<compile_context>
chip_gen: v7x
topology: tpu7x:2x2x1
jax: 0.10.0
libtpu: 0.0.40
codegen_flags: <defaults>
</compile_context>

<pallas_src>
import jax
import jax.numpy as jnp
from jax import lax
from jax.experimental import pallas as pl
from jax.experimental.pallas import tpu as pltpu

LANE = 128


def bottleneck_kernel(top_ref, x_ref, bot_ref,
                      w1_ref, s1_ref, b1_ref,
                      w2_ref, s2_ref, b2_ref,
                      w3_ref, s3_ref, b3_ref,
                      out_ref):
    # top_ref/bot_ref: (1, 1, W, Cin)   one-row halos (clamped rows off-image,
    #                                    zeroed in-kernel by the row mask)
    # x_ref:           (1, TH, W, Cin)  interior rows of this spatial tile
    # w1_ref: (Cin, P)      conv1 1x1 as matmul              (bf16)
    # w2_ref: (9, P, P)     conv2 3x3 weights, [ky*3+kx]     (bf16)
    # w3_ref: (P, Cout)     conv3 1x1 as matmul              (bf16)
    # s*/b*:  (1, C)        folded eval-mode BatchNorm scale / bias (f32)
    # out_ref: (1, TH, W, Cout)
    _, TH, W, Cin = x_ref.shape
    Pp = w1_ref.shape[1]
    Cout = w3_ref.shape[1]
    M = (TH + 2) * W
    bf16 = jnp.bfloat16

    ht = pl.program_id(1)
    nT = pl.num_programs(1)

    # bf16 row slices stay sublane-aligned only when W % 16 == 0.
    pre_cast = (W % 16 == 0)

    # ---- conv1 (1x1) as one (M, Cin) @ (Cin, P) bf16 matmul ------------------
    if pre_cast:
        xin = jnp.concatenate(
            [top_ref[0].reshape(W, Cin).astype(bf16),
             x_ref[0].reshape(TH * W, Cin).astype(bf16),
             bot_ref[0].reshape(W, Cin).astype(bf16)], axis=0)        # (M, Cin)
    else:
        xin = jnp.concatenate(
            [top_ref[0].reshape(W, Cin),
             x_ref[0].reshape(TH * W, Cin),
             bot_ref[0].reshape(W, Cin)], axis=0).astype(bf16)        # (M, Cin)

    h1 = jnp.dot(xin, w1_ref[...], preferred_element_type=jnp.float32)
    h1 = jnp.maximum(h1 * s1_ref[...] + b1_ref[...], 0.0)            # (M, P) f32

    # conv2's zero padding in H: halo rows outside the image must be zero
    # *after* bn1+relu.  Mask-multiply (no concat copy); only the first/last
    # spatial tile is affected, interior tiles keep everything.
    ridx = lax.broadcasted_iota(jnp.int32, (M, 1), 0)                 # flat row idx
    keep = ((ridx >= W) | (ht > 0)) & ((ridx < (TH + 1) * W) | (ht < nT - 1))
    h1 = h1 * keep.astype(jnp.float32)

    # ---- conv2 (3x3, pad=1, stride=1) + bn2 + relu ---------------------------
    # W-direction neighbours via sublane roll (XLU) + lane-invariant edge
    # masks; the roll wrap-around lands only in masked columns.
    colx = ridx % W                                                    # x coordinate
    h1_l = pltpu.roll(h1, shift=1, axis=0) * (colx >= 1).astype(jnp.float32)
    h1_r = pltpu.roll(h1, shift=M - 1, axis=0) * (colx <= W - 2).astype(jnp.float32)

    if pre_cast:
        taps = (h1_l.astype(bf16), h1.astype(bf16), h1_r.astype(bf16))
    else:
        taps = (h1_l, h1, h1_r)

    # 9 accumulating K=P matmuls — no im2col stack materialized.
    acc = jnp.zeros((TH * W, Pp), jnp.float32)
    for ky in range(3):
        rows = slice(ky * W, (ky + TH) * W)                           # aligned: W % 8 == 0
        for kx in range(3):
            a = taps[kx][rows]
            if not pre_cast:
                a = a.astype(bf16)
            acc = acc + jnp.dot(a, w2_ref[ky * 3 + kx],
                                preferred_element_type=jnp.float32)
    h2 = jnp.maximum(acc * s2_ref[...] + b2_ref[...], 0.0)            # (TH*W, P) f32

    # ---- conv3 (1x1) + bn3 ---------------------------------------------------
    h3 = jnp.dot(h2.astype(bf16), w3_ref[...],
                 preferred_element_type=jnp.float32)
    h3 = h3 * s3_ref[...] + b3_ref[...]                               # (TH*W, Cout)

    # ---- residual (stride=1, downsample=None -> identity) + relu -------------
    res = x_ref[0].reshape(TH * W, Cin).astype(jnp.float32)
    out = jnp.maximum(h3 + res, 0.0)
    out_ref[0] = out.reshape(TH, W, Cout).astype(out_ref.dtype)


def _round_up(x, m):
    return ((x + m - 1) // m) * m


def _pad_last(a, target):
    pad = target - a.shape[-1]
    if pad == 0:
        return a
    return jnp.pad(a, [(0, 0)] * (a.ndim - 1) + [(0, pad)])


def fold_bn(gamma, beta, mean, var, eps=1e-5):
    scale = gamma / jnp.sqrt(var + eps)
    bias = beta - mean * scale
    return scale[None, :], bias[None, :]


def _vmem_capacity_bytes():
    try:
        cap = int(pltpu.get_tpu_info().vmem_capacity_bytes)
        if cap > 0:
            return cap
    except Exception:
        pass
    return 64 * 1024 * 1024            # assume the smallest generation (v7x)


def _choose_tile_h(H, W, cin, pp, cout, budget_bytes):
    """Largest divisor of H whose per-step VMEM footprint fits the budget."""
    f32, bf = 4, 2

    def est(th):
        m = (th + 2) * W
        io = 2 * (th * W * cin * f32 + 2 * W * cin * f32 + th * W * cout * f32)
        # Count weights x2 (conservative: covers the double-buffered fallback).
        wts = 2 * ((cin * pp + 9 * pp * pp + pp * cout) * bf
                   + (4 * pp + 2 * cout) * f32)
        live = (m * cin * bf                      # xin (bf16)
                + 3 * m * pp * (f32 + bf)         # h1/h1_l/h1_r + bf16 casts
                + th * W * (2 * pp + 2 * cout) * f32)   # acc/h2 + h3/out
        return io + wts + live + live // 4        # 25% headroom for temporaries

    for th in range(H, 0, -1):
        if H % th == 0 and est(th) <= budget_bytes:
            return th
    return 1


def bottleneck_pallas(x_nhwc, w1, s1, b1, w2_hwio, s2, b2, w3, s3, b3, *, tile_h=None):
    N, H, W, Cin = x_nhwc.shape
    P = w1.shape[1]
    Cout = w3.shape[1]
    assert Cin == Cout, "identity residual requires inplanes == planes * expansion"
    assert W % 8 == 0, "W must be a multiple of 8 (sublane) for aligned slices"

    # Lane-dense channels: pad Cin / P / Cout up to multiples of 128 (no-op at
    # real ResNet widths).  Padded scale/bias are zero so padded lanes stay 0.
    Cin_p = _round_up(Cin, LANE)
    P_p = _round_up(P, LANE)
    Cout_p = _round_up(Cout, LANE)
    bf16 = jnp.bfloat16

    xp = _pad_last(x_nhwc, Cin_p)
    w1p = jnp.pad(w1, ((0, Cin_p - Cin), (0, P_p - P))).astype(bf16)
    w3p = jnp.pad(w3, ((0, P_p - P), (0, Cout_p - Cout))).astype(bf16)
    w2p = jnp.pad(w2_hwio, ((0, 0), (0, 0), (0, P_p - P), (0, P_p - P))).astype(bf16)
    w2p = w2p.reshape(9, P_p, P_p)                     # [ky*3+kx, cin, cout]
    s1p, b1p = _pad_last(s1, P_p), _pad_last(b1, P_p)
    s2p, b2p = _pad_last(s2, P_p), _pad_last(b2, P_p)
    s3p, b3p = _pad_last(s3, Cout_p), _pad_last(b3, Cout_p)

    vmem_cap = _vmem_capacity_bytes()                  # 64 MiB on v7x, 128 on v5e/v6e
    if tile_h is None:
        TH = _choose_tile_h(H, W, Cin_p, P_p, Cout_p, int(vmem_cap * 0.70))
    else:
        TH = tile_h
    assert H % TH == 0
    nT = H // TH
    vmem_limit = int(min(vmem_cap * 0.9, 110 * 1024 * 1024))

    def _in_specs(single_buffer_weights):
        wkw = {"pipeline_mode": pl.Buffered(1)} if single_buffer_weights else {}
        return [
            # 1-row halos fetched straight from xp with clamped row indices
            # (off-image rows are zeroed in-kernel by the row mask).
            pl.BlockSpec((1, 1, W, Cin_p),
                         lambda n, t: (n, jnp.maximum(t * TH - 1, 0), 0, 0)),
            pl.BlockSpec((1, TH, W, Cin_p), lambda n, t: (n, t, 0, 0)),
            pl.BlockSpec((1, 1, W, Cin_p),
                         lambda n, t: (n, jnp.minimum(t * TH + TH, H - 1), 0, 0)),
            # Grid-invariant weights / BN params (single-buffered if supported).
            pl.BlockSpec((Cin_p, P_p), lambda n, t: (0, 0), **wkw),       # w1
            pl.BlockSpec((1, P_p), lambda n, t: (0, 0), **wkw),           # s1
            pl.BlockSpec((1, P_p), lambda n, t: (0, 0), **wkw),           # b1
            pl.BlockSpec((9, P_p, P_p), lambda n, t: (0, 0, 0), **wkw),   # w2
            pl.BlockSpec((1, P_p), lambda n, t: (0, 0), **wkw),           # s2
            pl.BlockSpec((1, P_p), lambda n, t: (0, 0), **wkw),           # b2
            pl.BlockSpec((P_p, Cout_p), lambda n, t: (0, 0), **wkw),      # w3
            pl.BlockSpec((1, Cout_p), lambda n, t: (0, 0), **wkw),        # s3
            pl.BlockSpec((1, Cout_p), lambda n, t: (0, 0), **wkw),        # b3
        ]

    def _call(single_buffer_weights):
        return pl.pallas_call(
            bottleneck_kernel,
            out_shape=jax.ShapeDtypeStruct((N, H, W, Cout_p), x_nhwc.dtype),
            grid_spec=pltpu.PrefetchScalarGridSpec(
                num_scalar_prefetch=0,
                grid=(N, nT),
                in_specs=_in_specs(single_buffer_weights),
                out_specs=pl.BlockSpec((1, TH, W, Cout_p),
                                       lambda n, t: (n, t, 0, 0)),
            ),
            compiler_params=pltpu.CompilerParams(
                dimension_semantics=("parallel", "parallel"),
                vmem_limit_bytes=vmem_limit,
            ),
        )(xp, xp, xp, w1p, s1p, b1p, w2p, s2p, b2p, w3p, s3p, b3p)

    try:
        out = _call(True)
    except Exception:
        # Fallback: double-buffered weights (older pipeline_mode support).
        out = _call(False)
    return out[..., :Cout]


def reference_forward(x_nhwc, params):
    """Pure-JAX reference (lax conv, eval-mode BN) for correctness check."""
    dn = ('NHWC', 'HWIO', 'NHWC')
    eps = 1e-5

    def bn(y, g, b, m, v):
        return (y - m) / jnp.sqrt(v + eps) * g + b

    out = lax.conv_general_dilated(x_nhwc, params['w1_hwio'], (1, 1), 'VALID',
                                   dimension_numbers=dn)
    out = jnp.maximum(bn(out, *params['bn1']), 0.0)
    out = lax.conv_general_dilated(out, params['w2_hwio'], (1, 1),
                                   ((1, 1), (1, 1)), dimension_numbers=dn)
    out = jnp.maximum(bn(out, *params['bn2']), 0.0)
    out = lax.conv_general_dilated(out, params['w3_hwio'], (1, 1), 'VALID',
                                   dimension_numbers=dn)
    out = bn(out, *params['bn3'])
    return jnp.maximum(out + x_nhwc, 0.0)


if __name__ == "__main__":
    # Small shapes: batch=2, inplanes=16, planes=4 (planes*expansion == inplanes),
    # spatial 16x16, stride=1, downsample=None.
    N, inplanes, planes, H, W = 2, 16, 4, 16, 16
    Cout = planes * 4

    key = jax.random.PRNGKey(0)
    keys = jax.random.split(key, 8)

    w1_hwio = 0.1 * jax.random.normal(keys[0], (1, 1, inplanes, planes), jnp.float32)
    w2_hwio = 0.1 * jax.random.normal(keys[1], (3, 3, planes, planes), jnp.float32)
    w3_hwio = 0.1 * jax.random.normal(keys[2], (1, 1, planes, Cout), jnp.float32)

    def bn_params(k, c):
        k1, k2, k3, k4 = jax.random.split(k, 4)
        gamma = 1.0 + 0.1 * jax.random.normal(k1, (c,), jnp.float32)
        beta = 0.1 * jax.random.normal(k2, (c,), jnp.float32)
        mean = 0.1 * jax.random.normal(k3, (c,), jnp.float32)
        var = 0.5 + jnp.abs(jax.random.normal(k4, (c,), jnp.float32))
        return gamma, beta, mean, var

    bn1 = bn_params(keys[3], planes)
    bn2 = bn_params(keys[4], planes)
    bn3 = bn_params(keys[5], Cout)

    s1, b1 = fold_bn(*bn1)
    s2, b2 = fold_bn(*bn2)
    s3, b3 = fold_bn(*bn3)

    w1 = w1_hwio.reshape(inplanes, planes)
    w3 = w3_hwio.reshape(planes, Cout)

    # Input: PyTorch NCHW, transposed to NHWC for the kernel.
    x_nchw = jax.random.normal(keys[6], (N, inplanes, H, W), jnp.float32)
    x_nhwc = jnp.transpose(x_nchw, (0, 2, 3, 1))

    out_nhwc = bottleneck_pallas(x_nhwc, w1, s1, b1, w2_hwio, s2, b2, w3, s3, b3)
    out_nchw = jnp.transpose(out_nhwc, (0, 3, 1, 2))
    jax.block_until_ready(out_nchw)

    ref_nhwc = reference_forward(
        x_nhwc,
        dict(w1_hwio=w1_hwio, w2_hwio=w2_hwio, w3_hwio=w3_hwio,
             bn1=bn1, bn2=bn2, bn3=bn3))
    assert out_nchw.shape == (N, Cout, H, W)
    err = float(jnp.max(jnp.abs(out_nhwc - ref_nhwc)))
    # bf16 MXU operands vs f32 reference -> slightly relaxed tolerance.
    assert jnp.allclose(out_nhwc, ref_nhwc, atol=2e-2, rtol=2e-2), err

    # Also exercise the multi-tile (halo) path explicitly with TH = H // 2.
    out_tiled = bottleneck_pallas(x_nhwc, w1, s1, b1, w2_hwio, s2, b2, w3, s3, b3,
                                  tile_h=H // 2)
    jax.block_until_ready(out_tiled)
    err_t = float(jnp.max(jnp.abs(out_tiled - ref_nhwc)))
    assert jnp.allclose(out_tiled, ref_nhwc, atol=2e-2, rtol=2e-2), err_t

    print("KERNEL_OK")
</pallas_src>

<mosaic_0001>
module attributes {stable_mosaic.version = 11 : i64} {
  func.func @bottleneck_kernel(%arg0: i32, %arg1: i32, %arg2: memref<1x1x16x128xf32, #tpu.memory_space<vmem>>, %arg3: memref<1x16x16x128xf32, #tpu.memory_space<vmem>>, %arg4: memref<1x1x16x128xf32, #tpu.memory_space<vmem>>, %arg5: memref<128x128xbf16, #tpu.memory_space<vmem>>, %arg6: memref<1x128xf32, #tpu.memory_space<vmem>>, %arg7: memref<1x128xf32, #tpu.memory_space<vmem>>, %arg8: memref<9x128x128xbf16, #tpu.memory_space<vmem>>, %arg9: memref<1x128xf32, #tpu.memory_space<vmem>>, %arg10: memref<1x128xf32, #tpu.memory_space<vmem>>, %arg11: memref<128x128xbf16, #tpu.memory_space<vmem>>, %arg12: memref<1x128xf32, #tpu.memory_space<vmem>>, %arg13: memref<1x128xf32, #tpu.memory_space<vmem>>, %arg14: memref<1x16x16x128xf32, #tpu.memory_space<vmem>>) attributes {dimension_semantics = [#tpu.dimension_semantics<parallel>, #tpu.dimension_semantics<parallel>], iteration_bounds = array<i64: 2, 1>, scalar_prefetch = 0 : i64, scratch_operands = 0 : i64, tpu.core_type = #tpu.core_type<tc>, window_params = [{transform_indices = @transform_0, window_bounds = array<i64: 1, 1, 16, 128>}, {transform_indices = @transform_1, window_bounds = array<i64: 1, 16, 16, 128>}, {transform_indices = @transform_2, window_bounds = array<i64: 1, 1, 16, 128>}, {pipeline_mode = #tpu.pipeline_mode<synchronous>, transform_indices = @transform_3, window_bounds = array<i64: 128, 128>}, {pipeline_mode = #tpu.pipeline_mode<synchronous>, transform_indices = @transform_4, window_bounds = array<i64: 1, 128>}, {pipeline_mode = #tpu.pipeline_mode<synchronous>, transform_indices = @transform_5, window_bounds = array<i64: 1, 128>}, {pipeline_mode = #tpu.pipeline_mode<synchronous>, transform_indices = @transform_6, window_bounds = array<i64: 9, 128, 128>}, {pipeline_mode = #tpu.pipeline_mode<synchronous>, transform_indices = @transform_7, window_bounds = array<i64: 1, 128>}, {pipeline_mode = #tpu.pipeline_mode<synchronous>, transform_indices = @transform_8, window_bounds = array<i64: 1, 128>}, {pipeline_mode = #tpu.pipeline_mode<synchronous>, transform_indices = @transform_9, window_bounds = array<i64: 128, 128>}, {pipeline_mode = #tpu.pipeline_mode<synchronous>, transform_indices = @transform_10, window_bounds = array<i64: 1, 128>}, {pipeline_mode = #tpu.pipeline_mode<synchronous>, transform_indices = @transform_11, window_bounds = array<i64: 1, 128>}, {transform_indices = @transform_12, window_bounds = array<i64: 1, 16, 16, 128>}]} {
    %c0 = arith.constant 0 : index
    %c0_0 = arith.constant 0 : index
    %c0_1 = arith.constant 0 : index
    %c0_2 = arith.constant 0 : index
    %0 = vector.load %arg2[%c0, %c0_0, %c0_1, %c0_2] : memref<1x1x16x128xf32, #tpu.memory_space<vmem>>, vector<1x1x16x128xf32>
    %1 = vector.shape_cast %0 : vector<1x1x16x128xf32> to vector<1x16x128xf32>
    %2 = vector.shape_cast %1 : vector<1x16x128xf32> to vector<16x128xf32>
    %3 = arith.truncf %2 : vector<16x128xf32> to vector<16x128xbf16>
    %c0_3 = arith.constant 0 : index
    %c0_4 = arith.constant 0 : index
    %c0_5 = arith.constant 0 : index
    %c0_6 = arith.constant 0 : index
    %4 = vector.load %arg3[%c0_3, %c0_4, %c0_5, %c0_6] : memref<1x16x16x128xf32, #tpu.memory_space<vmem>>, vector<1x16x16x128xf32>
    %5 = vector.shape_cast %4 : vector<1x16x16x128xf32> to vector<16x16x128xf32>
    %6 = vector.shape_cast %5 : vector<16x16x128xf32> to vector<256x128xf32>
    %7 = arith.truncf %6 : vector<256x128xf32> to vector<256x128xbf16>
    %c0_7 = arith.constant 0 : index
    %c0_8 = arith.constant 0 : index
    %c0_9 = arith.constant 0 : index
    %c0_10 = arith.constant 0 : index
    %8 = vector.load %arg4[%c0_7, %c0_8, %c0_9, %c0_10] : memref<1x1x16x128xf32, #tpu.memory_space<vmem>>, vector<1x1x16x128xf32>
    %9 = vector.shape_cast %8 : vector<1x1x16x128xf32> to vector<1x16x128xf32>
    %10 = vector.shape_cast %9 : vector<1x16x128xf32> to vector<16x128xf32>
    %11 = arith.truncf %10 : vector<16x128xf32> to vector<16x128xbf16>
    %12 = tpu.concatenate %3, %7, %11 in 0 : vector<16x128xbf16>, vector<256x128xbf16>, vector<16x128xbf16> -> vector<288x128xbf16>
    %c0_11 = arith.constant 0 : index
    %c0_12 = arith.constant 0 : index
    %13 = vector.load %arg5[%c0_11, %c0_12] : memref<128x128xbf16, #tpu.memory_space<vmem>>, vector<128x128xbf16>
    %cst = arith.constant dense<0.000000e+00> : vector<288x128xf32>
    %14 = tpu.matmul %12, %13, %cst {dimension_numbers = #tpu.dot_dimension_numbers<[1], [0], [0], [1], [0, 0, 1, 1], [], []>} : vector<288x128xbf16>, vector<128x128xbf16>, vector<288x128xf32> -> vector<288x128xf32>
    %c0_13 = arith.constant 0 : index
    %c0_14 = arith.constant 0 : index
    %15 = vector.load %arg6[%c0_13, %c0_14] : memref<1x128xf32, #tpu.memory_space<vmem>>, vector<1x128xf32>
    %16 = vector.broadcast %15 : vector<1x128xf32> to vector<288x128xf32>
    %17 = arith.mulf %14, %16 : vector<288x128xf32>
    %c0_15 = arith.constant 0 : index
    %c0_16 = arith.constant 0 : index
    %18 = vector.load %arg7[%c0_15, %c0_16] : memref<1x128xf32, #tpu.memory_space<vmem>>, vector<1x128xf32>
    %19 = vector.broadcast %18 : vector<1x128xf32> to vector<288x128xf32>
    %20 = arith.addf %17, %19 : vector<288x128xf32>
    %cst_17 = arith.constant 0.000000e+00 : f32
    %21 = vector.broadcast %cst_17 : f32 to vector<288x128xf32>
    %22 = arith.maximumf %20, %21 : vector<288x128xf32>
    %23 = tpu.iota {dimensions = array<i32: 0>} : vector<288x1xi32>
    %c16_i32 = arith.constant 16 : i32
    %24 = vector.broadcast %c16_i32 : i32 to vector<288x1xi32>
    %25 = arith.cmpi sge, %23, %24 : vector<288x1xi32>
    %c0_i32 = arith.constant 0 : i32
    %26 = arith.cmpi sgt, %arg1, %c0_i32 : i32
    %27 = vector.broadcast %26 : i1 to vector<288x1xi1>
    %28 = arith.ori %25, %27 : vector<288x1xi1>
    %c272_i32 = arith.constant 272 : i32
    %29 = vector.broadcast %c272_i32 : i32 to vector<288x1xi32>
    %30 = arith.cmpi slt, %23, %29 : vector<288x1xi32>
    %c0_i32_18 = arith.constant 0 : i32
    %31 = arith.cmpi slt, %arg1, %c0_i32_18 : i32
    %32 = vector.broadcast %31 : i1 to vector<288x1xi1>
    %33 = arith.ori %30, %32 : vector<288x1xi1>
    %34 = arith.andi %28, %33 : vector<288x1xi1>
    %35 = arith.extui %34 : vector<288x1xi1> to vector<288x1xi32>
    %36 = arith.sitofp %35 : vector<288x1xi32> to vector<288x1xf32>
    %37 = vector.broadcast %36 : vector<288x1xf32> to vector<288x128xf32>
    %38 = arith.mulf %22, %37 : vector<288x128xf32>
    %c16_i32_19 = arith.constant 16 : i32
    %c0_i32_20 = arith.constant 0 : i32
    %39 = arith.cmpi eq, %c16_i32_19, %c0_i32_20 : i32
    %c1_i32 = arith.constant 1 : i32
    %40 = arith.select %39, %c1_i32, %c16_i32_19 : i32
    %41 = vector.broadcast %40 : i32 to vector<288x1xi32>
    %42 = arith.remsi %23, %41 : vector<288x1xi32>
    %c0_i32_21 = arith.constant 0 : i32
    %43 = vector.broadcast %c0_i32_21 : i32 to vector<288x1xi32>
    %44 = arith.cmpi ne, %42, %43 : vector<288x1xi32>
    %c0_i32_22 = arith.constant 0 : i32
    %45 = vector.broadcast %c0_i32_22 : i32 to vector<288x1xi32>
    %46 = arith.cmpi slt, %42, %45 : vector<288x1xi32>
    %c0_i32_23 = arith.constant 0 : i32
    %47 = arith.cmpi slt, %40, %c0_i32_23 : i32
    %48 = vector.broadcast %47 : i1 to vector<288x1xi1>
    %49 = vector.broadcast %48 : vector<288x1xi1> to vector<288x1xi1>
    %50 = arith.xori %46, %49 : vector<288x1xi1>
    %51 = arith.andi %50, %44 : vector<288x1xi1>
    %52 = vector.broadcast %40 : i32 to vector<288x1xi32>
    %53 = arith.addi %42, %52 : vector<288x1xi32>
    %54 = arith.select %51, %53, %42 : vector<288x1xi1>, vector<288x1xi32>
    %c1_i32_24 = arith.constant 1 : i32
    %55 = tpu.dynamic_rotate %38 by %c1_i32_24 dim 0 : vector<288x128xf32>, i32 -> vector<288x128xf32>
    %c1_i32_25 = arith.constant 1 : i32
    %56 = vector.broadcast %c1_i32_25 : i32 to vector<288x1xi32>
    %57 = arith.cmpi sge, %54, %56 : vector<288x1xi32>
    %58 = arith.extui %57 : vector<288x1xi1> to vector<288x1xi32>
    %59 = arith.sitofp %58 : vector<288x1xi32> to vector<288x1xf32>
    %60 = vector.broadcast %59 : vector<288x1xf32> to vector<288x128xf32>
    %61 = arith.mulf %55, %60 : vector<288x128xf32>
    %c287_i32 = arith.constant 287 : i32
    %62 = tpu.dynamic_rotate %38 by %c287_i32 dim 0 : vector<288x128xf32>, i32 -> vector<288x128xf32>
    %c14_i32 = arith.constant 14 : i32
    %63 = vector.broadcast %c14_i32 : i32 to vector<288x1xi32>
    %64 = arith.cmpi sle, %54, %63 : vector<288x1xi32>
    %65 = arith.extui %64 : vector<288x1xi1> to vector<288x1xi32>
    %66 = arith.sitofp %65 : vector<288x1xi32> to vector<288x1xf32>
    %67 = vector.broadcast %66 : vector<288x1xf32> to vector<288x128xf32>
    %68 = arith.mulf %62, %67 : vector<288x128xf32>
    %69 = arith.truncf %61 : vector<288x128xf32> to vector<288x128xbf16>
    %70 = arith.truncf %38 : vector<288x128xf32> to vector<288x128xbf16>
    %71 = arith.truncf %68 : vector<288x128xf32> to vector<288x128xbf16>
    %cst_26 = arith.constant 0.000000e+00 : f32
    %72 = vector.broadcast %cst_26 : f32 to vector<256x128xf32>
    %73 = vector.extract_strided_slice %69 {offsets = [0, 0], sizes = [256, 128], strides = [1, 1]} : vector<288x128xbf16> to vector<256x128xbf16>
    %c0_27 = arith.constant 0 : index
    %c0_28 = arith.constant 0 : index
    %c0_29 = arith.constant 0 : index
    %74 = vector.load %arg8[%c0_27, %c0_28, %c0_29] : memref<9x128x128xbf16, #tpu.memory_space<vmem>>, vector<1x128x128xbf16>
    %75 = vector.shape_cast %74 : vector<1x128x128xbf16> to vector<128x128xbf16>
    %cst_30 = arith.constant dense<0.000000e+00> : vector<256x128xf32>
    %76 = tpu.matmul %73, %75, %cst_30 {dimension_numbers = #tpu.dot_dimension_numbers<[1], [0], [0], [1], [0, 0, 1, 1], [], []>} : vector<256x128xbf16>, vector<128x128xbf16>, vector<256x128xf32> -> vector<256x128xf32>
    %77 = arith.addf %72, %76 : vector<256x128xf32>
    %78 = vector.extract_strided_slice %70 {offsets = [0, 0], sizes = [256, 128], strides = [1, 1]} : vector<288x128xbf16> to vector<256x128xbf16>
    %c1 = arith.constant 1 : index
    %c0_31 = arith.constant 0 : index
    %c0_32 = arith.constant 0 : index
    %79 = vector.load %arg8[%c1, %c0_31, %c0_32] : memref<9x128x128xbf16, #tpu.memory_space<vmem>>, vector<1x128x128xbf16>
    %80 = vector.shape_cast %79 : vector<1x128x128xbf16> to vector<128x128xbf16>
    %cst_33 = arith.constant dense<0.000000e+00> : vector<256x128xf32>
    %81 = tpu.matmul %78, %80, %cst_33 {dimension_numbers = #tpu.dot_dimension_numbers<[1], [0], [0], [1], [0, 0, 1, 1], [], []>} : vector<256x128xbf16>, vector<128x128xbf16>, vector<256x128xf32> -> vector<256x128xf32>
    %82 = arith.addf %77, %81 : vector<256x128xf32>
    %83 = vector.extract_strided_slice %71 {offsets = [0, 0], sizes = [256, 128], strides = [1, 1]} : vector<288x128xbf16> to vector<256x128xbf16>
    %c2 = arith.constant 2 : index
    %c0_34 = arith.constant 0 : index
    %c0_35 = arith.constant 0 : index
    %84 = vector.load %arg8[%c2, %c0_34, %c0_35] : memref<9x128x128xbf16, #tpu.memory_space<vmem>>, vector<1x128x128xbf16>
    %85 = vector.shape_cast %84 : vector<1x128x128xbf16> to vector<128x128xbf16>
    %cst_36 = arith.constant dense<0.000000e+00> : vector<256x128xf32>
    %86 = tpu.matmul %83, %85, %cst_36 {dimension_numbers = #tpu.dot_dimension_numbers<[1], [0], [0], [1], [0, 0, 1, 1], [], []>} : vector<256x128xbf16>, vector<128x128xbf16>, vector<256x128xf32> -> vector<256x128xf32>
    %87 = arith.addf %82, %86 : vector<256x128xf32>
    %88 = vector.extract_strided_slice %69 {offsets = [16, 0], sizes = [256, 128], strides = [1, 1]} : vector<288x128xbf16> to vector<256x128xbf16>
    %c3 = arith.constant 3 : index
    %c0_37 = arith.constant 0 : index
    %c0_38 = arith.constant 0 : index
    %89 = vector.load %arg8[%c3, %c0_37, %c0_38] : memref<9x128x128xbf16, #tpu.memory_space<vmem>>, vector<1x128x128xbf16>
    %90 = vector.shape_cast %89 : vector<1x128x128xbf16> to vector<128x128xbf16>
    %cst_39 = arith.constant dense<0.000000e+00> : vector<256x128xf32>
    %91 = tpu.matmul %88, %90, %cst_39 {dimension_numbers = #tpu.dot_dimension_numbers<[1], [0], [0], [1], [0, 0, 1, 1], [], []>} : vector<256x128xbf16>, vector<128x128xbf16>, vector<256x128xf32> -> vector<256x128xf32>
    %92 = arith.addf %87, %91 : vector<256x128xf32>
    %93 = vector.extract_strided_slice %70 {offsets = [16, 0], sizes = [256, 128], strides = [1, 1]} : vector<288x128xbf16> to vector<256x128xbf16>
    %c4 = arith.constant 4 : index
    %c0_40 = arith.constant 0 : index
    %c0_41 = arith.constant 0 : index
    %94 = vector.load %arg8[%c4, %c0_40, %c0_41] : memref<9x128x128xbf16, #tpu.memory_space<vmem>>, vector<1x128x128xbf16>
    %95 = vector.shape_cast %94 : vector<1x128x128xbf16> to vector<128x128xbf16>
    %cst_42 = arith.constant dense<0.000000e+00> : vector<256x128xf32>
    %96 = tpu.matmul %93, %95, %cst_42 {dimension_numbers = #tpu.dot_dimension_numbers<[1], [0], [0], [1], [0, 0, 1, 1], [], []>} : vector<256x128xbf16>, vector<128x128xbf16>, vector<256x128xf32> -> vector<256x128xf32>
    %97 = arith.addf %92, %96 : vector<256x128xf32>
    %98 = vector.extract_strided_slice %71 {offsets = [16, 0], sizes = [256, 128], strides = [1, 1]} : vector<288x128xbf16> to vector<256x128xbf16>
    %c5 = arith.constant 5 : index
    %c0_43 = arith.constant 0 : index
    %c0_44 = arith.constant 0 : index
    %99 = vector.load %arg8[%c5, %c0_43, %c0_44] : memref<9x128x128xbf16, #tpu.memory_space<vmem>>, vector<1x128x128xbf16>
    %100 = vector.shape_cast %99 : vector<1x128x128xbf16> to vector<128x128xbf16>
    %cst_45 = arith.constant dense<0.000000e+00> : vector<256x128xf32>
    %101 = tpu.matmul %98, %100, %cst_45 {dimension_numbers = #tpu.dot_dimension_numbers<[1], [0], [0], [1], [0, 0, 1, 1], [], []>} : vector<256x128xbf16>, vector<128x128xbf16>, vector<256x128xf32> -> vector<256x128xf32>
    %102 = arith.addf %97, %101 : vector<256x128xf32>
    %103 = vector.extract_strided_slice %69 {offsets = [32, 0], sizes = [256, 128], strides = [1, 1]} : vector<288x128xbf16> to vector<256x128xbf16>
    %c6 = arith.constant 6 : index
    %c0_46 = arith.constant 0 : index
    %c0_47 = arith.constant 0 : index
    %104 = vector.load %arg8[%c6, %c0_46, %c0_47] : memref<9x128x128xbf16, #tpu.memory_space<vmem>>, vector<1x128x128xbf16>
    %105 = vector.shape_cast %104 : vector<1x128x128xbf16> to vector<128x128xbf16>
    %cst_48 = arith.constant dense<0.000000e+00> : vector<256x128xf32>
    %106 = tpu.matmul %103, %105, %cst_48 {dimension_numbers = #tpu.dot_dimension_numbers<[1], [0], [0], [1], [0, 0, 1, 1], [], []>} : vector<256x128xbf16>, vector<128x128xbf16>, vector<256x128xf32> -> vector<256x128xf32>
    %107 = arith.addf %102, %106 : vector<256x128xf32>
    %108 = vector.extract_strided_slice %70 {offsets = [32, 0], sizes = [256, 128], strides = [1, 1]} : vector<288x128xbf16> to vector<256x128xbf16>
    %c7 = arith.constant 7 : index
    %c0_49 = arith.constant 0 : index
    %c0_50 = arith.constant 0 : index
    %109 = vector.load %arg8[%c7, %c0_49, %c0_50] : memref<9x128x128xbf16, #tpu.memory_space<vmem>>, vector<1x128x128xbf16>
    %110 = vector.shape_cast %109 : vector<1x128x128xbf16> to vector<128x128xbf16>
    %cst_51 = arith.constant dense<0.000000e+00> : vector<256x128xf32>
    %111 = tpu.matmul %108, %110, %cst_51 {dimension_numbers = #tpu.dot_dimension_numbers<[1], [0], [0], [1], [0, 0, 1, 1], [], []>} : vector<256x128xbf16>, vector<128x128xbf16>, vector<256x128xf32> -> vector<256x128xf32>
    %112 = arith.addf %107, %111 : vector<256x128xf32>
    %113 = vector.extract_strided_slice %71 {offsets = [32, 0], sizes = [256, 128], strides = [1, 1]} : vector<288x128xbf16> to vector<256x128xbf16>
    %c8 = arith.constant 8 : index
    %c0_52 = arith.constant 0 : index
    %c0_53 = arith.constant 0 : index
    %114 = vector.load %arg8[%c8, %c0_52, %c0_53] : memref<9x128x128xbf16, #tpu.memory_space<vmem>>, vector<1x128x128xbf16>
    %115 = vector.shape_cast %114 : vector<1x128x128xbf16> to vector<128x128xbf16>
    %cst_54 = arith.constant dense<0.000000e+00> : vector<256x128xf32>
    %116 = tpu.matmul %113, %115, %cst_54 {dimension_numbers = #tpu.dot_dimension_numbers<[1], [0], [0], [1], [0, 0, 1, 1], [], []>} : vector<256x128xbf16>, vector<128x128xbf16>, vector<256x128xf32> -> vector<256x128xf32>
    %117 = arith.addf %112, %116 : vector<256x128xf32>
    %c0_55 = arith.constant 0 : index
    %c0_56 = arith.constant 0 : index
    %118 = vector.load %arg9[%c0_55, %c0_56] : memref<1x128xf32, #tpu.memory_space<vmem>>, vector<1x128xf32>
    %119 = vector.broadcast %118 : vector<1x128xf32> to vector<256x128xf32>
    %120 = arith.mulf %117, %119 : vector<256x128xf32>
    %c0_57 = arith.constant 0 : index
    %c0_58 = arith.constant 0 : index
    %121 = vector.load %arg10[%c0_57, %c0_58] : memref<1x128xf32, #tpu.memory_space<vmem>>, vector<1x128xf32>
    %122 = vector.broadcast %121 : vector<1x128xf32> to vector<256x128xf32>
    %123 = arith.addf %120, %122 : vector<256x128xf32>
    %cst_59 = arith.constant 0.000000e+00 : f32
    %124 = vector.broadcast %cst_59 : f32 to vector<256x128xf32>
    %125 = arith.maximumf %123, %124 : vector<256x128xf32>
    %126 = arith.truncf %125 : vector<256x128xf32> to vector<256x128xbf16>
    %c0_60 = arith.constant 0 : index
    %c0_61 = arith.constant 0 : index
    %127 = vector.load %arg11[%c0_60, %c0_61] : memref<128x128xbf16, #tpu.memory_space<vmem>>, vector<128x128xbf16>
    %cst_62 = arith.constant dense<0.000000e+00> : vector<256x128xf32>
    %128 = tpu.matmul %126, %127, %cst_62 {dimension_numbers = #tpu.dot_dimension_numbers<[1], [0], [0], [1], [0, 0, 1, 1], [], []>} : vector<256x128xbf16>, vector<128x128xbf16>, vector<256x128xf32> -> vector<256x128xf32>
    %c0_63 = arith.constant 0 : index
    %c0_64 = arith.constant 0 : index
    %129 = vector.load %arg12[%c0_63, %c0_64] : memref<1x128xf32, #tpu.memory_space<vmem>>, vector<1x128xf32>
    %130 = vector.broadcast %129 : vector<1x128xf32> to vector<256x128xf32>
    %131 = arith.mulf %128, %130 : vector<256x128xf32>
    %c0_65 = arith.constant 0 : index
    %c0_66 = arith.constant 0 : index
    %132 = vector.load %arg13[%c0_65, %c0_66] : memref<1x128xf32, #tpu.memory_space<vmem>>, vector<1x128xf32>
    %133 = vector.broadcast %132 : vector<1x128xf32> to vector<256x128xf32>
    %134 = arith.addf %131, %133 : vector<256x128xf32>
    %c0_67 = arith.constant 0 : index
    %c0_68 = arith.constant 0 : index
    %c0_69 = arith.constant 0 : index
    %c0_70 = arith.constant 0 : index
    %135 = vector.load %arg3[%c0_67, %c0_68, %c0_69, %c0_70] : memref<1x16x16x128xf32, #tpu.memory_space<vmem>>, vector<1x16x16x128xf32>
    %136 = vector.shape_cast %135 : vector<1x16x16x128xf32> to vector<16x16x128xf32>
    %137 = vector.shape_cast %136 : vector<16x16x128xf32> to vector<256x128xf32>
    %138 = arith.addf %134, %137 : vector<256x128xf32>
    %cst_71 = arith.constant 0.000000e+00 : f32
    %139 = vector.broadcast %cst_71 : f32 to vector<256x128xf32>
    %140 = arith.maximumf %138, %139 : vector<256x128xf32>
    %141 = vector.shape_cast %140 : vector<256x128xf32> to vector<16x16x128xf32>
    %c0_72 = arith.constant 0 : index
    %c0_73 = arith.constant 0 : index
    %c0_74 = arith.constant 0 : index
    %c0_75 = arith.constant 0 : index
    %142 = vector.load %arg14[%c0_72, %c0_73, %c0_74, %c0_75] : memref<1x16x16x128xf32, #tpu.memory_space<vmem>>, vector<1x16x16x128xf32>
    %143 = vector.shape_cast %142 : vector<1x16x16x128xf32> to vector<16x16x128xf32>
    %144 = vector.shape_cast %141 : vector<16x16x128xf32> to vector<1x16x16x128xf32>
    tpu.vector_store %arg14[%c0_72, %c0_73, %c0_74, %c0_75], %144 {strides = array<i32>} : memref<1x16x16x128xf32, #tpu.memory_space<vmem>>, vector<1x16x16x128xf32>,
    return
  }
  func.func @transform_0(%arg0: i32, %arg1: i32) -> (i32, i32, i32, i32) {
    %c16_i32 = arith.constant 16 : i32
    %0 = arith.muli %arg1, %c16_i32 : i32
    %c1_i32 = arith.constant 1 : i32
    %1 = arith.subi %0, %c1_i32 : i32
    %c0_i32 = arith.constant 0 : i32
    %2 = arith.maxsi %1, %c0_i32 : i32
    %c0_i32_0 = arith.constant 0 : i32
    %c0_i32_1 = arith.constant 0 : i32
    %c0_i32_2 = arith.constant 0 : i32
    return %arg0, %2, %c0_i32_0, %c0_i32_1 : i32, i32, i32, i32
  }
  func.func @transform_1(%arg0: i32, %arg1: i32) -> (i32, i32, i32, i32) {
    %c0_i32 = arith.constant 0 : i32
    %c0_i32_0 = arith.constant 0 : i32
    %c0_i32_1 = arith.constant 0 : i32
    return %arg0, %arg1, %c0_i32, %c0_i32_0 : i32, i32, i32, i32
  }
  func.func @transform_2(%arg0: i32, %arg1: i32) -> (i32, i32, i32, i32) {
    %c16_i32 = arith.constant 16 : i32
    %0 = arith.muli %arg1, %c16_i32 : i32
    %c16_i32_0 = arith.constant 16 : i32
    %1 = arith.addi %0, %c16_i32_0 : i32
    %c15_i32 = arith.constant 15 : i32
    %2 = arith.minsi %1, %c15_i32 : i32
    %c0_i32 = arith.constant 0 : i32
    %c0_i32_1 = arith.constant 0 : i32
    %c0_i32_2 = arith.constant 0 : i32
    return %arg0, %2, %c0_i32, %c0_i32_1 : i32, i32, i32, i32
  }
  func.func @transform_3(%arg0: i32, %arg1: i32) -> (i32, i32) {
    %c0_i32 = arith.constant 0 : i32
    %c0_i32_0 = arith.constant 0 : i32
    %c0_i32_1 = arith.constant 0 : i32
    return %c0_i32, %c0_i32_0 : i32, i32
  }
  func.func @transform_4(%arg0: i32, %arg1: i32) -> (i32, i32) {
    %c0_i32 = arith.constant 0 : i32
    %c0_i32_0 = arith.constant 0 : i32
    %c0_i32_1 = arith.constant 0 : i32
    return %c0_i32, %c0_i32_0 : i32, i32
  }
  func.func @transform_5(%arg0: i32, %arg1: i32) -> (i32, i32) {
    %c0_i32 = arith.constant 0 : i32
    %c0_i32_0 = arith.constant 0 : i32
    %c0_i32_1 = arith.constant 0 : i32
    return %c0_i32, %c0_i32_0 : i32, i32
  }
  func.func @transform_6(%arg0: i32, %arg1: i32) -> (i32, i32, i32) {
    %c0_i32 = arith.constant 0 : i32
    %c0_i32_0 = arith.constant 0 : i32
    %c0_i32_1 = arith.constant 0 : i32
    %c0_i32_2 = arith.constant 0 : i32
    return %c0_i32, %c0_i32_0, %c0_i32_1 : i32, i32, i32
  }
  func.func @transform_7(%arg0: i32, %arg1: i32) -> (i32, i32) {
    %c0_i32 = arith.constant 0 : i32
    %c0_i32_0 = arith.constant 0 : i32
    %c0_i32_1 = arith.constant 0 : i32
    return %c0_i32, %c0_i32_0 : i32, i32
  }
  func.func @transform_8(%arg0: i32, %arg1: i32) -> (i32, i32) {
    %c0_i32 = arith.constant 0 : i32
    %c0_i32_0 = arith.constant 0 : i32
    %c0_i32_1 = arith.constant 0 : i32
    return %c0_i32, %c0_i32_0 : i32, i32
  }
  func.func @transform_9(%arg0: i32, %arg1: i32) -> (i32, i32) {
    %c0_i32 = arith.constant 0 : i32
    %c0_i32_0 = arith.constant 0 : i32
    %c0_i32_1 = arith.constant 0 : i32
    return %c0_i32, %c0_i32_0 : i32, i32
  }
  func.func @transform_10(%arg0: i32, %arg1: i32) -> (i32, i32) {
    %c0_i32 = arith.constant 0 : i32
    %c0_i32_0 = arith.constant 0 : i32
    %c0_i32_1 = arith.constant 0 : i32
    return %c0_i32, %c0_i32_0 : i32, i32
  }
  func.func @transform_11(%arg0: i32, %arg1: i32) -> (i32, i32) {
    %c0_i32 = arith.constant 0 : i32
    %c0_i32_0 = arith.constant 0 : i32
    %c0_i32_1 = arith.constant 0 : i32
    return %c0_i32, %c0_i32_0 : i32, i32
  }
  func.func @transform_12(%arg0: i32, %arg1: i32) -> (i32, i32, i32, i32) {
    %c0_i32 = arith.constant 0 : i32
    %c0_i32_0 = arith.constant 0 : i32
    %c0_i32_1 = arith.constant 0 : i32
    return %arg0, %arg1, %c0_i32, %c0_i32_0 : i32, i32, i32, i32
  }
}

module attributes {stable_mosaic.version = 11 : i64} {
  func.func @bottleneck_kernel(%arg0: i32, %arg1: i32, %arg2: memref<1x1x16x128xf32, #tpu.memory_space<vmem>>, %arg3: memref<1x16x16x128xf32, #tpu.memory_space<vmem>>, %arg4: memref<1x1x16x128xf32, #tpu.memory_space<vmem>>, %arg5: memref<128x128xbf16, #tpu.memory_space<vmem>>, %arg6: memref<1x128xf32, #tpu.memory_space<vmem>>, %arg7: memref<1x128xf32, #tpu.memory_space<vmem>>, %arg8: memref<9x128x128xbf16, #tpu.memory_space<vmem>>, %arg9: memref<1x128xf32, #tpu.memory_space<vmem>>, %arg10: memref<1x128xf32, #tpu.memory_space<vmem>>, %arg11: memref<128x128xbf16, #tpu.memory_space<vmem>>, %arg12: memref<1x128xf32, #tpu.memory_space<vmem>>, %arg13: memref<1x128xf32, #tpu.memory_space<vmem>>, %arg14: memref<1x16x16x128xf32, #tpu.memory_space<vmem>>) attributes {dimension_semantics = [#tpu.dimension_semantics<parallel>, #tpu.dimension_semantics<parallel>], iteration_bounds = array<i64: 2, 1>, scalar_prefetch = 0 : i64, scratch_operands = 0 : i64, tpu.core_type = #tpu.core_type<tc>, window_params = [{transform_indices = @transform_0, window_bounds = array<i64: 1, 1, 16, 128>}, {transform_indices = @transform_1, window_bounds = array<i64: 1, 16, 16, 128>}, {transform_indices = @transform_2, window_bounds = array<i64: 1, 1, 16, 128>}, {pipeline_mode = #tpu.pipeline_mode<synchronous>, transform_indices = @transform_3, window_bounds = array<i64: 128, 128>}, {pipeline_mode = #tpu.pipeline_mode<synchronous>, transform_indices = @transform_4, window_bounds = array<i64: 1, 128>}, {pipeline_mode = #tpu.pipeline_mode<synchronous>, transform_indices = @transform_5, window_bounds = array<i64: 1, 128>}, {pipeline_mode = #tpu.pipeline_mode<synchronous>, transform_indices = @transform_6, window_bounds = array<i64: 9, 128, 128>}, {pipeline_mode = #tpu.pipeline_mode<synchronous>, transform_indices = @transform_7, window_bounds = array<i64: 1, 128>}, {pipeline_mode = #tpu.pipeline_mode<synchronous>, transform_indices = @transform_8, window_bounds = array<i64: 1, 128>}, {pipeline_mode = #tpu.pipeline_mode<synchronous>, transform_indices = @transform_9, window_bounds = array<i64: 128, 128>}, {pipeline_mode = #tpu.pipeline_mode<synchronous>, transform_indices = @transform_10, window_bounds = array<i64: 1, 128>}, {pipeline_mode = #tpu.pipeline_mode<synchronous>, transform_indices = @transform_11, window_bounds = array<i64: 1, 128>}, {transform_indices = @transform_12, window_bounds = array<i64: 1, 16, 16, 128>}]} {
    %c0 = arith.constant 0 : index
    %c0_0 = arith.constant 0 : index
    %c0_1 = arith.constant 0 : index
    %c0_2 = arith.constant 0 : index
    %0 = vector.load %arg2[%c0, %c0_0, %c0_1, %c0_2] : memref<1x1x16x128xf32, #tpu.memory_space<vmem>>, vector<1x1x16x128xf32>
    %1 = vector.shape_cast %0 : vector<1x1x16x128xf32> to vector<1x16x128xf32>
    %2 = vector.shape_cast %1 : vector<1x16x128xf32> to vector<16x128xf32>
    %3 = arith.truncf %2 : vector<16x128xf32> to vector<16x128xbf16>
    %c0_3 = arith.constant 0 : index
    %c0_4 = arith.constant 0 : index
    %c0_5 = arith.constant 0 : index
    %c0_6 = arith.constant 0 : index
    %4 = vector.load %arg3[%c0_3, %c0_4, %c0_5, %c0_6] : memref<1x16x16x128xf32, #tpu.memory_space<vmem>>, vector<1x16x16x128xf32>
    %5 = vector.shape_cast %4 : vector<1x16x16x128xf32> to vector<16x16x128xf32>
    %6 = vector.shape_cast %5 : vector<16x16x128xf32> to vector<256x128xf32>
    %7 = arith.truncf %6 : vector<256x128xf32> to vector<256x128xbf16>
    %c0_7 = arith.constant 0 : index
    %c0_8 = arith.constant 0 : index
    %c0_9 = arith.constant 0 : index
    %c0_10 = arith.constant 0 : index
    %8 = vector.load %arg4[%c0_7, %c0_8, %c0_9, %c0_10] : memref<1x1x16x128xf32, #tpu.memory_space<vmem>>, vector<1x1x16x128xf32>
    %9 = vector.shape_cast %8 : vector<1x1x16x128xf32> to vector<1x16x128xf32>
    %10 = vector.shape_cast %9 : vector<1x16x128xf32> to vector<16x128xf32>
    %11 = arith.truncf %10 : vector<16x128xf32> to vector<16x128xbf16>
    %12 = tpu.concatenate %3, %7, %11 in 0 : vector<16x128xbf16>, vector<256x128xbf16>, vector<16x128xbf16> -> vector<288x128xbf16>
    %c0_11 = arith.constant 0 : index
    %c0_12 = arith.constant 0 : index
    %13 = vector.load %arg5[%c0_11, %c0_12] : memref<128x128xbf16, #tpu.memory_space<vmem>>, vector<128x128xbf16>
    %cst = arith.constant dense<0.000000e+00> : vector<288x128xf32>
    %14 = tpu.matmul %12, %13, %cst {dimension_numbers = #tpu.dot_dimension_numbers<[1], [0], [0], [1], [0, 0, 1, 1], [], []>} : vector<288x128xbf16>, vector<128x128xbf16>, vector<288x128xf32> -> vector<288x128xf32>
    %c0_13 = arith.constant 0 : index
    %c0_14 = arith.constant 0 : index
    %15 = vector.load %arg6[%c0_13, %c0_14] : memref<1x128xf32, #tpu.memory_space<vmem>>, vector<1x128xf32>
    %16 = vector.broadcast %15 : vector<1x128xf32> to vector<288x128xf32>
    %17 = arith.mulf %14, %16 : vector<288x128xf32>
    %c0_15 = arith.constant 0 : index
    %c0_16 = arith.constant 0 : index
    %18 = vector.load %arg7[%c0_15, %c0_16] : memref<1x128xf32, #tpu.memory_space<vmem>>, vector<1x128xf32>
    %19 = vector.broadcast %18 : vector<1x128xf32> to vector<288x128xf32>
    %20 = arith.addf %17, %19 : vector<288x128xf32>
    %cst_17 = arith.constant 0.000000e+00 : f32
    %21 = vector.broadcast %cst_17 : f32 to vector<288x128xf32>
    %22 = arith.maximumf %20, %21 : vector<288x128xf32>
    %23 = tpu.iota {dimensions = array<i32: 0>} : vector<288x1xi32>
    %c16_i32 = arith.constant 16 : i32
    %24 = vector.broadcast %c16_i32 : i32 to vector<288x1xi32>
    %25 = arith.cmpi sge, %23, %24 : vector<288x1xi32>
    %c0_i32 = arith.constant 0 : i32
    %26 = arith.cmpi sgt, %arg1, %c0_i32 : i32
    %27 = vector.broadcast %26 : i1 to vector<288x1xi1>
    %28 = arith.ori %25, %27 : vector<288x1xi1>
    %c272_i32 = arith.constant 272 : i32
    %29 = vector.broadcast %c272_i32 : i32 to vector<288x1xi32>
    %30 = arith.cmpi slt, %23, %29 : vector<288x1xi32>
    %c0_i32_18 = arith.constant 0 : i32
    %31 = arith.cmpi slt, %arg1, %c0_i32_18 : i32
    %32 = vector.broadcast %31 : i1 to vector<288x1xi1>
    %33 = arith.ori %30, %32 : vector<288x1xi1>
    %34 = arith.andi %28, %33 : vector<288x1xi1>
    %35 = arith.extui %34 : vector<288x1xi1> to vector<288x1xi32>
    %36 = arith.sitofp %35 : vector<288x1xi32> to vector<288x1xf32>
    %37 = vector.broadcast %36 : vector<288x1xf32> to vector<288x128xf32>
    %38 = arith.mulf %22, %37 : vector<288x128xf32>
    %c16_i32_19 = arith.constant 16 : i32
    %c0_i32_20 = arith.constant 0 : i32
    %39 = arith.cmpi eq, %c16_i32_19, %c0_i32_20 : i32
    %c1_i32 = arith.constant 1 : i32
    %40 = arith.select %39, %c1_i32, %c16_i32_19 : i32
    %41 = vector.broadcast %40 : i32 to vector<288x1xi32>
    %42 = arith.remsi %23, %41 : vector<288x1xi32>
    %c0_i32_21 = arith.constant 0 : i32
    %43 = vector.broadcast %c0_i32_21 : i32 to vector<288x1xi32>
    %44 = arith.cmpi ne, %42, %43 : vector<288x1xi32>
    %c0_i32_22 = arith.constant 0 : i32
    %45 = vector.broadcast %c0_i32_22 : i32 to vector<288x1xi32>
    %46 = arith.cmpi slt, %42, %45 : vector<288x1xi32>
    %c0_i32_23 = arith.constant 0 : i32
    %47 = arith.cmpi slt, %40, %c0_i32_23 : i32
    %48 = vector.broadcast %47 : i1 to vector<288x1xi1>
    %49 = vector.broadcast %48 : vector<288x1xi1> to vector<288x1xi1>
    %50 = arith.xori %46, %49 : vector<288x1xi1>
    %51 = arith.andi %50, %44 : vector<288x1xi1>
    %52 = vector.broadcast %40 : i32 to vector<288x1xi32>
    %53 = arith.addi %42, %52 : vector<288x1xi32>
    %54 = arith.select %51, %53, %42 : vector<288x1xi1>, vector<288x1xi32>
    %c1_i32_24 = arith.constant 1 : i32
    %55 = tpu.dynamic_rotate %38 by %c1_i32_24 dim 0 : vector<288x128xf32>, i32 -> vector<288x128xf32>
    %c1_i32_25 = arith.constant 1 : i32
    %56 = vector.broadcast %c1_i32_25 : i32 to vector<288x1xi32>
    %57 = arith.cmpi sge, %54, %56 : vector<288x1xi32>
    %58 = arith.extui %57 : vector<288x1xi1> to vector<288x1xi32>
    %59 = arith.sitofp %58 : vector<288x1xi32> to vector<288x1xf32>
    %60 = vector.broadcast %59 : vector<288x1xf32> to vector<288x128xf32>
    %61 = arith.mulf %55, %60 : vector<288x128xf32>
    %c287_i32 = arith.constant 287 : i32
    %62 = tpu.dynamic_rotate %38 by %c287_i32 dim 0 : vector<288x128xf32>, i32 -> vector<288x128xf32>
    %c14_i32 = arith.constant 14 : i32
    %63 = vector.broadcast %c14_i32 : i32 to vector<288x1xi32>
    %64 = arith.cmpi sle, %54, %63 : vector<288x1xi32>
    %65 = arith.extui %64 : vector<288x1xi1> to vector<288x1xi32>
    %66 = arith.sitofp %65 : vector<288x1xi32> to vector<288x1xf32>
    %67 = vector.broadcast %66 : vector<288x1xf32> to vector<288x128xf32>
    %68 = arith.mulf %62, %67 : vector<288x128xf32>
    %69 = arith.truncf %61 : vector<288x128xf32> to vector<288x128xbf16>
    %70 = arith.truncf %38 : vector<288x128xf32> to vector<288x128xbf16>
    %71 = arith.truncf %68 : vector<288x128xf32> to vector<288x128xbf16>
    %cst_26 = arith.constant 0.000000e+00 : f32
    %72 = vector.broadcast %cst_26 : f32 to vector<256x128xf32>
    %73 = vector.extract_strided_slice %69 {offsets = [0, 0], sizes = [256, 128], strides = [1, 1]} : vector<288x128xbf16> to vector<256x128xbf16>
    %c0_27 = arith.constant 0 : index
    %c0_28 = arith.constant 0 : index
    %c0_29 = arith.constant 0 : index
    %74 = vector.load %arg8[%c0_27, %c0_28, %c0_29] : memref<9x128x128xbf16, #tpu.memory_space<vmem>>, vector<1x128x128xbf16>
    %75 = vector.shape_cast %74 : vector<1x128x128xbf16> to vector<128x128xbf16>
    %cst_30 = arith.constant dense<0.000000e+00> : vector<256x128xf32>
    %76 = tpu.matmul %73, %75, %cst_30 {dimension_numbers = #tpu.dot_dimension_numbers<[1], [0], [0], [1], [0, 0, 1, 1], [], []>} : vector<256x128xbf16>, vector<128x128xbf16>, vector<256x128xf32> -> vector<256x128xf32>
    %77 = arith.addf %72, %76 : vector<256x128xf32>
    %78 = vector.extract_strided_slice %70 {offsets = [0, 0], sizes = [256, 128], strides = [1, 1]} : vector<288x128xbf16> to vector<256x128xbf16>
    %c1 = arith.constant 1 : index
    %c0_31 = arith.constant 0 : index
    %c0_32 = arith.constant 0 : index
    %79 = vector.load %arg8[%c1, %c0_31, %c0_32] : memref<9x128x128xbf16, #tpu.memory_space<vmem>>, vector<1x128x128xbf16>
    %80 = vector.shape_cast %79 : vector<1x128x128xbf16> to vector<128x128xbf16>
    %cst_33 = arith.constant dense<0.000000e+00> : vector<256x128xf32>
    %81 = tpu.matmul %78, %80, %cst_33 {dimension_numbers = #tpu.dot_dimension_numbers<[1], [0], [0], [1], [0, 0, 1, 1], [], []>} : vector<256x128xbf16>, vector<128x128xbf16>, vector<256x128xf32> -> vector<256x128xf32>
    %82 = arith.addf %77, %81 : vector<256x128xf32>
    %83 = vector.extract_strided_slice %71 {offsets = [0, 0], sizes = [256, 128], strides = [1, 1]} : vector<288x128xbf16> to vector<256x128xbf16>
    %c2 = arith.constant 2 : index
    %c0_34 = arith.constant 0 : index
    %c0_35 = arith.constant 0 : index
    %84 = vector.load %arg8[%c2, %c0_34, %c0_35] : memref<9x128x128xbf16, #tpu.memory_space<vmem>>, vector<1x128x128xbf16>
    %85 = vector.shape_cast %84 : vector<1x128x128xbf16> to vector<128x128xbf16>
    %cst_36 = arith.constant dense<0.000000e+00> : vector<256x128xf32>
    %86 = tpu.matmul %83, %85, %cst_36 {dimension_numbers = #tpu.dot_dimension_numbers<[1], [0], [0], [1], [0, 0, 1, 1], [], []>} : vector<256x128xbf16>, vector<128x128xbf16>, vector<256x128xf32> -> vector<256x128xf32>
    %87 = arith.addf %82, %86 : vector<256x128xf32>
    %88 = vector.extract_strided_slice %69 {offsets = [16, 0], sizes = [256, 128], strides = [1, 1]} : vector<288x128xbf16> to vector<256x128xbf16>
    %c3 = arith.constant 3 : index
    %c0_37 = arith.constant 0 : index
    %c0_38 = arith.constant 0 : index
    %89 = vector.load %arg8[%c3, %c0_37, %c0_38] : memref<9x128x128xbf16, #tpu.memory_space<vmem>>, vector<1x128x128xbf16>
    %90 = vector.shape_cast %89 : vector<1x128x128xbf16> to vector<128x128xbf16>
    %cst_39 = arith.constant dense<0.000000e+00> : vector<256x128xf32>
    %91 = tpu.matmul %88, %90, %cst_39 {dimension_numbers = #tpu.dot_dimension_numbers<[1], [0], [0], [1], [0, 0, 1, 1], [], []>} : vector<256x128xbf16>, vector<128x128xbf16>, vector<256x128xf32> -> vector<256x128xf32>
    %92 = arith.addf %87, %91 : vector<256x128xf32>
    %93 = vector.extract_strided_slice %70 {offsets = [16, 0], sizes = [256, 128], strides = [1, 1]} : vector<288x128xbf16> to vector<256x128xbf16>
    %c4 = arith.constant 4 : index
    %c0_40 = arith.constant 0 : index
    %c0_41 = arith.constant 0 : index
    %94 = vector.load %arg8[%c4, %c0_40, %c0_41] : memref<9x128x128xbf16, #tpu.memory_space<vmem>>, vector<1x128x128xbf16>
    %95 = vector.shape_cast %94 : vector<1x128x128xbf16> to vector<128x128xbf16>
    %cst_42 = arith.constant dense<0.000000e+00> : vector<256x128xf32>
    %96 = tpu.matmul %93, %95, %cst_42 {dimension_numbers = #tpu.dot_dimension_numbers<[1], [0], [0], [1], [0, 0, 1, 1], [], []>} : vector<256x128xbf16>, vector<128x128xbf16>, vector<256x128xf32> -> vector<256x128xf32>
    %97 = arith.addf %92, %96 : vector<256x128xf32>
    %98 = vector.extract_strided_slice %71 {offsets = [16, 0], sizes = [256, 128], strides = [1, 1]} : vector<288x128xbf16> to vector<256x128xbf16>
    %c5 = arith.constant 5 : index
    %c0_43 = arith.constant 0 : index
    %c0_44 = arith.constant 0 : index
    %99 = vector.load %arg8[%c5, %c0_43, %c0_44] : memref<9x128x128xbf16, #tpu.memory_space<vmem>>, vector<1x128x128xbf16>
    %100 = vector.shape_cast %99 : vector<1x128x128xbf16> to vector<128x128xbf16>
    %cst_45 = arith.constant dense<0.000000e+00> : vector<256x128xf32>
    %101 = tpu.matmul %98, %100, %cst_45 {dimension_numbers = #tpu.dot_dimension_numbers<[1], [0], [0], [1], [0, 0, 1, 1], [], []>} : vector<256x128xbf16>, vector<128x128xbf16>, vector<256x128xf32> -> vector<256x128xf32>
    %102 = arith.addf %97, %101 : vector<256x128xf32>
    %103 = vector.extract_strided_slice %69 {offsets = [32, 0], sizes = [256, 128], strides = [1, 1]} : vector<288x128xbf16> to vector<256x128xbf16>
    %c6 = arith.constant 6 : index
    %c0_46 = arith.constant 0 : index
    %c0_47 = arith.constant 0 : index
    %104 = vector.load %arg8[%c6, %c0_46, %c0_47] : memref<9x128x128xbf16, #tpu.memory_space<vmem>>, vector<1x128x128xbf16>
    %105 = vector.shape_cast %104 : vector<1x128x128xbf16> to vector<128x128xbf16>
    %cst_48 = arith.constant dense<0.000000e+00> : vector<256x128xf32>
    %106 = tpu.matmul %103, %105, %cst_48 {dimension_numbers = #tpu.dot_dimension_numbers<[1], [0], [0], [1], [0, 0, 1, 1], [], []>} : vector<256x128xbf16>, vector<128x128xbf16>, vector<256x128xf32> -> vector<256x128xf32>
    %107 = arith.addf %102, %106 : vector<256x128xf32>
    %108 = vector.extract_strided_slice %70 {offsets = [32, 0], sizes = [256, 128], strides = [1, 1]} : vector<288x128xbf16> to vector<256x128xbf16>
    %c7 = arith.constant 7 : index
    %c0_49 = arith.constant 0 : index
    %c0_50 = arith.constant 0 : index
    %109 = vector.load %arg8[%c7, %c0_49, %c0_50] : memref<9x128x128xbf16, #tpu.memory_space<vmem>>, vector<1x128x128xbf16>
    %110 = vector.shape_cast %109 : vector<1x128x128xbf16> to vector<128x128xbf16>
    %cst_51 = arith.constant dense<0.000000e+00> : vector<256x128xf32>
    %111 = tpu.matmul %108, %110, %cst_51 {dimension_numbers = #tpu.dot_dimension_numbers<[1], [0], [0], [1], [0, 0, 1, 1], [], []>} : vector<256x128xbf16>, vector<128x128xbf16>, vector<256x128xf32> -> vector<256x128xf32>
    %112 = arith.addf %107, %111 : vector<256x128xf32>
    %113 = vector.extract_strided_slice %71 {offsets = [32, 0], sizes = [256, 128], strides = [1, 1]} : vector<288x128xbf16> to vector<256x128xbf16>
    %c8 = arith.constant 8 : index
    %c0_52 = arith.constant 0 : index
    %c0_53 = arith.constant 0 : index
    %114 = vector.load %arg8[%c8, %c0_52, %c0_53] : memref<9x128x128xbf16, #tpu.memory_space<vmem>>, vector<1x128x128xbf16>
    %115 = vector.shape_cast %114 : vector<1x128x128xbf16> to vector<128x128xbf16>
    %cst_54 = arith.constant dense<0.000000e+00> : vector<256x128xf32>
    %116 = tpu.matmul %113, %115, %cst_54 {dimension_numbers = #tpu.dot_dimension_numbers<[1], [0], [0], [1], [0, 0, 1, 1], [], []>} : vector<256x128xbf16>, vector<128x128xbf16>, vector<256x128xf32> -> vector<256x128xf32>
    %117 = arith.addf %112, %116 : vector<256x128xf32>
    %c0_55 = arith.constant 0 : index
    %c0_56 = arith.constant 0 : index
    %118 = vector.load %arg9[%c0_55, %c0_56] : memref<1x128xf32, #tpu.memory_space<vmem>>, vector<1x128xf32>
    %119 = vector.broadcast %118 : vector<1x128xf32> to vector<256x128xf32>
    %120 = arith.mulf %117, %119 : vector<256x128xf32>
    %c0_57 = arith.constant 0 : index
    %c0_58 = arith.constant 0 : index
    %121 = vector.load %arg10[%c0_57, %c0_58] : memref<1x128xf32, #tpu.memory_space<vmem>>, vector<1x128xf32>
    %122 = vector.broadcast %121 : vector<1x128xf32> to vector<256x128xf32>
    %123 = arith.addf %120, %122 : vector<256x128xf32>
    %cst_59 = arith.constant 0.000000e+00 : f32
    %124 = vector.broadcast %cst_59 : f32 to vector<256x128xf32>
    %125 = arith.maximumf %123, %124 : vector<256x128xf32>
    %126 = arith.truncf %125 : vector<256x128xf32> to vector<256x128xbf16>
    %c0_60 = arith.constant 0 : index
    %c0_61 = arith.constant 0 : index
    %127 = vector.load %arg11[%c0_60, %c0_61] : memref<128x128xbf16, #tpu.memory_space<vmem>>, vector<128x128xbf16>
    %cst_62 = arith.constant dense<0.000000e+00> : vector<256x128xf32>
    %128 = tpu.matmul %126, %127, %cst_62 {dimension_numbers = #tpu.dot_dimension_numbers<[1], [0], [0], [1], [0, 0, 1, 1], [], []>} : vector<256x128xbf16>, vector<128x128xbf16>, vector<256x128xf32> -> vector<256x128xf32>
    %c0_63 = arith.constant 0 : index
    %c0_64 = arith.constant 0 : index
    %129 = vector.load %arg12[%c0_63, %c0_64] : memref<1x128xf32, #tpu.memory_space<vmem>>, vector<1x128xf32>
    %130 = vector.broadcast %129 : vector<1x128xf32> to vector<256x128xf32>
    %131 = arith.mulf %128, %130 : vector<256x128xf32>
    %c0_65 = arith.constant 0 : index
    %c0_66 = arith.constant 0 : index
    %132 = vector.load %arg13[%c0_65, %c0_66] : memref<1x128xf32, #tpu.memory_space<vmem>>, vector<1x128xf32>
    %133 = vector.broadcast %132 : vector<1x128xf32> to vector<256x128xf32>
    %134 = arith.addf %131, %133 : vector<256x128xf32>
    %c0_67 = arith.constant 0 : index
    %c0_68 = arith.constant 0 : index
    %c0_69 = arith.constant 0 : index
    %c0_70 = arith.constant 0 : index
    %135 = vector.load %arg3[%c0_67, %c0_68, %c0_69, %c0_70] : memref<1x16x16x128xf32, #tpu.memory_space<vmem>>, vector<1x16x16x128xf32>
    %136 = vector.shape_cast %135 : vector<1x16x16x128xf32> to vector<16x16x128xf32>
    %137 = vector.shape_cast %136 : vector<16x16x128xf32> to vector<256x128xf32>
    %138 = arith.addf %134, %137 : vector<256x128xf32>
    %cst_71 = arith.constant 0.000000e+00 : f32
    %139 = vector.broadcast %cst_71 : f32 to vector<256x128xf32>
    %140 = arith.maximumf %138, %139 : vector<256x128xf32>
    %141 = vector.shape_cast %140 : vector<256x128xf32> to vector<16x16x128xf32>
    %c0_72 = arith.constant 0 : index
    %c0_73 = arith.constant 0 : index
    %c0_74 = arith.constant 0 : index
    %c0_75 = arith.constant 0 : index
    %142 = vector.load %arg14[%c0_72, %c0_73, %c0_74, %c0_75] : memref<1x16x16x128xf32, #tpu.memory_space<vmem>>, vector<1x16x16x128xf32>
    %143 = vector.shape_cast %142 : vector<1x16x16x128xf32> to vector<16x16x128xf32>
    %144 = vector.shape_cast %141 : vector<16x16x128xf32> to vector<1x16x16x128xf32>
    tpu.vector_store %arg14[%c0_72, %c0_73, %c0_74, %c0_75], %144 {strides = array<i32>} : memref<1x16x16x128xf32, #tpu.memory_space<vmem>>, vector<1x16x16x128xf32>,
    return
  }
  func.func @transform_0(%arg0: i32, %arg1: i32) -> (i32, i32, i32, i32) {
    %c16_i32 = arith.constant 16 : i32
    %0 = arith.muli %arg1, %c16_i32 : i32
    %c1_i32 = arith.constant 1 : i32
    %1 = arith.subi %0, %c1_i32 : i32
    %c0_i32 = arith.constant 0 : i32
    %2 = arith.maxsi %1, %c0_i32 : i32
    %c0_i32_0 = arith.constant 0 : i32
    %c0_i32_1 = arith.constant 0 : i32
    %c0_i32_2 = arith.constant 0 : i32
    return %arg0, %2, %c0_i32_0, %c0_i32_1 : i32, i32, i32, i32
  }
  func.func @transform_1(%arg0: i32, %arg1: i32) -> (i32, i32, i32, i32) {
    %c0_i32 = arith.constant 0 : i32
    %c0_i32_0 = arith.constant 0 : i32
    %c0_i32_1 = arith.constant 0 : i32
    return %arg0, %arg1, %c0_i32, %c0_i32_0 : i32, i32, i32, i32
  }
  func.func @transform_2(%arg0: i32, %arg1: i32) -> (i32, i32, i32, i32) {
    %c16_i32 = arith.constant 16 : i32
    %0 = arith.muli %arg1, %c16_i32 : i32
    %c16_i32_0 = arith.constant 16 : i32
    %1 = arith.addi %0, %c16_i32_0 : i32
    %c15_i32 = arith.constant 15 : i32
    %2 = arith.minsi %1, %c15_i32 : i32
    %c0_i32 = arith.constant 0 : i32
    %c0_i32_1 = arith.constant 0 : i32
    %c0_i32_2 = arith.constant 0 : i32
    return %arg0, %2, %c0_i32, %c0_i32_1 : i32, i32, i32, i32
  }
  func.func @transform_3(%arg0: i32, %arg1: i32) -> (i32, i32) {
    %c0_i32 = arith.constant 0 : i32
    %c0_i32_0 = arith.constant 0 : i32
    %c0_i32_1 = arith.constant 0 : i32
    return %c0_i32, %c0_i32_0 : i32, i32
  }
  func.func @transform_4(%arg0: i32, %arg1: i32) -> (i32, i32) {
    %c0_i32 = arith.constant 0 : i32
    %c0_i32_0 = arith.constant 0 : i32
    %c0_i32_1 = arith.constant 0 : i32
    return %c0_i32, %c0_i32_0 : i32, i32
  }
  func.func @transform_5(%arg0: i32, %arg1: i32) -> (i32, i32) {
    %c0_i32 = arith.constant 0 : i32
    %c0_i32_0 = arith.constant 0 : i32
    %c0_i32_1 = arith.constant 0 : i32
    return %c0_i32, %c0_i32_0 : i32, i32
  }
  func.func @transform_6(%arg0: i32, %arg1: i32) -> (i32, i32, i32) {
    %c0_i32 = arith.constant 0 : i32
    %c0_i32_0 = arith.constant 0 : i32
    %c0_i32_1 = arith.constant 0 : i32
    %c0_i32_2 = arith.constant 0 : i32
    return %c0_i32, %c0_i32_0, %c0_i32_1 : i32, i32, i32
  }
  func.func @transform_7(%arg0: i32, %arg1: i32) -> (i32, i32) {
    %c0_i32 = arith.constant 0 : i32
    %c0_i32_0 = arith.constant 0 : i32
    %c0_i32_1 = arith.constant 0 : i32
    return %c0_i32, %c0_i32_0 : i32, i32
  }
  func.func @transform_8(%arg0: i32, %arg1: i32) -> (i32, i32) {
    %c0_i32 = arith.constant 0 : i32
    %c0_i32_0 = arith.constant 0 : i32
    %c0_i32_1 = arith.constant 0 : i32
    return %c0_i32, %c0_i32_0 : i32, i32
  }
  func.func @transform_9(%arg0: i32, %arg1: i32) -> (i32, i32) {
    %c0_i32 = arith.constant 0 : i32
    %c0_i32_0 = arith.constant 0 : i32
    %c0_i32_1 = arith.constant 0 : i32
    return %c0_i32, %c0_i32_0 : i32, i32
  }
  func.func @transform_10(%arg0: i32, %arg1: i32) -> (i32, i32) {
    %c0_i32 = arith.constant 0 : i32
    %c0_i32_0 = arith.constant 0 : i32
    %c0_i32_1 = arith.constant 0 : i32
    return %c0_i32, %c0_i32_0 : i32, i32
  }
  func.func @transform_11(%arg0: i32, %arg1: i32) -> (i32, i32) {
    %c0_i32 = arith.constant 0 : i32
    %c0_i32_0 = arith.constant 0 : i32
    %c0_i32_1 = arith.constant 0 : i32
    return %c0_i32, %c0_i32_0 : i32, i32
  }
  func.func @transform_12(%arg0: i32, %arg1: i32) -> (i32, i32, i32, i32) {
    %c0_i32 = arith.constant 0 : i32
    %c0_i32_0 = arith.constant 0 : i32
    %c0_i32_1 = arith.constant 0 : i32
    return %arg0, %arg1, %c0_i32, %c0_i32_0 : i32, i32, i32, i32
  }
}

</mosaic_0001>

<bundles_post_ra>
// kernel: tpu_custom_call.1
= control target key start
LH: loop header
LB: loop body
LE: loop exit
PB: predicated region body
PF: predicated region fallthrough
CT: control target
= control target key end

     0   :  { %s8899_s0 = inlined_call_operand.hbm [shape: f32[2,16,16,128], index: 0, kind: input, shape index: {}]   ;;  %s8900_s1 = inlined_call_operand.hbm [shape: f32[2,16,16,128], index: 1, kind: input, shape index: {}]   ;;  %s8901_s2 = inlined_call_operand.hbm [shape: f32[2,16,16,128], index: 2, kind: input, shape index: {}]   ;;  %s8902_s3 = inlined_call_operand.hbm [shape: bf16[128,128], index: 3, kind: input, shape index: {}]   ;;  %s8903_s4 = inlined_call_operand.vmem [shape: f32[1,128], index: 4, kind: input, shape index: {}]   ;;  %s8904_s5 = inlined_call_operand.vmem [shape: f32[1,128], index: 5, kind: input, shape index: {}]   ;;  %s8905_s6 = inlined_call_operand.hbm [shape: bf16[9,128,128], index: 6, kind: input, shape index: {}]   ;;  %s8906_s7 = inlined_call_operand.vmem [shape: f32[1,128], index: 7, kind: input, shape index: {}]   ;;  %s8907_s8 = inlined_call_operand.vmem [shape: f32[1,128], index: 8, kind: input, shape index: {}]   ;;  %s8908_s9 = inlined_call_operand.hbm [shape: bf16[128,128], index: 9, kind: input, shape index: {}]   ;;  %s8909_s10 = inlined_call_operand.vmem [shape: f32[1,128], index: 10, kind: input, shape index: {}]   ;;  %s8910_s11 = inlined_call_operand.vmem [shape: f32[1,128], index: 11, kind: input, shape index: {}]   ;;  %s8911_s12 = inlined_call_operand.hbm [shape: f32[2,16,16,128], index: 12, kind: output, shape index: {}]  }
   0x1   :  { %8997 = sst [smem:[#allocation69_spill]] %s8900_s1 }
   0x2   :  { %8998 = sst [smem:[#allocation70_spill]] %s8902_s3 }
   0x3   :  { %8999 = sst [smem:[#allocation71_spill]] %s8906_s7 }
   0x4   :  { %9000 = sst [smem:[#allocation72_spill]] %s8907_s8 }
   0x5   :  { %9001 = sst [smem:[#allocation73_spill]] %s8909_s10 }
   0x6   :  { %9002 = sst [smem:[#allocation74_spill]] %s8910_s11 }
   0x7   :  { %9003 = sst [smem:[#allocation75_spill]] %s8911_s12 }
   0x8   :  { %17 = vsyncpa [#allocation3], 0 }
   0x9   :  { %19 = vsyncpa [#allocation3 + $0x1], 0 }
   0xa   :  { %20 = vsyncpa [#allocation6], 0 }
   0xb   :  { %22 = vsyncpa [#allocation6 + $0x1], 0 }
   0xc   :  { %23 = vsyncpa [#allocation9], 0 }
   0xd   :  { %24 = vsyncpa [#allocation12], 0 }
   0xe   :  { %25 = vsyncpa [#allocation4], 0 }
   0xf   :  { %27 = vsyncpa [#allocation4 + $0x1], 0  ;;  %s7071_s21 = smov 0   ;;  %s7073_s22 = smov 0  }
  0x10   :  { %s7075_s23 = smov 0   ;;  %s7077_s24 = smov 0  }
  0x11   :  { %s7079_s25 = smov 0   ;;  %s7081_s26 = smov 0  }
  0x12 LB: > { %9004 = sst [smem:[#allocation19_spill]] %s6970_s21  ;;  %s7102_s27 = sadd.s32 4294967295, %s6990_s26   ;;  %s6990_s26 = sphi %s7081_s26, %s33_s26   ;;  %s6986_s25 = sphi %s7079_s25, %s9234_s25   ;;  %s6982_s24 = sphi %s7077_s24, %s9233_s24   ;;  %s6978_s23 = sphi %s7075_s23, %s9232_s23   ;;  %s6974_s22 = sphi %s7073_s22, %s9236_s22   ;;  %s6970_s21 = sphi %s7071_s21, %s9235_s21  }
  0x13   : > { %9005 = sst [smem:[#allocation20_spill]] %s6978_s23  ;;  %s5250_s28 = sadd.s32 4294967294, %s6990_s26  }
  0x14   : > { %9006 = sst [smem:[#allocation21_spill]] %s6982_s24  ;;  %p69_p0 = scmp.ne.s32.totalorder %s6978_s23, %s6974_s22 }
  0x15   : > { %9007 = sst [smem:[#allocation22_spill]] %s6986_s25  ;;  %p70_p1 = scmp.eq.s32.totalorder %s6990_s26, 0 }
  0x16   : > { %9008 = sst [smem:[#allocation23_spill]] %s6990_s26  ;;  %p75_p2 = scmp.ne.s32.totalorder %s6974_s22, %s6970_s21 }
  0x17   : > { %p8917_p3 = scmp.eq.s32.totalorder %s7102_s27, 0  ;;  %p7111_p4 = por %p70_p1, %p69_p0 }
  0x18   : > { %p354_p5 = scmp.eq.s32.totalorder %s7102_s27, 1  ;;  %p360_p7 = scmp.eq.s32.totalorder %s5250_s28, 1 }
  0x19   : > { %p7118_p6 = por %p8917_p3, %p75_p2  ;;  %p5251_p9 = scmp.ge.s32.totalorder %s6990_s26, 1 }
  0x1a   : > { %p7122_p8 = por %p354_p5, %p69_p0  ;;  %p7127_p10 = por %p360_p7, %p75_p2 }
  0x1b   : > { %s9010_s30 = scalar_select %p7118_p6, 1, 0 }
  0x1c   : > { %s9011_s13 = scalar_select %p7122_p8, 1, 0 }
  0x1d   : > { %s9013_s14 = scalar_select %p7127_p10, 1, 0 }
  0x1e   : > { %9012 = sst [smem:[#allocation24_spill]] %s9011_s13  ;;  %p367_p11 = scmp.lt.s32.totalorder %s6990_s26, 3 }
  0x1f   : > { %9014 = sst [smem:[#allocation25_spill]] %s9013_s14  ;;  %s6992_s16 = smov [#allocation8]  }
  0x20   : > { %p7132_p12 = pnand %p5251_p9, %p367_p11  ;;  %s379_s17 = sshll.u32 %s6992_s16, 4  ;;  %s7136_s17 = int_to_ptr.vmem [resolvable:$true] %s379_s17 }
  0x21   : > { %s45_s19 = sadd.s32 1, %s6986_s25  ;;  %s9018_s3 = sld [smem:[#allocation70_spill]] }
  0x22   : > { %s9015_s15 = scalar_select %p7132_p12, 1, 0 }
  0x23   : > { %p6504_p13 = pneg %p7132_p12  ;;  %p7149_p2 = scmp.ge.s32.totalorder %s45_s19, 2 }
  0x25   : > { %p7143_p1 = pnand %p6504_p13, %p8917_p3 }
  0x27   : > { %s9016_s18 = scalar_select %p7143_p1, 1, 0 }
  0x28   : > { %s6722_s16 = scalar_lea.hbm %s9018_s3, 1024  ;;  %p7161_p7 = pneg %p7143_p1 }
  0x29   : > { %p6723_p5 = scmp.ne.s32.totalorder %s9018_s3, %s6722_s16  ;;  %p6729_p13 = scmp.lt.u32.totalorder %s6722_s16, %s9018_s3 }
  0x2a   : > { %s9019_s24 = scalar_select %p7161_p7, 1, 0 }
  0x2b   : > { %p6725_p9 = pnand %p7161_p7, %p6723_p5 }
  0x2d   : > { %p6726_p11 = pneg %p6725_p9 }
  0x2f   : > { %p6731_p0 = pnand %p6729_p13, %p6726_p11 }
  0x31   : > { %6734 = shalt.err (!%p6731_p0)
}
  0x32   : > { %s6735_s12 = scalar_lea.vmem %s7136_s17, 1024  ;;  %p6743_p6 = scmp.lt.s32.totalorder %s7136_s17, %s7136_s17 }
  0x33   : > { %p6736_p3 = scmp.ne.s32.totalorder %s7136_s17, %s6735_s12  ;;  %p6744_p12 = scmp.lt.s32.totalorder %s6735_s12, %s6735_s12 }
  0x35   : > { %p6738_p10 = pnand %p6736_p3, %p7161_p7  ;;  %p6745_p5 = por %p6744_p12, %p6743_p6 }
  0x37   : > { %p6739_p8 = pneg %p6738_p10 }
  0x39   : > { %p6746_p9 = pnand %p6745_p5, %p6739_p8 }
  0x3b   : > { %6749 = shalt.err (!%p6746_p9)
}
  0x3c   : > { %s8921_s21 = smov 64   ;;  %s8923_s11 = smov 4  }
  0x3d   : > { %6507 = dma.hbm_to_vmem [thread:$0]  (!%p7143_p1), %s9018_s3, 1024, %s7136_s17, [#allocation9], %s8921_s21, %s8921_s21, %s8923_s11  }
  0x3e   : > { %s9238_s19 = smov (%p7149_p2, %s45_s19), 0  ;;  %p6531_p3 = scmp.lt.s32.totalorder %s6990_s26, 2 }
  0x3f   : > { %9020 = sst [smem:[#allocation26_spill]] %s9238_s19  ;;  %s7191_s20 = sand.u32 1, %s6978_s23  }
  0x40   : > { %s57_s16 = ssub.s32 %s6986_s25, %s9238_s19  ;;  %s7196_s12 = sshll.u32 %s6986_s25, 12 }
  0x41   : > { %p60_p6 = scmp.eq.s32.totalorder %s57_s16, 0  ;;  %p7200_p8 = pnand %p6531_p3, %p7111_p4 }
  0x42   : > { %s9022_s13 = sadd.s32 1, %s6978_s23  ;;  %s464_s28 = sand.u32 1, %s6990_s26  }
  0x43   : > { %s9021_s10 = scalar_select %p7200_p8, 1, 0 }
  0x44   : > { %s7207_s17 = scalar_select %p60_p6, %s6978_s23, %s9022_s13  }
  0x45   : > { %s5259_s14 = sshll.u32 %s7191_s20, 8  ;;  %s9024_s1 = sld [smem:[#allocation69_spill]] }
  0x46   : > { %9023 = sst [smem:[#allocation27_spill]] %s7207_s17  ;;  %s468_s29 = scalar_lea.vmem [#allocation5], %s5259_s14 }
  0x47   : > { %s478_s16 = sshll.u32 %s468_s29, 4  ;;  %s6995_s19 = smov [#allocation10]   ;;  %s7217_s16 = int_to_ptr.vmem [resolvable:$true] %s478_s16 }
  0x48   : > { %s7219_s25 = sshll.u32 %s6995_s19, 4  ;;  %s7221_s13 = scalar_lea.sflag [#allocation6], %s464_s28  ;;  %s399_s25 = int_to_ptr.vmem [resolvable:$true] %s7219_s25 }
  0x49   : > { %p7227_p10 = pneg %p7200_p8 }
  0x4b   : > { %s7215_s3 = scalar_lea.hbm %s9024_s1, %s7196_s12  ;;  %s6755_s29 = scalar_lea.hbm %s9024_s1, 8192 }
  0x4c   : > { %s6750_s17 = scalar_lea.hbm %s7215_s3, 4096  ;;  %p6756_p2 = scmp.lt.u32.totalorder %s7215_s3, %s9024_s1 }
  0x4d   : > { %p6751_p4 = scmp.ne.s32.totalorder %s7215_s3, %s6750_s17  ;;  %p6757_p11 = scmp.lt.u32.totalorder %s6755_s29, %s6750_s17 }
  0x4e   : > { %s9025_s21 = scalar_select %p7227_p10, 1, 0 }
  0x4f   : > { %p6753_p12 = pnand %p7227_p10, %p6751_p4  ;;  %p6758_p13 = por %p6757_p11, %p6756_p2 }
  0x50   : > { %p6759_p5 = scmp.lt.u32.totalorder %s6750_s17, %s7215_s3 }
  0x51   : > { %p6754_p0 = pneg %p6753_p12 }
  0x52   : > { %p6760_p9 = por %p6759_p5, %p6758_p13 }
  0x54   : > { %p6761_p3 = pnand %p6760_p9, %p6754_p0 }
  0x56   : > { %6764 = shalt.err (!%p6761_p3)
}
  0x57   : > { %s6765_s28 = scalar_lea.vmem %s7217_s16, 4096  ;;  %s6996_s11 = smov [#allocation5]  }
  0x58   : > { %p6766_p6 = scmp.ne.s32.totalorder %s7217_s16, %s6765_s28  ;;  %s6770_s14 = sshll.u32 %s6996_s11, 4  ;;  %s6771_s14 = int_to_ptr.vmem [resolvable:$false] %s6770_s14 }
  0x59   : > { %s6772_s23 = scalar_lea.vmem %s6771_s14, 8192  ;;  %p6773_p1 = scmp.lt.s32.totalorder %s7217_s16, %s6771_s14 }
  0x5a   : > { %p6768_p4 = pnand %p6766_p6, %p7227_p10  ;;  %p6774_p7 = scmp.lt.s32.totalorder %s6772_s23, %s6765_s28 }
  0x5c   : > { %p6769_p12 = pneg %p6768_p4  ;;  %p6775_p2 = por %p6774_p7, %p6773_p1 }
  0x5e   : > { %p6776_p11 = pnand %p6775_p2, %p6769_p12 }
  0x60   : > { %6779 = shalt.err (!%p6776_p11)
}
  0x61   : > { %s8936_s17 = smov 128   ;;  %s8938_s29 = smov 8  }
  0x62   : > { %6520 = dma.hbm_to_vmem [thread:$0]  (!%p7200_p8), %s7215_s3, 4096, %s7217_s16, %s7221_s13, %s8936_s17, %s8936_s17, %s8938_s29  }
  0x63   : > { %s6780_s28 = scalar_lea.hbm %s8905_s6, 9216  ;;  %p9026_p7 = scmp.ne.s32.totalorder %s9019_s24, 0 }
  0x64   : > { %p6781_p1 = scmp.ne.s32.totalorder %s8905_s6, %s6780_s28  ;;  %p6787_p5 = scmp.lt.u32.totalorder %s6780_s28, %s8905_s6 }
  0x66   : > { %p6783_p0 = pnand %p6781_p1, %p9026_p7 }
  0x68   : > { %p6784_p13 = pneg %p6783_p0 }
  0x6a   : > { %p6789_p9 = pnand %p6787_p5, %p6784_p13 }
  0x6c   : > { %6792 = shalt.err (!%p6789_p9)
}
  0x6d   : > { %s6793_s8 = scalar_lea.vmem %s399_s25, 9216  ;;  %p6801_p12 = scmp.lt.s32.totalorder %s399_s25, %s399_s25 }
  0x6e   : > { %p6794_p3 = scmp.ne.s32.totalorder %s399_s25, %s6793_s8  ;;  %p6802_p2 = scmp.lt.s32.totalorder %s6793_s8, %s6793_s8 }
  0x70   : > { %p6796_p6 = pnand %p6794_p3, %p9026_p7  ;;  %p6803_p11 = por %p6802_p2, %p6801_p12 }
  0x72   : > { %p6797_p4 = pneg %p6796_p6 }
  0x74   : > { %p6804_p8 = pnand %p6803_p11, %p6797_p4 }
  0x76   : > { %6807 = shalt.err (!%p6804_p8)
}
  0x77   : > { %p9027_p1 = scmp.ne.s32.totalorder %s9016_s18, 0  ;;  %s9028_s3 = smov 4  }
  0x78   : > { %s9029_s16 = smov 64   ;;  %s6999_s19 = smov [#allocation11]  }
  0x79   : > { %6510 = dma.hbm_to_vmem [thread:$0]  (!%p9027_p1), %s8905_s6, 9216, %s399_s25, [#allocation9], %s9029_s16, %s9029_s16, %s9028_s3  }
  0x7a   : > { %s417_s11 = sshll.u32 %s6999_s19, 4  ;;  %s5256_s28 = sshll.u32 %s7191_s20, 4  ;;  %s418_s11 = int_to_ptr.vmem [resolvable:$true] %s417_s11 }
  0x7b   : > { %s6808_s23 = scalar_lea.hbm %s8908_s9, 1024 }
  0x7c   : > { %p6809_p8 = scmp.ne.s32.totalorder %s8908_s9, %s6808_s23  ;;  %p6815_p5 = scmp.lt.u32.totalorder %s6808_s23, %s8908_s9 }
  0x7e   : > { %p6811_p0 = pnand %p6809_p8, %p9026_p7 }
  0x80   : > { %p6812_p13 = pneg %p6811_p0 }
  0x82   : > { %p6817_p9 = pnand %p6815_p5, %p6812_p13 }
  0x84   : > { %6820 = shalt.err (!%p6817_p9)
}
  0x85   : > { %s6821_s25 = scalar_lea.vmem %s418_s11, 1024  ;;  %p6829_p12 = scmp.lt.s32.totalorder %s418_s11, %s418_s11 }
  0x86   : > { %p6822_p3 = scmp.ne.s32.totalorder %s418_s11, %s6821_s25  ;;  %p6830_p2 = scmp.lt.s32.totalorder %s6821_s25, %s6821_s25 }
  0x88   : > { %p6824_p6 = pnand %p6822_p3, %p9026_p7  ;;  %p6831_p11 = por %p6830_p2, %p6829_p12 }
  0x8a   : > { %p6825_p4 = pneg %p6824_p6 }
  0x8c   : > { %p6832_p10 = pnand %p6831_p11, %p6825_p4 }
  0x8e   : > { %6835 = shalt.err (!%p6832_p10)
}
  0x8f   : > { %6513 = dma.hbm_to_vmem [thread:$0]  (!%p9027_p1), %s8908_s9, 1024, %s418_s11, [#allocation12], %s9029_s16, %s9029_s16, %s9028_s3  }
  0x90   : > { %s7302_s26 = scalar_lea.hbm %s8899_s0, %s7196_s12  ;;  %s441_s18 = scalar_lea.vmem [#allocation2], %s5256_s28 }
  0x91   : > { %s454_s19 = sshll.u32 %s441_s18, 4  ;;  %s7306_s14 = scalar_lea.vmem [#allocation7], %s5256_s28  ;;  %s7304_s19 = int_to_ptr.vmem [resolvable:$true] %s454_s19 }
  0x92   : > { %s505_s8 = sshll.u32 %s7306_s14, 4  ;;  %s438_s23 = scalar_lea.sflag [#allocation3], %s7191_s20  ;;  %s7338_s8 = int_to_ptr.vmem [resolvable:$true] %s505_s8 }
  0x93   : > { %s6836_s1 = scalar_lea.hbm %s7302_s26, 256  ;;  %p9030_p7 = scmp.ne.s32.totalorder %s9025_s21, 0 }
  0x94   : > { %p6837_p10 = scmp.ne.s32.totalorder %s7302_s26, %s6836_s1  ;;  %s6841_s11 = scalar_lea.hbm %s8899_s0, 8192 }
  0x95   : > { %p6842_p0 = scmp.lt.u32.totalorder %s7302_s26, %s8899_s0  ;;  %p6843_p13 = scmp.lt.u32.totalorder %s6841_s11, %s6836_s1 }
  0x96   : > { %p6839_p1 = pnand %p6837_p10, %p9030_p7  ;;  %p6845_p9 = scmp.lt.u32.totalorder %s6836_s1, %s7302_s26 }
  0x97   : > { %p6844_p5 = por %p6843_p13, %p6842_p0 }
  0x98   : > { %p6840_p8 = pneg %p6839_p1 }
  0x99   : > { %p6846_p3 = por %p6845_p9, %p6844_p5 }
  0x9b   : > { %p6847_p6 = pnand %p6846_p3, %p6840_p8 }
  0x9d   : > { %6850 = shalt.err (!%p6847_p6)
}
  0x9e   : > { %s6851_s28 = scalar_lea.vmem %s7304_s19, 256  ;;  %s7000_s17 = smov [#allocation2]  }
  0x9f   : > { %p6852_p4 = scmp.ne.s32.totalorder %s7304_s19, %s6851_s28  ;;  %s6856_s24 = sshll.u32 %s7000_s17, 4  ;;  %s6857_s24 = int_to_ptr.vmem [resolvable:$false] %s6856_s24 }
  0xa0   : > { %s6858_s29 = scalar_lea.vmem %s6857_s24, 512  ;;  %p6859_p11 = scmp.lt.s32.totalorder %s7304_s19, %s6857_s24 }
  0xa1   : > { %p6854_p12 = pnand %p6852_p4, %p9030_p7  ;;  %p6860_p10 = scmp.lt.s32.totalorder %s6858_s29, %s6851_s28 }
  0xa3   : > { %p6855_p2 = pneg %p6854_p12  ;;  %p6861_p1 = por %p6860_p10, %p6859_p11 }
  0xa5   : > { %p6862_p0 = pnand %p6861_p1, %p6855_p2 }
  0xa7   : > { %6865 = shalt.err (!%p6862_p0)
}
  0xa8   : > { %p9031_p8 = scmp.ne.s32.totalorder %s9021_s10, 0  ;;  %s9032_s18 = smov 8  }
  0xa9   : > { %s9033_s1 = smov 128   ;;  %s5411_s3 = sadd.s32 3840, %s7196_s12 }
  0xaa   : > { %6517 = dma.hbm_to_vmem [thread:$0]  (!%p9031_p8), %s7302_s26, 256, %s7304_s19, %s438_s23, %s9033_s1, %s9033_s1, %s9032_s18  }
  0xab   : > { %s7344_s25 = scalar_lea.hbm %s8901_s2, %s5411_s3  ;;  %s6871_s19 = scalar_lea.hbm %s8901_s2, 8192 }
  0xac   : > { %s6866_s20 = scalar_lea.hbm %s7344_s25, 256  ;;  %p6872_p3 = scmp.lt.u32.totalorder %s7344_s25, %s8901_s2 }
  0xad   : > { %p6867_p13 = scmp.ne.s32.totalorder %s7344_s25, %s6866_s20  ;;  %p6873_p6 = scmp.lt.u32.totalorder %s6871_s19, %s6866_s20 }
  0xae   : > { %p6875_p12 = scmp.lt.u32.totalorder %s6866_s20, %s7344_s25 }
  0xaf   : > { %p6869_p5 = pnand %p6867_p13, %p9030_p7  ;;  %p6874_p4 = por %p6873_p6, %p6872_p3 }
  0xb1   : > { %p6870_p9 = pneg %p6869_p5  ;;  %p6876_p2 = por %p6875_p12, %p6874_p4 }
  0xb3   : > { %p6877_p11 = pnand %p6876_p2, %p6870_p9 }
  0xb5   : > { %6880 = shalt.err (!%p6877_p11)
}
  0xb6   : > { %s6881_s23 = scalar_lea.vmem %s7338_s8, 256  ;;  %s7001_s28 = smov [#allocation7]  }
  0xb7   : > { %p6882_p10 = scmp.ne.s32.totalorder %s7338_s8, %s6881_s23  ;;  %s6886_s17 = sshll.u32 %s7001_s28, 4  ;;  %s6887_s17 = int_to_ptr.vmem [resolvable:$false] %s6886_s17 }
  0xb8   : > { %s6888_s24 = scalar_lea.vmem %s6887_s17, 512  ;;  %p6889_p13 = scmp.lt.s32.totalorder %s7338_s8, %s6887_s17 }
  0xb9   : > { %p6884_p1 = pnand %p6882_p10, %p9030_p7  ;;  %p6890_p5 = scmp.lt.s32.totalorder %s6888_s24, %s6881_s23 }
  0xbb   : > { %p6885_p0 = pneg %p6884_p1  ;;  %p6891_p3 = por %p6890_p5, %p6889_p13 }
  0xbd   : > { %p6892_p6 = pnand %p6891_p3, %p6885_p0 }
  0xbf   : > { %6895 = shalt.err (!%p6892_p6)
}
  0xc0   : > { %6523 = dma.hbm_to_vmem [thread:$0]  (!%p9031_p8), %s7344_s25, 256, %s7338_s8, %s7221_s13, %s9033_s1, %s9033_s1, %s9032_s18  }
  0xc1   : > { %p9034_p7 = scmp.ne.s32.totalorder %s9015_s15, 0 }
  0xc3   : > { %517 = sbr.rel (%p9034_p7) target bundleno = 1331 (0x533), region = 68 }
  0xca   : > { %s7374_s21 = sand.u32 1, %s6974_s22   ;;  %p9035_p9 = scmp.ne.s32.totalorder %s9010_s30, 0 }
  0xcb   : > { %s5266_s29 = sshll.u32 %s7374_s21, 4  ;;  %s520_s3 = scalar_lea.sflag [#allocation3], %s7374_s21 }
  0xcc   : > { %s523_s16 = scalar_lea.vmem [#allocation2], %s5266_s29 }
  0xcd   : > { %6949 = dma.done.wait (%p9035_p9), %s520_s3, 256  }
  0xce   : > { %6951 = vsyncadd (%p9035_p9), %s520_s3, 4294967040  ;;  %s528_s10 = sand.u32 1, %s7102_s27   ;;  %s5267_s15 = sshll.u32 %s7374_s21, 8 }
  0xcf   : > { %s529_s13 = scalar_lea.sflag [#allocation6], %s528_s10  ;;  %s7386_s8 = scalar_lea.vmem [#allocation5], %s5267_s15 }
  0xd0   : > { %6953 = dma.done.wait (%p9035_p9), %s529_s13, 4352  }
  0xd1   : > { %6955 = vsyncadd (%p9035_p9), %s529_s13, 4294962944  ;;  %s7392_s18 = scalar_lea.vmem [#allocation7], %s5266_s29  ;;  %p9036_p8 = scmp.eq.s32.totalorder %s7102_s27, 0 }
  0xd3   : > { %6957 = dma.done.wait (%p9036_p8), [#allocation9], 10240   ;;  %p9037_p4 = pmov %p9036_p8 }
  0xd5   : > { %6959 = vsyncadd (%p9037_p4), [#allocation9], 4294957056  ;;  %p9038_p12 = pmov %p9037_p4 }
  0xd6   : > { %p9039_p2 = pmov %p9037_p4 }
  0xd7   : > { %6961 = dma.done.wait (%p9038_p12), [#allocation12], 1024  }
  0xd8   : > { %6963 = vsyncadd (%p9039_p2), [#allocation12], 4294966272  ;;  %v6594_v0 = vld [vmem:[#allocation8] sm:$0xff]   ;;  %v6595_v1 = vld [vmem:[#allocation8 + $0x8] sm:$0xff]   ;;  %s9218_s7 = sld [smem:[#allocation71_spill]]  ;;  %s9219_s14 = sld [smem:[#allocation72_spill]] }
  0xd9   : > { %5680 = vmatprep.subr.bf16.mxu0 %v6594_v0  ;;  %v6596_v2 = vld [vmem:[#allocation8 + $0x10] sm:$0xff]   ;;  %v6597_v3 = vld [vmem:[#allocation8 + $0x18] sm:$0xff]   ;;  %v6598_v7 = vld [vmem:[#allocation8 + $0x20] sm:$0xff]   ;;  %s9220_s28 = sld [smem:[#allocation73_spill]]  ;;  %s9221_s29 = sld [smem:[#allocation74_spill]] }
  0xda   : > { %5681 = vmatpush3.bf16.msra.mxu0 %v6594_v0  ;;  %v615_v4 = vld [vmem:[%s523_s16] sm:$0xff]  ;;  %v616_v5 = vld [vmem:[%s523_s16 + $0x8] sm:$0xff]  ;;  %s8725_s3 = scalar_lea.vmem [#allocation13], %s5267_s15  ;;  %s9222_s16 = sld [smem:[#allocation21_spill]] }
  0xdb   : > { %5682 = vmatprep.subr.bf16.mxu0 %v6595_v1  ;;  %v617_v6 = vpack.c.bf16 %v616_v5, %v615_v4  ;;  %v6599_v8 = vld [vmem:[#allocation8 + $0x28] sm:$0xff]   ;;  %v6600_v9 = vld [vmem:[#allocation8 + $0x30] sm:$0xff]   ;;  %v6601_v10 = vld [vmem:[#allocation8 + $0x38] sm:$0xff]   ;;  %s5084_s15 = sshll.u32 %s8725_s3, 4  ;;  %s9223_s13 = sld [smem:[#allocation24_spill]]  ;;  %s8847_s15 = int_to_ptr.vmem [resolvable:$true] %s5084_s15 }
  0xdc   : > { %v618_v11 = vld [vmem:[%s7386_s8] sm:$0xff]  ;;  %v619_v12 = vld [vmem:[%s7386_s8 + $0x8] sm:$0xff]  ;;  %v620_v13 = vld [vmem:[%s7386_s8 + $0x10] sm:$0xff]  ;;  %s9224_s30 = sld [smem:[#allocation75_spill]]  ;;  %s5068_s11 = scalar_lea.sflag [#allocation4], %s7374_s21 }
  0xdd   : > { %5696 = vmatprep.mubr.bf16.mxu0 %v617_v6  ;;  %v621_v14 = vld [vmem:[%s7386_s8 + $0x18] sm:$0xff]  ;;  %v6602_v15 = vld [vmem:[#allocation10 + $0x40] sm:$0xff]   ;;  %v650_v16 = vpack.c.bf16 %v619_v12, %v618_v11  ;;  %v6603_v17 = vld [vmem:[#allocation10 + $0x48] sm:$0xff]   ;;  %s6896_s25 = scalar_lea.vmem %s8847_s15, 4096 }
  0xde   : > { %5683 = vmatpush3.bf16.msra.mxu0 %v6595_v1  ;;  %v651_v18 = vpack.c.bf16 %v621_v14, %v620_v13  ;;  %v622_v19 = vld [vmem:[%s7386_s8 + $0x20] sm:$0xff]  ;;  %v623_v20 = vld [vmem:[%s7386_s8 + $0x28] sm:$0xff]  ;;  %v624_v21 = vld [vmem:[%s7386_s8 + $0x30] sm:$0xff]  ;;  %p6897_p11 = scmp.ne.s32.totalorder %s8847_s15, %s6896_s25 }
  0xdf   : > { %5684 = vmatprep.subr.bf16.mxu0 %v6596_v2  ;;  %v625_v22 = vld [vmem:[%s7386_s8 + $0x38] sm:$0xff]  ;;  %v6604_v23 = vld [vmem:[#allocation10 + $0x50] sm:$0xff]   ;;  %v652_v24 = vpack.c.bf16 %v623_v20, %v622_v19  ;;  %v626_v27 = vld [vmem:[%s7386_s8 + $0x40] sm:$0xff] }
  0xe0   : > { %v6605_v25 = vld [vmem:[#allocation10 + $0x58] sm:$0xff]   ;;  %v653_v26 = vpack.c.bf16 %v625_v22, %v624_v21  ;;  %v627_v28 = vld [vmem:[%s7386_s8 + $0x48] sm:$0xff]  ;;  %v628_v29 = vld [vmem:[%s7386_s8 + $0x50] sm:$0xff]  ;;  %s5412_s10 = sshll.u32 %s9222_s16, 12 }
  0xe1   : > { %v629_v30 = vld [vmem:[%s7386_s8 + $0x58] sm:$0xff]  ;;  %v6606_v31 = vld [vmem:[#allocation10 + $0x60] sm:$0xff]   ;;  %v654_v32 = vpack.c.bf16 %v627_v28, %v626_v27  ;;  %v631_v35 = vld [vmem:[%s7386_s8 + $0x68] sm:$0xff]  ;;  %p9225_p10 = scmp.ne.s32.totalorder %s9223_s13, 0 }
  0xe2   : > { %5685 = vmatpush3.bf16.msra.mxu0 %v6596_v2  ;;  %v655_v33 = vpack.c.bf16 %v629_v30, %v628_v29  ;;  %v630_v34 = vld [vmem:[%s7386_s8 + $0x60] sm:$0xff]  ;;  %v632_v36 = vld [vmem:[%s7386_s8 + $0x70] sm:$0xff]  ;;  %v633_v37 = vld [vmem:[%s7386_s8 + $0x78] sm:$0xff]  ;;  %s8845_s1 = scalar_lea.hbm %s9224_s30, %s5412_s10 }
  0xe3   : > { %5686 = vmatprep.subr.bf16.mxu0 %v6597_v3  ;;  %v656_v38 = vpack.c.bf16 %v631_v35, %v630_v34  ;;  %v657_v39 = vpack.c.bf16 %v633_v37, %v632_v36  ;;  %v634_v40 = vld [vmem:[%s7386_s8 + $0x80] sm:$0xff]  ;;  %v635_v41 = vld [vmem:[%s7386_s8 + $0x88] sm:$0xff]  ;;  %v636_v42 = vld [vmem:[%s7386_s8 + $0x90] sm:$0xff]  ;;  %p6898_p1 = pnand %p6897_p11, %p9225_p10 }
  0xe4   : > { %v637_v43 = vld [vmem:[%s7386_s8 + $0x98] sm:$0xff]  ;;  %v658_v44 = vpack.c.bf16 %v635_v41, %v634_v40  ;;  %v638_v46 = vld [vmem:[%s7386_s8 + $0xa0] sm:$0xff]  ;;  %v639_v47 = vld [vmem:[%s7386_s8 + $0xa8] sm:$0xff] }
  0xe5   : > { %v659_v45 = vpack.c.bf16 %v637_v43, %v636_v42  ;;  %v640_v48 = vld [vmem:[%s7386_s8 + $0xb0] sm:$0xff]  ;;  %v641_v49 = vld [vmem:[%s7386_s8 + $0xb8] sm:$0xff]  ;;  %v660_v50 = vpack.c.bf16 %v639_v47, %v638_v46  ;;  %v642_v52 = vld [vmem:[%s7386_s8 + $0xc0] sm:$0xff]  ;;  %v8942_v46 = vmov 0.0   ;;  %p6899_p0 = pneg %p6898_p1 }
  0xe6   : > { %5687 = vmatpush3.bf16.msra.mxu0 %v6597_v3  ;;  %v661_v51 = vpack.c.bf16 %v641_v49, %v640_v48  ;;  %v643_v53 = vld [vmem:[%s7386_s8 + $0xc8] sm:$0xff]  ;;  %v644_v54 = vld [vmem:[%s7386_s8 + $0xd0] sm:$0xff]  ;;  %v645_v55 = vld [vmem:[%s7386_s8 + $0xd8] sm:$0xff] }
  0xe7   : > { %5688 = vmatprep.subr.bf16.mxu0 %v6598_v7  ;;  %v662_v56 = vpack.c.bf16 %v643_v53, %v642_v52  ;;  %v663_v57 = vpack.c.bf16 %v645_v55, %v644_v54  ;;  %v646_v58 = vld [vmem:[%s7386_s8 + $0xe0] sm:$0xff]  ;;  %v647_v59 = vld [vmem:[%s7386_s8 + $0xe8] sm:$0xff]  ;;  %v648_v60 = vld [vmem:[%s7386_s8 + $0xf0] sm:$0xff] }
  0xe8   : > { %v649_v61 = vld [vmem:[%s7386_s8 + $0xf8] sm:$0xff]  ;;  %v664_v62 = vpack.c.bf16 %v647_v59, %v646_v58  ;;  %v666_v0 = vld [vmem:[%s7392_s18] sm:$0xff]  ;;  %v6607_v3 = vld [vmem:[#allocation10 + $0x68] sm:$0xff]  }
  0xe9   : > { %v665_v63 = vpack.c.bf16 %v649_v61, %v648_v60  ;;  %v667_v1 = vld [vmem:[%s7392_s18 + $0x8] sm:$0xff]  ;;  %v6608_v4 = vld [vmem:[#allocation10 + $0x70] sm:$0xff]   ;;  %v6610_v6 = vld [vmem:[#allocation10 + $0xc0] sm:$0xff]  }
  0xea   : > { %5689 = vmatpush3.bf16.msra.mxu0 %v6598_v7  ;;  %v668_v2 = vpack.c.bf16 %v667_v1, %v666_v0  ;;  %v6609_v5 = vld [vmem:[#allocation10 + $0x78] sm:$0xff]   ;;  %6212 = vmatprep.subr.bf16.mxu1 %v6610_v6  ;;  %v6611_v7 = vld [vmem:[#allocation10 + $0xc8] sm:$0xff]   ;;  %v6616_v12 = vld [vmem:[#allocation10 + $0xf0] sm:$0xff]  }
  0xeb   : > { %5690 = vmatprep.subr.bf16.mxu0 %v6599_v8  ;;  %6220 = vmatpush3.bf16.msra.mxu1 %v6610_v6  ;;  %v6615_v11 = vld [vmem:[#allocation10 + $0xe8] sm:$0xff]   ;;  %v6617_v13 = vld [vmem:[#allocation10 + $0xf8] sm:$0xff]   ;;  %v7436_v14 = vld [vmem:[#allocation10] sm:$0xff]  }
  0xec   : > { %6213 = vmatprep.subr.bf16.mxu1 %v6611_v7  ;;  %v7601_v53 = vld [vmem:[%s8903_s4] ss:$0 sm:$0xff] }
  0xee   : > { %5691 = vmatpush3.bf16.msra.mxu0 %v6599_v8  ;;  %v6612_v8 = vld [vmem:[#allocation10 + $0xd0] sm:$0xff]  }
  0xef   : > { %5692 = vmatprep.subr.bf16.mxu0 %v6600_v9  ;;  %6221 = vmatpush3.bf16.msra.mxu1 %v6611_v7 }
  0xf0   : > { %6214 = vmatprep.subr.bf16.mxu1 %v6612_v8 }
  0xf2   : > { %5693 = vmatpush3.bf16.msra.mxu0 %v6600_v9  ;;  %v6613_v9 = vld [vmem:[#allocation10 + $0xd8] sm:$0xff]  }
  0xf3   : > { %5694 = vmatprep.subr.bf16.mxu0 %v6601_v10  ;;  %6222 = vmatpush3.bf16.msra.mxu1 %v6612_v8 }
  0xf4   : > { %6215 = vmatprep.subr.bf16.mxu1 %v6613_v9 }
  0xf6   : > { %5695 = vmatpush3.bf16.msra.mxu0 %v6601_v10  ;;  %v6614_v10 = vld [vmem:[#allocation10 + $0xe0] sm:$0xff]  }
  0xf7   : > { %5732 = vmatprep.subr.bf16.mxu0 %v6602_v15  ;;  %6223 = vmatpush3.bf16.msra.mxu1 %v6613_v9 }
  0xf8   : > { %6216 = vmatprep.subr.bf16.mxu1 %v6614_v10 }
  0xf9   : > { %5697 = vmatmul.mubr.bf16.vlgmr.msra.gmra.mrb[0].mxu0 %v650_v16  ;;  %v1032_v16 = vlaneseq }
  0xfa   : > { %5700 = vmatprep.mubr.bf16.mxu0 %v651_v18  ;;  %5733 = vmatpush3.bf16.msra.mxu0 %v6602_v15  ;;  %v7439_v15 = vld [vmem:[#allocation10 + $0x100] sm:$0xff]  }
  0xfb   : > { %5734 = vmatprep.subr.bf16.mxu0 %v6603_v17  ;;  %6224 = vmatpush3.bf16.msra.mxu1 %v6614_v10 }
  0xfc   : > { %6217 = vmatprep.subr.bf16.mxu1 %v6615_v11 }
  0xfe   : > { %5735 = vmatpush3.bf16.msra.mxu0 %v6603_v17  ;;  %v7442_v17 = vshrl.u32 %v1032_v16, 7 }
  0xff   : > { %5736 = vmatprep.subr.bf16.mxu0 %v6604_v23  ;;  %6225 = vmatpush3.bf16.msra.mxu1 %v6615_v11 }
 0x100   : > { %6218 = vmatprep.subr.bf16.mxu1 %v6616_v12  ;;  %v1035_v18 = vadd.s32 16, %v7442_v17  ;;  %v1037_v19 = vadd.s32 32, %v7442_v17  ;;  %v1039_v20 = vadd.s32 48, %v7442_v17  ;;  %v1045_v27 = vadd.s32 96, %v7442_v17 }
 0x101   : > { %5701 = vmatmul.mubr.bf16.gmra.mrb[4].mxu0 %v652_v24  ;;  %v1047_v28 = vadd.s32 112, %v7442_v17  ;;  %v1036_v29 = vadd.s32 24, %v7442_v17  ;;  %v1049_v30 = vadd.s32 128, %v7442_v17  ;;  %v1055_v42 = vadd.s32 176, %v7442_v17 }
 0x102   : > { %5704 = vmatprep.mubr.bf16.mxu0 %v653_v26  ;;  %5737 = vmatpush3.bf16.msra.mxu0 %v6604_v23  ;;  %v1383_v21 = vand.u32 15, %v1035_v18  ;;  %v1397_v22 = vand.u32 15, %v1037_v19  ;;  %v1034_v23 = vadd.s32 8, %v7442_v17  ;;  %v1411_v24 = vand.u32 15, %v1039_v20 }
 0x103   : > { %5738 = vmatprep.subr.bf16.mxu0 %v6605_v25  ;;  %6226 = vmatpush3.bf16.msra.mxu1 %v6616_v12  ;;  %v1043_v26 = vadd.s32 80, %v7442_v17  ;;  %v1453_v37 = vand.u32 15, %v1045_v27  ;;  %v1467_v40 = vand.u32 15, %v1047_v28  ;;  %v1390_v41 = vand.u32 15, %v1036_v29 }
 0x104   : > { %6219 = vmatprep.subr.bf16.mxu1 %v6617_v13  ;;  %vm7454_vm0 = vcmp.ge.s32.totalorder %v1383_v21, 1  ;;  %vm7458_vm1 = vcmp.ge.s32.totalorder %v1397_v22, 1  ;;  %vm7462_vm2 = vcmp.ge.s32.totalorder %v1411_v24, 1  ;;  %v1057_v43 = vadd.s32 192, %v7442_v17 }
 0x105   : > { %v1439_v36 = vand.u32 15, %v1043_v26  ;;  %v7474_v47 = vsel %vm7454_vm0, 1.0, %v8942_v46  ;;  %v1059_v48 = vadd.s32 208, %v7442_v17  ;;  %v7480_v49 = vsel %vm7458_vm1, 1.0, %v8942_v46 }
 0x106   : > { %5739 = vmatpush3.bf16.msra.mxu0 %v6605_v25  ;;  %v1041_v25 = vadd.s32 64, %v7442_v17  ;;  %vm7495_vm5 = vcmp.ge.s32.totalorder %v1453_v37, 1  ;;  %vm7499_vm7 = vcmp.ge.s32.totalorder %v1467_v40, 1  ;;  %vm2090_vm8 = vcmp.le.s32.totalorder %v1390_v41, 14 }
 0x107   : > { %5740 = vmatprep.subr.bf16.mxu0 %v6606_v31  ;;  %6227 = vmatpush3.bf16.msra.mxu1 %v6617_v13  ;;  %vm7491_vm4 = vcmp.ge.s32.totalorder %v1439_v36, 1  ;;  %v1537_v58 = vand.u32 15, %v1057_v43  ;;  %v1551_v60 = vand.u32 15, %v1059_v48  ;;  %v1061_v61 = vadd.s32 224, %v7442_v17 }
 0x108   : > { %5924 = vmatprep.subr.bf16.mxu1 %v7439_v15  ;;  %v1425_v35 = vand.u32 15, %v1041_v25  ;;  %v7516_v1 = vsel %vm7491_vm4, 1.0, %v8942_v46  ;;  %v1040_v7 = vadd.s32 56, %v7442_v17  ;;  %v1065_v10 = vadd.s32 256, %v7442_v17 }
 0x109   : > { %5705 = vmatmul.mubr.bf16.gmra.mrb[8].mxu0 %v654_v32  ;;  %vm1894_vm13 = vcmp.ge.s32.totalorder %v1537_v58, 1  ;;  %vm1896_vm15 = vcmp.ge.s32.totalorder %v1551_v60, 1  ;;  %v1565_v8 = vand.u32 15, %v1061_v61  ;;  %v1042_v12 = vadd.s32 72, %v7442_v17  ;;  %v7613_v58 = vld [vmem:[%s8904_s5] ss:$0 sm:$0xff] }
 0x10a   : > { %5708 = vmatprep.mubr.bf16.mxu0 %v655_v33  ;;  %5741 = vmatpush3.bf16.msra.mxu0 %v6606_v31  ;;  %v1376_v33 = vand.u32 15, %v1034_v23  ;;  %vm7487_vm3 = vcmp.ge.s32.totalorder %v1425_v35, 1  ;;  %v1044_v13 = vadd.s32 88, %v7442_v17  ;;  %v1046_v16 = vadd.s32 104, %v7442_v17 }
 0x10b   : > { %5742 = vmatprep.subr.bf16.mxu0 %v6607_v3  ;;  %v7511_v0 = vsel %vm7487_vm3, 1.0, %v8942_v46  ;;  %v1048_v20 = vadd.s32 120, %v7442_v17  ;;  %v1050_v21 = vadd.s32 136, %v7442_v17  ;;  %v7555_v22 = vsel %vm1894_vm13, 1.0, %v8942_v46 }
 0x10c   : > { %vm2088_vm6 = vcmp.le.s32.totalorder %v1376_v33, 14  ;;  %v7558_v23 = vsel %vm1896_vm15, 1.0, %v8942_v46  ;;  %v1052_v25 = vadd.s32 152, %v7442_v17  ;;  %vm1898_vm0 = vcmp.ge.s32.totalorder %v1565_v8, 1 }
 0x10d   : > { %v1593_v26 = vand.u32 15, %v1065_v10  ;;  %v1418_v27 = vand.u32 15, %v1040_v7  ;;  %v1369_v28 = vand.u32 15, %v7442_v17  ;;  %v1432_v29 = vand.u32 15, %v1042_v12 }
 0x10e   : > { %5743 = vmatpush3.bf16.msra.mxu0 %v6607_v3  ;;  %v7524_v3 = vsel %vm2090_vm8, 1.0, %v8942_v46  ;;  %v1460_v31 = vand.u32 15, %v1046_v16  ;;  %v1474_v32 = vand.u32 15, %v1048_v20  ;;  %v1488_v33 = vand.u32 15, %v1050_v21 }
 0x10f   : > { %5744 = vmatprep.subr.bf16.mxu0 %v6608_v4  ;;  %v1054_v34 = vadd.s32 168, %v7442_v17  ;;  %v1056_v35 = vadd.s32 184, %v7442_v17  ;;  %v7570_v36 = vsel %vm1898_vm0, 1.0, %v8942_v46  ;;  %v1502_v37 = vand.u32 15, %v1052_v25 }
 0x110   : > { %vm7577_vm3 = vcmp.le.s32.totalorder %v1418_v27, 14  ;;  %vm1870_vm4 = vcmp.ge.s32.totalorder %v1369_v28, 1  ;;  %vm7590_vm8 = vcmp.le.s32.totalorder %v1474_v32, 14  ;;  %v1064_v25 = vadd.s32 248, %v7442_v17 }
 0x111   : > { %5709 = vmatmul.mubr.bf16.gmra.mrb[12].mxu0 %v656_v38  ;;  %v1051_v38 = vadd.s32 144, %v7442_v17  ;;  %v1530_v52 = vand.u32 15, %v1056_v35  ;;  %v7621_v60 = vsel %vm7577_vm3, 1.0, %v8942_v46  ;;  %v7681_v48 = vadd.s32 272, %v7442_v17 }
 0x112   : > { %5712 = vmatprep.mubr.bf16.mxu0 %v657_v39  ;;  %5745 = vmatpush3.bf16.msra.mxu0 %v6608_v4  ;;  %v1053_v39 = vadd.s32 160, %v7442_v17  ;;  %v7529_v4 = vsel %vm7499_vm7, 1.0, %v8942_v46  ;;  %vm7586_vm7 = vcmp.le.s32.totalorder %v1460_v31, 14  ;;  %v1586_v43 = vand.u32 15, %v1064_v25 }
 0x113   : > { %5746 = vmatprep.subr.bf16.mxu0 %v6609_v5  ;;  %v1495_v54 = vand.u32 15, %v1051_v38  ;;  %v1058_v38 = vadd.s32 200, %v7442_v17  ;;  %v7636_v8 = vsel %vm7586_vm7, 1.0, %v8942_v46 }
 0x114   : > { %v1509_v55 = vand.u32 15, %v1053_v39  ;;  %v1060_v39 = vadd.s32 216, %v7442_v17 }
 0x115   : > { %vm1888_vm10 = vcmp.ge.s32.totalorder %v1495_v54, 1 }
 0x116   : > { %5747 = vmatpush3.bf16.msra.mxu0 %v6609_v5  ;;  %vm1890_vm11 = vcmp.ge.s32.totalorder %v1509_v55, 1  ;;  %v7541_v11 = vsel %vm1888_vm10, 1.0, %v8942_v46  ;;  %vm7606_vm10 = vcmp.le.s32.totalorder %v1502_v37, 14 }
 0x117   : > { %5780 = vmatprep.subr.bf16.mxu0 %v7436_v14  ;;  %v7547_v18 = vsel %vm1890_vm11, 1.0, %v8942_v46  ;;  %vm1833_vm11 = vcmp.lt.s32.totalorder %v7442_v17, 1  ;;  %v7652_v16 = vsel %vm7606_vm10, 1.0, %v8942_v46 }
 0x118   : > { %9069 = vst [vmem:[#allocation29_spill] sm:$0xff] %v7652_v16 }
 0x119   : > { %5713 = vmatmul.mubr.bf16.gmra.mrb[16].mxu0 %v658_v44  ;;  %v1481_v44 = vand.u32 15, %v1049_v30  ;;  %v1446_v30 = vand.u32 15, %v1044_v13 }
 0x11a   : > { %5716 = vmatprep.mubr.bf16.mxu0 %v659_v45  ;;  %v1038_v45 = vadd.s32 40, %v7442_v17 }
 0x11b   : > { %vm1886_vm9 = vcmp.ge.s32.totalorder %v1481_v44, 1 }
 0x11c   : > { %v1404_v59 = vand.u32 15, %v1038_v45  ;;  %v7532_v5 = vsel %vm1886_vm9, 1.0, %v8942_v46  ;;  %vm7594_vm9 = vcmp.le.s32.totalorder %v1488_v33, 14 }
 0x11d   : > { %v7646_v10 = vsel %vm7594_vm9, 1.0, %v8942_v46 }
 0x11e   : > { %vm7534_vm14 = vcmp.le.s32.totalorder %v1404_v59, 14  ;;  %v7616_v59 = vsel %vm1870_vm4, 1.0, %v8942_v46  ;;  %9068 = vst [vmem:[#allocation28_spill] sm:$0xff] %v7646_v10 }
 0x11f   : > { %v7563_v24 = vsel %vm7534_vm14, 1.0, %v8942_v46  ;;  %vm2110_vm14 = vcmp.le.s32.totalorder %v1530_v52, 14 }
 0x120   : > { %v7665_v33 = vsel %vm2110_vm14, 1.0, %v8942_v46 }
 0x121   : > { %5717 = vmatmul.mubr.bf16.gmra.mrb[20].mxu0 %v660_v50  ;;  %v7485_v50 = vsel %vm7462_vm2, 1.0, %v8942_v46  ;;  %vm1902_vm2 = vcmp.ge.s32.totalorder %v1593_v26, 1  ;;  %9071 = vst [vmem:[#allocation31_spill] sm:$0xff] %v7665_v33 }
 0x122   : > { %5720 = vmatprep.mubr.bf16.mxu0 %v661_v51  ;;  %v1516_v51 = vand.u32 15, %v1054_v34  ;;  %v7604_v54 = vsel %vm1902_vm2, 1.0, %v8942_v46  ;;  %vm7698_vm2 = vcmp.le.s32.totalorder %v1586_v43, 14  ;;  %v6620_v43 = vld [vmem:[#allocation10 + $0x8] sm:$0xff]  }
 0x124   : > { %vm2108_vm13 = vcmp.le.s32.totalorder %v1516_v51, 14  ;;  %v7684_v51 = vadd.s32 280, %v7442_v17 }
 0x125   : > { %v7662_v32 = vsel %vm2108_vm13, 1.0, %v8942_v46 }
 0x126   : > { %9070 = vst [vmem:[#allocation30_spill] sm:$0xff] %v7662_v32 }
 0x129   : > { %5721 = vmatmul.mubr.bf16.gmra.mrb[24].mxu0 %v662_v56  ;;  %v1544_v56 = vand.u32 15, %v1058_v38 }
 0x12a   : > { %5724 = vmatprep.mubr.bf16.mxu0 %v663_v57  ;;  %v1523_v57 = vand.u32 15, %v1055_v42  ;;  %v1062_v42 = vadd.s32 232, %v7442_v17 }
 0x12b   : > { %vm2112_vm15 = vcmp.le.s32.totalorder %v1544_v56, 14 }
 0x12c   : > { %vm1892_vm12 = vcmp.ge.s32.totalorder %v1523_v57, 1  ;;  %v1558_v57 = vand.u32 15, %v1060_v39  ;;  %v7669_v37 = vsel %vm2112_vm15, 1.0, %v8942_v46 }
 0x12d   : > { %v7550_v19 = vsel %vm1892_vm12, 1.0, %v8942_v46  ;;  %vm2050_vm12 = vcmp.lt.s32.totalorder %v7442_v17, 7  ;;  %9072 = vst [vmem:[#allocation32_spill] sm:$0xff] %v7669_v37  ;;  %v6622_v37 = vld [vmem:[#allocation10 + $0x10] sm:$0xff]  }
 0x12e   : > { %vm2114_vm0 = vcmp.le.s32.totalorder %v1558_v57, 14 }
 0x12f   : > { %v7672_v38 = vsel %vm2114_vm0, 1.0, %v8942_v46 }
 0x130   : > { %9073 = vst [vmem:[#allocation33_spill] sm:$0xff] %v7672_v38 }
 0x131   : > { %5725 = vmatmul.mubr.bf16.gmra.mrb[28].mxu0 %v664_v62  ;;  %v1063_v62 = vadd.s32 240, %v7442_v17 }
 0x132   : > { %5728 = vmatprep.mubr.bf16.mxu0 %v665_v63  ;;  %v7506_v63 = vsel %vm2088_vm6, 1.0, %v8942_v46  ;;  %vm7582_vm6 = vcmp.le.s32.totalorder %v1446_v30, 14 }
 0x133   : > { %v1579_v9 = vand.u32 15, %v1063_v62  ;;  %v1572_v62 = vand.u32 15, %v1062_v42  ;;  %v7631_v7 = vsel %vm7582_vm6, 1.0, %v8942_v46 }
 0x135   : > { %vm1900_vm1 = vcmp.ge.s32.totalorder %v1579_v9, 1  ;;  %v7641_v9 = vsel %vm7590_vm8, 1.0, %v8942_v46 }
 0x136   : > { %v7575_v40 = vsel %vm1900_vm1, 1.0, %v8942_v46  ;;  %vm2116_vm1 = vcmp.le.s32.totalorder %v1572_v62, 14 }
 0x137   : > { %v7676_v42 = vsel %vm2116_vm1, 1.0, %v8942_v46 }
 0x138   : > { %9074 = vst [vmem:[#allocation34_spill] sm:$0xff] %v7676_v42  ;;  %v9081_v42 = vmov 0.0  }
 0x139   : > { %5729 = vmatmul.mubr.bf16.gmra.mrb[32].mxu0 %v668_v2  ;;  %v7521_v2 = vsel %vm7495_vm5, 1.0, %v8942_v46  ;;  %vm2096_vm5 = vcmp.le.s32.totalorder %v1432_v29, 14  ;;  %v1066_v29 = vadd.s32 264, %v7442_v17  ;;  %v6639_v17 = vld [vmem:[#allocation10 + $0x160] sm:$0xff]  }
 0x13a   : > { %v7624_v61 = vsel %vm2096_vm5, 1.0, %v8942_v46 }
 0x13b   : > { %v1600_v45 = vand.u32 15, %v1066_v29 }
 0x13d   : > { %vm7721_vm3 = vcmp.le.s32.totalorder %v1600_v45, 14 }
 0x1cc   : > { %v5698_v6 = vpop.f32.mrb[0].mxu0 }
 0x1cd   : > { %v919_v12 = vmul.f32 %v5698_v6, %v7601_v53  ;;  %v767_v13 = vpop.f32.mrb[1].mxu0 }
 0x1ce   : > { %v917_v20 = vmul.f32 %v7601_v53, %v767_v13  ;;  %v5699_v21 = vpop.f32.mrb[2].mxu0 }
 0x1cf   : > { %v962_v26 = vadd.f32 %v7613_v58, %v919_v12  ;;  %v920_v27 = vmul.f32 %v5699_v21, %v7601_v53  ;;  %v770_v28 = vpop.f32.mrb[3].mxu0 }
 0x1d0   : > { %v960_v30 = vadd.f32 %v7613_v58, %v917_v20  ;;  %v918_v31 = vmul.f32 %v7601_v53, %v770_v28 }
 0x1d1   : > { %v998_v34 = vmax.f32 %v962_v26, 0.0  ;;  %v963_v35 = vadd.f32 %v7613_v58, %v920_v27 }
 0x1d2   : > { %v996_v39 = vmax.f32 %v960_v30, 0.0  ;;  %v961_v41 = vadd.f32 %v7613_v58, %v918_v31 }
 0x1d3   : > { %v7678_v44 = vmax.f32 %v963_v35, 0.0  ;;  %v1799_v52 = vrot.slane %v998_v34, 7  ;;  %v2016_v55 = vrot.slane %v998_v34, 1 }
 0x1d4   : > { %v7686_v56 = vmul.f32 0.0, %v996_v39  ;;  %v997_v57 = vmax.f32 %v961_v41, 0.0  ;;  %v5702_v62 = vpop.f32.mrb[4].mxu0 }
 0x1d5   : > { %v1800_v6 = vrot.slane %v7678_v44, 7  ;;  %v8944_v12 = vrot.slane %v7678_v44, 1  ;;  %v7691_v13 = vpack.c.bf16 %v7678_v44, %v998_v34  ;;  %v923_v20 = vmul.f32 %v5702_v62, %v7601_v53  ;;  %v783_v21 = vpop.f32.mrb[5].mxu0 }
 0x1d6   : > { %v7695_v26 = vmul.f32 0.0, %v997_v57  ;;  %v921_v27 = vmul.f32 %v7601_v53, %v783_v21  ;;  %v5703_v28 = vpop.f32.mrb[6].mxu0 }
 0x1d7   : > { %9075 = vst [vmem:[#allocation35_spill] sm:$0xff] %v7691_v13  ;;  %v1866_v30 = vsel %vm1833_vm11, %v1799_v52, %v1800_v6  ;;  %v966_v31 = vadd.f32 %v7613_v58, %v923_v20  ;;  %v924_v34 = vmul.f32 %v5703_v28, %v7601_v53  ;;  %v786_v35 = vpop.f32.mrb[7].mxu0  ;;  %v7710_v39 = vsel %vm2050_vm12, %v2016_v55, %v8944_v12 }
 0x1d8   : > { %v1798_v41 = vrot.slane %v7695_v26, 7  ;;  %v964_v57 = vadd.f32 %v7613_v58, %v921_v27  ;;  %v922_v62 = vmul.f32 %v7601_v53, %v786_v35  ;;  %v2249_v28 = vpack.c.bf16 %v7695_v26, %v7686_v56 }
 0x1d9   : > { %v7716_v21 = vmax.f32 %v966_v31, 0.0  ;;  %v967_v20 = vadd.f32 %v7613_v58, %v924_v34  ;;  %v9080_v31 = vrot.slane %v7686_v56, 7 }
 0x1da   : > { %v1867_v12 = vsel %vm1833_vm11, %v1798_v41, %v1799_v52  ;;  %v7727_v25 = vmax.f32 %v964_v57, 0.0  ;;  %v965_v27 = vadd.f32 %v7613_v58, %v922_v62  ;;  %5748 = vmatprep.mubr.bf16.mxu0 %v2249_v28  ;;  %v7742_v52 = vsel %vm7698_vm2, 1.0, %v9081_v42 }
 0x1db   : > { %v7734_v34 = vsel %vm1833_vm11, %v9080_v31, %v1798_v41  ;;  %v1980_v35 = vmul.f32 %v7474_v47, %v1867_v12  ;;  %v7737_v45 = vmax.f32 %v967_v20, 0.0  ;;  %9082 = vst [vmem:[#allocation36_spill] sm:$0xff] %v7742_v52  ;;  %5749 = vmatmul.mubr.bf16.vlgmr.msra.gmra.mrb[36].mxu0 %v7691_v13  ;;  %v9083_v31 = vrot.slane %v7695_v26, 1 }
 0x1dc   : > { %v1801_v62 = vrot.slane %v7727_v25, 7  ;;  %v7746_v38 = vmax.f32 %v965_v27, 0.0  ;;  %v5706_v41 = vpop.f32.mrb[8].mxu0  ;;  %5781 = vmatpush3.bf16.msra.mxu0 %v7436_v14  ;;  %v7766_v57 = vsel %vm7721_vm3, 1.0, %v9081_v42 }
 0x1dd   : > { %v7753_v47 = vsel %vm2050_vm12, %v9083_v31, %v2016_v55  ;;  %v1804_v29 = vrot.slane %v7737_v45, 7  ;;  %v927_v20 = vmul.f32 %v5706_v41, %v7601_v53  ;;  %v799_v28 = vpop.f32.mrb[9].mxu0  ;;  %v7760_v27 = vpack.c.bf16 %v7737_v45, %v7716_v21  ;;  %9085 = vst [vmem:[#allocation38_spill] sm:$0xff] %v7766_v57  ;;  %5782 = vmatprep.subr.bf16.mxu0 %v6620_v43 }
 0x1de   : > { %v1803_v55 = vrot.slane %v7716_v21, 7  ;;  %v1802_v31 = vrot.slane %v7746_v38, 7  ;;  %v925_v12 = vmul.f32 %v7601_v53, %v799_v28  ;;  %v5707_v52 = vpop.f32.mrb[10].mxu0  ;;  %v7773_v41 = vpack.c.bf16 %v7746_v38, %v7727_v25 }
 0x1df   : > { %9084 = vst [vmem:[#allocation37_spill] sm:$0xff] %v7760_v27  ;;  %v970_v14 = vadd.f32 %v7613_v58, %v927_v20  ;;  %v928_v33 = vmul.f32 %v5707_v52, %v7601_v53  ;;  %v802_v46 = vpop.f32.mrb[11].mxu0  ;;  %v7777_v42 = vpack.c.bf16 %v1866_v30, %v1980_v35  ;;  %v1865_v57 = vsel %vm1833_vm11, %v1800_v6, %v1801_v62 }
 0x1e0   : > { %9086 = vst [vmem:[#allocation39_spill] sm:$0xff] %v7773_v41  ;;  %v968_v32 = vadd.f32 %v7613_v58, %v925_v12  ;;  %v926_v28 = vmul.f32 %v7601_v53, %v802_v46  ;;  %5752 = vmatprep.mubr.bf16.mxu0 %v7773_v41  ;;  %v1864_v16 = vsel %vm1833_vm11, %v1801_v62, %v1802_v31  ;;  %v6624_v46 = vld [vmem:[#allocation10 + $0x18] sm:$0xff]  }
 0x1e1   : > { %9087 = vst [vmem:[#allocation40_spill] sm:$0xff] %v7777_v42  ;;  %v1982_v10 = vmul.f32 %v7480_v49, %v1865_v57  ;;  %v7787_v20 = vmax.f32 %v970_v14, 0.0  ;;  %v971_v52 = vadd.f32 %v7613_v58, %v928_v33  ;;  %5783 = vmatpush3.bf16.msra.mxu0 %v6620_v43  ;;  %v1862_v30 = vsel %vm1833_vm11, %v1803_v55, %v1804_v29 }
 0x1e2   : > { %v1863_v6 = vsel %vm1833_vm11, %v1802_v31, %v1803_v55  ;;  %v7794_v35 = vmax.f32 %v968_v32, 0.0  ;;  %v969_v12 = vadd.f32 %v7613_v58, %v926_v28  ;;  %5784 = vmatprep.subr.bf16.mxu0 %v6622_v37  ;;  %v9092_v57 = vrot.slane %v7695_v26, 1 }
 0x1e3   : > { %v7797_v62 = vpack.c.bf16 %v1864_v16, %v1982_v10  ;;  %v1984_v49 = vmul.f32 %v7485_v50, %v1863_v6  ;;  %v7803_v14 = vmax.f32 %v971_v52, 0.0  ;;  %5753 = vmatmul.mubr.bf16.gmra.mrb[40].mxu0 %v7760_v27  ;;  %v1807_v50 = vrot.slane %v7787_v20, 7 }
 0x1e4   : > { %v1805_v32 = vrot.slane %v7794_v35, 7  ;;  %v7807_v31 = vmax.f32 %v969_v12, 0.0  ;;  %v5710_v10 = vpop.f32.mrb[12].mxu0 }
 0x1e5   : > { %9088 = vst [vmem:[#allocation41_spill] sm:$0xff] %v7797_v62  ;;  %v7810_v16 = vpack.c.bf16 %v1862_v30, %v1984_v49  ;;  %v1808_v28 = vrot.slane %v7803_v14, 7  ;;  %v931_v6 = vmul.f32 %v5710_v10, %v7601_v53  ;;  %v815_v33 = vpop.f32.mrb[13].mxu0  ;;  %v7817_v52 = vpack.c.bf16 %v7803_v14, %v7787_v20  ;;  %5785 = vmatpush3.bf16.msra.mxu0 %v6622_v37  ;;  %v6626_v49 = vld [vmem:[#allocation10 + $0x20] sm:$0xff]  }
 0x1e6   : > { %v1806_v12 = vrot.slane %v7807_v31, 7  ;;  %v929_v55 = vmul.f32 %v7601_v53, %v815_v33  ;;  %v5711_v43 = vpop.f32.mrb[14].mxu0  ;;  %v7823_v30 = vpack.c.bf16 %v7807_v31, %v7794_v35  ;;  %5786 = vmatprep.subr.bf16.mxu0 %v6624_v46  ;;  %v9093_v10 = vrot.slane %v7686_v56, 1 }
 0x1e7   : > { %9089 = vst [vmem:[#allocation42_spill] sm:$0xff] %v7810_v16  ;;  %9090 = vst [vmem:[#allocation43_spill] sm:$0xff] %v7817_v52  ;;  %v974_v37 = vadd.f32 %v7613_v58, %v931_v6  ;;  %v932_v27 = vmul.f32 %v5711_v43, %v7601_v53  ;;  %v818_v33 = vpop.f32.mrb[15].mxu0  ;;  %v1861_v41 = vsel %vm1833_vm11, %v1804_v29, %v1805_v32 }
 0x1e8   : > { %9091 = vst [vmem:[#allocation44_spill] sm:$0xff] %v7823_v30  ;;  %v7831_v16 = vsel %vm2050_vm12, %v9093_v10, %v9092_v57  ;;  %v1858_v62 = vsel %vm1833_vm11, %v1807_v50, %v1808_v28  ;;  %v972_v42 = vadd.f32 %v7613_v58, %v929_v55  ;;  %v930_v26 = vmul.f32 %v7601_v53, %v818_v33 }
 0x1e9   : > { %9094 = vst [vmem:[#allocation45_spill] sm:$0xff] %v7831_v16  ;;  %5756 = vmatprep.mubr.bf16.mxu0 %v7823_v30  ;;  %v1860_v57 = vsel %vm1833_vm11, %v1805_v32, %v1806_v12  ;;  %v1986_v6 = vmul.f32 %v7511_v0, %v1861_v41  ;;  %v7845_v10 = vmax.f32 %v974_v37, 0.0  ;;  %v975_v43 = vadd.f32 %v7613_v58, %v932_v27  ;;  %v6628_v32 = vld [vmem:[#allocation10 + $0x28] sm:$0xff]   ;;  %v6630_v41 = vld [vmem:[#allocation10 + $0x30] sm:$0xff]  }
 0x1ea   : > { %5787 = vmatpush3.bf16.msra.mxu0 %v6624_v46  ;;  %v1859_v29 = vsel %vm1833_vm11, %v1806_v12, %v1807_v50  ;;  %v7852_v55 = vmul.f32 %v7506_v63, %v7753_v47  ;;  %v7854_v33 = vmax.f32 %v972_v42, 0.0  ;;  %v973_v30 = vadd.f32 %v7613_v58, %v930_v26 }
 0x1eb   : > { %5788 = vmatprep.subr.bf16.mxu0 %v6626_v49  ;;  %v7857_v13 = vpack.c.bf16 %v1860_v57, %v1986_v6  ;;  %v1988_v0 = vmul.f32 %v7516_v1, %v1859_v29  ;;  %v7862_v46 = vmax.f32 %v975_v43, 0.0  ;;  %5757 = vmatmul.mubr.bf16.gmra.mrb[44].mxu0 %v7817_v52  ;;  %v1811_v1 = vrot.slane %v7845_v10, 7 }
 0x1ec   : > { %9095 = vst [vmem:[#allocation46_spill] sm:$0xff] %v7852_v55  ;;  %v1809_v47 = vrot.slane %v7854_v33, 7  ;;  %v7868_v50 = vmax.f32 %v973_v30, 0.0  ;;  %v5714_v12 = vpop.f32.mrb[16].mxu0  ;;  %v9100_v52 = vrot.slane %v7727_v25, 1 }
 0x1ed   : > { %9096 = vst [vmem:[#allocation47_spill] sm:$0xff] %v7857_v13  ;;  %v7871_v37 = vpack.c.bf16 %v1858_v62, %v1988_v0  ;;  %v1812_v26 = vrot.slane %v7862_v46, 7  ;;  %v935_v57 = vmul.f32 %v5714_v12, %v7601_v53  ;;  %v831_v6 = vpop.f32.mrb[17].mxu0  ;;  %v7878_v43 = vpack.c.bf16 %v7862_v46, %v7845_v10 }
 0x1ee   : > { %5789 = vmatpush3.bf16.msra.mxu0 %v6626_v49  ;;  %v1810_v29 = vrot.slane %v7868_v50, 7  ;;  %v933_v63 = vmul.f32 %v7601_v53, %v831_v6  ;;  %v5715_v62 = vpop.f32.mrb[18].mxu0  ;;  %v7885_v0 = vpack.c.bf16 %v7868_v50, %v7854_v33  ;;  %v1857_v49 = vsel %vm1833_vm11, %v1808_v28, %v1809_v47 }
 0x1ef   : > { %9097 = vst [vmem:[#allocation48_spill] sm:$0xff] %v7871_v37  ;;  %9098 = vst [vmem:[#allocation49_spill] sm:$0xff] %v7878_v43  ;;  %5790 = vmatprep.subr.bf16.mxu0 %v6628_v32  ;;  %v978_v12 = vadd.f32 %v7613_v58, %v935_v57  ;;  %v936_v42 = vmul.f32 %v5715_v62, %v7601_v53  ;;  %v834_v27 = vpop.f32.mrb[19].mxu0  ;;  %v1854_v30 = vsel %vm1833_vm11, %v1811_v1, %v1812_v26 }
 0x1f0   : > { %9099 = vst [vmem:[#allocation50_spill] sm:$0xff] %v7885_v0  ;;  %v976_v6 = vadd.f32 %v7613_v58, %v933_v63  ;;  %v934_v16 = vmul.f32 %v7601_v53, %v834_v27  ;;  %5760 = vmatprep.mubr.bf16.mxu0 %v7885_v0  ;;  %v1856_v55 = vsel %vm1833_vm11, %v1809_v47, %v1810_v29  ;;  %v9101_v63 = vrot.slane %v7678_v44, 1 }
 0x1f1   : > { %v1990_v57 = vmul.f32 %v7521_v2, %v1857_v49  ;;  %v7899_v37 = vmax.f32 %v978_v12, 0.0  ;;  %v979_v62 = vadd.f32 %v7613_v58, %v936_v42  ;;  %v1855_v28 = vsel %vm1833_vm11, %v1810_v29, %v1811_v1  ;;  %v6632_v2 = vld [vmem:[#allocation10 + $0x38] sm:$0xff]  }
 0x1f2   : > { %5791 = vmatpush3.bf16.msra.mxu0 %v6628_v32  ;;  %v2082_v27 = vsel %vm2050_vm12, %v9101_v63, %v9100_v52  ;;  %v7910_v0 = vmax.f32 %v976_v6, 0.0  ;;  %v977_v47 = vadd.f32 %v7613_v58, %v934_v16  ;;  %v1992_v32 = vmul.f32 %v7529_v4, %v1855_v28 }
 0x1f3   : > { %5792 = vmatprep.subr.bf16.mxu0 %v6630_v41  ;;  %v7913_v12 = vpack.c.bf16 %v1856_v55, %v1990_v57  ;;  %v7919_v44 = vmax.f32 %v979_v62, 0.0  ;;  %5761 = vmatmul.mubr.bf16.gmra.mrb[48].mxu0 %v7878_v43  ;;  %v1815_v4 = vrot.slane %v7899_v37, 7 }
 0x1f4   : > { %v1813_v49 = vrot.slane %v7910_v0, 7  ;;  %v7923_v6 = vmax.f32 %v977_v47, 0.0  ;;  %v5718_v16 = vpop.f32.mrb[20].mxu0  ;;  %v7926_v55 = vpack.c.bf16 %v1854_v30, %v1992_v32  ;;  %v7941_v32 = vld [vmem:[#allocation10 + $0x80] sm:$0xff]  }
 0x1f5   : > { %9102 = vst [vmem:[#allocation51_spill] sm:$0xff] %v7913_v12  ;;  %v1816_v57 = vrot.slane %v7919_v44, 7  ;;  %v939_v28 = vmul.f32 %v5718_v16, %v7601_v53  ;;  %v847_v63 = vpop.f32.mrb[21].mxu0  ;;  %v7933_v62 = vpack.c.bf16 %v7919_v44, %v7899_v37  ;;  %9106 = vst [vmem:[#allocation55_spill] sm:$0xff] %v7941_v32  ;;  %v2198_v16 = vmul.f32 %v7524_v3, %v2082_v27 }
 0x1f6   : > { %9103 = vst [vmem:[#allocation52_spill] sm:$0xff] %v7926_v55  ;;  %5793 = vmatpush3.bf16.msra.mxu0 %v6630_v41  ;;  %v1814_v47 = vrot.slane %v7923_v6, 7  ;;  %v937_v52 = vmul.f32 %v7601_v53, %v847_v63  ;;  %v5719_v1 = vpop.f32.mrb[22].mxu0  ;;  %v7939_v30 = vpack.c.bf16 %v7923_v6, %v7910_v0  ;;  %v1853_v63 = vsel %vm1833_vm11, %v1812_v26, %v1813_v49 }
 0x1f7   : > { %9104 = vst [vmem:[#allocation53_spill] sm:$0xff] %v7933_v62  ;;  %5794 = vmatprep.subr.bf16.mxu0 %v6632_v2  ;;  %v982_v29 = vadd.f32 %v7613_v58, %v939_v28  ;;  %v940_v42 = vmul.f32 %v5719_v1, %v7601_v53  ;;  %v850_v55 = vpop.f32.mrb[23].mxu0  ;;  %v1850_v41 = vsel %vm1833_vm11, %v1815_v4, %v1816_v57 }
 0x1f8   : > { %9105 = vst [vmem:[#allocation54_spill] sm:$0xff] %v7939_v30  ;;  %v980_v43 = vadd.f32 %v7613_v58, %v937_v52  ;;  %v938_v12 = vmul.f32 %v7601_v53, %v850_v55  ;;  %5764 = vmatprep.mubr.bf16.mxu0 %v7939_v30  ;;  %v1851_v3 = vsel %vm1833_vm11, %v1814_v47, %v1815_v4 }
 0x1f9   : > { %v1852_v27 = vsel %vm1833_vm11, %v1813_v49, %v1814_v47  ;;  %v7957_v1 = vmax.f32 %v982_v29, 0.0  ;;  %v983_v28 = vadd.f32 %v7613_v58, %v940_v42  ;;  %v1996_v13 = vmul.f32 %v7541_v11, %v1851_v3 }
 0x1fa   : > { %5795 = vmatpush3.bf16.msra.mxu0 %v6632_v2  ;;  %v1994_v26 = vmul.f32 %v7532_v5, %v1853_v63  ;;  %v7962_v52 = vmax.f32 %v980_v43, 0.0  ;;  %v981_v55 = vadd.f32 %v7613_v58, %v938_v12  ;;  %v7967_v4 = vpack.c.bf16 %v2198_v16, %v7710_v39 }
 0x1fb   : > { %5828 = vmatprep.subr.bf16.mxu0 %v7941_v32  ;;  %v9108_v49 = vrot.slane %v7716_v21, 1  ;;  %v9109_v29 = vrot.slane %v7746_v38, 1  ;;  %v7977_v43 = vmax.f32 %v983_v28, 0.0  ;;  %v7979_v2 = vpack.c.bf16 %v1850_v41, %v1996_v13  ;;  %5765 = vmatmul.mubr.bf16.gmra.mrb[52].mxu0 %v7933_v62 }
 0x1fc   : > { %9107 = vst [vmem:[#allocation56_spill] sm:$0xff] %v7967_v4  ;;  %v1817_v39 = vrot.slane %v7962_v52, 7  ;;  %v7983_v47 = vmax.f32 %v981_v55, 0.0  ;;  %v5722_v16 = vpop.f32.mrb[24].mxu0  ;;  %v7986_v63 = vpack.c.bf16 %v1852_v27, %v1994_v26  ;;  %v1819_v3 = vrot.slane %v7957_v1, 7 }
 0x1fd   : > { %v2080_v42 = vsel %vm2050_vm12, %v9109_v29, %v9108_v49  ;;  %9110 = vst [vmem:[#allocation57_spill] sm:$0xff] %v7979_v2  ;;  %v1820_v49 = vrot.slane %v7977_v43, 7  ;;  %v943_v28 = vmul.f32 %v5722_v16, %v7601_v53  ;;  %v863_v29 = vpop.f32.mrb[25].mxu0  ;;  %5908 = vmatprep.mubr.bf16.mxu1 %v7979_v2  ;;  %v7994_v13 = vpack.c.bf16 %v7977_v43, %v7957_v1 }
 0x1fe   : > { %9111 = vst [vmem:[#allocation58_spill] sm:$0xff] %v7986_v63  ;;  %v1818_v55 = vrot.slane %v7983_v47, 7  ;;  %v941_v27 = vmul.f32 %v7601_v53, %v863_v29  ;;  %v5723_v26 = vpop.f32.mrb[26].mxu0  ;;  %v8001_v5 = vpack.c.bf16 %v7983_v47, %v7962_v52  ;;  %v1849_v4 = vsel %vm1833_vm11, %v1816_v57, %v1817_v39 }
 0x1ff   : > { %9112 = vst [vmem:[#allocation59_spill] sm:$0xff] %v7994_v13  ;;  %v986_v16 = vadd.f32 %v7613_v58, %v943_v28  ;;  %v944_v12 = vmul.f32 %v5723_v26, %v7601_v53  ;;  %v866_v11 = vpop.f32.mrb[27].mxu0  ;;  %v1846_v41 = vsel %vm1833_vm11, %v1819_v3, %v1820_v49  ;;  %v1998_v28 = vmul.f32 %v7547_v18, %v1849_v4  ;;  %v6621_v4 = vld [vmem:[#allocation10 + $0x108] sm:$0xff]  }
 0x200   : > { %9113 = vst [vmem:[#allocation60_spill] sm:$0xff] %v8001_v5  ;;  %v984_v2 = vadd.f32 %v7613_v58, %v941_v27  ;;  %v942_v29 = vmul.f32 %v7601_v53, %v866_v11  ;;  %5768 = vmatprep.mubr.bf16.mxu0 %v8001_v5  ;;  %v1848_v62 = vsel %vm1833_vm11, %v1817_v39, %v1818_v55  ;;  %v9114_v63 = vrot.slane %v7746_v38, 1 }
 0x201   : > { %v8015_v30 = vmax.f32 %v986_v16, 0.0  ;;  %v987_v26 = vadd.f32 %v7613_v58, %v944_v12  ;;  %v1847_v57 = vsel %vm1833_vm11, %v1818_v55, %v1819_v3  ;;  %v9115_v27 = vrot.slane %v7727_v25, 1 }
 0x202   : > { %v8026_v5 = vmax.f32 %v984_v2, 0.0  ;;  %v985_v39 = vadd.f32 %v7613_v58, %v942_v29  ;;  %v8029_v32 = vpack.c.bf16 %v1848_v62, %v1998_v28  ;;  %v2000_v18 = vmul.f32 %v7550_v19, %v1847_v57 }
 0x203   : > { %v2081_v11 = vsel %vm2050_vm12, %v9115_v27, %v9114_v63  ;;  %v8035_v55 = vmax.f32 %v987_v26, 0.0  ;;  %v1823_v25 = vrot.slane %v8015_v30, 7  ;;  %5769 = vmatmul.mubr.bf16.gmra.mrb[56].mxu0 %v7994_v13  ;;  %v2200_v57 = vmul.f32 %v7563_v24, %v2080_v42 }
 0x204   : > { %9116 = vst [vmem:[#allocation61_spill] sm:$0xff] %v8029_v32  ;;  %v1821_v2 = vrot.slane %v8026_v5, 7  ;;  %v8039_v63 = vmax.f32 %v985_v39, 0.0  ;;  %5909 = vmatmul.mubr.bf16.vlgmr.msra.gmra.mrb[0].mxu1 %v8029_v32  ;;  %v5726_v19 = vpop.f32.mrb[28].mxu0  ;;  %v8043_v62 = vpack.c.bf16 %v1846_v41, %v2000_v18 }
 0x205   : > { %9117 = vst [vmem:[#allocation62_spill] sm:$0xff] %v8035_v55  ;;  %v8983_v16 = vrot.slane %v8035_v55, 7  ;;  %5925 = vmatpush3.bf16.msra.mxu1 %v7439_v15  ;;  %v947_v29 = vmul.f32 %v5726_v19, %v7601_v53  ;;  %v879_v28 = vpop.f32.mrb[29].mxu0  ;;  %v8050_v26 = vpack.c.bf16 %v8035_v55, %v8015_v30  ;;  %v6623_v19 = vld [vmem:[#allocation10 + $0x110] sm:$0xff]  }
 0x206   : > { %9118 = vst [vmem:[#allocation63_spill] sm:$0xff] %v8043_v62  ;;  %v1822_v39 = vrot.slane %v8039_v63, 7  ;;  %v945_v41 = vmul.f32 %v7601_v53, %v879_v28  ;;  %5912 = vmatprep.mubr.bf16.mxu1 %v8043_v62  ;;  %v5727_v18 = vpop.f32.mrb[30].mxu0  ;;  %5926 = vmatprep.subr.bf16.mxu1 %v6621_v4  ;;  %v8059_v15 = vpack.c.bf16 %v8039_v63, %v8026_v5 }
 0x207   : > { %9119 = vst [vmem:[#allocation64_spill] sm:$0xff] %v8050_v26  ;;  %v990_v3 = vadd.f32 %v7613_v58, %v947_v29  ;;  %v948_v38 = vmul.f32 %v5727_v18, %v7601_v53  ;;  %v882_v24 = vpop.f32.mrb[31].mxu0  ;;  %v1845_v42 = vsel %vm1833_vm11, %v1820_v49, %v1821_v2  ;;  %v1842_v28 = vsel %vm1833_vm11, %v1823_v25, %v8983_v16 }
 0x208   : > { %9120 = vst [vmem:[#allocation65_spill] sm:$0xff] %v8059_v15  ;;  %v988_v27 = vadd.f32 %v7613_v58, %v945_v41  ;;  %v946_v12 = vmul.f32 %v7601_v53, %v882_v24  ;;  %5772 = vmatprep.mubr.bf16.mxu0 %v8059_v15  ;;  %v1844_v29 = vsel %vm1833_vm11, %v1821_v2, %v1822_v39 }
 0x209   : > { %v2002_v18 = vmul.f32 %v7555_v22, %v1845_v42  ;;  %v8075_v62 = vmax.f32 %v990_v3, 0.0  ;;  %v991_v49 = vadd.f32 %v7613_v58, %v948_v38  ;;  %5927 = vmatpush3.bf16.msra.mxu1 %v6621_v4  ;;  %v1843_v13 = vsel %vm1833_vm11, %v1822_v39, %v1823_v25  ;;  %v6625_v22 = vld [vmem:[#allocation10 + $0x118] sm:$0xff]  }
 0x20a   : > { %v8080_v16 = vpack.c.bf16 %v2200_v57, %v2081_v11  ;;  %v8082_v41 = vmax.f32 %v988_v27, 0.0  ;;  %v989_v24 = vadd.f32 %v7613_v58, %v946_v12  ;;  %5928 = vmatprep.subr.bf16.mxu1 %v6623_v19  ;;  %v2004_v2 = vmul.f32 %v7558_v23, %v1843_v13 }
 0x20b   : > { %v8085_v15 = vpack.c.bf16 %v1844_v29, %v2002_v18  ;;  %v8090_v4 = vmax.f32 %v991_v49, 0.0  ;;  %v9123_v25 = vrot.slane %v7794_v35, 1  ;;  %v9124_v11 = vrot.slane %v7737_v45, 1  ;;  %5773 = vmatmul.mubr.bf16.gmra.mrb[60].mxu0 %v8050_v26 }
 0x20c   : > { %9121 = vst [vmem:[#allocation66_spill] sm:$0xff] %v8080_v16  ;;  %v1825_v27 = vrot.slane %v8082_v41, 7  ;;  %v8100_v39 = vmax.f32 %v989_v24, 0.0  ;;  %v5730_v23 = vpop.f32.mrb[32].mxu0  ;;  %v8104_v13 = vpack.c.bf16 %v1842_v28, %v2004_v2  ;;  %v1827_v42 = vrot.slane %v8075_v62, 7  ;;  %v6627_v2 = vld [vmem:[#allocation10 + $0x120] sm:$0xff]  }
 0x20d   : > { %9122 = vst [vmem:[#allocation67_spill] sm:$0xff] %v8085_v15  ;;  %v2078_v57 = vsel %vm2050_vm12, %v9124_v11, %v9123_v25  ;;  %5913 = vmatmul.mubr.bf16.gmra.mrb[4].mxu1 %v8085_v15  ;;  %v1828_v29 = vrot.slane %v8090_v4, 7  ;;  %v951_v18 = vmul.f32 %v5730_v23, %v7601_v53  ;;  %v895_v49 = vpop.f32.mrb[33].mxu0  ;;  %v8111_v25 = vpack.c.bf16 %v8090_v4, %v8075_v62 }
 0x20e   : > { %9125 = vst [vmem:[#allocation68_spill] sm:$0xff] %v8104_v13  ;;  %5929 = vmatpush3.bf16.msra.mxu1 %v6623_v19  ;;  %v1826_v11 = vrot.slane %v8100_v39, 7  ;;  %v949_v38 = vmul.f32 %v7601_v53, %v895_v49  ;;  %5916 = vmatprep.mubr.bf16.mxu1 %v8104_v13  ;;  %v5731_v28 = vpop.f32.mrb[34].mxu0  ;;  %v8119_v19 = vpack.c.bf16 %v8100_v39, %v8082_v41  ;;  %v9126_v24 = vrot.slane %v8035_v55, 7 }
 0x20f   : > { %5930 = vmatprep.subr.bf16.mxu1 %v6625_v22  ;;  %v994_v23 = vadd.f32 %v7613_v58, %v951_v18  ;;  %v952_v12 = vmul.f32 %v5731_v28, %v7601_v53  ;;  %v898_v3 = vpop.f32.mrb[35].mxu0  ;;  %v1838_v49 = vsel %vm1833_vm11, %v1827_v42, %v1828_v29  ;;  %v9127_v55 = vrot.slane %v7737_v45, 1 }
 0x210   : > { %v1841_v16 = vsel %vm1833_vm11, %v9126_v24, %v1825_v27  ;;  %v992_v13 = vadd.f32 %v7613_v58, %v949_v38  ;;  %v950_v26 = vmul.f32 %v7601_v53, %v898_v3  ;;  %5776 = vmatprep.mubr.bf16.mxu0 %v8119_v19  ;;  %v1840_v18 = vsel %vm1833_vm11, %v1825_v27, %v1826_v11 }
 0x211   : > { %v2006_v28 = vmul.f32 %v7570_v36, %v1841_v16  ;;  %v995_v32 = vadd.f32 %v7613_v58, %v952_v12  ;;  %v1839_v24 = vsel %vm1833_vm11, %v1826_v11, %v1827_v42  ;;  %v9128_v38 = vrot.slane %v7716_v21, 1 }
 0x212   : > { %5931 = vmatpush3.bf16.msra.mxu1 %v6625_v22  ;;  %v8145_v3 = vmax.f32 %v992_v13, 0.0  ;;  %v993_v27 = vadd.f32 %v7613_v58, %v950_v26  ;;  %v2008_v16 = vmul.f32 %v7575_v40, %v1839_v24  ;;  %v6629_v22 = vld [vmem:[#allocation10 + $0x128] sm:$0xff]   ;;  %v1030_v12 = vmax.f32 %v994_v23, 0.0 }
 0x213   : > { %v2079_v53 = vsel %vm2050_vm12, %v9128_v38, %v9127_v55  ;;  %5932 = vmatprep.subr.bf16.mxu1 %v6627_v2  ;;  %v8148_v36 = vpack.c.bf16 %v1840_v18, %v2006_v28  ;;  %v1031_v15 = vmax.f32 %v995_v32, 0.0  ;;  %v2202_v42 = vmul.f32 %v7621_v60, %v2078_v57  ;;  %5777 = vmatmul.mubr.bf16.gmra.mrb[64].mxu0 %v8111_v25  ;;  %v6631_v28 = vld [vmem:[#allocation10 + $0x130] sm:$0xff]  }
 0x214   : > { %v9129_v45 = vrot.slane %v7787_v20, 1  ;;  %v9130_v21 = vrot.slane %v7807_v31, 1  ;;  %v2044_v13 = vrot.slane %v8075_v62, 1  ;;  %v1829_v58 = vrot.slane %v8145_v3, 7  ;;  %v6636_v62 = vld [vmem:[#allocation10 + $0x150] sm:$0xff]  }
 0x215   : > { %v8160_v26 = vmax.f32 %v993_v27, 0.0  ;;  %5917 = vmatmul.mubr.bf16.gmra.mrb[8].mxu1 %v8148_v36  ;;  %v8164_v40 = vpack.c.bf16 %v1838_v49, %v2008_v16  ;;  %v2042_v60 = vrot.slane %v8082_v41, 1  ;;  %v2045_v32 = vrot.slane %v8090_v4, 1 }
 0x216   : > { %v2076_v55 = vsel %vm2050_vm12, %v9130_v21, %v9129_v45  ;;  %v8168_v57 = vmul.f32 0.0, %v1031_v15  ;;  %5933 = vmatpush3.bf16.msra.mxu1 %v6627_v2  ;;  %v8170_v11 = vpack.c.bf16 %v2202_v42, %v2079_v53  ;;  %v2043_v23 = vrot.slane %v8100_v39, 1  ;;  %v9187_v39 = vld [vmem:[#allocation37_spill] sm:$0xff] }
 0x217   : > { %v1830_v18 = vrot.slane %v8160_v26, 7  ;;  %5920 = vmatprep.mubr.bf16.mxu1 %v8164_v40  ;;  %5934 = vmatprep.subr.bf16.mxu1 %v6629_v22  ;;  %v1837_v49 = vsel %vm1833_vm11, %v1828_v29, %v1829_v58  ;;  %v8179_v24 = vpack.c.bf16 %v8160_v26, %v8145_v3  ;;  %v8181_v15 = vmul.f32 0.0, %v1030_v12 }
 0x218   : > { %v1832_v2 = vrot.slane %v8168_v57, 7  ;;  %v2010_v38 = vmul.f32 %v7604_v54, %v1837_v49  ;;  %v9131_v53 = vmov %v9130_v21  ;;  %v9132_v27 = vrot.slane %v7794_v35, 1 }
 0x219   : > { %v1836_v29 = vsel %vm1833_vm11, %v1829_v58, %v1830_v18  ;;  %v2204_v42 = vmul.f32 %v7624_v61, %v2076_v55  ;;  %v9133_v12 = vrot.slane %v7854_v33, 1  ;;  %v9134_v45 = vrot.slane %v7803_v14, 1 }
 0x21a   : > { %v2077_v16 = vsel %vm2050_vm12, %v9132_v27, %v9131_v53  ;;  %v9136_v35 = vrot.slane %v7787_v20, 1  ;;  %5935 = vmatpush3.bf16.msra.mxu1 %v6629_v22  ;;  %v8208_v49 = vpack.c.bf16 %v1836_v29, %v2010_v38  ;;  %v9137_v58 = vrot.slane %v7686_v56, 7  ;;  %v6633_v38 = vld [vmem:[#allocation10 + $0x138] sm:$0xff]  }
 0x21b   : > { %v2074_v54 = vsel %vm2050_vm12, %v9134_v45, %v9133_v12  ;;  %v9135_v31 = vmov %v9134_v45  ;;  %v9138_v53 = vrot.slane %v7845_v10, 1  ;;  %v9139_v14 = vrot.slane %v7868_v50, 1  ;;  %5936 = vmatprep.subr.bf16.mxu1 %v6631_v28 }
 0x21c   : > { %v2075_v21 = vsel %vm2050_vm12, %v9136_v35, %v9135_v31  ;;  %v1869_v61 = vsel %vm1833_vm11, %v1832_v2, %v9137_v58  ;;  %v2206_v55 = vmul.f32 %v7631_v7, %v2074_v54  ;;  %v8224_v27 = vpack.c.bf16 %v2204_v42, %v2077_v16 }
 0x21d   : > { %v2072_v20 = vsel %vm2050_vm12, %v9139_v14, %v9138_v53  ;;  %v1978_v22 = vmul.f32 %v7616_v59, %v1869_v61  ;;  %v9140_v29 = vmov %v9139_v14  ;;  %v9141_v54 = vand.u32 15, %v7681_v48  ;;  %5921 = vmatmul.mubr.bf16.gmra.mrb[12].mxu1 %v8208_v49 }
 0x21e   : > { %v2073_v7 = vsel %vm2050_vm12, %v9133_v12, %v9140_v29  ;;  %v2208_v45 = vmul.f32 %v7636_v8, %v2072_v20  ;;  %v8239_v35 = vpack.c.bf16 %v2206_v55, %v2075_v21  ;;  %v9144_v59 = vrot.slane %v7910_v0, 1  ;;  %5937 = vmatpush3.bf16.msra.mxu1 %v6631_v28  ;;  %v9155_v12 = vld [vmem:[#allocation35_spill] sm:$0xff] }
 0x21f   : > { %vm8235_vm4 = vcmp.ge.s32.totalorder %v9141_v54, 1  ;;  %v9145_v16 = vrot.slane %v7862_v46, 1  ;;  %v9147_v42 = vmov %v9138_v53  ;;  %v9148_v48 = vrot.slane %v7899_v37, 1  ;;  %5940 = vmatprep.mubr.bf16.mxu1 %v9155_v12  ;;  %v6640_v54 = vld [vmem:[#allocation10 + $0x88] sm:$0xff]   ;;  %5938 = vmatprep.subr.bf16.mxu1 %v6633_v38  ;;  %v9164_v37 = vld [vmem:[#allocation40_spill] sm:$0xff]  ;;  %v9192_v55 = vld [vmem:[#allocation47_spill] sm:$0xff] }
 0x220   : > { %v9149_v58 = vrot.slane %v7923_v6, 1  ;;  %v9150_v61 = vand.u32 15, %v7684_v51  ;;  %v2231_v10 = vpack.c.bf16 %v7734_v34, %v1978_v22  ;;  %v8267_v46 = vpack.c.bf16 %v2208_v45, %v2073_v7  ;;  %v6634_v7 = vld [vmem:[#allocation10 + $0x140] sm:$0xff]  }
 0x221   : > { %v2070_v33 = vsel %vm2050_vm12, %v9145_v16, %v9144_v59  ;;  %v9146_v50 = vmov %v9145_v16  ;;  %v9154_v20 = vmov %v9144_v59  ;;  %v2046_v51 = vrot.slane %v8145_v3, 1  ;;  %v9156_v59 = vld [vmem:[#allocation28_spill] sm:$0xff] }
 0x222   : > { %v2071_v8 = vsel %vm2050_vm12, %v9147_v42, %v9146_v50  ;;  %v2068_v21 = vsel %vm2050_vm12, %v9149_v58, %v9148_v48  ;;  %vm8261_vm5 = vcmp.le.s32.totalorder %v9150_v61, 14  ;;  %v2210_v53 = vmul.f32 %v7641_v9, %v2070_v33  ;;  %5796 = vmatprep.mubr.bf16.mxu0 %v2231_v10  ;;  %v9161_v33 = vld [vmem:[#allocation29_spill] sm:$0xff]  ;;  %v9167_v10 = vld [vmem:[#allocation30_spill] sm:$0xff]  ;;  %5939 = vmatpush3.bf16.msra.mxu1 %v6633_v38 }
 0x223   : > { %v9153_v14 = vmov %v9149_v58  ;;  %v2212_v16 = vmul.f32 %v9156_v59, %v2068_v21  ;;  %v9157_v34 = vrot.slane %v7962_v52, 1  ;;  %v9158_v22 = vrot.slane %v7919_v44, 1  ;;  %5797 = vmatmul.mubr.bf16.vlgmr.msra.gmra.mrb[36].mxu0 %v9164_v37  ;;  %5972 = vmatprep.subr.bf16.mxu1 %v6634_v7  ;;  %v6641_v38 = vld [vmem:[#allocation10 + $0x90] sm:$0xff]  }
 0x224   : > { %v2069_v29 = vsel %vm2050_vm12, %v9154_v20, %v9153_v14  ;;  %v9160_v6 = vmov %v9148_v48  ;;  %v1831_v28 = vrot.slane %v8181_v15, 7  ;;  %v8292_v45 = vpack.c.bf16 %v2210_v53, %v2071_v8 }
 0x225   : > { %v2066_v9 = vsel %vm2050_vm12, %v9158_v22, %v9157_v34  ;;  %v9159_v0 = vmov %v9158_v22  ;;  %v9162_v42 = vrot.slane %v7957_v1, 1  ;;  %v9163_v48 = vrot.slane %v7983_v47, 1 }
 0x226   : > { %v2067_v3 = vsel %vm2050_vm12, %v9160_v6, %v9159_v0  ;;  %v2214_v50 = vmul.f32 %v9161_v33, %v2066_v9  ;;  %v8302_v58 = vpack.c.bf16 %v2212_v16, %v2069_v29  ;;  %v9166_v61 = vmov %v9157_v34  ;;  %v9170_v29 = vld [vmem:[#allocation41_spill] sm:$0xff]  ;;  %v9171_v16 = vld [vmem:[#allocation55_spill] sm:$0xff] }
 0x227   : > { %v2064_v44 = vsel %vm2050_vm12, %v9163_v48, %v9162_v42  ;;  %v9165_v21 = vmov %v9163_v48  ;;  %v9168_v14 = vrot.slane %v8026_v5, 1  ;;  %v9169_v20 = vrot.slane %v7977_v43, 1  ;;  %5800 = vmatprep.mubr.bf16.mxu0 %v9170_v29  ;;  %5829 = vmatpush3.bf16.msra.mxu0 %v9171_v16  ;;  %v9174_v9 = vld [vmem:[#allocation31_spill] sm:$0xff] }
 0x228   : > { %v2065_v8 = vsel %vm2050_vm12, %v9166_v61, %v9165_v21  ;;  %v2216_v53 = vmul.f32 %v9167_v10, %v2064_v44  ;;  %v2048_v59 = vrot.slane %v8181_v15, 1  ;;  %v8320_v47 = vpack.c.bf16 %v2214_v50, %v2067_v3  ;;  %5830 = vmatprep.subr.bf16.mxu0 %v6640_v54  ;;  %v6635_v44 = vld [vmem:[#allocation10 + $0x148] sm:$0xff]   ;;  %v9179_v61 = vld [vmem:[#allocation32_spill] sm:$0xff]  ;;  %v9180_v10 = vld [vmem:[#allocation62_spill] sm:$0xff] }
 0x229   : > { %v2062_v12 = vsel %vm2050_vm12, %v9169_v20, %v9168_v14  ;;  %v9172_v52 = vmov %v9169_v20  ;;  %v9173_v34 = vmov %v9162_v42  ;;  %v2047_v6 = vrot.slane %v8160_v26, 1 }
 0x22a   : > { %v2063_v22 = vsel %vm2050_vm12, %v9173_v34, %v9172_v52  ;;  %v2218_v0 = vmul.f32 %v9174_v9, %v2062_v12  ;;  %v8330_v33 = vpack.c.bf16 %v2216_v53, %v2065_v8  ;;  %v9175_v42 = vrot.slane %v8015_v30, 1  ;;  %v9184_v12 = vld [vmem:[#allocation33_spill] sm:$0xff]  ;;  %v9185_v9 = vld [vmem:[#allocation39_spill] sm:$0xff] }
 0x22b   : > { %v9176_v3 = vrot.slane %v8039_v63, 1  ;;  %v9178_v50 = vmov %v9168_v14  ;;  %v9181_v53 = vrot.slane %v9180_v10, 1  ;;  %v2056_v52 = vsel %vm2050_vm12, %v2043_v23, %v2044_v13  ;;  %5941 = vmatmul.mubr.bf16.vlgmr.msra.gmra.mrb[16].mxu1 %v9185_v9  ;;  %5831 = vmatpush3.bf16.msra.mxu0 %v6640_v54 }
 0x22c   : > { %v8344_v21 = vpack.c.bf16 %v2218_v0, %v2063_v22  ;;  %v9183_v5 = vmov %v9175_v42  ;;  %v2057_v34 = vsel %vm2050_vm12, %v2042_v60, %v2043_v23  ;;  %v2054_v30 = vsel %vm2050_vm12, %v2045_v32, %v2046_v51  ;;  %5973 = vmatpush3.bf16.msra.mxu1 %v6634_v7  ;;  %5944 = vmatprep.mubr.bf16.mxu1 %v9187_v39 }
 0x22d   : > { %v2060_v43 = vsel %vm2050_vm12, %v9176_v3, %v9175_v42  ;;  %v9177_v1 = vmov %v9176_v3  ;;  %v2058_v14 = vsel %vm2050_vm12, %v9181_v53, %v2042_v60  ;;  %v9182_v63 = vmov %v9181_v53  ;;  %v9186_v42 = vld [vmem:[#allocation34_spill] sm:$0xff]  ;;  %v6643_v60 = vld [vmem:[#allocation10 + $0x98] sm:$0xff]   ;;  %5974 = vmatprep.subr.bf16.mxu1 %v6635_v44  ;;  %5832 = vmatprep.subr.bf16.mxu0 %v6641_v38 }
 0x22e   : > { %v2061_v48 = vsel %vm2050_vm12, %v9178_v50, %v9177_v1  ;;  %v2220_v8 = vmul.f32 %v9179_v61, %v2060_v43  ;;  %v2059_v20 = vsel %vm2050_vm12, %v9183_v5, %v9182_v63  ;;  %v2222_v16 = vmul.f32 %v9184_v12, %v2058_v14  ;;  %v9188_v43 = vld [vmem:[#allocation36_spill] sm:$0xff] }
 0x22f   : > { %v2049_v22 = vrot.slane %v8168_v57, 1  ;;  %v2224_v3 = vmul.f32 %v9186_v42, %v2056_v52  ;;  %v2055_v41 = vsel %vm2050_vm12, %v2044_v13, %v2045_v32  ;;  %v2226_v1 = vmul.f32 %v9188_v43, %v2054_v30  ;;  %v9190_v32 = vld [vmem:[#allocation38_spill] sm:$0xff]  ;;  %5833 = vmatpush3.bf16.msra.mxu0 %v6641_v38  ;;  %v9196_v12 = vld [vmem:[#allocation48_spill] sm:$0xff]  ;;  %v6642_v52 = vld [vmem:[#allocation10 + $0x168] sm:$0xff]  }
 0x230   : > { %v8378_v0 = vpack.c.bf16 %v2220_v8, %v2061_v48  ;;  %v8388_v23 = vpack.c.bf16 %v2222_v16, %v2059_v20  ;;  %v2052_v54 = vsel %vm2050_vm12, %v2047_v6, %v2048_v59  ;;  %v9189_v50 = vmov 0.0   ;;  %v9191_v8 = vld [vmem:[#allocation42_spill] sm:$0xff]  ;;  %5975 = vmatpush3.bf16.msra.mxu1 %v6635_v44  ;;  %5834 = vmatprep.subr.bf16.mxu0 %v6643_v60  ;;  %v9194_v20 = vld [vmem:[#allocation44_spill] sm:$0xff]  ;;  %v9195_v44 = vld [vmem:[#allocation43_spill] sm:$0xff] }
 0x231   : > { %v5300_v4 = vsel %vm8235_vm4, 1.0, %v9189_v50  ;;  %v8396_v48 = vpack.c.bf16 %v2224_v3, %v2057_v34  ;;  %v2053_v13 = vsel %vm2050_vm12, %v2046_v51, %v2047_v6  ;;  %v2228_v7 = vmul.f32 %v9190_v32, %v2052_v54  ;;  %5801 = vmatmul.mubr.bf16.gmra.mrb[40].mxu0 %v9191_v8  ;;  %5976 = vmatprep.subr.bf16.mxu1 %v6636_v62  ;;  %v9197_v16 = vld [vmem:[#allocation51_spill] sm:$0xff]  ;;  %v6647_v34 = vld [vmem:[#allocation10 + $0xb0] sm:$0xff]   ;;  %v9203_v54 = vld [vmem:[#allocation53_spill] sm:$0xff] }
 0x232   : > { %v5318_v61 = vsel %vm8261_vm5, 1.0, %v9189_v50  ;;  %v8405_v10 = vpack.c.bf16 %v2226_v1, %v2055_v41  ;;  %v8411_v31 = vsel %vm1833_vm11, %v1831_v28, %v1832_v2  ;;  %v1835_v51 = vsel %vm1833_vm11, %v1830_v18, %v1831_v28  ;;  %5804 = vmatprep.mubr.bf16.mxu0 %v9192_v55  ;;  %v6637_v2 = vld [vmem:[#allocation10 + $0x158] sm:$0xff]   ;;  %v6644_v28 = vld [vmem:[#allocation10 + $0xa0] sm:$0xff]   ;;  %v9198_v30 = vld [vmem:[#allocation50_spill] sm:$0xff] }
 0x233   : > { %v2266_v6 = vpack.c.bf16 %v8168_v57, %v8181_v15  ;;  %v8420_v53 = vpack.c.bf16 %v2228_v7, %v2053_v13  ;;  %v8422_v14 = vmul.f32 %v5300_v4, %v1835_v51  ;;  %v8426_v63 = vsel %vm2050_vm12, %v2048_v59, %v2049_v22  ;;  %5945 = vmatmul.mubr.bf16.gmra.mrb[20].mxu1 %v9194_v20  ;;  %v6649_v42 = vld [vmem:[#allocation10 + $0xb8] sm:$0xff]   ;;  %v6645_v3 = vld [vmem:[#allocation10 + $0x170] sm:$0xff]   ;;  %v9200_v41 = vld [vmem:[#allocation52_spill] sm:$0xff] }
 0x234   : > { %v9193_v26 = vrot.slane %v7686_v56, 1  ;;  %5835 = vmatpush3.bf16.msra.mxu0 %v6643_v60  ;;  %5948 = vmatprep.mubr.bf16.mxu1 %v9195_v44  ;;  %v6646_v56 = vld [vmem:[#allocation10 + $0xa8] sm:$0xff]   ;;  %v9201_v60 = vld [vmem:[#allocation58_spill] sm:$0xff]  ;;  %v6648_v43 = vld [vmem:[#allocation10 + $0x178] sm:$0xff]  }
 0x235   : > { %v2248_v38 = vpack.c.bf16 %v8411_v31, %v8422_v14  ;;  %5977 = vmatpush3.bf16.msra.mxu1 %v6636_v62  ;;  %5836 = vmatprep.subr.bf16.mxu0 %v6644_v28  ;;  %v9202_v1 = vld [vmem:[#allocation54_spill] sm:$0xff]  ;;  %v6650_v50 = vld [vmem:[#allocation10 + $0x180] sm:$0xff]   ;;  %v9204_v62 = vld [vmem:[#allocation57_spill] sm:$0xff] }
 0x236   : > { %v2086_v18 = vsel %vm2050_vm12, %v2049_v22, %v9193_v26  ;;  %5978 = vmatprep.subr.bf16.mxu1 %v6637_v2  ;;  %v9199_v22 = vld [vmem:[#allocation49_spill] sm:$0xff]  ;;  %v6682_v4 = vld [vmem:[#allocation10 + $0xc0] sm:$0xff]   ;;  %v9207_v7 = vld [vmem:[#allocation59_spill] sm:$0xff] }
 0x237   : > { %v8434_v5 = vmul.f32 %v5318_v61, %v2086_v18  ;;  %v9205_v13 = vld [vmem:[#allocation61_spill] sm:$0xff]  ;;  %v9206_v32 = vld [vmem:[#allocation60_spill] sm:$0xff]  ;;  %v9208_v61 = vld [vmem:[#allocation63_spill] sm:$0xff] }
 0x238   : > { %5837 = vmatpush3.bf16.msra.mxu0 %v6644_v28  ;;  %v9209_v51 = vld [vmem:[#allocation67_spill] sm:$0xff]  ;;  %v9210_v26 = vld [vmem:[#allocation65_spill] sm:$0xff]  ;;  %v9211_v18 = vld [vmem:[#allocation64_spill] sm:$0xff] }
 0x239   : > { %v2284_v59 = vpack.c.bf16 %v8434_v5, %v8426_v63  ;;  %5805 = vmatmul.mubr.bf16.gmra.mrb[44].mxu0 %v9196_v12  ;;  %5979 = vmatpush3.bf16.msra.mxu1 %v6637_v2  ;;  %v9212_v2 = vld [vmem:[#allocation68_spill] sm:$0xff]  ;;  %v9213_v28 = vld [vmem:[#allocation46_spill] sm:$0xff]  ;;  %v6675_v14 = vld [vmem:[#allocation11 + $0x8] sm:$0xff]  }
 0x23a   : > { %5808 = vmatprep.mubr.bf16.mxu0 %v9197_v16  ;;  %5838 = vmatprep.subr.bf16.mxu0 %v6646_v56  ;;  %v6674_v31 = vld [vmem:[#allocation11] sm:$0xff]  }
 0x23b   : > { %5980 = vmatprep.subr.bf16.mxu1 %v6639_v17  ;;  %5949 = vmatmul.mubr.bf16.gmra.mrb[24].mxu1 %v9198_v30 }
 0x23c   : > { %5839 = vmatpush3.bf16.msra.mxu0 %v6646_v56  ;;  %5952 = vmatprep.mubr.bf16.mxu1 %v9199_v22  ;;  %v9214_v56 = vld [vmem:[#allocation45_spill] sm:$0xff] }
 0x23d   : > { %5981 = vmatpush3.bf16.msra.mxu1 %v6639_v17  ;;  %5840 = vmatprep.subr.bf16.mxu0 %v6647_v34  ;;  %v9215_v17 = vpack.c.bf16 %v9213_v28, %v9214_v56  ;;  %v6684_v28 = vld [vmem:[#allocation10 + $0xd0] sm:$0xff]   ;;  %v6653_v56 = vld [vmem:[#allocation10 + $0x198] sm:$0xff]  }
 0x23e   : > { %5982 = vmatprep.subr.bf16.mxu1 %v6642_v52 }
 0x240   : > { %5841 = vmatpush3.bf16.msra.mxu0 %v6647_v34  ;;  %v9217_v34 = vld [vmem:[#allocation66_spill] sm:$0xff] }
 0x241   : > { %5809 = vmatmul.mubr.bf16.gmra.mrb[48].mxu0 %v9200_v41  ;;  %5983 = vmatpush3.bf16.msra.mxu1 %v6642_v52  ;;  %v9216_v52 = vld [vmem:[#allocation56_spill] sm:$0xff] }
 0x242   : > { %5812 = vmatprep.mubr.bf16.mxu0 %v9201_v60  ;;  %5842 = vmatprep.subr.bf16.mxu0 %v6649_v42 }
 0x243   : > { %5984 = vmatprep.subr.bf16.mxu1 %v6645_v3  ;;  %5953 = vmatmul.mubr.bf16.gmra.mrb[28].mxu1 %v9202_v1 }
 0x244   : > { %5843 = vmatpush3.bf16.msra.mxu0 %v6649_v42  ;;  %5956 = vmatprep.mubr.bf16.mxu1 %v9203_v54  ;;  %v6683_v42 = vld [vmem:[#allocation10 + $0xc8] sm:$0xff]  }
 0x245   : > { %5985 = vmatpush3.bf16.msra.mxu1 %v6645_v3  ;;  %5876 = vmatprep.subr.bf16.mxu0 %v6682_v4  ;;  %v6651_v3 = vld [vmem:[#allocation10 + $0x188] sm:$0xff]  }
 0x246   : > { %5986 = vmatprep.subr.bf16.mxu1 %v6648_v43 }
 0x249   : > { %5813 = vmatmul.mubr.bf16.gmra.mrb[52].mxu0 %v9204_v62  ;;  %5987 = vmatpush3.bf16.msra.mxu1 %v6648_v43  ;;  %v6652_v43 = vld [vmem:[#allocation10 + $0x190] sm:$0xff]  }
 0x24a   : > { %5816 = vmatprep.mubr.bf16.mxu0 %v9205_v13  ;;  %6020 = vmatprep.subr.bf16.mxu1 %v6650_v50 }
 0x24b   : > { %5957 = vmatmul.mubr.bf16.gmra.mrb[0].mxu1 %v9206_v32 }
 0x24c   : > { %5960 = vmatprep.mubr.bf16.mxu1 %v9207_v7 }
 0x251   : > { %5817 = vmatmul.mubr.bf16.gmra.mrb[56].mxu0 %v9208_v61 }
 0x252   : > { %5820 = vmatprep.mubr.bf16.mxu0 %v9209_v51 }
 0x253   : > { %5961 = vmatmul.mubr.bf16.gmra.mrb[4].mxu1 %v9210_v26 }
 0x254   : > { %5964 = vmatprep.mubr.bf16.mxu1 %v9211_v18 }
 0x259   : > { %5821 = vmatmul.mubr.bf16.gmra.mrb[60].mxu0 %v9212_v2 }
 0x25a   : > { %5824 = vmatprep.mubr.bf16.mxu0 %v8148_v36 }
 0x25b   : > { %5965 = vmatmul.mubr.bf16.gmra.mrb[8].mxu1 %v8119_v19 }
 0x25c   : > { %5968 = vmatprep.mubr.bf16.mxu1 %v8111_v25 }
 0x261   : > { %5825 = vmatmul.mubr.bf16.gmra.mrb[64].mxu0 %v8164_v40 }
 0x262   : > { %5844 = vmatprep.mubr.bf16.mxu0 %v9215_v17  ;;  %v6686_v17 = vld [vmem:[#allocation10 + $0xe0] sm:$0xff]  }
 0x263   : > { %5969 = vmatmul.mubr.bf16.gmra.mrb[12].mxu1 %v8179_v24 }
 0x264   : > { %5988 = vmatprep.mubr.bf16.mxu1 %v9216_v52 }
 0x269   : > { %5845 = vmatmul.mubr.bf16.vlgmr.msra.gmra.mrb[36].mxu0 %v9216_v52  ;;  %v6687_v52 = vld [vmem:[#allocation10 + $0xe8] sm:$0xff]  }
 0x26a   : > { %5848 = vmatprep.mubr.bf16.mxu0 %v9217_v34  ;;  %5877 = vmatpush3.bf16.msra.mxu0 %v6682_v4  ;;  %v6685_v4 = vld [vmem:[#allocation10 + $0xd8] sm:$0xff]  }
 0x26b   : > { %5878 = vmatprep.subr.bf16.mxu0 %v6683_v42  ;;  %5989 = vmatmul.mubr.bf16.vlgmr.msra.gmra.mrb[16].mxu1 %v9217_v34 }
 0x26c   : > { %6021 = vmatpush3.bf16.msra.mxu1 %v6650_v50  ;;  %5992 = vmatprep.mubr.bf16.mxu1 %v8170_v11  ;;  %v6654_v50 = vld [vmem:[#allocation10 + $0x1a0] sm:$0xff]  }
 0x26d   : > { %6022 = vmatprep.subr.bf16.mxu1 %v6651_v3 }
 0x26e   : > { %5879 = vmatpush3.bf16.msra.mxu0 %v6683_v42  ;;  %v6655_v42 = vld [vmem:[#allocation10 + $0x1a8] sm:$0xff]  }
 0x26f   : > { %5880 = vmatprep.subr.bf16.mxu0 %v6684_v28 }
 0x270   : > { %6023 = vmatpush3.bf16.msra.mxu1 %v6651_v3  ;;  %v6656_v3 = vld [vmem:[#allocation10 + $0x1b0] sm:$0xff]  }
 0x271   : > { %5849 = vmatmul.mubr.bf16.gmra.mrb[40].mxu0 %v8170_v11  ;;  %6024 = vmatprep.subr.bf16.mxu1 %v6652_v43 }
 0x272   : > { %5852 = vmatprep.mubr.bf16.mxu0 %v8224_v27  ;;  %5881 = vmatpush3.bf16.msra.mxu0 %v6684_v28  ;;  %v6689_v28 = vld [vmem:[#allocation10 + $0xf8] sm:$0xff]  }
 0x273   : > { %5882 = vmatprep.subr.bf16.mxu0 %v6685_v4  ;;  %5993 = vmatmul.mubr.bf16.gmra.mrb[20].mxu1 %v8224_v27 }
 0x274   : > { %5996 = vmatprep.mubr.bf16.mxu1 %v8239_v35  ;;  %6025 = vmatpush3.bf16.msra.mxu1 %v6652_v43  ;;  %v6688_v43 = vld [vmem:[#allocation10 + $0xf0] sm:$0xff]  }
 0x275   : > { %6026 = vmatprep.subr.bf16.mxu1 %v6653_v56 }
 0x276   : > { %5883 = vmatpush3.bf16.msra.mxu0 %v6685_v4  ;;  %v6657_v4 = vld [vmem:[#allocation10 + $0x1b8] sm:$0xff]  }
 0x277   : > { %5884 = vmatprep.subr.bf16.mxu0 %v6686_v17 }
 0x278   : > { %6027 = vmatpush3.bf16.msra.mxu1 %v6653_v56  ;;  %v6658_v56 = vld [vmem:[#allocation10 + $0x1c0] sm:$0xff]  }
 0x279   : > { %5853 = vmatmul.mubr.bf16.gmra.mrb[44].mxu0 %v8239_v35  ;;  %6028 = vmatprep.subr.bf16.mxu1 %v6654_v50 }
 0x27a   : > { %5856 = vmatprep.mubr.bf16.mxu0 %v8267_v46  ;;  %5885 = vmatpush3.bf16.msra.mxu0 %v6686_v17  ;;  %v6660_v17 = vld [vmem:[#allocation10 + $0x1d0] sm:$0xff]  }
 0x27b   : > { %5886 = vmatprep.subr.bf16.mxu0 %v6687_v52  ;;  %5997 = vmatmul.mubr.bf16.gmra.mrb[24].mxu1 %v8267_v46 }
 0x27c   : > { %6000 = vmatprep.mubr.bf16.mxu1 %v8292_v45  ;;  %6029 = vmatpush3.bf16.msra.mxu1 %v6654_v50  ;;  %v6659_v50 = vld [vmem:[#allocation10 + $0x1c8] sm:$0xff]  }
 0x27d   : > { %6030 = vmatprep.subr.bf16.mxu1 %v6655_v42 }
 0x27e   : > { %5887 = vmatpush3.bf16.msra.mxu0 %v6687_v52 }
 0x27f   : > { %5888 = vmatprep.subr.bf16.mxu0 %v6688_v43 }
 0x280   : > { %6031 = vmatpush3.bf16.msra.mxu1 %v6655_v42 }
 0x281   : > { %5857 = vmatmul.mubr.bf16.gmra.mrb[48].mxu0 %v8292_v45  ;;  %6032 = vmatprep.subr.bf16.mxu1 %v6656_v3 }
 0x282   : > { %5860 = vmatprep.mubr.bf16.mxu0 %v8302_v58  ;;  %5889 = vmatpush3.bf16.msra.mxu0 %v6688_v43 }
 0x283   : > { %5890 = vmatprep.subr.bf16.mxu0 %v6689_v28  ;;  %6001 = vmatmul.mubr.bf16.gmra.mrb[28].mxu1 %v8302_v58 }
 0x284   : > { %6004 = vmatprep.mubr.bf16.mxu1 %v8320_v47  ;;  %6033 = vmatpush3.bf16.msra.mxu1 %v6656_v3  ;;  %v8612_v3 = vld [vmem:[%s9219_s14] ss:$0 sm:$0xff] }
 0x285   : > { %6034 = vmatprep.subr.bf16.mxu1 %v6657_v4 }
 0x286   : > { %5891 = vmatpush3.bf16.msra.mxu0 %v6689_v28 }
 0x287   : > { %6164 = vmatprep.subr.bf16.mxu0 %v6674_v31 }
 0x288   : > { %6035 = vmatpush3.bf16.msra.mxu1 %v6657_v4 }
 0x289   : > { %5861 = vmatmul.mubr.bf16.gmra.mrb[52].mxu0 %v8320_v47  ;;  %6068 = vmatprep.subr.bf16.mxu1 %v6658_v56 }
 0x28a   : > { %5864 = vmatprep.mubr.bf16.mxu0 %v8330_v33 }
 0x28b   : > { %6005 = vmatmul.mubr.bf16.gmra.mrb[0].mxu1 %v8330_v33 }
 0x28c   : > { %6008 = vmatprep.mubr.bf16.mxu1 %v8344_v21 }
 0x291   : > { %5865 = vmatmul.mubr.bf16.gmra.mrb[56].mxu0 %v8344_v21 }
 0x292   : > { %5868 = vmatprep.mubr.bf16.mxu0 %v8378_v0 }
 0x293   : > { %6009 = vmatmul.mubr.bf16.gmra.mrb[4].mxu1 %v8378_v0 }
 0x294   : > { %6012 = vmatprep.mubr.bf16.mxu1 %v8388_v23 }
 0x299   : > { %5869 = vmatmul.mubr.bf16.gmra.mrb[60].mxu0 %v8388_v23 }
 0x29a   : > { %5872 = vmatprep.mubr.bf16.mxu0 %v8396_v48 }
 0x29b   : > { %6013 = vmatmul.mubr.bf16.gmra.mrb[8].mxu1 %v8396_v48 }
 0x29c   : > { %6016 = vmatprep.mubr.bf16.mxu1 %v8405_v10 }
 0x2a1   : > { %5873 = vmatmul.mubr.bf16.gmra.mrb[64].mxu0 %v8405_v10 }
 0x2a2   : > { %5892 = vmatprep.mubr.bf16.mxu0 %v9164_v37  ;;  %v6661_v37 = vld [vmem:[#allocation10 + $0x1d8] sm:$0xff]  }
 0x2a3   : > { %6017 = vmatmul.mubr.bf16.gmra.mrb[12].mxu1 %v8420_v53 }
 0x2a4   : > { %6036 = vmatprep.mubr.bf16.mxu1 %v9170_v29 }
 0x2a9   : > { %5893 = vmatmul.mubr.bf16.vlgmr.msra.gmra.mrb[36].mxu0 %v9170_v29  ;;  %v6662_v29 = vld [vmem:[#allocation10 + $0x1e0] sm:$0xff]  }
 0x2aa   : > { %5896 = vmatprep.mubr.bf16.mxu0 %v9191_v8  ;;  %6165 = vmatpush3.bf16.msra.mxu0 %v6674_v31 }
 0x2ab   : > { %6037 = vmatmul.mubr.bf16.vlgmr.msra.gmra.mrb[16].mxu1 %v9191_v8  ;;  %v6663_v8 = vld [vmem:[#allocation10 + $0x1e8] sm:$0xff]   ;;  %6166 = vmatprep.subr.bf16.mxu0 %v6675_v14 }
 0x2ac   : > { %6069 = vmatpush3.bf16.msra.mxu1 %v6658_v56  ;;  %6040 = vmatprep.mubr.bf16.mxu1 %v9192_v55 }
 0x2ad   : > { %6070 = vmatprep.subr.bf16.mxu1 %v6659_v50 }
 0x2ae   : > { %6167 = vmatpush3.bf16.msra.mxu0 %v6675_v14 }
 0x2b0   : > { %6071 = vmatpush3.bf16.msra.mxu1 %v6659_v50 }
 0x2b1   : > { %5897 = vmatmul.mubr.bf16.gmra.mrb[40].mxu0 %v9192_v55  ;;  %6072 = vmatprep.subr.bf16.mxu1 %v6660_v17  ;;  %v6664_v55 = vld [vmem:[#allocation10 + $0x1f0] sm:$0xff]  }
 0x2b2   : > { %5900 = vmatprep.mubr.bf16.mxu0 %v9196_v12 }
 0x2b3   : > { %6041 = vmatmul.mubr.bf16.gmra.mrb[20].mxu1 %v9196_v12  ;;  %v6665_v12 = vld [vmem:[#allocation10 + $0x1f8] sm:$0xff]  }
 0x2b4   : > { %6044 = vmatprep.mubr.bf16.mxu1 %v9197_v16  ;;  %6073 = vmatpush3.bf16.msra.mxu1 %v6660_v17 }
 0x2b5   : > { %6074 = vmatprep.subr.bf16.mxu1 %v6661_v37 }
 0x2b8   : > { %6075 = vmatpush3.bf16.msra.mxu1 %v6661_v37 }
 0x2b9   : > { %5901 = vmatmul.mubr.bf16.gmra.mrb[44].mxu0 %v9197_v16  ;;  %6076 = vmatprep.subr.bf16.mxu1 %v6662_v29  ;;  %v6666_v16 = vld [vmem:[#allocation10 + $0x200] sm:$0xff]  }
 0x2ba   : > { %5904 = vmatprep.mubr.bf16.mxu0 %v9200_v41 }
 0x2bb   : > { %6045 = vmatmul.mubr.bf16.gmra.mrb[24].mxu1 %v9200_v41  ;;  %v6667_v41 = vld [vmem:[#allocation10 + $0x208] sm:$0xff]  }
 0x2bc   : > { %6048 = vmatprep.mubr.bf16.mxu1 %v9201_v60  ;;  %6077 = vmatpush3.bf16.msra.mxu1 %v6662_v29 }
 0x2bd   : > { %6078 = vmatprep.subr.bf16.mxu1 %v6663_v8 }
 0x2c0   : > { %6079 = vmatpush3.bf16.msra.mxu1 %v6663_v8 }
 0x2c1   : > { %5905 = vmatmul.mubr.bf16.gmra.mrb[48].mxu0 %v9201_v60  ;;  %6080 = vmatprep.subr.bf16.mxu1 %v6664_v55  ;;  %v6668_v60 = vld [vmem:[#allocation10 + $0x210] sm:$0xff]  }
 0x2c3   : > { %6049 = vmatmul.mubr.bf16.gmra.mrb[28].mxu1 %v9204_v62 }
 0x2c4   : > { %6052 = vmatprep.mubr.bf16.mxu1 %v9205_v13  ;;  %6081 = vmatpush3.bf16.msra.mxu1 %v6664_v55 }
 0x2c5   : > { %6082 = vmatprep.subr.bf16.mxu1 %v6665_v12 }
 0x2c8   : > { %6083 = vmatpush3.bf16.msra.mxu1 %v6665_v12 }
 0x2c9   : > { %6116 = vmatprep.subr.bf16.mxu1 %v6666_v16 }
 0x2cb   : > { %6053 = vmatmul.mubr.bf16.gmra.mrb[0].mxu1 %v9208_v61 }
 0x2cc   : > { %6056 = vmatprep.mubr.bf16.mxu1 %v9209_v51 }
 0x2d3   : > { %6057 = vmatmul.mubr.bf16.gmra.mrb[4].mxu1 %v9212_v2 }
 0x2d4   : > { %6060 = vmatprep.mubr.bf16.mxu1 %v8148_v36  ;;  %v6669_v36 = vld [vmem:[#allocation10 + $0x218] sm:$0xff]  }
 0x2db   : > { %6061 = vmatmul.mubr.bf16.gmra.mrb[8].mxu1 %v8164_v40  ;;  %v6670_v40 = vld [vmem:[#allocation10 + $0x220] sm:$0xff]  }
 0x2dc   : > { %6064 = vmatprep.mubr.bf16.mxu1 %v8208_v49  ;;  %v6671_v49 = vld [vmem:[#allocation10 + $0x228] sm:$0xff]  }
 0x2e3   : > { %6065 = vmatmul.mubr.bf16.gmra.mrb[12].mxu1 %v2248_v38  ;;  %v6676_v38 = vld [vmem:[#allocation11 + $0x10] sm:$0xff]  }
 0x2e4   : > { %6084 = vmatprep.mubr.bf16.mxu1 %v9185_v9  ;;  %v6672_v9 = vld [vmem:[#allocation10 + $0x230] sm:$0xff]   ;;  %6168 = vmatprep.subr.bf16.mxu0 %v6676_v38 }
 0x2e5   : > { %6169 = vmatpush3.bf16.msra.mxu0 %v6676_v38 }
 0x2eb   : > { %6085 = vmatmul.mubr.bf16.vlgmr.msra.gmra.mrb[16].mxu1 %v9187_v39  ;;  %v6673_v39 = vld [vmem:[#allocation10 + $0x238] sm:$0xff]  }
 0x2ec   : > { %6117 = vmatpush3.bf16.msra.mxu1 %v6666_v16  ;;  %6088 = vmatprep.mubr.bf16.mxu1 %v9194_v20  ;;  %v6677_v20 = vld [vmem:[#allocation11 + $0x18] sm:$0xff]  }
 0x2ed   : > { %6118 = vmatprep.subr.bf16.mxu1 %v6667_v41  ;;  %6170 = vmatprep.subr.bf16.mxu0 %v6677_v20 }
 0x2ee   : > { %6171 = vmatpush3.bf16.msra.mxu0 %v6677_v20 }
 0x2f0   : > { %6119 = vmatpush3.bf16.msra.mxu1 %v6667_v41 }
 0x2f1   : > { %6120 = vmatprep.subr.bf16.mxu1 %v6668_v60 }
 0x2f3   : > { %6089 = vmatmul.mubr.bf16.gmra.mrb[20].mxu1 %v9195_v44  ;;  %v6678_v44 = vld [vmem:[#allocation11 + $0x20] sm:$0xff]  }
 0x2f4   : > { %6092 = vmatprep.mubr.bf16.mxu1 %v9198_v30  ;;  %6121 = vmatpush3.bf16.msra.mxu1 %v6668_v60 }
 0x2f5   : > { %6122 = vmatprep.subr.bf16.mxu1 %v6669_v36  ;;  %6172 = vmatprep.subr.bf16.mxu0 %v6678_v44 }
 0x2f6   : > { %6173 = vmatpush3.bf16.msra.mxu0 %v6678_v44 }
 0x2f8   : > { %6123 = vmatpush3.bf16.msra.mxu1 %v6669_v36 }
 0x2f9   : > { %6124 = vmatprep.subr.bf16.mxu1 %v6670_v40 }
 0x2fb   : > { %6093 = vmatmul.mubr.bf16.gmra.mrb[24].mxu1 %v9199_v22 }
 0x2fc   : > { %6096 = vmatprep.mubr.bf16.mxu1 %v9202_v1  ;;  %6125 = vmatpush3.bf16.msra.mxu1 %v6670_v40  ;;  %v6679_v1 = vld [vmem:[#allocation11 + $0x28] sm:$0xff]  }
 0x2fd   : > { %6126 = vmatprep.subr.bf16.mxu1 %v6671_v49  ;;  %6174 = vmatprep.subr.bf16.mxu0 %v6679_v1 }
 0x2fe   : > { %6175 = vmatpush3.bf16.msra.mxu0 %v6679_v1 }
 0x300   : > { %6127 = vmatpush3.bf16.msra.mxu1 %v6671_v49 }
 0x301   : > { %6128 = vmatprep.subr.bf16.mxu1 %v6672_v9 }
 0x303   : > { %6097 = vmatmul.mubr.bf16.gmra.mrb[28].mxu1 %v9203_v54  ;;  %v6680_v54 = vld [vmem:[#allocation11 + $0x30] sm:$0xff]  }
 0x304   : > { %6100 = vmatprep.mubr.bf16.mxu1 %v9206_v32  ;;  %6129 = vmatpush3.bf16.msra.mxu1 %v6672_v9 }
 0x305   : > { %6130 = vmatprep.subr.bf16.mxu1 %v6673_v39  ;;  %6176 = vmatprep.subr.bf16.mxu0 %v6680_v54 }
 0x306   : > { %6177 = vmatpush3.bf16.msra.mxu0 %v6680_v54 }
 0x308   : > { %6131 = vmatpush3.bf16.msra.mxu1 %v6673_v39 }
 0x30b   : > { %6101 = vmatmul.mubr.bf16.gmra.mrb[0].mxu1 %v9207_v7  ;;  %v6681_v7 = vld [vmem:[#allocation11 + $0x38] sm:$0xff]  }
 0x30c   : > { %6104 = vmatprep.mubr.bf16.mxu1 %v9210_v26  ;;  %6178 = vmatprep.subr.bf16.mxu0 %v6681_v7 }
 0x30d   : > { %6179 = vmatpush3.bf16.msra.mxu0 %v6681_v7 }
 0x313   : > { %6105 = vmatmul.mubr.bf16.gmra.mrb[4].mxu1 %v9211_v18 }
 0x314   : > { %6108 = vmatprep.mubr.bf16.mxu1 %v8119_v19 }
 0x31b   : > { %6109 = vmatmul.mubr.bf16.gmra.mrb[8].mxu1 %v8111_v25 }
 0x31c   : > { %6112 = vmatprep.mubr.bf16.mxu1 %v8179_v24 }
 0x323   : > { %6113 = vmatmul.mubr.bf16.gmra.mrb[12].mxu1 %v2266_v6 }
 0x324   : > { %6132 = vmatprep.mubr.bf16.mxu1 %v9217_v34  ;;  %v8607_v34 = vld [vmem:[%s9218_s7] ss:$0 sm:$0xff] }
 0x32b   : > { %6133 = vmatmul.mubr.bf16.vlgmr.msra.gmra.mrb[16].mxu1 %v8170_v11 }
 0x32c   : > { %6136 = vmatprep.mubr.bf16.mxu1 %v8224_v27 }
 0x333   : > { %6137 = vmatmul.mubr.bf16.gmra.mrb[20].mxu1 %v8239_v35 }
 0x334   : > { %6140 = vmatprep.mubr.bf16.mxu1 %v8267_v46 }
 0x33b   : > { %6141 = vmatmul.mubr.bf16.gmra.mrb[24].mxu1 %v8292_v45 }
 0x33c   : > { %6144 = vmatprep.mubr.bf16.mxu1 %v8302_v58 }
 0x343   : > { %6145 = vmatmul.mubr.bf16.gmra.mrb[28].mxu1 %v8320_v47 }
 0x344   : > { %6148 = vmatprep.mubr.bf16.mxu1 %v8330_v33 }
 0x34b   : > { %6149 = vmatmul.mubr.bf16.gmra.mrb[0].mxu1 %v8344_v21 }
 0x34c   : > { %6152 = vmatprep.mubr.bf16.mxu1 %v8378_v0 }
 0x353   : > { %6153 = vmatmul.mubr.bf16.gmra.mrb[4].mxu1 %v8388_v23 }
 0x354   : > { %6156 = vmatprep.mubr.bf16.mxu1 %v8396_v48 }
 0x35b   : > { %6157 = vmatmul.mubr.bf16.gmra.mrb[8].mxu1 %v8405_v10 }
 0x35c   : > { %v8553_v25 = vpop.f32.mrb[52].mxu0  ;;  %6160 = vmatprep.mubr.bf16.mxu1 %v8420_v53 }
 0x35d   : > { %v8555_v19 = vpop.f32.mrb[53].mxu0 }
 0x35e   : > { %v8558_v57 = vpop.f32.mrb[54].mxu0 }
 0x35f   : > { %v8561_v11 = vpop.f32.mrb[55].mxu0 }
 0x363   : > { %6161 = vmatmul.mubr.bf16.gmra.mrb[12].mxu1 %v2284_v59 }
 0x364   : > { %v8563_v24 = vpop.f32.mrb[56].mxu0 }
 0x365   : > { %v8565_v15 = vpop.f32.mrb[57].mxu0 }
 0x366   : > { %v8570_v27 = vpop.f32.mrb[58].mxu0 }
 0x367   : > { %v8572_v35 = vpop.f32.mrb[59].mxu0 }
 0x36c   : > { %v8574_v46 = vpop.f32.mrb[60].mxu0 }
 0x36d   : > { %v8576_v45 = vpop.f32.mrb[61].mxu0 }
 0x36e   : > { %v8578_v58 = vpop.f32.mrb[62].mxu0 }
 0x36f   : > { %v8580_v47 = vpop.f32.mrb[63].mxu0 }
 0x374   : > { %v8582_v33 = vpop.f32.mrb[64].mxu0 }
 0x375   : > { %v8584_v21 = vpop.f32.mrb[65].mxu0 }
 0x376   : > { %v8586_v0 = vpop.f32.mrb[66].mxu0 }
 0x377   : > { %v8588_v23 = vpop.f32.mrb[67].mxu0 }
 0x37c   : > { %v5894_v48 = vpop.f32.mrb[36].mxu0 }
 0x37d   : > { %v3093_v10 = vpop.f32.mrb[37].mxu0 }
 0x37e   : > { %v5895_v6 = vpop.f32.mrb[38].mxu0 }
 0x37f   : > { %v3096_v53 = vpop.f32.mrb[39].mxu0 }
 0x384   : > { %v5898_v63 = vpop.f32.mrb[40].mxu0 }
 0x385   : > { %v3109_v5 = vpop.f32.mrb[41].mxu0 }
 0x386   : > { %v5899_v59 = vpop.f32.mrb[42].mxu0 }
 0x387   : > { %v3112_v30 = vpop.f32.mrb[43].mxu0 }
 0x38c   : > { %v5902_v22 = vpop.f32.mrb[44].mxu0 }
 0x38d   : > { %v8590_v62 = vpop.f32.mrb[45].mxu0 }
 0x38e   : > { %v8592_v13 = vpop.f32.mrb[46].mxu0 }
 0x38f   : > { %v8594_v32 = vpop.f32.mrb[47].mxu0 }
 0x394   : > { %v8596_v61 = vpop.f32.mrb[48].mxu0 }
 0x395   : > { %v8598_v51 = vpop.f32.mrb[49].mxu0 }
 0x396   : > { %v8600_v26 = vpop.f32.mrb[50].mxu0 }
 0x397   : > { %v8602_v18 = vpop.f32.mrb[51].mxu0 }
 0x3fe   : > { %v6134_v2 = vpop.f32.mrb[16].mxu1 }
 0x3ff   : > { %v6228_v52 = vadd.f32 %v6134_v2, %v5894_v48  ;;  %v4383_v42 = vpop.f32.mrb[17].mxu1 }
 0x400   : > { %v6229_v43 = vadd.f32 %v4383_v42, %v3093_v10  ;;  %v6135_v28 = vpop.f32.mrb[18].mxu1 }
 0x401   : > { %v4551_v4 = vmul.f32 %v6228_v52, %v8607_v34  ;;  %v6230_v56 = vadd.f32 %v6135_v28, %v5895_v6  ;;  %v4386_v50 = vpop.f32.mrb[19].mxu1 }
 0x402   : > { %v4549_v17 = vmul.f32 %v6229_v43, %v8607_v34  ;;  %v6231_v37 = vadd.f32 %v4386_v50, %v3096_v53 }
 0x403   : > { %v4590_v29 = vadd.f32 %v8612_v3, %v4551_v4  ;;  %v4552_v8 = vmul.f32 %v6230_v56, %v8607_v34 }
 0x404   : > { %v4588_v55 = vadd.f32 %v8612_v3, %v4549_v17  ;;  %v4550_v12 = vmul.f32 %v6231_v37, %v8607_v34 }
 0x405   : > { %v4591_v16 = vadd.f32 %v8612_v3, %v4552_v8  ;;  %v4622_v36 = vmax.f32 %v4590_v29, 0.0 }
 0x406   : > { %v4589_v41 = vadd.f32 %v8612_v3, %v4550_v12  ;;  %v6138_v60 = vpop.f32.mrb[20].mxu1  ;;  %v4620_v39 = vmax.f32 %v4588_v55, 0.0 }
 0x407   : > { %v4623_v40 = vmax.f32 %v4591_v16, 0.0  ;;  %v6232_v49 = vadd.f32 %v6138_v60, %v5898_v63  ;;  %v4399_v9 = vpop.f32.mrb[21].mxu1 }
 0x408   : > { %v4621_v31 = vmax.f32 %v4589_v41, 0.0  ;;  %v6233_v14 = vadd.f32 %v4399_v9, %v3109_v5  ;;  %v6139_v38 = vpop.f32.mrb[22].mxu1 }
 0x409   : > { %v4653_v20 = vpack.c.bf16 %v4623_v40, %v4622_v36  ;;  %v4555_v44 = vmul.f32 %v6232_v49, %v8607_v34  ;;  %v6234_v48 = vadd.f32 %v6139_v38, %v5899_v59  ;;  %v4402_v10 = vpop.f32.mrb[23].mxu1 }
 0x40a   : > { %v4553_v6 = vmul.f32 %v6233_v14, %v8607_v34  ;;  %v6235_v53 = vadd.f32 %v4402_v10, %v3112_v30  ;;  %v4652_v1 = vpack.c.bf16 %v4621_v31, %v4620_v39 }
 0x40b   : > { %v4594_v54 = vadd.f32 %v8612_v3, %v4555_v44  ;;  %v4556_v7 = vmul.f32 %v6234_v48, %v8607_v34 }
 0x40c   : > { %v4592_v63 = vadd.f32 %v8612_v3, %v4553_v6  ;;  %v4554_v2 = vmul.f32 %v6235_v53, %v8607_v34  ;;  %6180 = vmatprep.mubr.bf16.mxu0 %v4652_v1 }
 0x40d   : > { %v4595_v5 = vadd.f32 %v8612_v3, %v4556_v7  ;;  %6181 = vmatmul.mubr.bf16.vlgmr.msra.gmra.mrb[68].mxu0 %v4653_v20  ;;  %v4626_v42 = vmax.f32 %v4594_v54, 0.0 }
 0x40e   : > { %v4593_v52 = vadd.f32 %v8612_v3, %v4554_v2  ;;  %v6142_v59 = vpop.f32.mrb[24].mxu1  ;;  %v4624_v4 = vmax.f32 %v4592_v63, 0.0 }
 0x40f   : > { %v4627_v43 = vmax.f32 %v4595_v5, 0.0  ;;  %v6236_v28 = vadd.f32 %v6142_v59, %v5902_v22  ;;  %v4415_v30 = vpop.f32.mrb[25].mxu1 }
 0x410   : > { %v4625_v56 = vmax.f32 %v4593_v52, 0.0  ;;  %v6237_v50 = vadd.f32 %v4415_v30, %v8590_v62  ;;  %v6143_v17 = vpop.f32.mrb[26].mxu1 }
 0x411   : > { %v4559_v37 = vmul.f32 %v6236_v28, %v8607_v34  ;;  %v6238_v29 = vadd.f32 %v6143_v17, %v8592_v13  ;;  %v4418_v8 = vpop.f32.mrb[27].mxu1  ;;  %v4655_v55 = vpack.c.bf16 %v4627_v43, %v4626_v42 }
 0x412   : > { %v4557_v12 = vmul.f32 %v6237_v50, %v8607_v34  ;;  %v6239_v16 = vadd.f32 %v4418_v8, %v8594_v32  ;;  %v4654_v41 = vpack.c.bf16 %v4625_v56, %v4624_v4 }
 0x413   : > { %v4598_v60 = vadd.f32 %v8612_v3, %v4559_v37  ;;  %v4560_v22 = vmul.f32 %v6238_v29, %v8607_v34 }
 0x414   : > { %v4596_v36 = vadd.f32 %v8612_v3, %v4557_v12  ;;  %v4558_v62 = vmul.f32 %v6239_v16, %v8607_v34  ;;  %6184 = vmatprep.mubr.bf16.mxu0 %v4654_v41 }
 0x415   : > { %v4599_v40 = vadd.f32 %v8612_v3, %v4560_v22  ;;  %6185 = vmatmul.mubr.bf16.gmra.mrb[72].mxu0 %v4655_v55  ;;  %v4630_v9 = vmax.f32 %v4598_v60, 0.0 }
 0x416   : > { %v4597_v13 = vadd.f32 %v8612_v3, %v4558_v62  ;;  %v6146_v49 = vpop.f32.mrb[28].mxu1  ;;  %v4628_v14 = vmax.f32 %v4596_v36, 0.0 }
 0x417   : > { %v4631_v39 = vmax.f32 %v4599_v40, 0.0  ;;  %v6240_v32 = vadd.f32 %v6146_v49, %v8596_v61  ;;  %v4431_v31 = vpop.f32.mrb[29].mxu1 }
 0x418   : > { %v4629_v38 = vmax.f32 %v4597_v13, 0.0  ;;  %v6241_v20 = vadd.f32 %v4431_v31, %v8598_v51  ;;  %v6147_v44 = vpop.f32.mrb[30].mxu1 }
 0x419   : > { %v4563_v48 = vmul.f32 %v6240_v32, %v8607_v34  ;;  %v6242_v10 = vadd.f32 %v6147_v44, %v8600_v26  ;;  %v4434_v6 = vpop.f32.mrb[31].mxu1  ;;  %v4657_v53 = vpack.c.bf16 %v4631_v39, %v4630_v9 }
 0x41a   : > { %v4561_v1 = vmul.f32 %v6241_v20, %v8607_v34  ;;  %v6243_v54 = vadd.f32 %v4434_v6, %v8602_v18  ;;  %v4656_v7 = vpack.c.bf16 %v4629_v38, %v4628_v14 }
 0x41b   : > { %v4602_v63 = vadd.f32 %v8612_v3, %v4563_v48  ;;  %v4564_v61 = vmul.f32 %v6242_v10, %v8607_v34 }
 0x41c   : > { %v4600_v2 = vadd.f32 %v8612_v3, %v4561_v1  ;;  %v4562_v51 = vmul.f32 %v6243_v54, %v8607_v34  ;;  %6188 = vmatprep.mubr.bf16.mxu0 %v4656_v7 }
 0x41d   : > { %v4603_v5 = vadd.f32 %v8612_v3, %v4564_v61  ;;  %6189 = vmatmul.mubr.bf16.gmra.mrb[76].mxu0 %v4657_v53  ;;  %v4634_v59 = vmax.f32 %v4602_v63, 0.0 }
 0x41e   : > { %v4601_v26 = vadd.f32 %v8612_v3, %v4562_v51  ;;  %v6150_v52 = vpop.f32.mrb[0].mxu1  ;;  %v4632_v28 = vmax.f32 %v4600_v2, 0.0 }
 0x41f   : > { %v4635_v42 = vmax.f32 %v4603_v5, 0.0  ;;  %v6244_v18 = vadd.f32 %v6150_v52, %v8553_v25  ;;  %v4447_v43 = vpop.f32.mrb[1].mxu1 }
 0x420   : > { %v4633_v30 = vmax.f32 %v4601_v26, 0.0  ;;  %v6245_v4 = vadd.f32 %v4447_v43, %v8555_v19  ;;  %v6151_v56 = vpop.f32.mrb[2].mxu1 }
 0x421   : > { %v4567_v50 = vmul.f32 %v6244_v18, %v8607_v34  ;;  %v6246_v17 = vadd.f32 %v6151_v56, %v8558_v57  ;;  %v4450_v37 = vpop.f32.mrb[3].mxu1  ;;  %v4659_v29 = vpack.c.bf16 %v4635_v42, %v4634_v59 }
 0x422   : > { %v4565_v8 = vmul.f32 %v6245_v4, %v8607_v34  ;;  %v6247_v55 = vadd.f32 %v4450_v37, %v8561_v11  ;;  %v4658_v12 = vpack.c.bf16 %v4633_v30, %v4632_v28 }
 0x423   : > { %v4606_v16 = vadd.f32 %v8612_v3, %v4567_v50  ;;  %v4568_v25 = vmul.f32 %v6246_v17, %v8607_v34 }
 0x424   : > { %v4604_v41 = vadd.f32 %v8612_v3, %v4565_v8  ;;  %v4566_v19 = vmul.f32 %v6247_v55, %v8607_v34  ;;  %6192 = vmatprep.mubr.bf16.mxu0 %v4658_v12 }
 0x425   : > { %v4607_v60 = vadd.f32 %v8612_v3, %v4568_v25  ;;  %6193 = vmatmul.mubr.bf16.gmra.mrb[80].mxu0 %v4659_v29  ;;  %v4638_v36 = vmax.f32 %v4606_v16, 0.0 }
 0x426   : > { %v4605_v57 = vadd.f32 %v8612_v3, %v4566_v19  ;;  %v6154_v22 = vpop.f32.mrb[4].mxu1  ;;  %v4636_v13 = vmax.f32 %v4604_v41, 0.0 }
 0x427   : > { %v4639_v62 = vmax.f32 %v4607_v60, 0.0  ;;  %v6248_v11 = vadd.f32 %v6154_v22, %v8563_v24  ;;  %v4463_v40 = vpop.f32.mrb[5].mxu1 }
 0x428   : > { %v4637_v49 = vmax.f32 %v4605_v57, 0.0  ;;  %v6249_v9 = vadd.f32 %v4463_v40, %v8565_v15  ;;  %v6155_v39 = vpop.f32.mrb[6].mxu1 }
 0x429   : > { %v4571_v32 = vmul.f32 %v6248_v11, %v8607_v34  ;;  %v6250_v31 = vadd.f32 %v6155_v39, %v8570_v27  ;;  %v4466_v14 = vpop.f32.mrb[7].mxu1  ;;  %v4661_v38 = vpack.c.bf16 %v4639_v62, %v4638_v36 }
 0x42a   : > { %v4569_v20 = vmul.f32 %v6249_v9, %v8607_v34  ;;  %v6251_v44 = vadd.f32 %v4466_v14, %v8572_v35  ;;  %v4660_v48 = vpack.c.bf16 %v4637_v49, %v4636_v13 }
 0x42b   : > { %v4610_v10 = vadd.f32 %v8612_v3, %v4571_v32  ;;  %v4572_v24 = vmul.f32 %v6250_v31, %v8607_v34 }
 0x42c   : > { %v4608_v6 = vadd.f32 %v8612_v3, %v4569_v20  ;;  %v4570_v15 = vmul.f32 %v6251_v44, %v8607_v34  ;;  %6196 = vmatprep.mubr.bf16.mxu0 %v4660_v48 }
 0x42d   : > { %v4611_v53 = vadd.f32 %v8612_v3, %v4572_v24  ;;  %6197 = vmatmul.mubr.bf16.gmra.mrb[84].mxu0 %v4661_v38  ;;  %v4642_v54 = vmax.f32 %v4610_v10, 0.0 }
 0x42e   : > { %v4609_v27 = vadd.f32 %v8612_v3, %v4570_v15  ;;  %v6158_v1 = vpop.f32.mrb[8].mxu1  ;;  %v4640_v61 = vmax.f32 %v4608_v6, 0.0 }
 0x42f   : > { %v4643_v7 = vmax.f32 %v4611_v53, 0.0  ;;  %v6252_v35 = vadd.f32 %v6158_v1, %v8574_v46  ;;  %v4479_v63 = vpop.f32.mrb[9].mxu1  ;;  %v6690_v53 = vld [vmem:[%s7386_s8 + $0x10] sm:$0xff] }
 0x430   : > { %v4641_v2 = vmax.f32 %v4609_v27, 0.0  ;;  %v6253_v51 = vadd.f32 %v4479_v63, %v8576_v45  ;;  %v6159_v5 = vpop.f32.mrb[10].mxu1 }
 0x431   : > { %v4575_v26 = vmul.f32 %v6252_v35, %v8607_v34  ;;  %v6254_v52 = vadd.f32 %v6159_v5, %v8578_v58  ;;  %v4482_v59 = vpop.f32.mrb[11].mxu1  ;;  %v4663_v42 = vpack.c.bf16 %v4643_v7, %v4642_v54  ;;  %v6691_v54 = vld [vmem:[%s7386_s8] sm:$0xff]  ;;  %v6693_v5 = vld [vmem:[%s7386_s8 + $0x8] sm:$0xff] }
 0x432   : > { %v4573_v18 = vmul.f32 %v6253_v51, %v8607_v34  ;;  %v6255_v43 = vadd.f32 %v4482_v59, %v8580_v47  ;;  %v4662_v28 = vpack.c.bf16 %v4641_v2, %v4640_v61  ;;  %v6692_v61 = vld [vmem:[%s7386_s8 + $0x18] sm:$0xff] }
 0x433   : > { %v4614_v30 = vadd.f32 %v8612_v3, %v4575_v26  ;;  %v4576_v46 = vmul.f32 %v6254_v52, %v8607_v34 }
 0x434   : > { %v4612_v4 = vadd.f32 %v8612_v3, %v4573_v18  ;;  %v4574_v45 = vmul.f32 %v6255_v43, %v8607_v34  ;;  %6200 = vmatprep.mubr.bf16.mxu0 %v4662_v28 }
 0x435   : > { %v4615_v56 = vadd.f32 %v8612_v3, %v4576_v46  ;;  %6201 = vmatmul.mubr.bf16.gmra.mrb[88].mxu0 %v4663_v42  ;;  %v4646_v17 = vmax.f32 %v4614_v30, 0.0 }
 0x436   : > { %v4613_v58 = vadd.f32 %v8612_v3, %v4574_v45  ;;  %v6162_v50 = vpop.f32.mrb[12].mxu1  ;;  %v4644_v8 = vmax.f32 %v4612_v4, 0.0 }
 0x437   : > { %v4647_v37 = vmax.f32 %v4615_v56, 0.0  ;;  %v6256_v47 = vadd.f32 %v6162_v50, %v8582_v33  ;;  %v4495_v29 = vpop.f32.mrb[13].mxu1  ;;  %v6694_v50 = vld [vmem:[%s7386_s8 + $0x30] sm:$0xff] }
 0x438   : > { %v4645_v55 = vmax.f32 %v4613_v58, 0.0  ;;  %v6257_v12 = vadd.f32 %v4495_v29, %v8584_v21  ;;  %v6163_v16 = vpop.f32.mrb[14].mxu1 }
 0x439   : > { %v4579_v25 = vmul.f32 %v6256_v47, %v8607_v34  ;;  %v6258_v41 = vadd.f32 %v6163_v16, %v8586_v0  ;;  %v4498_v19 = vpop.f32.mrb[15].mxu1  ;;  %v4665_v60 = vpack.c.bf16 %v4647_v37, %v4646_v17  ;;  %v6695_v47 = vld [vmem:[%s7386_s8 + $0x20] sm:$0xff] }
 0x43a   : > { %v4577_v57 = vmul.f32 %v6257_v12, %v8607_v34  ;;  %v6259_v22 = vadd.f32 %v4498_v19, %v8588_v23  ;;  %v4664_v36 = vpack.c.bf16 %v4645_v55, %v4644_v8  ;;  %v6696_v12 = vld [vmem:[%s7386_s8 + $0x38] sm:$0xff] }
 0x43b   : > { %v4618_v62 = vadd.f32 %v8612_v3, %v4579_v25  ;;  %v4580_v33 = vmul.f32 %v6258_v41, %v8607_v34  ;;  %v6697_v41 = vld [vmem:[%s7386_s8 + $0x28] sm:$0xff] }
 0x43c   : > { %v4616_v11 = vadd.f32 %v8612_v3, %v4577_v57  ;;  %v4578_v21 = vmul.f32 %v6259_v22, %v8607_v34  ;;  %6204 = vmatprep.mubr.bf16.mxu0 %v4664_v36  ;;  %v8704_v34 = vld [vmem:[%s9220_s28] ss:$0 sm:$0xff] }
 0x43d   : > { %v4619_v40 = vadd.f32 %v8612_v3, %v4580_v33  ;;  %6205 = vmatmul.mubr.bf16.gmra.mrb[92].mxu0 %v4665_v60  ;;  %v4650_v13 = vmax.f32 %v4618_v62, 0.0 }
 0x43e   : > { %v4617_v0 = vadd.f32 %v8612_v3, %v4578_v21  ;;  %v4648_v9 = vmax.f32 %v4616_v11, 0.0  ;;  %v8709_v3 = vld [vmem:[%s9221_s29] ss:$0 sm:$0xff] }
 0x43f   : > { %v4651_v49 = vmax.f32 %v4619_v40, 0.0 }
 0x440   : > { %v4649_v39 = vmax.f32 %v4617_v0, 0.0 }
 0x441   : > { %v4667_v23 = vpack.c.bf16 %v4651_v49, %v4650_v13 }
 0x442   : > { %v4666_v32 = vpack.c.bf16 %v4649_v39, %v4648_v9  ;;  %v6698_v9 = vld [vmem:[%s7386_s8 + $0x50] sm:$0xff] }
 0x444   : > { %6208 = vmatprep.mubr.bf16.mxu0 %v4666_v32  ;;  %v6699_v32 = vld [vmem:[%s7386_s8 + $0x40] sm:$0xff] }
 0x445   : > { %6209 = vmatmul.mubr.bf16.gmra.mrb[96].mxu0 %v4667_v23 }
 0x4e0   : > { %v6182_v31 = vpop.f32.mrb[68].mxu0 }
 0x4e1   : > { %v4902_v14 = vmul.f32 %v6182_v31, %v8704_v34  ;;  %v4766_v38 = vpop.f32.mrb[69].mxu0 }
 0x4e2   : > { %v4900_v20 = vmul.f32 %v8704_v34, %v4766_v38  ;;  %v6183_v44 = vpop.f32.mrb[70].mxu0 }
 0x4e3   : > { %v4941_v48 = vadd.f32 %v8709_v3, %v4902_v14  ;;  %v4903_v10 = vmul.f32 %v6183_v44, %v8704_v34  ;;  %v4769_v24 = vpop.f32.mrb[71].mxu0 }
 0x4e4   : > { %v4939_v6 = vadd.f32 %v8709_v3, %v4900_v20  ;;  %v4901_v15 = vmul.f32 %v8704_v34, %v4769_v24  ;;  %v6700_v20 = vld [vmem:[%s7386_s8 + $0x58] sm:$0xff] }
 0x4e5   : > { %v4973_v27 = vadd.f32 %v6690_v53, %v4941_v48  ;;  %v4942_v1 = vadd.f32 %v8709_v3, %v4903_v10  ;;  %v6701_v10 = vld [vmem:[%s7386_s8 + $0x48] sm:$0xff] }
 0x4e6   : > { %v4971_v7 = vadd.f32 %v6691_v54, %v4939_v6  ;;  %v4940_v35 = vadd.f32 %v8709_v3, %v4901_v15 }
 0x4e7   : > { %v5005_v63 = vmax.f32 %v4973_v27, 0.0  ;;  %v4974_v2 = vadd.f32 %v6692_v61, %v4942_v1 }
 0x4e8   : > { %v5003_v51 = vmax.f32 %v4971_v7, 0.0  ;;  %v4972_v26 = vadd.f32 %v6693_v5, %v4940_v35  ;;  %v6186_v52 = vpop.f32.mrb[72].mxu0  ;;  %v6702_v5 = vld [vmem:[%s7386_s8 + $0x70] sm:$0xff] }
 0x4e9   : > { %5037 = vst [vmem:[%s8725_s3 + $0x10] sm:$0xff] %v5005_v63  ;;  %v5006_v59 = vmax.f32 %v4974_v2, 0.0  ;;  %v4906_v42 = vmul.f32 %v6186_v52, %v8704_v34  ;;  %v4782_v18 = vpop.f32.mrb[73].mxu0 }
 0x4ea   : > { %5035 = vst [vmem:[%s8725_s3] sm:$0xff] %v5003_v51  ;;  %v5004_v43 = vmax.f32 %v4972_v26, 0.0  ;;  %v4904_v28 = vmul.f32 %v8704_v34, %v4782_v18  ;;  %v6187_v30 = vpop.f32.mrb[74].mxu0 }
 0x4eb   : > { %5038 = vst [vmem:[%s8725_s3 + $0x18] sm:$0xff] %v5006_v59  ;;  %v4945_v46 = vadd.f32 %v8709_v3, %v4906_v42  ;;  %v4907_v4 = vmul.f32 %v6187_v30, %v8704_v34  ;;  %v4785_v45 = vpop.f32.mrb[75].mxu0  ;;  %v6703_v59 = vld [vmem:[%s7386_s8 + $0x60] sm:$0xff] }
 0x4ec   : > { %5036 = vst [vmem:[%s8725_s3 + $0x8] sm:$0xff] %v5004_v43  ;;  %v4943_v56 = vadd.f32 %v8709_v3, %v4904_v28  ;;  %v4905_v58 = vmul.f32 %v8704_v34, %v4785_v45  ;;  %v6704_v28 = vld [vmem:[%s7386_s8 + $0x78] sm:$0xff] }
 0x4ed   : > { %v4977_v17 = vadd.f32 %v6694_v50, %v4945_v46  ;;  %v4946_v37 = vadd.f32 %v8709_v3, %v4907_v4  ;;  %v6705_v4 = vld [vmem:[%s7386_s8 + $0x68] sm:$0xff] }
 0x4ee   : > { %v4975_v29 = vadd.f32 %v6695_v47, %v4943_v56  ;;  %v4944_v8 = vadd.f32 %v8709_v3, %v4905_v58 }
 0x4ef   : > { %v5009_v55 = vmax.f32 %v4977_v17, 0.0  ;;  %v4978_v16 = vadd.f32 %v6696_v12, %v4946_v37 }
 0x4f0   : > { %v5007_v25 = vmax.f32 %v4975_v29, 0.0  ;;  %v4976_v19 = vadd.f32 %v6697_v41, %v4944_v8  ;;  %v6190_v60 = vpop.f32.mrb[76].mxu0  ;;  %v6706_v41 = vld [vmem:[%s7386_s8 + $0x90] sm:$0xff] }
 0x4f1   : > { %5041 = vst [vmem:[%s8725_s3 + $0x30] sm:$0xff] %v5009_v55  ;;  %v5010_v57 = vmax.f32 %v4978_v16, 0.0  ;;  %v4910_v22 = vmul.f32 %v6190_v60, %v8704_v34  ;;  %v4798_v36 = vpop.f32.mrb[77].mxu0 }
 0x4f2   : > { %5039 = vst [vmem:[%s8725_s3 + $0x20] sm:$0xff] %v5007_v25  ;;  %v5008_v62 = vmax.f32 %v4976_v19, 0.0  ;;  %v4908_v33 = vmul.f32 %v8704_v34, %v4798_v36  ;;  %v6191_v11 = vpop.f32.mrb[78].mxu0 }
 0x4f3   : > { %5042 = vst [vmem:[%s8725_s3 + $0x38] sm:$0xff] %v5010_v57  ;;  %v4949_v21 = vadd.f32 %v8709_v3, %v4910_v22  ;;  %v4911_v40 = vmul.f32 %v6191_v11, %v8704_v34  ;;  %v4801_v0 = vpop.f32.mrb[79].mxu0  ;;  %v6707_v57 = vld [vmem:[%s7386_s8 + $0x80] sm:$0xff] }
 0x4f4   : > { %5040 = vst [vmem:[%s8725_s3 + $0x28] sm:$0xff] %v5008_v62  ;;  %v4947_v13 = vadd.f32 %v8709_v3, %v4908_v33  ;;  %v4909_v49 = vmul.f32 %v8704_v34, %v4801_v0  ;;  %v6708_v33 = vld [vmem:[%s7386_s8 + $0x98] sm:$0xff] }
 0x4f5   : > { %v4981_v39 = vadd.f32 %v6698_v9, %v4949_v21  ;;  %v4950_v23 = vadd.f32 %v8709_v3, %v4911_v40  ;;  %v6709_v40 = vld [vmem:[%s7386_s8 + $0x88] sm:$0xff] }
 0x4f6   : > { %v4979_v31 = vadd.f32 %v6699_v32, %v4947_v13  ;;  %v4948_v14 = vadd.f32 %v8709_v3, %v4909_v49 }
 0x4f7   : > { %v5013_v38 = vmax.f32 %v4981_v39, 0.0  ;;  %v4982_v44 = vadd.f32 %v6700_v20, %v4950_v23 }
 0x4f8   : > { %v5011_v48 = vmax.f32 %v4979_v31, 0.0  ;;  %v4980_v24 = vadd.f32 %v6701_v10, %v4948_v14  ;;  %v6194_v6 = vpop.f32.mrb[80].mxu0  ;;  %v6710_v10 = vld [vmem:[%s7386_s8 + $0xb0] sm:$0xff] }
 0x4f9   : > { %5045 = vst [vmem:[%s8725_s3 + $0x50] sm:$0xff] %v5013_v38  ;;  %v5014_v15 = vmax.f32 %v4982_v44, 0.0  ;;  %v4914_v53 = vmul.f32 %v6194_v6, %v8704_v34  ;;  %v4814_v27 = vpop.f32.mrb[81].mxu0 }
 0x4fa   : > { %5043 = vst [vmem:[%s8725_s3 + $0x40] sm:$0xff] %v5011_v48  ;;  %v5012_v1 = vmax.f32 %v4980_v24, 0.0  ;;  %v4912_v54 = vmul.f32 %v8704_v34, %v4814_v27  ;;  %v6195_v7 = vpop.f32.mrb[82].mxu0 }
 0x4fb   : > { %5046 = vst [vmem:[%s8725_s3 + $0x58] sm:$0xff] %v5014_v15  ;;  %v4953_v35 = vadd.f32 %v8709_v3, %v4914_v53  ;;  %v4915_v63 = vmul.f32 %v6195_v7, %v8704_v34  ;;  %v4817_v61 = vpop.f32.mrb[83].mxu0  ;;  %v6711_v15 = vld [vmem:[%s7386_s8 + $0xa0] sm:$0xff] }
 0x4fc   : > { %5044 = vst [vmem:[%s8725_s3 + $0x48] sm:$0xff] %v5012_v1  ;;  %v4951_v2 = vadd.f32 %v8709_v3, %v4912_v54  ;;  %v4913_v51 = vmul.f32 %v8704_v34, %v4817_v61  ;;  %v6712_v54 = vld [vmem:[%s7386_s8 + $0xb8] sm:$0xff] }
 0x4fd   : > { %v4985_v26 = vadd.f32 %v6702_v5, %v4953_v35  ;;  %v4954_v52 = vadd.f32 %v8709_v3, %v4915_v63  ;;  %v6713_v63 = vld [vmem:[%s7386_s8 + $0xa8] sm:$0xff] }
 0x4fe   : > { %v4983_v42 = vadd.f32 %v6703_v59, %v4951_v2  ;;  %v4952_v18 = vadd.f32 %v8709_v3, %v4913_v51 }
 0x4ff   : > { %v5017_v43 = vmax.f32 %v4985_v26, 0.0  ;;  %v4986_v30 = vadd.f32 %v6704_v28, %v4954_v52 }
 0x500   : > { %v5015_v46 = vmax.f32 %v4983_v42, 0.0  ;;  %v4984_v45 = vadd.f32 %v6705_v4, %v4952_v18  ;;  %v6198_v56 = vpop.f32.mrb[84].mxu0  ;;  %v6714_v4 = vld [vmem:[%s7386_s8 + $0xd0] sm:$0xff] }
 0x501   : > { %5049 = vst [vmem:[%s8725_s3 + $0x70] sm:$0xff] %v5017_v43  ;;  %v5018_v58 = vmax.f32 %v4986_v30, 0.0  ;;  %v4918_v50 = vmul.f32 %v6198_v56, %v8704_v34  ;;  %v4830_v17 = vpop.f32.mrb[85].mxu0 }
 0x502   : > { %5047 = vst [vmem:[%s8725_s3 + $0x60] sm:$0xff] %v5015_v46  ;;  %v5016_v37 = vmax.f32 %v4984_v45, 0.0  ;;  %v4916_v47 = vmul.f32 %v8704_v34, %v4830_v17  ;;  %v6199_v29 = vpop.f32.mrb[86].mxu0 }
 0x503   : > { %5050 = vst [vmem:[%s8725_s3 + $0x78] sm:$0xff] %v5018_v58  ;;  %v4957_v8 = vadd.f32 %v8709_v3, %v4918_v50  ;;  %v4919_v55 = vmul.f32 %v6199_v29, %v8704_v34  ;;  %v4833_v12 = vpop.f32.mrb[87].mxu0  ;;  %v6715_v58 = vld [vmem:[%s7386_s8 + $0xc0] sm:$0xff] }
 0x504   : > { %5048 = vst [vmem:[%s8725_s3 + $0x68] sm:$0xff] %v5016_v37  ;;  %v4955_v16 = vadd.f32 %v8709_v3, %v4916_v47  ;;  %v4917_v25 = vmul.f32 %v8704_v34, %v4833_v12  ;;  %v6716_v47 = vld [vmem:[%s7386_s8 + $0xd8] sm:$0xff] }
 0x505   : > { %v4989_v19 = vadd.f32 %v6706_v41, %v4957_v8  ;;  %v4958_v60 = vadd.f32 %v8709_v3, %v4919_v55  ;;  %v6717_v55 = vld [vmem:[%s7386_s8 + $0xc8] sm:$0xff] }
 0x506   : > { %v4987_v22 = vadd.f32 %v6707_v57, %v4955_v16  ;;  %v4956_v36 = vadd.f32 %v8709_v3, %v4917_v25 }
 0x507   : > { %v5021_v62 = vmax.f32 %v4989_v19, 0.0  ;;  %v4990_v11 = vadd.f32 %v6708_v33, %v4958_v60 }
 0x508   : > { %v5019_v21 = vmax.f32 %v4987_v22, 0.0  ;;  %v4988_v0 = vadd.f32 %v6709_v40, %v4956_v36  ;;  %v6202_v13 = vpop.f32.mrb[88].mxu0  ;;  %v6718_v40 = vld [vmem:[%s7386_s8 + $0xf0] sm:$0xff] }
 0x509   : > { %5053 = vst [vmem:[%s8725_s3 + $0x90] sm:$0xff] %v5021_v62  ;;  %v5022_v49 = vmax.f32 %v4990_v11, 0.0  ;;  %v4922_v9 = vmul.f32 %v6202_v13, %v8704_v34  ;;  %v4846_v39 = vpop.f32.mrb[89].mxu0 }
 0x50a   : > { %5051 = vst [vmem:[%s8725_s3 + $0x80] sm:$0xff] %v5019_v21  ;;  %v5020_v23 = vmax.f32 %v4988_v0, 0.0  ;;  %v4920_v32 = vmul.f32 %v8704_v34, %v4846_v39  ;;  %v6203_v31 = vpop.f32.mrb[90].mxu0 }
 0x50b   : > { %5054 = vst [vmem:[%s8725_s3 + $0x98] sm:$0xff] %v5022_v49  ;;  %v4961_v14 = vadd.f32 %v8709_v3, %v4922_v9  ;;  %v4923_v38 = vmul.f32 %v6203_v31, %v8704_v34  ;;  %v4849_v20 = vpop.f32.mrb[91].mxu0  ;;  %v6719_v49 = vld [vmem:[%s7386_s8 + $0xe0] sm:$0xff] }
 0x50c   : > { %5052 = vst [vmem:[%s8725_s3 + $0x88] sm:$0xff] %v5020_v23  ;;  %v4959_v44 = vadd.f32 %v8709_v3, %v4920_v32  ;;  %v4921_v48 = vmul.f32 %v8704_v34, %v4849_v20  ;;  %v6720_v32 = vld [vmem:[%s7386_s8 + $0xf8] sm:$0xff] }
 0x50d   : > { %v4993_v24 = vadd.f32 %v6710_v10, %v4961_v14  ;;  %v4962_v6 = vadd.f32 %v8709_v3, %v4923_v38 }
 0x50e   : > { %v4991_v53 = vadd.f32 %v6711_v15, %v4959_v44  ;;  %v4960_v27 = vadd.f32 %v8709_v3, %v4921_v48 }
 0x50f   : > { %v5025_v1 = vmax.f32 %v4993_v24, 0.0  ;;  %v4994_v7 = vadd.f32 %v6712_v54, %v4962_v6 }
 0x510   : > { %v5023_v35 = vmax.f32 %v4991_v53, 0.0  ;;  %v4992_v61 = vadd.f32 %v6713_v63, %v4960_v27  ;;  %v6206_v2 = vpop.f32.mrb[92].mxu0 }
 0x511   : > { %5057 = vst [vmem:[%s8725_s3 + $0xb0] sm:$0xff] %v5025_v1  ;;  %v5026_v51 = vmax.f32 %v4994_v7, 0.0  ;;  %v4926_v5 = vmul.f32 %v6206_v2, %v8704_v34  ;;  %v4862_v26 = vpop.f32.mrb[93].mxu0 }
 0x512   : > { %5055 = vst [vmem:[%s8725_s3 + $0xa0] sm:$0xff] %v5023_v35  ;;  %v5024_v52 = vmax.f32 %v4992_v61, 0.0  ;;  %v4924_v59 = vmul.f32 %v8704_v34, %v4862_v26  ;;  %v6207_v42 = vpop.f32.mrb[94].mxu0 }
 0x513   : > { %5058 = vst [vmem:[%s8725_s3 + $0xb8] sm:$0xff] %v5026_v51  ;;  %v4965_v18 = vadd.f32 %v8709_v3, %v4926_v5  ;;  %v4927_v43 = vmul.f32 %v6207_v42, %v8704_v34  ;;  %v4865_v28 = vpop.f32.mrb[95].mxu0 }
 0x514   : > { %5056 = vst [vmem:[%s8725_s3 + $0xa8] sm:$0xff] %v5024_v52  ;;  %v4963_v30 = vadd.f32 %v8709_v3, %v4924_v59  ;;  %v4925_v46 = vmul.f32 %v8704_v34, %v4865_v28 }
 0x515   : > { %v4997_v45 = vadd.f32 %v6714_v4, %v4965_v18  ;;  %v4966_v56 = vadd.f32 %v8709_v3, %v4927_v43 }
 0x516   : > { %v4995_v50 = vadd.f32 %v6715_v58, %v4963_v30  ;;  %v4964_v17 = vadd.f32 %v8709_v3, %v4925_v46 }
 0x517   : > { %v5029_v37 = vmax.f32 %v4997_v45, 0.0  ;;  %v4998_v29 = vadd.f32 %v6716_v47, %v4966_v56 }
 0x518   : > { %v5027_v8 = vmax.f32 %v4995_v50, 0.0  ;;  %v4996_v12 = vadd.f32 %v6717_v55, %v4964_v17  ;;  %v6210_v16 = vpop.f32.mrb[96].mxu0 }
 0x519   : > { %5061 = vst [vmem:[%s8725_s3 + $0xd0] sm:$0xff] %v5029_v37  ;;  %v5030_v25 = vmax.f32 %v4998_v29, 0.0  ;;  %v4930_v41 = vmul.f32 %v6210_v16, %v8704_v34  ;;  %v4878_v19 = vpop.f32.mrb[97].mxu0 }
 0x51a   : > { %5059 = vst [vmem:[%s8725_s3 + $0xc0] sm:$0xff] %v5027_v8  ;;  %v5028_v60 = vmax.f32 %v4996_v12, 0.0  ;;  %v4928_v57 = vmul.f32 %v8704_v34, %v4878_v19  ;;  %v6211_v22 = vpop.f32.mrb[98].mxu0 }
 0x51b   : > { %5062 = vst [vmem:[%s8725_s3 + $0xd8] sm:$0xff] %v5030_v25  ;;  %v4969_v36 = vadd.f32 %v8709_v3, %v4930_v41  ;;  %v4931_v62 = vmul.f32 %v6211_v22, %v8704_v34  ;;  %v4881_v33 = vpop.f32.mrb[99].mxu0 }
 0x51c   : > { %5060 = vst [vmem:[%s8725_s3 + $0xc8] sm:$0xff] %v5028_v60  ;;  %v4967_v11 = vadd.f32 %v8709_v3, %v4928_v57  ;;  %v4929_v21 = vmul.f32 %v8704_v34, %v4881_v33  ;;  %v6721_v34 = vld [vmem:[%s7386_s8 + $0xe8] sm:$0xff]  ;;  %s7003_s8 = smov [#allocation13]  }
 0x51d   : > { %v5001_v0 = vadd.f32 %v6718_v40, %v4969_v36  ;;  %v4970_v13 = vadd.f32 %v8709_v3, %v4931_v62  ;;  %s6900_s20 = sshll.u32 %s7003_s8, 4  ;;  %s6901_s20 = int_to_ptr.vmem [resolvable:$false] %s6900_s20 }
 0x51e   : > { %v4999_v9 = vadd.f32 %v6719_v49, %v4967_v11  ;;  %v4968_v39 = vadd.f32 %v8709_v3, %v4929_v21  ;;  %s6902_s7 = scalar_lea.vmem %s6901_s20, 8192  ;;  %p6903_p13 = scmp.lt.s32.totalorder %s8847_s15, %s6901_s20 }
 0x51f   : > { %v5033_v23 = vmax.f32 %v5001_v0, 0.0  ;;  %v5002_v31 = vadd.f32 %v6720_v32, %v4970_v13  ;;  %p6904_p5 = scmp.lt.s32.totalorder %s6902_s7, %s6896_s25 }
 0x520   : > { %v5031_v14 = vmax.f32 %v4999_v9, 0.0  ;;  %v5000_v38 = vadd.f32 %v6721_v34, %v4968_v39 }
 0x521   : > { %5065 = vst [vmem:[%s8725_s3 + $0xf0] sm:$0xff] %v5033_v23  ;;  %v5034_v20 = vmax.f32 %v5002_v31, 0.0  ;;  %p6905_p3 = por %p6904_p5, %p6903_p13 }
 0x522   : > { %5063 = vst [vmem:[%s8725_s3 + $0xe0] sm:$0xff] %v5031_v14  ;;  %v5032_v3 = vmax.f32 %v5000_v38, 0.0 }
 0x523   : > { %5066 = vst [vmem:[%s8725_s3 + $0xf8] sm:$0xff] %v5034_v20  ;;  %p6906_p6 = pnand %p6905_p3, %p6899_p0 }
 0x524   : > { %5064 = vst [vmem:[%s8725_s3 + $0xe8] sm:$0xff] %v5032_v3 }
 0x525   : > { %6909 = shalt.err (!%p6906_p6)
}
 0x526   : > { %s6910_s26 = scalar_lea.hbm %s8845_s1, 4096  ;;  %s6914_s12 = scalar_lea.hbm %s9224_s30, 8192 }
 0x527   : > { %p6911_p7 = scmp.ne.s32.totalorder %s8845_s1, %s6910_s26  ;;  %p6915_p4 = scmp.lt.u32.totalorder %s8845_s1, %s9224_s30 }
 0x528   : > { %p6916_p12 = scmp.lt.u32.totalorder %s6914_s12, %s6910_s26  ;;  %p6918_p11 = scmp.lt.u32.totalorder %s6910_s26, %s8845_s1 }
 0x529   : > { %p6912_p9 = pnand %p6911_p7, %p9225_p10 }
 0x52a   : > { %p6917_p2 = por %p6916_p12, %p6915_p4 }
 0x52b   : > { %p6913_p8 = pneg %p6912_p9 }
 0x52c   : > { %p6919_p1 = por %p6918_p11, %p6917_p2 }
 0x52e   : > { %p6920_p0 = pnand %p6919_p1, %p6913_p8 }
 0x530   : > { %6923 = shalt.err (!%p6920_p0)
}
 0x531   : > { %s7004_s17 = smov 128   ;;  %s7005_s24 = smov 8  }
 0x532   : > { %6502 = dma.vmem_to_hbm [thread:$0]  (%p9225_p10), %s8847_s15, 4096, %s8845_s1, %s5068_s11, %s7004_s17, %s7004_s17, %s7005_s24  }
 0x533 PF: > { %s9226_s29 = sld [smem:[#allocation19_spill]]  ;;  %s9227_s3 = sld [smem:[#allocation25_spill]] }
 0x534   : > { %s9228_s16 = sld [smem:[#allocation23_spill]] }
 0x539   : > { %s5099_s10 = sand.u32 1, %s9226_s29   ;;  %p9229_p13 = scmp.ne.s32.totalorder %s9227_s3, 0 }
 0x53a   : > { %p9230_p5 = scmp.ge.s32.totalorder %s9228_s16, 2  ;;  %s5100_s18 = scalar_lea.sflag [#allocation4], %s5099_s10 }
 0x53c   : > { %p6525_p3 = pnand %p9230_p5, %p9229_p13 }
 0x53e   : > { %6965 = dma.done.wait (!%p6525_p3), %s5100_s18, 4096  }
 0x53f   : > { %6967 = vsyncadd (!%p6525_p3), %s5100_s18, 4294963200  ;;  %s33_s26 = sadd.s32 1, %s9228_s16   ;;  %s9231_s27 = sld [smem:[#allocation20_spill]] }
 0x540   : > { %p30_p6 = scmp.ge.s32.totalorder %s33_s26, 4   ;;  %s9232_s23 = sld [smem:[#allocation27_spill]] }
 0x541   : > { %s9233_s24 = sld [smem:[#allocation22_spill]]  ;;  %s9234_s25 = sld [smem:[#allocation26_spill]] }
 0x542   : > { %s9235_s21 = smov %s6974_s22  ;;  %32 = sbr.rel (!%p30_p6) target bundleno = 18 (0x12), region = 157 }
 0x545   : > { %s9236_s22 = smov %s9231_s27 }
 0x549   :  { %5105 = vsyncpa [#allocation3], 1 }
 0x54a   :  { %5107 = vsyncpa [#allocation3 + $0x1], 1 }
 0x54b   :  { %5108 = vsyncpa [#allocation6], 1 }
 0x54c   :  { %5110 = vsyncpa [#allocation6 + $0x1], 1 }
 0x54d   :  { %5111 = vsyncpa [#allocation9], 1 }
 0x54e   :  { %5112 = vsyncpa [#allocation12], 1 }
 0x54f   :  { %5113 = vsyncpa [#allocation4], 1 }
 0x550   :  { %5115 = vsyncpa [#allocation4 + $0x1], 1 }

// kernel: tpu_custom_call.1
= control target key start
LH: loop header
LB: loop body
LE: loop exit
PB: predicated region body
PF: predicated region fallthrough
CT: control target
= control target key end

     0   :  { %s8899_s0 = inlined_call_operand.hbm [shape: f32[2,16,16,128], index: 0, kind: input, shape index: {}]   ;;  %s8900_s1 = inlined_call_operand.hbm [shape: f32[2,16,16,128], index: 1, kind: input, shape index: {}]   ;;  %s8901_s2 = inlined_call_operand.hbm [shape: f32[2,16,16,128], index: 2, kind: input, shape index: {}]   ;;  %s8902_s3 = inlined_call_operand.hbm [shape: bf16[128,128], index: 3, kind: input, shape index: {}]   ;;  %s8903_s4 = inlined_call_operand.vmem [shape: f32[1,128], index: 4, kind: input, shape index: {}]   ;;  %s8904_s5 = inlined_call_operand.vmem [shape: f32[1,128], index: 5, kind: input, shape index: {}]   ;;  %s8905_s6 = inlined_call_operand.hbm [shape: bf16[9,128,128], index: 6, kind: input, shape index: {}]   ;;  %s8906_s7 = inlined_call_operand.vmem [shape: f32[1,128], index: 7, kind: input, shape index: {}]   ;;  %s8907_s8 = inlined_call_operand.vmem [shape: f32[1,128], index: 8, kind: input, shape index: {}]   ;;  %s8908_s9 = inlined_call_operand.hbm [shape: bf16[128,128], index: 9, kind: input, shape index: {}]   ;;  %s8909_s10 = inlined_call_operand.vmem [shape: f32[1,128], index: 10, kind: input, shape index: {}]   ;;  %s8910_s11 = inlined_call_operand.vmem [shape: f32[1,128], index: 11, kind: input, shape index: {}]   ;;  %s8911_s12 = inlined_call_operand.hbm [shape: f32[2,16,16,128], index: 12, kind: output, shape index: {}]  }
   0x1   :  { %8997 = sst [smem:[#allocation69_spill]] %s8900_s1 }
   0x2   :  { %8998 = sst [smem:[#allocation70_spill]] %s8902_s3 }
   0x3   :  { %8999 = sst [smem:[#allocation71_spill]] %s8906_s7 }
   0x4   :  { %9000 = sst [smem:[#allocation72_spill]] %s8907_s8 }
   0x5   :  { %9001 = sst [smem:[#allocation73_spill]] %s8909_s10 }
   0x6   :  { %9002 = sst [smem:[#allocation74_spill]] %s8910_s11 }
   0x7   :  { %9003 = sst [smem:[#allocation75_spill]] %s8911_s12 }
   0x8   :  { %17 = vsyncpa [#allocation3], 0 }
   0x9   :  { %19 = vsyncpa [#allocation3 + $0x1], 0 }
   0xa   :  { %20 = vsyncpa [#allocation6], 0 }
   0xb   :  { %22 = vsyncpa [#allocation6 + $0x1], 0 }
   0xc   :  { %23 = vsyncpa [#allocation9], 0 }
   0xd   :  { %24 = vsyncpa [#allocation12], 0 }
   0xe   :  { %25 = vsyncpa [#allocation4], 0 }
   0xf   :  { %27 = vsyncpa [#allocation4 + $0x1], 0  ;;  %s7071_s21 = smov 0   ;;  %s7073_s22 = smov 0  }
  0x10   :  { %s7075_s23 = smov 0   ;;  %s7077_s24 = smov 0  }
  0x11   :  { %s7079_s25 = smov 0   ;;  %s7081_s26 = smov 0  }
  0x12 LB: > { %9004 = sst [smem:[#allocation19_spill]] %s6970_s21  ;;  %s7102_s27 = sadd.s32 4294967295, %s6990_s26   ;;  %s6990_s26 = sphi %s7081_s26, %s33_s26   ;;  %s6986_s25 = sphi %s7079_s25, %s9234_s25   ;;  %s6982_s24 = sphi %s7077_s24, %s9233_s24   ;;  %s6978_s23 = sphi %s7075_s23, %s9232_s23   ;;  %s6974_s22 = sphi %s7073_s22, %s9236_s22   ;;  %s6970_s21 = sphi %s7071_s21, %s9235_s21  }
  0x13   : > { %9005 = sst [smem:[#allocation20_spill]] %s6978_s23  ;;  %s5250_s28 = sadd.s32 4294967294, %s6990_s26  }
  0x14   : > { %9006 = sst [smem:[#allocation21_spill]] %s6982_s24  ;;  %p69_p0 = scmp.ne.s32.totalorder %s6978_s23, %s6974_s22 }
  0x15   : > { %9007 = sst [smem:[#allocation22_spill]] %s6986_s25  ;;  %p70_p1 = scmp.eq.s32.totalorder %s6990_s26, 0 }
  0x16   : > { %9008 = sst [smem:[#allocation23_spill]] %s6990_s26  ;;  %p75_p2 = scmp.ne.s32.totalorder %s6974_s22, %s6970_s21 }
  0x17   : > { %p8917_p3 = scmp.eq.s32.totalorder %s7102_s27, 0  ;;  %p7111_p4 = por %p70_p1, %p69_p0 }
  0x18   : > { %p354_p5 = scmp.eq.s32.totalorder %s7102_s27, 1  ;;  %p360_p7 = scmp.eq.s32.totalorder %s5250_s28, 1 }
  0x19   : > { %p7118_p6 = por %p8917_p3, %p75_p2  ;;  %p5251_p9 = scmp.ge.s32.totalorder %s6990_s26, 1 }
  0x1a   : > { %p7122_p8 = por %p354_p5, %p69_p0  ;;  %p7127_p10 = por %p360_p7, %p75_p2 }
  0x1b   : > { %s9010_s30 = scalar_select %p7118_p6, 1, 0 }
  0x1c   : > { %s9011_s13 = scalar_select %p7122_p8, 1, 0 }
  0x1d   : > { %s9013_s14 = scalar_select %p7127_p10, 1, 0 }
  0x1e   : > { %9012 = sst [smem:[#allocation24_spill]] %s9011_s13  ;;  %p367_p11 = scmp.lt.s32.totalorder %s6990_s26, 3 }
  0x1f   : > { %9014 = sst [smem:[#allocation25_spill]] %s9013_s14  ;;  %s6992_s16 = smov [#allocation8]  }
  0x20   : > { %p7132_p12 = pnand %p5251_p9, %p367_p11  ;;  %s379_s17 = sshll.u32 %s6992_s16, 4  ;;  %s7136_s17 = int_to_ptr.vmem [resolvable:$true] %s379_s17 }
  0x21   : > { %s45_s19 = sadd.s32 1, %s6986_s25  ;;  %s9018_s3 = sld [smem:[#allocation70_spill]] }
  0x22   : > { %s9015_s15 = scalar_select %p7132_p12, 1, 0 }
  0x23   : > { %p6504_p13 = pneg %p7132_p12  ;;  %p7149_p2 = scmp.ge.s32.totalorder %s45_s19, 2 }
  0x25   : > { %p7143_p1 = pnand %p6504_p13, %p8917_p3 }
  0x27   : > { %s9016_s18 = scalar_select %p7143_p1, 1, 0 }
  0x28   : > { %s6722_s16 = scalar_lea.hbm %s9018_s3, 1024  ;;  %p7161_p7 = pneg %p7143_p1 }
  0x29   : > { %p6723_p5 = scmp.ne.s32.totalorder %s9018_s3, %s6722_s16  ;;  %p6729_p13 = scmp.lt.u32.totalorder %s6722_s16, %s9018_s3 }
  0x2a   : > { %s9019_s24 = scalar_select %p7161_p7, 1, 0 }
  0x2b   : > { %p6725_p9 = pnand %p7161_p7, %p6723_p5 }
  0x2d   : > { %p6726_p11 = pneg %p6725_p9 }
  0x2f   : > { %p6731_p0 = pnand %p6729_p13, %p6726_p11 }
  0x31   : > { %6734 = shalt.err (!%p6731_p0)
}
  0x32   : > { %s6735_s12 = scalar_lea.vmem %s7136_s17, 1024  ;;  %p6743_p6 = scmp.lt.s32.totalorder %s7136_s17, %s7136_s17 }
  0x33   : > { %p6736_p3 = scmp.ne.s32.totalorder %s7136_s17, %s6735_s12  ;;  %p6744_p12 = scmp.lt.s32.totalorder %s6735_s12, %s6735_s12 }
  0x35   : > { %p6738_p10 = pnand %p6736_p3, %p7161_p7  ;;  %p6745_p5 = por %p6744_p12, %p6743_p6 }
  0x37   : > { %p6739_p8 = pneg %p6738_p10 }
  0x39   : > { %p6746_p9 = pnand %p6745_p5, %p6739_p8 }
  0x3b   : > { %6749 = shalt.err (!%p6746_p9)
}
  0x3c   : > { %s8921_s21 = smov 64   ;;  %s8923_s11 = smov 4  }
  0x3d   : > { %6507 = dma.hbm_to_vmem [thread:$0]  (!%p7143_p1), %s9018_s3, 1024, %s7136_s17, [#allocation9], %s8921_s21, %s8921_s21, %s8923_s11  }
  0x3e   : > { %s9238_s19 = smov (%p7149_p2, %s45_s19), 0  ;;  %p6531_p3 = scmp.lt.s32.totalorder %s6990_s26, 2 }
  0x3f   : > { %9020 = sst [smem:[#allocation26_spill]] %s9238_s19  ;;  %s7191_s20 = sand.u32 1, %s6978_s23  }
  0x40   : > { %s57_s16 = ssub.s32 %s6986_s25, %s9238_s19  ;;  %s7196_s12 = sshll.u32 %s6986_s25, 12 }
  0x41   : > { %p60_p6 = scmp.eq.s32.totalorder %s57_s16, 0  ;;  %p7200_p8 = pnand %p6531_p3, %p7111_p4 }
  0x42   : > { %s9022_s13 = sadd.s32 1, %s6978_s23  ;;  %s464_s28 = sand.u32 1, %s6990_s26  }
  0x43   : > { %s9021_s10 = scalar_select %p7200_p8, 1, 0 }
  0x44   : > { %s7207_s17 = scalar_select %p60_p6, %s6978_s23, %s9022_s13  }
  0x45   : > { %s5259_s14 = sshll.u32 %s7191_s20, 8  ;;  %s9024_s1 = sld [smem:[#allocation69_spill]] }
  0x46   : > { %9023 = sst [smem:[#allocation27_spill]] %s7207_s17  ;;  %s468_s29 = scalar_lea.vmem [#allocation5], %s5259_s14 }
  0x47   : > { %s478_s16 = sshll.u32 %s468_s29, 4  ;;  %s6995_s19 = smov [#allocation10]   ;;  %s7217_s16 = int_to_ptr.vmem [resolvable:$true] %s478_s16 }
  0x48   : > { %s7219_s25 = sshll.u32 %s6995_s19, 4  ;;  %s7221_s13 = scalar_lea.sflag [#allocation6], %s464_s28  ;;  %s399_s25 = int_to_ptr.vmem [resolvable:$true] %s7219_s25 }
  0x49   : > { %p7227_p10 = pneg %p7200_p8 }
  0x4b   : > { %s7215_s3 = scalar_lea.hbm %s9024_s1, %s7196_s12  ;;  %s6755_s29 = scalar_lea.hbm %s9024_s1, 8192 }
  0x4c   : > { %s6750_s17 = scalar_lea.hbm %s7215_s3, 4096  ;;  %p6756_p2 = scmp.lt.u32.totalorder %s7215_s3, %s9024_s1 }
  0x4d   : > { %p6751_p4 = scmp.ne.s32.totalorder %s7215_s3, %s6750_s17  ;;  %p6757_p11 = scmp.lt.u32.totalorder %s6755_s29, %s6750_s17 }
  0x4e   : > { %s9025_s21 = scalar_select %p7227_p10, 1, 0 }
  0x4f   : > { %p6753_p12 = pnand %p7227_p10, %p6751_p4  ;;  %p6758_p13 = por %p6757_p11, %p6756_p2 }
  0x50   : > { %p6759_p5 = scmp.lt.u32.totalorder %s6750_s17, %s7215_s3 }
  0x51   : > { %p6754_p0 = pneg %p6753_p12 }
  0x52   : > { %p6760_p9 = por %p6759_p5, %p6758_p13 }
  0x54   : > { %p6761_p3 = pnand %p6760_p9, %p6754_p0 }
  0x56   : > { %6764 = shalt.err (!%p6761_p3)
}
  0x57   : > { %s6765_s28 = scalar_lea.vmem %s7217_s16, 4096  ;;  %s6996_s11 = smov [#allocation5]  }
  0x58   : > { %p6766_p6 = scmp.ne.s32.totalorder %s7217_s16, %s6765_s28  ;;  %s6770_s14 = sshll.u32 %s6996_s11, 4  ;;  %s6771_s14 = int_to_ptr.vmem [resolvable:$false] %s6770_s14 }
  0x59   : > { %s6772_s23 = scalar_lea.vmem %s6771_s14, 8192  ;;  %p6773_p1 = scmp.lt.s32.totalorder %s7217_s16, %s6771_s14 }
  0x5a   : > { %p6768_p4 = pnand %p6766_p6, %p7227_p10  ;;  %p6774_p7 = scmp.lt.s32.totalorder %s6772_s23, %s6765_s28 }
  0x5c   : > { %p6769_p12 = pneg %p6768_p4  ;;  %p6775_p2 = por %p6774_p7, %p6773_p1 }
  0x5e   : > { %p6776_p11 = pnand %p6775_p2, %p6769_p12 }
  0x60   : > { %6779 = shalt.err (!%p6776_p11)
}
  0x61   : > { %s8936_s17 = smov 128   ;;  %s8938_s29 = smov 8  }
  0x62   : > { %6520 = dma.hbm_to_vmem [thread:$0]  (!%p7200_p8), %s7215_s3, 4096, %s7217_s16, %s7221_s13, %s8936_s17, %s8936_s17, %s8938_s29  }
  0x63   : > { %s6780_s28 = scalar_lea.hbm %s8905_s6, 9216  ;;  %p9026_p7 = scmp.ne.s32.totalorder %s9019_s24, 0 }
  0x64   : > { %p6781_p1 = scmp.ne.s32.totalorder %s8905_s6, %s6780_s28  ;;  %p6787_p5 = scmp.lt.u32.totalorder %s6780_s28, %s8905_s6 }
  0x66   : > { %p6783_p0 = pnand %p6781_p1, %p9026_p7 }
  0x68   : > { %p6784_p13 = pneg %p6783_p0 }
  0x6a   : > { %p6789_p9 = pnand %p6787_p5, %p6784_p13 }
  0x6c   : > { %6792 = shalt.err (!%p6789_p9)
}
  0x6d   : > { %s6793_s8 = scalar_lea.vmem %s399_s25, 9216  ;;  %p6801_p12 = scmp.lt.s32.totalorder %s399_s25, %s399_s25 }
  0x6e   : > { %p6794_p3 = scmp.ne.s32.totalorder %s399_s25, %s6793_s8  ;;  %p6802_p2 = scmp.lt.s32.totalorder %s6793_s8, %s6793_s8 }
  0x70   : > { %p6796_p6 = pnand %p6794_p3, %p9026_p7  ;;  %p6803_p11 = por %p6802_p2, %p6801_p12 }
  0x72   : > { %p6797_p4 = pneg %p6796_p6 }
  0x74   : > { %p6804_p8 = pnand %p6803_p11, %p6797_p4 }
  0x76   : > { %6807 = shalt.err (!%p6804_p8)
}
  0x77   : > { %p9027_p1 = scmp.ne.s32.totalorder %s9016_s18, 0  ;;  %s9028_s3 = smov 4  }
  0x78   : > { %s9029_s16 = smov 64   ;;  %s6999_s19 = smov [#allocation11]  }
  0x79   : > { %6510 = dma.hbm_to_vmem [thread:$0]  (!%p9027_p1), %s8905_s6, 9216, %s399_s25, [#allocation9], %s9029_s16, %s9029_s16, %s9028_s3  }
  0x7a   : > { %s417_s11 = sshll.u32 %s6999_s19, 4  ;;  %s5256_s28 = sshll.u32 %s7191_s20, 4  ;;  %s418_s11 = int_to_ptr.vmem [resolvable:$true] %s417_s11 }
  0x7b   : > { %s6808_s23 = scalar_lea.hbm %s8908_s9, 1024 }
  0x7c   : > { %p6809_p8 = scmp.ne.s32.totalorder %s8908_s9, %s6808_s23  ;;  %p6815_p5 = scmp.lt.u32.totalorder %s6808_s23, %s8908_s9 }
  0x7e   : > { %p6811_p0 = pnand %p6809_p8, %p9026_p7 }
  0x80   : > { %p6812_p13 = pneg %p6811_p0 }
  0x82   : > { %p6817_p9 = pnand %p6815_p5, %p6812_p13 }
  0x84   : > { %6820 = shalt.err (!%p6817_p9)
}
  0x85   : > { %s6821_s25 = scalar_lea.vmem %s418_s11, 1024  ;;  %p6829_p12 = scmp.lt.s32.totalorder %s418_s11, %s418_s11 }
  0x86   : > { %p6822_p3 = scmp.ne.s32.totalorder %s418_s11, %s6821_s25  ;;  %p6830_p2 = scmp.lt.s32.totalorder %s6821_s25, %s6821_s25 }
  0x88   : > { %p6824_p6 = pnand %p6822_p3, %p9026_p7  ;;  %p6831_p11 = por %p6830_p2, %p6829_p12 }
  0x8a   : > { %p6825_p4 = pneg %p6824_p6 }
  0x8c   : > { %p6832_p10 = pnand %p6831_p11, %p6825_p4 }
  0x8e   : > { %6835 = shalt.err (!%p6832_p10)
}
  0x8f   : > { %6513 = dma.hbm_to_vmem [thread:$0]  (!%p9027_p1), %s8908_s9, 1024, %s418_s11, [#allocation12], %s9029_s16, %s9029_s16, %s9028_s3  }
  0x90   : > { %s7302_s26 = scalar_lea.hbm %s8899_s0, %s7196_s12  ;;  %s441_s18 = scalar_lea.vmem [#allocation2], %s5256_s28 }
  0x91   : > { %s454_s19 = sshll.u32 %s441_s18, 4  ;;  %s7306_s14 = scalar_lea.vmem [#allocation7], %s5256_s28  ;;  %s7304_s19 = int_to_ptr.vmem [resolvable:$true] %s454_s19 }
  0x92   : > { %s505_s8 = sshll.u32 %s7306_s14, 4  ;;  %s438_s23 = scalar_lea.sflag [#allocation3], %s7191_s20  ;;  %s7338_s8 = int_to_ptr.vmem [resolvable:$true] %s505_s8 }
  0x93   : > { %s6836_s1 = scalar_lea.hbm %s7302_s26, 256  ;;  %p9030_p7 = scmp.ne.s32.totalorder %s9025_s21, 0 }
  0x94   : > { %p6837_p10 = scmp.ne.s32.totalorder %s7302_s26, %s6836_s1  ;;  %s6841_s11 = scalar_lea.hbm %s8899_s0, 8192 }
  0x95   : > { %p6842_p0 = scmp.lt.u32.totalorder %s7302_s26, %s8899_s0  ;;  %p6843_p13 = scmp.lt.u32.totalorder %s6841_s11, %s6836_s1 }
  0x96   : > { %p6839_p1 = pnand %p6837_p10, %p9030_p7  ;;  %p6845_p9 = scmp.lt.u32.totalorder %s6836_s1, %s7302_s26 }
  0x97   : > { %p6844_p5 = por %p6843_p13, %p6842_p0 }
  0x98   : > { %p6840_p8 = pneg %p6839_p1 }
  0x99   : > { %p6846_p3 = por %p6845_p9, %p6844_p5 }
  0x9b   : > { %p6847_p6 = pnand %p6846_p3, %p6840_p8 }
  0x9d   : > { %6850 = shalt.err (!%p6847_p6)
}
  0x9e   : > { %s6851_s28 = scalar_lea.vmem %s7304_s19, 256  ;;  %s7000_s17 = smov [#allocation2]  }
  0x9f   : > { %p6852_p4 = scmp.ne.s32.totalorder %s7304_s19, %s6851_s28  ;;  %s6856_s24 = sshll.u32 %s7000_s17, 4  ;;  %s6857_s24 = int_to_ptr.vmem [resolvable:$false] %s6856_s24 }
  0xa0   : > { %s6858_s29 = scalar_lea.vmem %s6857_s24, 512  ;;  %p6859_p11 = scmp.lt.s32.totalorder %s7304_s19, %s6857_s24 }
  0xa1   : > { %p6854_p12 = pnand %p6852_p4, %p9030_p7  ;;  %p6860_p10 = scmp.lt.s32.totalorder %s6858_s29, %s6851_s28 }
  0xa3   : > { %p6855_p2 = pneg %p6854_p12  ;;  %p6861_p1 = por %p6860_p10, %p6859_p11 }
  0xa5   : > { %p6862_p0 = pnand %p6861_p1, %p6855_p2 }
  0xa7   : > { %6865 = shalt.err (!%p6862_p0)
}
  0xa8   : > { %p9031_p8 = scmp.ne.s32.totalorder %s9021_s10, 0  ;;  %s9032_s18 = smov 8  }
  0xa9   : > { %s9033_s1 = smov 128   ;;  %s5411_s3 = sadd.s32 3840, %s7196_s12 }
  0xaa   : > { %6517 = dma.hbm_to_vmem [thread:$0]  (!%p9031_p8), %s7302_s26, 256, %s7304_s19, %s438_s23, %s9033_s1, %s9033_s1, %s9032_s18  }
  0xab   : > { %s7344_s25 = scalar_lea.hbm %s8901_s2, %s5411_s3  ;;  %s6871_s19 = scalar_lea.hbm %s8901_s2, 8192 }
  0xac   : > { %s6866_s20 = scalar_lea.hbm %s7344_s25, 256  ;;  %p6872_p3 = scmp.lt.u32.totalorder %s7344_s25, %s8901_s2 }
  0xad   : > { %p6867_p13 = scmp.ne.s32.totalorder %s7344_s25, %s6866_s20  ;;  %p6873_p6 = scmp.lt.u32.totalorder %s6871_s19, %s6866_s20 }
  0xae   : > { %p6875_p12 = scmp.lt.u32.totalorder %s6866_s20, %s7344_s25 }
  0xaf   : > { %p6869_p5 = pnand %p6867_p13, %p9030_p7  ;;  %p6874_p4 = por %p6873_p6, %p6872_p3 }
  0xb1   : > { %p6870_p9 = pneg %p6869_p5  ;;  %p6876_p2 = por %p6875_p12, %p6874_p4 }
  0xb3   : > { %p6877_p11 = pnand %p6876_p2, %p6870_p9 }
  0xb5   : > { %6880 = shalt.err (!%p6877_p11)
}
  0xb6   : > { %s6881_s23 = scalar_lea.vmem %s7338_s8, 256  ;;  %s7001_s28 = smov [#allocation7]  }
  0xb7   : > { %p6882_p10 = scmp.ne.s32.totalorder %s7338_s8, %s6881_s23  ;;  %s6886_s17 = sshll.u32 %s7001_s28, 4  ;;  %s6887_s17 = int_to_ptr.vmem [resolvable:$false] %s6886_s17 }
  0xb8   : > { %s6888_s24 = scalar_lea.vmem %s6887_s17, 512  ;;  %p6889_p13 = scmp.lt.s32.totalorder %s7338_s8, %s6887_s17 }
  0xb9   : > { %p6884_p1 = pnand %p6882_p10, %p9030_p7  ;;  %p6890_p5 = scmp.lt.s32.totalorder %s6888_s24, %s6881_s23 }
  0xbb   : > { %p6885_p0 = pneg %p6884_p1  ;;  %p6891_p3 = por %p6890_p5, %p6889_p13 }
  0xbd   : > { %p6892_p6 = pnand %p6891_p3, %p6885_p0 }
  0xbf   : > { %6895 = shalt.err (!%p6892_p6)
}
  0xc0   : > { %6523 = dma.hbm_to_vmem [thread:$0]  (!%p9031_p8), %s7344_s25, 256, %s7338_s8, %s7221_s13, %s9033_s1, %s9033_s1, %s9032_s18  }
  0xc1   : > { %p9034_p7 = scmp.ne.s32.totalorder %s9015_s15, 0 }
  0xc3   : > { %517 = sbr.rel (%p9034_p7) target bundleno = 1331 (0x533), region = 68 }
  0xca   : > { %s7374_s21 = sand.u32 1, %s6974_s22   ;;  %p9035_p9 = scmp.ne.s32.totalorder %s9010_s30, 0 }
  0xcb   : > { %s5266_s29 = sshll.u32 %s7374_s21, 4  ;;  %s520_s3 = scalar_lea.sflag [#allocation3], %s7374_s21 }
  0xcc   : > { %s523_s16 = scalar_lea.vmem [#allocation2], %s5266_s29 }
  0xcd   : > { %6949 = dma.done.wait (%p9035_p9), %s520_s3, 256  }
  0xce   : > { %6951 = vsyncadd (%p9035_p9), %s520_s3, 4294967040  ;;  %s528_s10 = sand.u32 1, %s7102_s27   ;;  %s5267_s15 = sshll.u32 %s7374_s21, 8 }
  0xcf   : > { %s529_s13 = scalar_lea.sflag [#allocation6], %s528_s10  ;;  %s7386_s8 = scalar_lea.vmem [#allocation5], %s5267_s15 }
  0xd0   : > { %6953 = dma.done.wait (%p9035_p9), %s529_s13, 4352  }
  0xd1   : > { %6955 = vsyncadd (%p9035_p9), %s529_s13, 4294962944  ;;  %s7392_s18 = scalar_lea.vmem [#allocation7], %s5266_s29  ;;  %p9036_p8 = scmp.eq.s32.totalorder %s7102_s27, 0 }
  0xd3   : > { %6957 = dma.done.wait (%p9036_p8), [#allocation9], 10240   ;;  %p9037_p4 = pmov %p9036_p8 }
  0xd5   : > { %6959 = vsyncadd (%p9037_p4), [#allocation9], 4294957056  ;;  %p9038_p12 = pmov %p9037_p4 }
  0xd6   : > { %p9039_p2 = pmov %p9037_p4 }
  0xd7   : > { %6961 = dma.done.wait (%p9038_p12), [#allocation12], 1024  }
  0xd8   : > { %6963 = vsyncadd (%p9039_p2), [#allocation12], 4294966272  ;;  %v6594_v0 = vld [vmem:[#allocation8] sm:$0xff]   ;;  %v6595_v1 = vld [vmem:[#allocation8 + $0x8] sm:$0xff]   ;;  %s9218_s7 = sld [smem:[#allocation71_spill]]  ;;  %s9219_s14 = sld [smem:[#allocation72_spill]] }
  0xd9   : > { %5680 = vmatprep.subr.bf16.mxu0 %v6594_v0  ;;  %v6596_v2 = vld [vmem:[#allocation8 + $0x10] sm:$0xff]   ;;  %v6597_v3 = vld [vmem:[#allocation8 + $0x18] sm:$0xff]   ;;  %v6598_v7 = vld [vmem:[#allocation8 + $0x20] sm:$0xff]   ;;  %s9220_s28 = sld [smem:[#allocation73_spill]]  ;;  %s9221_s29 = sld [smem:[#allocation74_spill]] }
  0xda   : > { %5681 = vmatpush3.bf16.msra.mxu0 %v6594_v0  ;;  %v615_v4 = vld [vmem:[%s523_s16] sm:$0xff]  ;;  %v616_v5 = vld [vmem:[%s523_s16 + $0x8] sm:$0xff]  ;;  %s8725_s3 = scalar_lea.vmem [#allocation13], %s5267_s15  ;;  %s9222_s16 = sld [smem:[#allocation21_spill]] }
  0xdb   : > { %5682 = vmatprep.subr.bf16.mxu0 %v6595_v1  ;;  %v617_v6 = vpack.c.bf16 %v616_v5, %v615_v4  ;;  %v6599_v8 = vld [vmem:[#allocation8 + $0x28] sm:$0xff]   ;;  %v6600_v9 = vld [vmem:[#allocation8 + $0x30] sm:$0xff]   ;;  %v6601_v10 = vld [vmem:[#allocation8 + $0x38] sm:$0xff]   ;;  %s5084_s15 = sshll.u32 %s8725_s3, 4  ;;  %s9223_s13 = sld [smem:[#allocation24_spill]]  ;;  %s8847_s15 = int_to_ptr.vmem [resolvable:$true] %s5084_s15 }
  0xdc   : > { %v618_v11 = vld [vmem:[%s7386_s8] sm:$0xff]  ;;  %v619_v12 = vld [vmem:[%s7386_s8 + $0x8] sm:$0xff]  ;;  %v620_v13 = vld [vmem:[%s7386_s8 + $0x10] sm:$0xff]  ;;  %s9224_s30 = sld [smem:[#allocation75_spill]]  ;;  %s5068_s11 = scalar_lea.sflag [#allocation4], %s7374_s21 }
  0xdd   : > { %5696 = vmatprep.mubr.bf16.mxu0 %v617_v6  ;;  %v621_v14 = vld [vmem:[%s7386_s8 + $0x18] sm:$0xff]  ;;  %v6602_v15 = vld [vmem:[#allocation10 + $0x40] sm:$0xff]   ;;  %v650_v16 = vpack.c.bf16 %v619_v12, %v618_v11  ;;  %v6603_v17 = vld [vmem:[#allocation10 + $0x48] sm:$0xff]   ;;  %s6896_s25 = scalar_lea.vmem %s8847_s15, 4096 }
  0xde   : > { %5683 = vmatpush3.bf16.msra.mxu0 %v6595_v1  ;;  %v651_v18 = vpack.c.bf16 %v621_v14, %v620_v13  ;;  %v622_v19 = vld [vmem:[%s7386_s8 + $0x20] sm:$0xff]  ;;  %v623_v20 = vld [vmem:[%s7386_s8 + $0x28] sm:$0xff]  ;;  %v624_v21 = vld [vmem:[%s7386_s8 + $0x30] sm:$0xff]  ;;  %p6897_p11 = scmp.ne.s32.totalorder %s8847_s15, %s6896_s25 }
  0xdf   : > { %5684 = vmatprep.subr.bf16.mxu0 %v6596_v2  ;;  %v625_v22 = vld [vmem:[%s7386_s8 + $0x38] sm:$0xff]  ;;  %v6604_v23 = vld [vmem:[#allocation10 + $0x50] sm:$0xff]   ;;  %v652_v24 = vpack.c.bf16 %v623_v20, %v622_v19  ;;  %v626_v27 = vld [vmem:[%s7386_s8 + $0x40] sm:$0xff] }
  0xe0   : > { %v6605_v25 = vld [vmem:[#allocation10 + $0x58] sm:$0xff]   ;;  %v653_v26 = vpack.c.bf16 %v625_v22, %v624_v21  ;;  %v627_v28 = vld [vmem:[%s7386_s8 + $0x48] sm:$0xff]  ;;  %v628_v29 = vld [vmem:[%s7386_s8 + $0x50] sm:$0xff]  ;;  %s5412_s10 = sshll.u32 %s9222_s16, 12 }
  0xe1   : > { %v629_v30 = vld [vmem:[%s7386_s8 + $0x58] sm:$0xff]  ;;  %v6606_v31 = vld [vmem:[#allocation10 + $0x60] sm:$0xff]   ;;  %v654_v32 = vpack.c.bf16 %v627_v28, %v626_v27  ;;  %v631_v35 = vld [vmem:[%s7386_s8 + $0x68] sm:$0xff]  ;;  %p9225_p10 = scmp.ne.s32.totalorder %s9223_s13, 0 }
  0xe2   : > { %5685 = vmatpush3.bf16.msra.mxu0 %v6596_v2  ;;  %v655_v33 = vpack.c.bf16 %v629_v30, %v628_v29  ;;  %v630_v34 = vld [vmem:[%s7386_s8 + $0x60] sm:$0xff]  ;;  %v632_v36 = vld [vmem:[%s7386_s8 + $0x70] sm:$0xff]  ;;  %v633_v37 = vld [vmem:[%s7386_s8 + $0x78] sm:$0xff]  ;;  %s8845_s1 = scalar_lea.hbm %s9224_s30, %s5412_s10 }
  0xe3   : > { %5686 = vmatprep.subr.bf16.mxu0 %v6597_v3  ;;  %v656_v38 = vpack.c.bf16 %v631_v35, %v630_v34  ;;  %v657_v39 = vpack.c.bf16 %v633_v37, %v632_v36  ;;  %v634_v40 = vld [vmem:[%s7386_s8 + $0x80] sm:$0xff]  ;;  %v635_v41 = vld [vmem:[%s7386_s8 + $0x88] sm:$0xff]  ;;  %v636_v42 = vld [vmem:[%s7386_s8 + $0x90] sm:$0xff]  ;;  %p6898_p1 = pnand %p6897_p11, %p9225_p10 }
  0xe4   : > { %v637_v43 = vld [vmem:[%s7386_s8 + $0x98] sm:$0xff]  ;;  %v658_v44 = vpack.c.bf16 %v635_v41, %v634_v40  ;;  %v638_v46 = vld [vmem:[%s7386_s8 + $0xa0] sm:$0xff]  ;;  %v639_v47 = vld [vmem:[%s7386_s8 + $0xa8] sm:$0xff] }
  0xe5   : > { %v659_v45 = vpack.c.bf16 %v637_v43, %v636_v42  ;;  %v640_v48 = vld [vmem:[%s7386_s8 + $0xb0] sm:$0xff]  ;;  %v641_v49 = vld [vmem:[%s7386_s8 + $0xb8] sm:$0xff]  ;;  %v660_v50 = vpack.c.bf16 %v639_v47, %v638_v46  ;;  %v642_v52 = vld [vmem:[%s7386_s8 + $0xc0] sm:$0xff]  ;;  %v8942_v46 = vmov 0.0   ;;  %p6899_p0 = pneg %p6898_p1 }
  0xe6   : > { %5687 = vmatpush3.bf16.msra.mxu0 %v6597_v3  ;;  %v661_v51 = vpack.c.bf16 %v641_v49, %v640_v48  ;;  %v643_v53 = vld [vmem:[%s7386_s8 + $0xc8] sm:$0xff]  ;;  %v644_v54 = vld [vmem:[%s7386_s8 + $0xd0] sm:$0xff]  ;;  %v645_v55 = vld [vmem:[%s7386_s8 + $0xd8] sm:$0xff] }
  0xe7   : > { %5688 = vmatprep.subr.bf16.mxu0 %v6598_v7  ;;  %v662_v56 = vpack.c.bf16 %v643_v53, %v642_v52  ;;  %v663_v57 = vpack.c.bf16 %v645_v55, %v644_v54  ;;  %v646_v58 = vld [vmem:[%s7386_s8 + $0xe0] sm:$0xff]  ;;  %v647_v59 = vld [vmem:[%s7386_s8 + $0xe8] sm:$0xff]  ;;  %v648_v60 = vld [vmem:[%s7386_s8 + $0xf0] sm:$0xff] }
  0xe8   : > { %v649_v61 = vld [vmem:[%s7386_s8 + $0xf8] sm:$0xff]  ;;  %v664_v62 = vpack.c.bf16 %v647_v59, %v646_v58  ;;  %v666_v0 = vld [vmem:[%s7392_s18] sm:$0xff]  ;;  %v6607_v3 = vld [vmem:[#allocation10 + $0x68] sm:$0xff]  }
  0xe9   : > { %v665_v63 = vpack.c.bf16 %v649_v61, %v648_v60  ;;  %v667_v1 = vld [vmem:[%s7392_s18 + $0x8] sm:$0xff]  ;;  %v6608_v4 = vld [vmem:[#allocation10 + $0x70] sm:$0xff]   ;;  %v6610_v6 = vld [vmem:[#allocation10 + $0xc0] sm:$0xff]  }
  0xea   : > { %5689 = vmatpush3.bf16.msra.mxu0 %v6598_v7  ;;  %v668_v2 = vpack.c.bf16 %v667_v1, %v666_v0  ;;  %v6609_v5 = vld [vmem:[#allocation10 + $0x78] sm:$0xff]   ;;  %6212 = vmatprep.subr.bf16.mxu1 %v6610_v6  ;;  %v6611_v7 = vld [vmem:[#allocation10 + $0xc8] sm:$0xff]   ;;  %v6616_v12 = vld [vmem:[#allocation10 + $0xf0] sm:$0xff]  }
  0xeb   : > { %5690 = vmatprep.subr.bf16.mxu0 %v6599_v8  ;;  %6220 = vmatpush3.bf16.msra.mxu1 %v6610_v6  ;;  %v6615_v11 = vld [vmem:[#allocation10 + $0xe8] sm:$0xff]   ;;  %v6617_v13 = vld [vmem:[#allocation10 + $0xf8] sm:$0xff]   ;;  %v7436_v14 = vld [vmem:[#allocation10] sm:$0xff]  }
  0xec   : > { %6213 = vmatprep.subr.bf16.mxu1 %v6611_v7  ;;  %v7601_v53 = vld [vmem:[%s8903_s4] ss:$0 sm:$0xff] }
  0xee   : > { %5691 = vmatpush3.bf16.msra.mxu0 %v6599_v8  ;;  %v6612_v8 = vld [vmem:[#allocation10 + $0xd0] sm:$0xff]  }
  0xef   : > { %5692 = vmatprep.subr.bf16.mxu0 %v6600_v9  ;;  %6221 = vmatpush3.bf16.msra.mxu1 %v6611_v7 }
  0xf0   : > { %6214 = vmatprep.subr.bf16.mxu1 %v6612_v8 }
  0xf2   : > { %5693 = vmatpush3.bf16.msra.mxu0 %v6600_v9  ;;  %v6613_v9 = vld [vmem:[#allocation10 + $0xd8] sm:$0xff]  }
  0xf3   : > { %5694 = vmatprep.subr.bf16.mxu0 %v6601_v10  ;;  %6222 = vmatpush3.bf16.msra.mxu1 %v6612_v8 }
  0xf4   : > { %6215 = vmatprep.subr.bf16.mxu1 %v6613_v9 }
  0xf6   : > { %5695 = vmatpush3.bf16.msra.mxu0 %v6601_v10  ;;  %v6614_v10 = vld [vmem:[#allocation10 + $0xe0] sm:$0xff]  }
  0xf7   : > { %5732 = vmatprep.subr.bf16.mxu0 %v6602_v15  ;;  %6223 = vmatpush3.bf16.msra.mxu1 %v6613_v9 }
  0xf8   : > { %6216 = vmatprep.subr.bf16.mxu1 %v6614_v10 }
  0xf9   : > { %5697 = vmatmul.mubr.bf16.vlgmr.msra.gmra.mrb[0].mxu0 %v650_v16  ;;  %v1032_v16 = vlaneseq }
  0xfa   : > { %5700 = vmatprep.mubr.bf16.mxu0 %v651_v18  ;;  %5733 = vmatpush3.bf16.msra.mxu0 %v6602_v15  ;;  %v7439_v15 = vld [vmem:[#allocation10 + $0x100] sm:$0xff]  }
  0xfb   : > { %5734 = vmatprep.subr.bf16.mxu0 %v6603_v17  ;;  %6224 = vmatpush3.bf16.msra.mxu1 %v6614_v10 }
  0xfc   : > { %6217 = vmatprep.subr.bf16.mxu1 %v6615_v11 }
  0xfe   : > { %5735 = vmatpush3.bf16.msra.mxu0 %v6603_v17  ;;  %v7442_v17 = vshrl.u32 %v1032_v16, 7 }
  0xff   : > { %5736 = vmatprep.subr.bf16.mxu0 %v6604_v23  ;;  %6225 = vmatpush3.bf16.msra.mxu1 %v6615_v11 }
 0x100   : > { %6218 = vmatprep.subr.bf16.mxu1 %v6616_v12  ;;  %v1035_v18 = vadd.s32 16, %v7442_v17  ;;  %v1037_v19 = vadd.s32 32, %v7442_v17  ;;  %v1039_v20 = vadd.s32 48, %v7442_v17  ;;  %v1045_v27 = vadd.s32 96, %v7442_v17 }
 0x101   : > { %5701 = vmatmul.mubr.bf16.gmra.mrb[4].mxu0 %v652_v24  ;;  %v1047_v28 = vadd.s32 112, %v7442_v17  ;;  %v1036_v29 = vadd.s32 24, %v7442_v17  ;;  %v1049_v30 = vadd.s32 128, %v7442_v17  ;;  %v1055_v42 = vadd.s32 176, %v7442_v17 }
 0x102   : > { %5704 = vmatprep.mubr.bf16.mxu0 %v653_v26  ;;  %5737 = vmatpush3.bf16.msra.mxu0 %v6604_v23  ;;  %v1383_v21 = vand.u32 15, %v1035_v18  ;;  %v1397_v22 = vand.u32 15, %v1037_v19  ;;  %v1034_v23 = vadd.s32 8, %v7442_v17  ;;  %v1411_v24 = vand.u32 15, %v1039_v20 }
 0x103   : > { %5738 = vmatprep.subr.bf16.mxu0 %v6605_v25  ;;  %6226 = vmatpush3.bf16.msra.mxu1 %v6616_v12  ;;  %v1043_v26 = vadd.s32 80, %v7442_v17  ;;  %v1453_v37 = vand.u32 15, %v1045_v27  ;;  %v1467_v40 = vand.u32 15, %v1047_v28  ;;  %v1390_v41 = vand.u32 15, %v1036_v29 }
 0x104   : > { %6219 = vmatprep.subr.bf16.mxu1 %v6617_v13  ;;  %vm7454_vm0 = vcmp.ge.s32.totalorder %v1383_v21, 1  ;;  %vm7458_vm1 = vcmp.ge.s32.totalorder %v1397_v22, 1  ;;  %vm7462_vm2 = vcmp.ge.s32.totalorder %v1411_v24, 1  ;;  %v1057_v43 = vadd.s32 192, %v7442_v17 }
 0x105   : > { %v1439_v36 = vand.u32 15, %v1043_v26  ;;  %v7474_v47 = vsel %vm7454_vm0, 1.0, %v8942_v46  ;;  %v1059_v48 = vadd.s32 208, %v7442_v17  ;;  %v7480_v49 = vsel %vm7458_vm1, 1.0, %v8942_v46 }
 0x106   : > { %5739 = vmatpush3.bf16.msra.mxu0 %v6605_v25  ;;  %v1041_v25 = vadd.s32 64, %v7442_v17  ;;  %vm7495_vm5 = vcmp.ge.s32.totalorder %v1453_v37, 1  ;;  %vm7499_vm7 = vcmp.ge.s32.totalorder %v1467_v40, 1  ;;  %vm2090_vm8 = vcmp.le.s32.totalorder %v1390_v41, 14 }
 0x107   : > { %5740 = vmatprep.subr.bf16.mxu0 %v6606_v31  ;;  %6227 = vmatpush3.bf16.msra.mxu1 %v6617_v13  ;;  %vm7491_vm4 = vcmp.ge.s32.totalorder %v1439_v36, 1  ;;  %v1537_v58 = vand.u32 15, %v1057_v43  ;;  %v1551_v60 = vand.u32 15, %v1059_v48  ;;  %v1061_v61 = vadd.s32 224, %v7442_v17 }
 0x108   : > { %5924 = vmatprep.subr.bf16.mxu1 %v7439_v15  ;;  %v1425_v35 = vand.u32 15, %v1041_v25  ;;  %v7516_v1 = vsel %vm7491_vm4, 1.0, %v8942_v46  ;;  %v1040_v7 = vadd.s32 56, %v7442_v17  ;;  %v1065_v10 = vadd.s32 256, %v7442_v17 }
 0x109   : > { %5705 = vmatmul.mubr.bf16.gmra.mrb[8].mxu0 %v654_v32  ;;  %vm1894_vm13 = vcmp.ge.s32.totalorder %v1537_v58, 1  ;;  %vm1896_vm15 = vcmp.ge.s32.totalorder %v1551_v60, 1  ;;  %v1565_v8 = vand.u32 15, %v1061_v61  ;;  %v1042_v12 = vadd.s32 72, %v7442_v17  ;;  %v7613_v58 = vld [vmem:[%s8904_s5] ss:$0 sm:$0xff] }
 0x10a   : > { %5708 = vmatprep.mubr.bf16.mxu0 %v655_v33  ;;  %5741 = vmatpush3.bf16.msra.mxu0 %v6606_v31  ;;  %v1376_v33 = vand.u32 15, %v1034_v23  ;;  %vm7487_vm3 = vcmp.ge.s32.totalorder %v1425_v35, 1  ;;  %v1044_v13 = vadd.s32 88, %v7442_v17  ;;  %v1046_v16 = vadd.s32 104, %v7442_v17 }
 0x10b   : > { %5742 = vmatprep.subr.bf16.mxu0 %v6607_v3  ;;  %v7511_v0 = vsel %vm7487_vm3, 1.0, %v8942_v46  ;;  %v1048_v20 = vadd.s32 120, %v7442_v17  ;;  %v1050_v21 = vadd.s32 136, %v7442_v17  ;;  %v7555_v22 = vsel %vm1894_vm13, 1.0, %v8942_v46 }
 0x10c   : > { %vm2088_vm6 = vcmp.le.s32.totalorder %v1376_v33, 14  ;;  %v7558_v23 = vsel %vm1896_vm15, 1.0, %v8942_v46  ;;  %v1052_v25 = vadd.s32 152, %v7442_v17  ;;  %vm1898_vm0 = vcmp.ge.s32.totalorder %v1565_v8, 1 }
 0x10d   : > { %v1593_v26 = vand.u32 15, %v1065_v10  ;;  %v1418_v27 = vand.u32 15, %v1040_v7  ;;  %v1369_v28 = vand.u32 15, %v7442_v17  ;;  %v1432_v29 = vand.u32 15, %v1042_v12 }
 0x10e   : > { %5743 = vmatpush3.bf16.msra.mxu0 %v6607_v3  ;;  %v7524_v3 = vsel %vm2090_vm8, 1.0, %v8942_v46  ;;  %v1460_v31 = vand.u32 15, %v1046_v16  ;;  %v1474_v32 = vand.u32 15, %v1048_v20  ;;  %v1488_v33 = vand.u32 15, %v1050_v21 }
 0x10f   : > { %5744 = vmatprep.subr.bf16.mxu0 %v6608_v4  ;;  %v1054_v34 = vadd.s32 168, %v7442_v17  ;;  %v1056_v35 = vadd.s32 184, %v7442_v17  ;;  %v7570_v36 = vsel %vm1898_vm0, 1.0, %v8942_v46  ;;  %v1502_v37 = vand.u32 15, %v1052_v25 }
 0x110   : > { %vm7577_vm3 = vcmp.le.s32.totalorder %v1418_v27, 14  ;;  %vm1870_vm4 = vcmp.ge.s32.totalorder %v1369_v28, 1  ;;  %vm7590_vm8 = vcmp.le.s32.totalorder %v1474_v32, 14  ;;  %v1064_v25 = vadd.s32 248, %v7442_v17 }
 0x111   : > { %5709 = vmatmul.mubr.bf16.gmra.mrb[12].mxu0 %v656_v38  ;;  %v1051_v38 = vadd.s32 144, %v7442_v17  ;;  %v1530_v52 = vand.u32 15, %v1056_v35  ;;  %v7621_v60 = vsel %vm7577_vm3, 1.0, %v8942_v46  ;;  %v7681_v48 = vadd.s32 272, %v7442_v17 }
 0x112   : > { %5712 = vmatprep.mubr.bf16.mxu0 %v657_v39  ;;  %5745 = vmatpush3.bf16.msra.mxu0 %v6608_v4  ;;  %v1053_v39 = vadd.s32 160, %v7442_v17  ;;  %v7529_v4 = vsel %vm7499_vm7, 1.0, %v8942_v46  ;;  %vm7586_vm7 = vcmp.le.s32.totalorder %v1460_v31, 14  ;;  %v1586_v43 = vand.u32 15, %v1064_v25 }
 0x113   : > { %5746 = vmatprep.subr.bf16.mxu0 %v6609_v5  ;;  %v1495_v54 = vand.u32 15, %v1051_v38  ;;  %v1058_v38 = vadd.s32 200, %v7442_v17  ;;  %v7636_v8 = vsel %vm7586_vm7, 1.0, %v8942_v46 }
 0x114   : > { %v1509_v55 = vand.u32 15, %v1053_v39  ;;  %v1060_v39 = vadd.s32 216, %v7442_v17 }
 0x115   : > { %vm1888_vm10 = vcmp.ge.s32.totalorder %v1495_v54, 1 }
 0x116   : > { %5747 = vmatpush3.bf16.msra.mxu0 %v6609_v5  ;;  %vm1890_vm11 = vcmp.ge.s32.totalorder %v1509_v55, 1  ;;  %v7541_v11 = vsel %vm1888_vm10, 1.0, %v8942_v46  ;;  %vm7606_vm10 = vcmp.le.s32.totalorder %v1502_v37, 14 }
 0x117   : > { %5780 = vmatprep.subr.bf16.mxu0 %v7436_v14  ;;  %v7547_v18 = vsel %vm1890_vm11, 1.0, %v8942_v46  ;;  %vm1833_vm11 = vcmp.lt.s32.totalorder %v7442_v17, 1  ;;  %v7652_v16 = vsel %vm7606_vm10, 1.0, %v8942_v46 }
 0x118   : > { %9069 = vst [vmem:[#allocation29_spill] sm:$0xff] %v7652_v16 }
 0x119   : > { %5713 = vmatmul.mubr.bf16.gmra.mrb[16].mxu0 %v658_v44  ;;  %v1481_v44 = vand.u32 15, %v1049_v30  ;;  %v1446_v30 = vand.u32 15, %v1044_v13 }
 0x11a   : > { %5716 = vmatprep.mubr.bf16.mxu0 %v659_v45  ;;  %v1038_v45 = vadd.s32 40, %v7442_v17 }
 0x11b   : > { %vm1886_vm9 = vcmp.ge.s32.totalorder %v1481_v44, 1 }
 0x11c   : > { %v1404_v59 = vand.u32 15, %v1038_v45  ;;  %v7532_v5 = vsel %vm1886_vm9, 1.0, %v8942_v46  ;;  %vm7594_vm9 = vcmp.le.s32.totalorder %v1488_v33, 14 }
 0x11d   : > { %v7646_v10 = vsel %vm7594_vm9, 1.0, %v8942_v46 }
 0x11e   : > { %vm7534_vm14 = vcmp.le.s32.totalorder %v1404_v59, 14  ;;  %v7616_v59 = vsel %vm1870_vm4, 1.0, %v8942_v46  ;;  %9068 = vst [vmem:[#allocation28_spill] sm:$0xff] %v7646_v10 }
 0x11f   : > { %v7563_v24 = vsel %vm7534_vm14, 1.0, %v8942_v46  ;;  %vm2110_vm14 = vcmp.le.s32.totalorder %v1530_v52, 14 }
 0x120   : > { %v7665_v33 = vsel %vm2110_vm14, 1.0, %v8942_v46 }
 0x121   : > { %5717 = vmatmul.mubr.bf16.gmra.mrb[20].mxu0 %v660_v50  ;;  %v7485_v50 = vsel %vm7462_vm2, 1.0, %v8942_v46  ;;  %vm1902_vm2 = vcmp.ge.s32.totalorder %v1593_v26, 1  ;;  %9071 = vst [vmem:[#allocation31_spill] sm:$0xff] %v7665_v33 }
 0x122   : > { %5720 = vmatprep.mubr.bf16.mxu0 %v661_v51  ;;  %v1516_v51 = vand.u32 15, %v1054_v34  ;;  %v7604_v54 = vsel %vm1902_vm2, 1.0, %v8942_v46  ;;  %vm7698_vm2 = vcmp.le.s32.totalorder %v1586_v43, 14  ;;  %v6620_v43 = vld [vmem:[#allocation10 + $0x8] sm:$0xff]  }
 0x124   : > { %vm2108_vm13 = vcmp.le.s32.totalorder %v1516_v51, 14  ;;  %v7684_v51 = vadd.s32 280, %v7442_v17 }
 0x125   : > { %v7662_v32 = vsel %vm2108_vm13, 1.0, %v8942_v46 }
 0x126   : > { %9070 = vst [vmem:[#allocation30_spill] sm:$0xff] %v7662_v32 }
 0x129   : > { %5721 = vmatmul.mubr.bf16.gmra.mrb[24].mxu0 %v662_v56  ;;  %v1544_v56 = vand.u32 15, %v1058_v38 }
 0x12a   : > { %5724 = vmatprep.mubr.bf16.mxu0 %v663_v57  ;;  %v1523_v57 = vand.u32 15, %v1055_v42  ;;  %v1062_v42 = vadd.s32 232, %v7442_v17 }
 0x12b   : > { %vm2112_vm15 = vcmp.le.s32.totalorder %v1544_v56, 14 }
 0x12c   : > { %vm1892_vm12 = vcmp.ge.s32.totalorder %v1523_v57, 1  ;;  %v1558_v57 = vand.u32 15, %v1060_v39  ;;  %v7669_v37 = vsel %vm2112_vm15, 1.0, %v8942_v46 }
 0x12d   : > { %v7550_v19 = vsel %vm1892_vm12, 1.0, %v8942_v46  ;;  %vm2050_vm12 = vcmp.lt.s32.totalorder %v7442_v17, 7  ;;  %9072 = vst [vmem:[#allocation32_spill] sm:$0xff] %v7669_v37  ;;  %v6622_v37 = vld [vmem:[#allocation10 + $0x10] sm:$0xff]  }
 0x12e   : > { %vm2114_vm0 = vcmp.le.s32.totalorder %v1558_v57, 14 }
 0x12f   : > { %v7672_v38 = vsel %vm2114_vm0, 1.0, %v8942_v46 }
 0x130   : > { %9073 = vst [vmem:[#allocation33_spill] sm:$0xff] %v7672_v38 }
 0x131   : > { %5725 = vmatmul.mubr.bf16.gmra.mrb[28].mxu0 %v664_v62  ;;  %v1063_v62 = vadd.s32 240, %v7442_v17 }
 0x132   : > { %5728 = vmatprep.mubr.bf16.mxu0 %v665_v63  ;;  %v7506_v63 = vsel %vm2088_vm6, 1.0, %v8942_v46  ;;  %vm7582_vm6 = vcmp.le.s32.totalorder %v1446_v30, 14 }
 0x133   : > { %v1579_v9 = vand.u32 15, %v1063_v62  ;;  %v1572_v62 = vand.u32 15, %v1062_v42  ;;  %v7631_v7 = vsel %vm7582_vm6, 1.0, %v8942_v46 }
 0x135   : > { %vm1900_vm1 = vcmp.ge.s32.totalorder %v1579_v9, 1  ;;  %v7641_v9 = vsel %vm7590_vm8, 1.0, %v8942_v46 }
 0x136   : > { %v7575_v40 = vsel %vm1900_vm1, 1.0, %v8942_v46  ;;  %vm2116_vm1 = vcmp.le.s32.totalorder %v1572_v62, 14 }
 0x137   : > { %v7676_v42 = vsel %vm2116_vm1, 1.0, %v8942_v46 }
 0x138   : > { %9074 = vst [vmem:[#allocation34_spill] sm:$0xff] %v7676_v42  ;;  %v9081_v42 = vmov 0.0  }
 0x139   : > { %5729 = vmatmul.mubr.bf16.gmra.mrb[32].mxu0 %v668_v2  ;;  %v7521_v2 = vsel %vm7495_vm5, 1.0, %v8942_v46  ;;  %vm2096_vm5 = vcmp.le.s32.totalorder %v1432_v29, 14  ;;  %v1066_v29 = vadd.s32 264, %v7442_v17  ;;  %v6639_v17 = vld [vmem:[#allocation10 + $0x160] sm:$0xff]  }
 0x13a   : > { %v7624_v61 = vsel %vm2096_vm5, 1.0, %v8942_v46 }
 0x13b   : > { %v1600_v45 = vand.u32 15, %v1066_v29 }
 0x13d   : > { %vm7721_vm3 = vcmp.le.s32.totalorder %v1600_v45, 14 }
 0x1cc   : > { %v5698_v6 = vpop.f32.mrb[0].mxu0 }
 0x1cd   : > { %v919_v12 = vmul.f32 %v5698_v6, %v7601_v53  ;;  %v767_v13 = vpop.f32.mrb[1].mxu0 }
 0x1ce   : > { %v917_v20 = vmul.f32 %v7601_v53, %v767_v13  ;;  %v5699_v21 = vpop.f32.mrb[2].mxu0 }
 0x1cf   : > { %v962_v26 = vadd.f32 %v7613_v58, %v919_v12  ;;  %v920_v27 = vmul.f32 %v5699_v21, %v7601_v53  ;;  %v770_v28 = vpop.f32.mrb[3].mxu0 }
 0x1d0   : > { %v960_v30 = vadd.f32 %v7613_v58, %v917_v20  ;;  %v918_v31 = vmul.f32 %v7601_v53, %v770_v28 }
 0x1d1   : > { %v998_v34 = vmax.f32 %v962_v26, 0.0  ;;  %v963_v35 = vadd.f32 %v7613_v58, %v920_v27 }
 0x1d2   : > { %v996_v39 = vmax.f32 %v960_v30, 0.0  ;;  %v961_v41 = vadd.f32 %v7613_v58, %v918_v31 }
 0x1d3   : > { %v7678_v44 = vmax.f32 %v963_v35, 0.0  ;;  %v1799_v52 = vrot.slane %v998_v34, 7  ;;  %v2016_v55 = vrot.slane %v998_v34, 1 }
 0x1d4   : > { %v7686_v56 = vmul.f32 0.0, %v996_v39  ;;  %v997_v57 = vmax.f32 %v961_v41, 0.0  ;;  %v5702_v62 = vpop.f32.mrb[4].mxu0 }
 0x1d5   : > { %v1800_v6 = vrot.slane %v7678_v44, 7  ;;  %v8944_v12 = vrot.slane %v7678_v44, 1  ;;  %v7691_v13 = vpack.c.bf16 %v7678_v44, %v998_v34  ;;  %v923_v20 = vmul.f32 %v5702_v62, %v7601_v53  ;;  %v783_v21 = vpop.f32.mrb[5].mxu0 }
 0x1d6   : > { %v7695_v26 = vmul.f32 0.0, %v997_v57  ;;  %v921_v27 = vmul.f32 %v7601_v53, %v783_v21  ;;  %v5703_v28 = vpop.f32.mrb[6].mxu0 }
 0x1d7   : > { %9075 = vst [vmem:[#allocation35_spill] sm:$0xff] %v7691_v13  ;;  %v1866_v30 = vsel %vm1833_vm11, %v1799_v52, %v1800_v6  ;;  %v966_v31 = vadd.f32 %v7613_v58, %v923_v20  ;;  %v924_v34 = vmul.f32 %v5703_v28, %v7601_v53  ;;  %v786_v35 = vpop.f32.mrb[7].mxu0  ;;  %v7710_v39 = vsel %vm2050_vm12, %v2016_v55, %v8944_v12 }
 0x1d8   : > { %v1798_v41 = vrot.slane %v7695_v26, 7  ;;  %v964_v57 = vadd.f32 %v7613_v58, %v921_v27  ;;  %v922_v62 = vmul.f32 %v7601_v53, %v786_v35  ;;  %v2249_v28 = vpack.c.bf16 %v7695_v26, %v7686_v56 }
 0x1d9   : > { %v7716_v21 = vmax.f32 %v966_v31, 0.0  ;;  %v967_v20 = vadd.f32 %v7613_v58, %v924_v34  ;;  %v9080_v31 = vrot.slane %v7686_v56, 7 }
 0x1da   : > { %v1867_v12 = vsel %vm1833_vm11, %v1798_v41, %v1799_v52  ;;  %v7727_v25 = vmax.f32 %v964_v57, 0.0  ;;  %v965_v27 = vadd.f32 %v7613_v58, %v922_v62  ;;  %5748 = vmatprep.mubr.bf16.mxu0 %v2249_v28  ;;  %v7742_v52 = vsel %vm7698_vm2, 1.0, %v9081_v42 }
 0x1db   : > { %v7734_v34 = vsel %vm1833_vm11, %v9080_v31, %v1798_v41  ;;  %v1980_v35 = vmul.f32 %v7474_v47, %v1867_v12  ;;  %v7737_v45 = vmax.f32 %v967_v20, 0.0  ;;  %9082 = vst [vmem:[#allocation36_spill] sm:$0xff] %v7742_v52  ;;  %5749 = vmatmul.mubr.bf16.vlgmr.msra.gmra.mrb[36].mxu0 %v7691_v13  ;;  %v9083_v31 = vrot.slane %v7695_v26, 1 }
 0x1dc   : > { %v1801_v62 = vrot.slane %v7727_v25, 7  ;;  %v7746_v38 = vmax.f32 %v965_v27, 0.0  ;;  %v5706_v41 = vpop.f32.mrb[8].mxu0  ;;  %5781 = vmatpush3.bf16.msra.mxu0 %v7436_v14  ;;  %v7766_v57 = vsel %vm7721_vm3, 1.0, %v9081_v42 }
 0x1dd   : > { %v7753_v47 = vsel %vm2050_vm12, %v9083_v31, %v2016_v55  ;;  %v1804_v29 = vrot.slane %v7737_v45, 7  ;;  %v927_v20 = vmul.f32 %v5706_v41, %v7601_v53  ;;  %v799_v28 = vpop.f32.mrb[9].mxu0  ;;  %v7760_v27 = vpack.c.bf16 %v7737_v45, %v7716_v21  ;;  %9085 = vst [vmem:[#allocation38_spill] sm:$0xff] %v7766_v57  ;;  %5782 = vmatprep.subr.bf16.mxu0 %v6620_v43 }
 0x1de   : > { %v1803_v55 = vrot.slane %v7716_v21, 7  ;;  %v1802_v31 = vrot.slane %v7746_v38, 7  ;;  %v925_v12 = vmul.f32 %v7601_v53, %v799_v28  ;;  %v5707_v52 = vpop.f32.mrb[10].mxu0  ;;  %v7773_v41 = vpack.c.bf16 %v7746_v38, %v7727_v25 }
 0x1df   : > { %9084 = vst [vmem:[#allocation37_spill] sm:$0xff] %v7760_v27  ;;  %v970_v14 = vadd.f32 %v7613_v58, %v927_v20  ;;  %v928_v33 = vmul.f32 %v5707_v52, %v7601_v53  ;;  %v802_v46 = vpop.f32.mrb[11].mxu0  ;;  %v7777_v42 = vpack.c.bf16 %v1866_v30, %v1980_v35  ;;  %v1865_v57 = vsel %vm1833_vm11, %v1800_v6, %v1801_v62 }
 0x1e0   : > { %9086 = vst [vmem:[#allocation39_spill] sm:$0xff] %v7773_v41  ;;  %v968_v32 = vadd.f32 %v7613_v58, %v925_v12  ;;  %v926_v28 = vmul.f32 %v7601_v53, %v802_v46  ;;  %5752 = vmatprep.mubr.bf16.mxu0 %v7773_v41  ;;  %v1864_v16 = vsel %vm1833_vm11, %v1801_v62, %v1802_v31  ;;  %v6624_v46 = vld [vmem:[#allocation10 + $0x18] sm:$0xff]  }
 0x1e1   : > { %9087 = vst [vmem:[#allocation40_spill] sm:$0xff] %v7777_v42  ;;  %v1982_v10 = vmul.f32 %v7480_v49, %v1865_v57  ;;  %v7787_v20 = vmax.f32 %v970_v14, 0.0  ;;  %v971_v52 = vadd.f32 %v7613_v58, %v928_v33  ;;  %5783 = vmatpush3.bf16.msra.mxu0 %v6620_v43  ;;  %v1862_v30 = vsel %vm1833_vm11, %v1803_v55, %v1804_v29 }
 0x1e2   : > { %v1863_v6 = vsel %vm1833_vm11, %v1802_v31, %v1803_v55  ;;  %v7794_v35 = vmax.f32 %v968_v32, 0.0  ;;  %v969_v12 = vadd.f32 %v7613_v58, %v926_v28  ;;  %5784 = vmatprep.subr.bf16.mxu0 %v6622_v37  ;;  %v9092_v57 = vrot.slane %v7695_v26, 1 }
 0x1e3   : > { %v7797_v62 = vpack.c.bf16 %v1864_v16, %v1982_v10  ;;  %v1984_v49 = vmul.f32 %v7485_v50, %v1863_v6  ;;  %v7803_v14 = vmax.f32 %v971_v52, 0.0  ;;  %5753 = vmatmul.mubr.bf16.gmra.mrb[40].mxu0 %v7760_v27  ;;  %v1807_v50 = vrot.slane %v7787_v20, 7 }
 0x1e4   : > { %v1805_v32 = vrot.slane %v7794_v35, 7  ;;  %v7807_v31 = vmax.f32 %v969_v12, 0.0  ;;  %v5710_v10 = vpop.f32.mrb[12].mxu0 }
 0x1e5   : > { %9088 = vst [vmem:[#allocation41_spill] sm:$0xff] %v7797_v62  ;;  %v7810_v16 = vpack.c.bf16 %v1862_v30, %v1984_v49  ;;  %v1808_v28 = vrot.slane %v7803_v14, 7  ;;  %v931_v6 = vmul.f32 %v5710_v10, %v7601_v53  ;;  %v815_v33 = vpop.f32.mrb[13].mxu0  ;;  %v7817_v52 = vpack.c.bf16 %v7803_v14, %v7787_v20  ;;  %5785 = vmatpush3.bf16.msra.mxu0 %v6622_v37  ;;  %v6626_v49 = vld [vmem:[#allocation10 + $0x20] sm:$0xff]  }
 0x1e6   : > { %v1806_v12 = vrot.slane %v7807_v31, 7  ;;  %v929_v55 = vmul.f32 %v7601_v53, %v815_v33  ;;  %v5711_v43 = vpop.f32.mrb[14].mxu0  ;;  %v7823_v30 = vpack.c.bf16 %v7807_v31, %v7794_v35  ;;  %5786 = vmatprep.subr.bf16.mxu0 %v6624_v46  ;;  %v9093_v10 = vrot.slane %v7686_v56, 1 }
 0x1e7   : > { %9089 = vst [vmem:[#allocation42_spill] sm:$0xff] %v7810_v16  ;;  %9090 = vst [vmem:[#allocation43_spill] sm:$0xff] %v7817_v52  ;;  %v974_v37 = vadd.f32 %v7613_v58, %v931_v6  ;;  %v932_v27 = vmul.f32 %v5711_v43, %v7601_v53  ;;  %v818_v33 = vpop.f32.mrb[15].mxu0  ;;  %v1861_v41 = vsel %vm1833_vm11, %v1804_v29, %v1805_v32 }
 0x1e8   : > { %9091 = vst [vmem:[#allocation44_spill] sm:$0xff] %v7823_v30  ;;  %v7831_v16 = vsel %vm2050_vm12, %v9093_v10, %v9092_v57  ;;  %v1858_v62 = vsel %vm1833_vm11, %v1807_v50, %v1808_v28  ;;  %v972_v42 = vadd.f32 %v7613_v58, %v929_v55  ;;  %v930_v26 = vmul.f32 %v7601_v53, %v818_v33 }
 0x1e9   : > { %9094 = vst [vmem:[#allocation45_spill] sm:$0xff] %v7831_v16  ;;  %5756 = vmatprep.mubr.bf16.mxu0 %v7823_v30  ;;  %v1860_v57 = vsel %vm1833_vm11, %v1805_v32, %v1806_v12  ;;  %v1986_v6 = vmul.f32 %v7511_v0, %v1861_v41  ;;  %v7845_v10 = vmax.f32 %v974_v37, 0.0  ;;  %v975_v43 = vadd.f32 %v7613_v58, %v932_v27  ;;  %v6628_v32 = vld [vmem:[#allocation10 + $0x28] sm:$0xff]   ;;  %v6630_v41 = vld [vmem:[#allocation10 + $0x30] sm:$0xff]  }
 0x1ea   : > { %5787 = vmatpush3.bf16.msra.mxu0 %v6624_v46  ;;  %v1859_v29 = vsel %vm1833_vm11, %v1806_v12, %v1807_v50  ;;  %v7852_v55 = vmul.f32 %v7506_v63, %v7753_v47  ;;  %v7854_v33 = vmax.f32 %v972_v42, 0.0  ;;  %v973_v30 = vadd.f32 %v7613_v58, %v930_v26 }
 0x1eb   : > { %5788 = vmatprep.subr.bf16.mxu0 %v6626_v49  ;;  %v7857_v13 = vpack.c.bf16 %v1860_v57, %v1986_v6  ;;  %v1988_v0 = vmul.f32 %v7516_v1, %v1859_v29  ;;  %v7862_v46 = vmax.f32 %v975_v43, 0.0  ;;  %5757 = vmatmul.mubr.bf16.gmra.mrb[44].mxu0 %v7817_v52  ;;  %v1811_v1 = vrot.slane %v7845_v10, 7 }
 0x1ec   : > { %9095 = vst [vmem:[#allocation46_spill] sm:$0xff] %v7852_v55  ;;  %v1809_v47 = vrot.slane %v7854_v33, 7  ;;  %v7868_v50 = vmax.f32 %v973_v30, 0.0  ;;  %v5714_v12 = vpop.f32.mrb[16].mxu0  ;;  %v9100_v52 = vrot.slane %v7727_v25, 1 }
 0x1ed   : > { %9096 = vst [vmem:[#allocation47_spill] sm:$0xff] %v7857_v13  ;;  %v7871_v37 = vpack.c.bf16 %v1858_v62, %v1988_v0  ;;  %v1812_v26 = vrot.slane %v7862_v46, 7  ;;  %v935_v57 = vmul.f32 %v5714_v12, %v7601_v53  ;;  %v831_v6 = vpop.f32.mrb[17].mxu0  ;;  %v7878_v43 = vpack.c.bf16 %v7862_v46, %v7845_v10 }
 0x1ee   : > { %5789 = vmatpush3.bf16.msra.mxu0 %v6626_v49  ;;  %v1810_v29 = vrot.slane %v7868_v50, 7  ;;  %v933_v63 = vmul.f32 %v7601_v53, %v831_v6  ;;  %v5715_v62 = vpop.f32.mrb[18].mxu0  ;;  %v7885_v0 = vpack.c.bf16 %v7868_v50, %v7854_v33  ;;  %v1857_v49 = vsel %vm1833_vm11, %v1808_v28, %v1809_v47 }
 0x1ef   : > { %9097 = vst [vmem:[#allocation48_spill] sm:$0xff] %v7871_v37  ;;  %9098 = vst [vmem:[#allocation49_spill] sm:$0xff] %v7878_v43  ;;  %5790 = vmatprep.subr.bf16.mxu0 %v6628_v32  ;;  %v978_v12 = vadd.f32 %v7613_v58, %v935_v57  ;;  %v936_v42 = vmul.f32 %v5715_v62, %v7601_v53  ;;  %v834_v27 = vpop.f32.mrb[19].mxu0  ;;  %v1854_v30 = vsel %vm1833_vm11, %v1811_v1, %v1812_v26 }
 0x1f0   : > { %9099 = vst [vmem:[#allocation50_spill] sm:$0xff] %v7885_v0  ;;  %v976_v6 = vadd.f32 %v7613_v58, %v933_v63  ;;  %v934_v16 = vmul.f32 %v7601_v53, %v834_v27  ;;  %5760 = vmatprep.mubr.bf16.mxu0 %v7885_v0  ;;  %v1856_v55 = vsel %vm1833_vm11, %v1809_v47, %v1810_v29  ;;  %v9101_v63 = vrot.slane %v7678_v44, 1 }
 0x1f1   : > { %v1990_v57 = vmul.f32 %v7521_v2, %v1857_v49  ;;  %v7899_v37 = vmax.f32 %v978_v12, 0.0  ;;  %v979_v62 = vadd.f32 %v7613_v58, %v936_v42  ;;  %v1855_v28 = vsel %vm1833_vm11, %v1810_v29, %v1811_v1  ;;  %v6632_v2 = vld [vmem:[#allocation10 + $0x38] sm:$0xff]  }
 0x1f2   : > { %5791 = vmatpush3.bf16.msra.mxu0 %v6628_v32  ;;  %v2082_v27 = vsel %vm2050_vm12, %v9101_v63, %v9100_v52  ;;  %v7910_v0 = vmax.f32 %v976_v6, 0.0  ;;  %v977_v47 = vadd.f32 %v7613_v58, %v934_v16  ;;  %v1992_v32 = vmul.f32 %v7529_v4, %v1855_v28 }
 0x1f3   : > { %5792 = vmatprep.subr.bf16.mxu0 %v6630_v41  ;;  %v7913_v12 = vpack.c.bf16 %v1856_v55, %v1990_v57  ;;  %v7919_v44 = vmax.f32 %v979_v62, 0.0  ;;  %5761 = vmatmul.mubr.bf16.gmra.mrb[48].mxu0 %v7878_v43  ;;  %v1815_v4 = vrot.slane %v7899_v37, 7 }
 0x1f4   : > { %v1813_v49 = vrot.slane %v7910_v0, 7  ;;  %v7923_v6 = vmax.f32 %v977_v47, 0.0  ;;  %v5718_v16 = vpop.f32.mrb[20].mxu0  ;;  %v7926_v55 = vpack.c.bf16 %v1854_v30, %v1992_v32  ;;  %v7941_v32 = vld [vmem:[#allocation10 + $0x80] sm:$0xff]  }
 0x1f5   : > { %9102 = vst [vmem:[#allocation51_spill] sm:$0xff] %v7913_v12  ;;  %v1816_v57 = vrot.slane %v7919_v44, 7  ;;  %v939_v28 = vmul.f32 %v5718_v16, %v7601_v53  ;;  %v847_v63 = vpop.f32.mrb[21].mxu0  ;;  %v7933_v62 = vpack.c.bf16 %v7919_v44, %v7899_v37  ;;  %9106 = vst [vmem:[#allocation55_spill] sm:$0xff] %v7941_v32  ;;  %v2198_v16 = vmul.f32 %v7524_v3, %v2082_v27 }
 0x1f6   : > { %9103 = vst [vmem:[#allocation52_spill] sm:$0xff] %v7926_v55  ;;  %5793 = vmatpush3.bf16.msra.mxu0 %v6630_v41  ;;  %v1814_v47 = vrot.slane %v7923_v6, 7  ;;  %v937_v52 = vmul.f32 %v7601_v53, %v847_v63  ;;  %v5719_v1 = vpop.f32.mrb[22].mxu0  ;;  %v7939_v30 = vpack.c.bf16 %v7923_v6, %v7910_v0  ;;  %v1853_v63 = vsel %vm1833_vm11, %v1812_v26, %v1813_v49 }
 0x1f7   : > { %9104 = vst [vmem:[#allocation53_spill] sm:$0xff] %v7933_v62  ;;  %5794 = vmatprep.subr.bf16.mxu0 %v6632_v2  ;;  %v982_v29 = vadd.f32 %v7613_v58, %v939_v28  ;;  %v940_v42 = vmul.f32 %v5719_v1, %v7601_v53  ;;  %v850_v55 = vpop.f32.mrb[23].mxu0  ;;  %v1850_v41 = vsel %vm1833_vm11, %v1815_v4, %v1816_v57 }
 0x1f8   : > { %9105 = vst [vmem:[#allocation54_spill] sm:$0xff] %v7939_v30  ;;  %v980_v43 = vadd.f32 %v7613_v58, %v937_v52  ;;  %v938_v12 = vmul.f32 %v7601_v53, %v850_v55  ;;  %5764 = vmatprep.mubr.bf16.mxu0 %v7939_v30  ;;  %v1851_v3 = vsel %vm1833_vm11, %v1814_v47, %v1815_v4 }
 0x1f9   : > { %v1852_v27 = vsel %vm1833_vm11, %v1813_v49, %v1814_v47  ;;  %v7957_v1 = vmax.f32 %v982_v29, 0.0  ;;  %v983_v28 = vadd.f32 %v7613_v58, %v940_v42  ;;  %v1996_v13 = vmul.f32 %v7541_v11, %v1851_v3 }
 0x1fa   : > { %5795 = vmatpush3.bf16.msra.mxu0 %v6632_v2  ;;  %v1994_v26 = vmul.f32 %v7532_v5, %v1853_v63  ;;  %v7962_v52 = vmax.f32 %v980_v43, 0.0  ;;  %v981_v55 = vadd.f32 %v7613_v58, %v938_v12  ;;  %v7967_v4 = vpack.c.bf16 %v2198_v16, %v7710_v39 }
 0x1fb   : > { %5828 = vmatprep.subr.bf16.mxu0 %v7941_v32  ;;  %v9108_v49 = vrot.slane %v7716_v21, 1  ;;  %v9109_v29 = vrot.slane %v7746_v38, 1  ;;  %v7977_v43 = vmax.f32 %v983_v28, 0.0  ;;  %v7979_v2 = vpack.c.bf16 %v1850_v41, %v1996_v13  ;;  %5765 = vmatmul.mubr.bf16.gmra.mrb[52].mxu0 %v7933_v62 }
 0x1fc   : > { %9107 = vst [vmem:[#allocation56_spill] sm:$0xff] %v7967_v4  ;;  %v1817_v39 = vrot.slane %v7962_v52, 7  ;;  %v7983_v47 = vmax.f32 %v981_v55, 0.0  ;;  %v5722_v16 = vpop.f32.mrb[24].mxu0  ;;  %v7986_v63 = vpack.c.bf16 %v1852_v27, %v1994_v26  ;;  %v1819_v3 = vrot.slane %v7957_v1, 7 }
 0x1fd   : > { %v2080_v42 = vsel %vm2050_vm12, %v9109_v29, %v9108_v49  ;;  %9110 = vst [vmem:[#allocation57_spill] sm:$0xff] %v7979_v2  ;;  %v1820_v49 = vrot.slane %v7977_v43, 7  ;;  %v943_v28 = vmul.f32 %v5722_v16, %v7601_v53  ;;  %v863_v29 = vpop.f32.mrb[25].mxu0  ;;  %5908 = vmatprep.mubr.bf16.mxu1 %v7979_v2  ;;  %v7994_v13 = vpack.c.bf16 %v7977_v43, %v7957_v1 }
 0x1fe   : > { %9111 = vst [vmem:[#allocation58_spill] sm:$0xff] %v7986_v63  ;;  %v1818_v55 = vrot.slane %v7983_v47, 7  ;;  %v941_v27 = vmul.f32 %v7601_v53, %v863_v29  ;;  %v5723_v26 = vpop.f32.mrb[26].mxu0  ;;  %v8001_v5 = vpack.c.bf16 %v7983_v47, %v7962_v52  ;;  %v1849_v4 = vsel %vm1833_vm11, %v1816_v57, %v1817_v39 }
 0x1ff   : > { %9112 = vst [vmem:[#allocation59_spill] sm:$0xff] %v7994_v13  ;;  %v986_v16 = vadd.f32 %v7613_v58, %v943_v28  ;;  %v944_v12 = vmul.f32 %v5723_v26, %v7601_v53  ;;  %v866_v11 = vpop.f32.mrb[27].mxu0  ;;  %v1846_v41 = vsel %vm1833_vm11, %v1819_v3, %v1820_v49  ;;  %v1998_v28 = vmul.f32 %v7547_v18, %v1849_v4  ;;  %v6621_v4 = vld [vmem:[#allocation10 + $0x108] sm:$0xff]  }
 0x200   : > { %9113 = vst [vmem:[#allocation60_spill] sm:$0xff] %v8001_v5  ;;  %v984_v2 = vadd.f32 %v7613_v58, %v941_v27  ;;  %v942_v29 = vmul.f32 %v7601_v53, %v866_v11  ;;  %5768 = vmatprep.mubr.bf16.mxu0 %v8001_v5  ;;  %v1848_v62 = vsel %vm1833_vm11, %v1817_v39, %v1818_v55  ;;  %v9114_v63 = vrot.slane %v7746_v38, 1 }
 0x201   : > { %v8015_v30 = vmax.f32 %v986_v16, 0.0  ;;  %v987_v26 = vadd.f32 %v7613_v58, %v944_v12  ;;  %v1847_v57 = vsel %vm1833_vm11, %v1818_v55, %v1819_v3  ;;  %v9115_v27 = vrot.slane %v7727_v25, 1 }
 0x202   : > { %v8026_v5 = vmax.f32 %v984_v2, 0.0  ;;  %v985_v39 = vadd.f32 %v7613_v58, %v942_v29  ;;  %v8029_v32 = vpack.c.bf16 %v1848_v62, %v1998_v28  ;;  %v2000_v18 = vmul.f32 %v7550_v19, %v1847_v57 }
 0x203   : > { %v2081_v11 = vsel %vm2050_vm12, %v9115_v27, %v9114_v63  ;;  %v8035_v55 = vmax.f32 %v987_v26, 0.0  ;;  %v1823_v25 = vrot.slane %v8015_v30, 7  ;;  %5769 = vmatmul.mubr.bf16.gmra.mrb[56].mxu0 %v7994_v13  ;;  %v2200_v57 = vmul.f32 %v7563_v24, %v2080_v42 }
 0x204   : > { %9116 = vst [vmem:[#allocation61_spill] sm:$0xff] %v8029_v32  ;;  %v1821_v2 = vrot.slane %v8026_v5, 7  ;;  %v8039_v63 = vmax.f32 %v985_v39, 0.0  ;;  %5909 = vmatmul.mubr.bf16.vlgmr.msra.gmra.mrb[0].mxu1 %v8029_v32  ;;  %v5726_v19 = vpop.f32.mrb[28].mxu0  ;;  %v8043_v62 = vpack.c.bf16 %v1846_v41, %v2000_v18 }
 0x205   : > { %9117 = vst [vmem:[#allocation62_spill] sm:$0xff] %v8035_v55  ;;  %v8983_v16 = vrot.slane %v8035_v55, 7  ;;  %5925 = vmatpush3.bf16.msra.mxu1 %v7439_v15  ;;  %v947_v29 = vmul.f32 %v5726_v19, %v7601_v53  ;;  %v879_v28 = vpop.f32.mrb[29].mxu0  ;;  %v8050_v26 = vpack.c.bf16 %v8035_v55, %v8015_v30  ;;  %v6623_v19 = vld [vmem:[#allocation10 + $0x110] sm:$0xff]  }
 0x206   : > { %9118 = vst [vmem:[#allocation63_spill] sm:$0xff] %v8043_v62  ;;  %v1822_v39 = vrot.slane %v8039_v63, 7  ;;  %v945_v41 = vmul.f32 %v7601_v53, %v879_v28  ;;  %5912 = vmatprep.mubr.bf16.mxu1 %v8043_v62  ;;  %v5727_v18 = vpop.f32.mrb[30].mxu0  ;;  %5926 = vmatprep.subr.bf16.mxu1 %v6621_v4  ;;  %v8059_v15 = vpack.c.bf16 %v8039_v63, %v8026_v5 }
 0x207   : > { %9119 = vst [vmem:[#allocation64_spill] sm:$0xff] %v8050_v26  ;;  %v990_v3 = vadd.f32 %v7613_v58, %v947_v29  ;;  %v948_v38 = vmul.f32 %v5727_v18, %v7601_v53  ;;  %v882_v24 = vpop.f32.mrb[31].mxu0  ;;  %v1845_v42 = vsel %vm1833_vm11, %v1820_v49, %v1821_v2  ;;  %v1842_v28 = vsel %vm1833_vm11, %v1823_v25, %v8983_v16 }
 0x208   : > { %9120 = vst [vmem:[#allocation65_spill] sm:$0xff] %v8059_v15  ;;  %v988_v27 = vadd.f32 %v7613_v58, %v945_v41  ;;  %v946_v12 = vmul.f32 %v7601_v53, %v882_v24  ;;  %5772 = vmatprep.mubr.bf16.mxu0 %v8059_v15  ;;  %v1844_v29 = vsel %vm1833_vm11, %v1821_v2, %v1822_v39 }
 0x209   : > { %v2002_v18 = vmul.f32 %v7555_v22, %v1845_v42  ;;  %v8075_v62 = vmax.f32 %v990_v3, 0.0  ;;  %v991_v49 = vadd.f32 %v7613_v58, %v948_v38  ;;  %5927 = vmatpush3.bf16.msra.mxu1 %v6621_v4  ;;  %v1843_v13 = vsel %vm1833_vm11, %v1822_v39, %v1823_v25  ;;  %v6625_v22 = vld [vmem:[#allocation10 + $0x118] sm:$0xff]  }
 0x20a   : > { %v8080_v16 = vpack.c.bf16 %v2200_v57, %v2081_v11  ;;  %v8082_v41 = vmax.f32 %v988_v27, 0.0  ;;  %v989_v24 = vadd.f32 %v7613_v58, %v946_v12  ;;  %5928 = vmatprep.subr.bf16.mxu1 %v6623_v19  ;;  %v2004_v2 = vmul.f32 %v7558_v23, %v1843_v13 }
 0x20b   : > { %v8085_v15 = vpack.c.bf16 %v1844_v29, %v2002_v18  ;;  %v8090_v4 = vmax.f32 %v991_v49, 0.0  ;;  %v9123_v25 = vrot.slane %v7794_v35, 1  ;;  %v9124_v11 = vrot.slane %v7737_v45, 1  ;;  %5773 = vmatmul.mubr.bf16.gmra.mrb[60].mxu0 %v8050_v26 }
 0x20c   : > { %9121 = vst [vmem:[#allocation66_spill] sm:$0xff] %v8080_v16  ;;  %v1825_v27 = vrot.slane %v8082_v41, 7  ;;  %v8100_v39 = vmax.f32 %v989_v24, 0.0  ;;  %v5730_v23 = vpop.f32.mrb[32].mxu0  ;;  %v8104_v13 = vpack.c.bf16 %v1842_v28, %v2004_v2  ;;  %v1827_v42 = vrot.slane %v8075_v62, 7  ;;  %v6627_v2 = vld [vmem:[#allocation10 + $0x120] sm:$0xff]  }
 0x20d   : > { %9122 = vst [vmem:[#allocation67_spill] sm:$0xff] %v8085_v15  ;;  %v2078_v57 = vsel %vm2050_vm12, %v9124_v11, %v9123_v25  ;;  %5913 = vmatmul.mubr.bf16.gmra.mrb[4].mxu1 %v8085_v15  ;;  %v1828_v29 = vrot.slane %v8090_v4, 7  ;;  %v951_v18 = vmul.f32 %v5730_v23, %v7601_v53  ;;  %v895_v49 = vpop.f32.mrb[33].mxu0  ;;  %v8111_v25 = vpack.c.bf16 %v8090_v4, %v8075_v62 }
 0x20e   : > { %9125 = vst [vmem:[#allocation68_spill] sm:$0xff] %v8104_v13  ;;  %5929 = vmatpush3.bf16.msra.mxu1 %v6623_v19  ;;  %v1826_v11 = vrot.slane %v8100_v39, 7  ;;  %v949_v38 = vmul.f32 %v7601_v53, %v895_v49  ;;  %5916 = vmatprep.mubr.bf16.mxu1 %v8104_v13  ;;  %v5731_v28 = vpop.f32.mrb[34].mxu0  ;;  %v8119_v19 = vpack.c.bf16 %v8100_v39, %v8082_v41  ;;  %v9126_v24 = vrot.slane %v8035_v55, 7 }
 0x20f   : > { %5930 = vmatprep.subr.bf16.mxu1 %v6625_v22  ;;  %v994_v23 = vadd.f32 %v7613_v58, %v951_v18  ;;  %v952_v12 = vmul.f32 %v5731_v28, %v7601_v53  ;;  %v898_v3 = vpop.f32.mrb[35].mxu0  ;;  %v1838_v49 = vsel %vm1833_vm11, %v1827_v42, %v1828_v29  ;;  %v9127_v55 = vrot.slane %v7737_v45, 1 }
 0x210   : > { %v1841_v16 = vsel %vm1833_vm11, %v9126_v24, %v1825_v27  ;;  %v992_v13 = vadd.f32 %v7613_v58, %v949_v38  ;;  %v950_v26 = vmul.f32 %v7601_v53, %v898_v3  ;;  %5776 = vmatprep.mubr.bf16.mxu0 %v8119_v19  ;;  %v1840_v18 = vsel %vm1833_vm11, %v1825_v27, %v1826_v11 }
 0x211   : > { %v2006_v28 = vmul.f32 %v7570_v36, %v1841_v16  ;;  %v995_v32 = vadd.f32 %v7613_v58, %v952_v12  ;;  %v1839_v24 = vsel %vm1833_vm11, %v1826_v11, %v1827_v42  ;;  %v9128_v38 = vrot.slane %v7716_v21, 1 }
 0x212   : > { %5931 = vmatpush3.bf16.msra.mxu1 %v6625_v22  ;;  %v8145_v3 = vmax.f32 %v992_v13, 0.0  ;;  %v993_v27 = vadd.f32 %v7613_v58, %v950_v26  ;;  %v2008_v16 = vmul.f32 %v7575_v40, %v1839_v24  ;;  %v6629_v22 = vld [vmem:[#allocation10 + $0x128] sm:$0xff]   ;;  %v1030_v12 = vmax.f32 %v994_v23, 0.0 }
 0x213   : > { %v2079_v53 = vsel %vm2050_vm12, %v9128_v38, %v9127_v55  ;;  %5932 = vmatprep.subr.bf16.mxu1 %v6627_v2  ;;  %v8148_v36 = vpack.c.bf16 %v1840_v18, %v2006_v28  ;;  %v1031_v15 = vmax.f32 %v995_v32, 0.0  ;;  %v2202_v42 = vmul.f32 %v7621_v60, %v2078_v57  ;;  %5777 = vmatmul.mubr.bf16.gmra.mrb[64].mxu0 %v8111_v25  ;;  %v6631_v28 = vld [vmem:[#allocation10 + $0x130] sm:$0xff]  }
 0x214   : > { %v9129_v45 = vrot.slane %v7787_v20, 1  ;;  %v9130_v21 = vrot.slane %v7807_v31, 1  ;;  %v2044_v13 = vrot.slane %v8075_v62, 1  ;;  %v1829_v58 = vrot.slane %v8145_v3, 7  ;;  %v6636_v62 = vld [vmem:[#allocation10 + $0x150] sm:$0xff]  }
 0x215   : > { %v8160_v26 = vmax.f32 %v993_v27, 0.0  ;;  %5917 = vmatmul.mubr.bf16.gmra.mrb[8].mxu1 %v8148_v36  ;;  %v8164_v40 = vpack.c.bf16 %v1838_v49, %v2008_v16  ;;  %v2042_v60 = vrot.slane %v8082_v41, 1  ;;  %v2045_v32 = vrot.slane %v8090_v4, 1 }
 0x216   : > { %v2076_v55 = vsel %vm2050_vm12, %v9130_v21, %v9129_v45  ;;  %v8168_v57 = vmul.f32 0.0, %v1031_v15  ;;  %5933 = vmatpush3.bf16.msra.mxu1 %v6627_v2  ;;  %v8170_v11 = vpack.c.bf16 %v2202_v42, %v2079_v53  ;;  %v2043_v23 = vrot.slane %v8100_v39, 1  ;;  %v9187_v39 = vld [vmem:[#allocation37_spill] sm:$0xff] }
 0x217   : > { %v1830_v18 = vrot.slane %v8160_v26, 7  ;;  %5920 = vmatprep.mubr.bf16.mxu1 %v8164_v40  ;;  %5934 = vmatprep.subr.bf16.mxu1 %v6629_v22  ;;  %v1837_v49 = vsel %vm1833_vm11, %v1828_v29, %v1829_v58  ;;  %v8179_v24 = vpack.c.bf16 %v8160_v26, %v8145_v3  ;;  %v8181_v15 = vmul.f32 0.0, %v1030_v12 }
 0x218   : > { %v1832_v2 = vrot.slane %v8168_v57, 7  ;;  %v2010_v38 = vmul.f32 %v7604_v54, %v1837_v49  ;;  %v9131_v53 = vmov %v9130_v21  ;;  %v9132_v27 = vrot.slane %v7794_v35, 1 }
 0x219   : > { %v1836_v29 = vsel %vm1833_vm11, %v1829_v58, %v1830_v18  ;;  %v2204_v42 = vmul.f32 %v7624_v61, %v2076_v55  ;;  %v9133_v12 = vrot.slane %v7854_v33, 1  ;;  %v9134_v45 = vrot.slane %v7803_v14, 1 }
 0x21a   : > { %v2077_v16 = vsel %vm2050_vm12, %v9132_v27, %v9131_v53  ;;  %v9136_v35 = vrot.slane %v7787_v20, 1  ;;  %5935 = vmatpush3.bf16.msra.mxu1 %v6629_v22  ;;  %v8208_v49 = vpack.c.bf16 %v1836_v29, %v2010_v38  ;;  %v9137_v58 = vrot.slane %v7686_v56, 7  ;;  %v6633_v38 = vld [vmem:[#allocation10 + $0x138] sm:$0xff]  }
 0x21b   : > { %v2074_v54 = vsel %vm2050_vm12, %v9134_v45, %v9133_v12  ;;  %v9135_v31 = vmov %v9134_v45  ;;  %v9138_v53 = vrot.slane %v7845_v10, 1  ;;  %v9139_v14 = vrot.slane %v7868_v50, 1  ;;  %5936 = vmatprep.subr.bf16.mxu1 %v6631_v28 }
 0x21c   : > { %v2075_v21 = vsel %vm2050_vm12, %v9136_v35, %v9135_v31  ;;  %v1869_v61 = vsel %vm1833_vm11, %v1832_v2, %v9137_v58  ;;  %v2206_v55 = vmul.f32 %v7631_v7, %v2074_v54  ;;  %v8224_v27 = vpack.c.bf16 %v2204_v42, %v2077_v16 }
 0x21d   : > { %v2072_v20 = vsel %vm2050_vm12, %v9139_v14, %v9138_v53  ;;  %v1978_v22 = vmul.f32 %v7616_v59, %v1869_v61  ;;  %v9140_v29 = vmov %v9139_v14  ;;  %v9141_v54 = vand.u32 15, %v7681_v48  ;;  %5921 = vmatmul.mubr.bf16.gmra.mrb[12].mxu1 %v8208_v49 }
 0x21e   : > { %v2073_v7 = vsel %vm2050_vm12, %v9133_v12, %v9140_v29  ;;  %v2208_v45 = vmul.f32 %v7636_v8, %v2072_v20  ;;  %v8239_v35 = vpack.c.bf16 %v2206_v55, %v2075_v21  ;;  %v9144_v59 = vrot.slane %v7910_v0, 1  ;;  %5937 = vmatpush3.bf16.msra.mxu1 %v6631_v28  ;;  %v9155_v12 = vld [vmem:[#allocation35_spill] sm:$0xff] }
 0x21f   : > { %vm8235_vm4 = vcmp.ge.s32.totalorder %v9141_v54, 1  ;;  %v9145_v16 = vrot.slane %v7862_v46, 1  ;;  %v9147_v42 = vmov %v9138_v53  ;;  %v9148_v48 = vrot.slane %v7899_v37, 1  ;;  %5940 = vmatprep.mubr.bf16.mxu1 %v9155_v12  ;;  %v6640_v54 = vld [vmem:[#allocation10 + $0x88] sm:$0xff]   ;;  %5938 = vmatprep.subr.bf16.mxu1 %v6633_v38  ;;  %v9164_v37 = vld [vmem:[#allocation40_spill] sm:$0xff]  ;;  %v9192_v55 = vld [vmem:[#allocation47_spill] sm:$0xff] }
 0x220   : > { %v9149_v58 = vrot.slane %v7923_v6, 1  ;;  %v9150_v61 = vand.u32 15, %v7684_v51  ;;  %v2231_v10 = vpack.c.bf16 %v7734_v34, %v1978_v22  ;;  %v8267_v46 = vpack.c.bf16 %v2208_v45, %v2073_v7  ;;  %v6634_v7 = vld [vmem:[#allocation10 + $0x140] sm:$0xff]  }
 0x221   : > { %v2070_v33 = vsel %vm2050_vm12, %v9145_v16, %v9144_v59  ;;  %v9146_v50 = vmov %v9145_v16  ;;  %v9154_v20 = vmov %v9144_v59  ;;  %v2046_v51 = vrot.slane %v8145_v3, 1  ;;  %v9156_v59 = vld [vmem:[#allocation28_spill] sm:$0xff] }
 0x222   : > { %v2071_v8 = vsel %vm2050_vm12, %v9147_v42, %v9146_v50  ;;  %v2068_v21 = vsel %vm2050_vm12, %v9149_v58, %v9148_v48  ;;  %vm8261_vm5 = vcmp.le.s32.totalorder %v9150_v61, 14  ;;  %v2210_v53 = vmul.f32 %v7641_v9, %v2070_v33  ;;  %5796 = vmatprep.mubr.bf16.mxu0 %v2231_v10  ;;  %v9161_v33 = vld [vmem:[#allocation29_spill] sm:$0xff]  ;;  %v9167_v10 = vld [vmem:[#allocation30_spill] sm:$0xff]  ;;  %5939 = vmatpush3.bf16.msra.mxu1 %v6633_v38 }
 0x223   : > { %v9153_v14 = vmov %v9149_v58  ;;  %v2212_v16 = vmul.f32 %v9156_v59, %v2068_v21  ;;  %v9157_v34 = vrot.slane %v7962_v52, 1  ;;  %v9158_v22 = vrot.slane %v7919_v44, 1  ;;  %5797 = vmatmul.mubr.bf16.vlgmr.msra.gmra.mrb[36].mxu0 %v9164_v37  ;;  %5972 = vmatprep.subr.bf16.mxu1 %v6634_v7  ;;  %v6641_v38 = vld [vmem:[#allocation10 + $0x90] sm:$0xff]  }
 0x224   : > { %v2069_v29 = vsel %vm2050_vm12, %v9154_v20, %v9153_v14  ;;  %v9160_v6 = vmov %v9148_v48  ;;  %v1831_v28 = vrot.slane %v8181_v15, 7  ;;  %v8292_v45 = vpack.c.bf16 %v2210_v53, %v2071_v8 }
 0x225   : > { %v2066_v9 = vsel %vm2050_vm12, %v9158_v22, %v9157_v34  ;;  %v9159_v0 = vmov %v9158_v22  ;;  %v9162_v42 = vrot.slane %v7957_v1, 1  ;;  %v9163_v48 = vrot.slane %v7983_v47, 1 }
 0x226   : > { %v2067_v3 = vsel %vm2050_vm12, %v9160_v6, %v9159_v0  ;;  %v2214_v50 = vmul.f32 %v9161_v33, %v2066_v9  ;;  %v8302_v58 = vpack.c.bf16 %v2212_v16, %v2069_v29  ;;  %v9166_v61 = vmov %v9157_v34  ;;  %v9170_v29 = vld [vmem:[#allocation41_spill] sm:$0xff]  ;;  %v9171_v16 = vld [vmem:[#allocation55_spill] sm:$0xff] }
 0x227   : > { %v2064_v44 = vsel %vm2050_vm12, %v9163_v48, %v9162_v42  ;;  %v9165_v21 = vmov %v9163_v48  ;;  %v9168_v14 = vrot.slane %v8026_v5, 1  ;;  %v9169_v20 = vrot.slane %v7977_v43, 1  ;;  %5800 = vmatprep.mubr.bf16.mxu0 %v9170_v29  ;;  %5829 = vmatpush3.bf16.msra.mxu0 %v9171_v16  ;;  %v9174_v9 = vld [vmem:[#allocation31_spill] sm:$0xff] }
 0x228   : > { %v2065_v8 = vsel %vm2050_vm12, %v9166_v61, %v9165_v21  ;;  %v2216_v53 = vmul.f32 %v9167_v10, %v2064_v44  ;;  %v2048_v59 = vrot.slane %v8181_v15, 1  ;;  %v8320_v47 = vpack.c.bf16 %v2214_v50, %v2067_v3  ;;  %5830 = vmatprep.subr.bf16.mxu0 %v6640_v54  ;;  %v6635_v44 = vld [vmem:[#allocation10 + $0x148] sm:$0xff]   ;;  %v9179_v61 = vld [vmem:[#allocation32_spill] sm:$0xff]  ;;  %v9180_v10 = vld [vmem:[#allocation62_spill] sm:$0xff] }
 0x229   : > { %v2062_v12 = vsel %vm2050_vm12, %v9169_v20, %v9168_v14  ;;  %v9172_v52 = vmov %v9169_v20  ;;  %v9173_v34 = vmov %v9162_v42  ;;  %v2047_v6 = vrot.slane %v8160_v26, 1 }
 0x22a   : > { %v2063_v22 = vsel %vm2050_vm12, %v9173_v34, %v9172_v52  ;;  %v2218_v0 = vmul.f32 %v9174_v9, %v2062_v12  ;;  %v8330_v33 = vpack.c.bf16 %v2216_v53, %v2065_v8  ;;  %v9175_v42 = vrot.slane %v8015_v30, 1  ;;  %v9184_v12 = vld [vmem:[#allocation33_spill] sm:$0xff]  ;;  %v9185_v9 = vld [vmem:[#allocation39_spill] sm:$0xff] }
 0x22b   : > { %v9176_v3 = vrot.slane %v8039_v63, 1  ;;  %v9178_v50 = vmov %v9168_v14  ;;  %v9181_v53 = vrot.slane %v9180_v10, 1  ;;  %v2056_v52 = vsel %vm2050_vm12, %v2043_v23, %v2044_v13  ;;  %5941 = vmatmul.mubr.bf16.vlgmr.msra.gmra.mrb[16].mxu1 %v9185_v9  ;;  %5831 = vmatpush3.bf16.msra.mxu0 %v6640_v54 }
 0x22c   : > { %v8344_v21 = vpack.c.bf16 %v2218_v0, %v2063_v22  ;;  %v9183_v5 = vmov %v9175_v42  ;;  %v2057_v34 = vsel %vm2050_vm12, %v2042_v60, %v2043_v23  ;;  %v2054_v30 = vsel %vm2050_vm12, %v2045_v32, %v2046_v51  ;;  %5973 = vmatpush3.bf16.msra.mxu1 %v6634_v7  ;;  %5944 = vmatprep.mubr.bf16.mxu1 %v9187_v39 }
 0x22d   : > { %v2060_v43 = vsel %vm2050_vm12, %v9176_v3, %v9175_v42  ;;  %v9177_v1 = vmov %v9176_v3  ;;  %v2058_v14 = vsel %vm2050_vm12, %v9181_v53, %v2042_v60  ;;  %v9182_v63 = vmov %v9181_v53  ;;  %v9186_v42 = vld [vmem:[#allocation34_spill] sm:$0xff]  ;;  %v6643_v60 = vld [vmem:[#allocation10 + $0x98] sm:$0xff]   ;;  %5974 = vmatprep.subr.bf16.mxu1 %v6635_v44  ;;  %5832 = vmatprep.subr.bf16.mxu0 %v6641_v38 }
 0x22e   : > { %v2061_v48 = vsel %vm2050_vm12, %v9178_v50, %v9177_v1  ;;  %v2220_v8 = vmul.f32 %v9179_v61, %v2060_v43  ;;  %v2059_v20 = vsel %vm2050_vm12, %v9183_v5, %v9182_v63  ;;  %v2222_v16 = vmul.f32 %v9184_v12, %v2058_v14  ;;  %v9188_v43 = vld [vmem:[#allocation36_spill] sm:$0xff] }
 0x22f   : > { %v2049_v22 = vrot.slane %v8168_v57, 1  ;;  %v2224_v3 = vmul.f32 %v9186_v42, %v2056_v52  ;;  %v2055_v41 = vsel %vm2050_vm12, %v2044_v13, %v2045_v32  ;;  %v2226_v1 = vmul.f32 %v9188_v43, %v2054_v30  ;;  %v9190_v32 = vld [vmem:[#allocation38_spill] sm:$0xff]  ;;  %5833 = vmatpush3.bf16.msra.mxu0 %v6641_v38  ;;  %v9196_v12 = vld [vmem:[#allocation48_spill] sm:$0xff]  ;;  %v6642_v52 = vld [vmem:[#allocation10 + $0x168] sm:$0xff]  }
 0x230   : > { %v8378_v0 = vpack.c.bf16 %v2220_v8, %v2061_v48  ;;  %v8388_v23 = vpack.c.bf16 %v2222_v16, %v2059_v20  ;;  %v2052_v54 = vsel %vm2050_vm12, %v2047_v6, %v2048_v59  ;;  %v9189_v50 = vmov 0.0   ;;  %v9191_v8 = vld [vmem:[#allocation42_spill] sm:$0xff]  ;;  %5975 = vmatpush3.bf16.msra.mxu1 %v6635_v44  ;;  %5834 = vmatprep.subr.bf16.mxu0 %v6643_v60  ;;  %v9194_v20 = vld [vmem:[#allocation44_spill] sm:$0xff]  ;;  %v9195_v44 = vld [vmem:[#allocation43_spill] sm:$0xff] }
 0x231   : > { %v5300_v4 = vsel %vm8235_vm4, 1.0, %v9189_v50  ;;  %v8396_v48 = vpack.c.bf16 %v2224_v3, %v2057_v34  ;;  %v2053_v13 = vsel %vm2050_vm12, %v2046_v51, %v2047_v6  ;;  %v2228_v7 = vmul.f32 %v9190_v32, %v2052_v54  ;;  %5801 = vmatmul.mubr.bf16.gmra.mrb[40].mxu0 %v9191_v8  ;;  %5976 = vmatprep.subr.bf16.mxu1 %v6636_v62  ;;  %v9197_v16 = vld [vmem:[#allocation51_spill] sm:$0xff]  ;;  %v6647_v34 = vld [vmem:[#allocation10 + $0xb0] sm:$0xff]   ;;  %v9203_v54 = vld [vmem:[#allocation53_spill] sm:$0xff] }
 0x232   : > { %v5318_v61 = vsel %vm8261_vm5, 1.0, %v9189_v50  ;;  %v8405_v10 = vpack.c.bf16 %v2226_v1, %v2055_v41  ;;  %v8411_v31 = vsel %vm1833_vm11, %v1831_v28, %v1832_v2  ;;  %v1835_v51 = vsel %vm1833_vm11, %v1830_v18, %v1831_v28  ;;  %5804 = vmatprep.mubr.bf16.mxu0 %v9192_v55  ;;  %v6637_v2 = vld [vmem:[#allocation10 + $0x158] sm:$0xff]   ;;  %v6644_v28 = vld [vmem:[#allocation10 + $0xa0] sm:$0xff]   ;;  %v9198_v30 = vld [vmem:[#allocation50_spill] sm:$0xff] }
 0x233   : > { %v2266_v6 = vpack.c.bf16 %v8168_v57, %v8181_v15  ;;  %v8420_v53 = vpack.c.bf16 %v2228_v7, %v2053_v13  ;;  %v8422_v14 = vmul.f32 %v5300_v4, %v1835_v51  ;;  %v8426_v63 = vsel %vm2050_vm12, %v2048_v59, %v2049_v22  ;;  %5945 = vmatmul.mubr.bf16.gmra.mrb[20].mxu1 %v9194_v20  ;;  %v6649_v42 = vld [vmem:[#allocation10 + $0xb8] sm:$0xff]   ;;  %v6645_v3 = vld [vmem:[#allocation10 + $0x170] sm:$0xff]   ;;  %v9200_v41 = vld [vmem:[#allocation52_spill] sm:$0xff] }
 0x234   : > { %v9193_v26 = vrot.slane %v7686_v56, 1  ;;  %5835 = vmatpush3.bf16.msra.mxu0 %v6643_v60  ;;  %5948 = vmatprep.mubr.bf16.mxu1 %v9195_v44  ;;  %v6646_v56 = vld [vmem:[#allocation10 + $0xa8] sm:$0xff]   ;;  %v9201_v60 = vld [vmem:[#allocation58_spill] sm:$0xff]  ;;  %v6648_v43 = vld [vmem:[#allocation10 + $0x178] sm:$0xff]  }
 0x235   : > { %v2248_v38 = vpack.c.bf16 %v8411_v31, %v8422_v14  ;;  %5977 = vmatpush3.bf16.msra.mxu1 %v6636_v62  ;;  %5836 = vmatprep.subr.bf16.mxu0 %v6644_v28  ;;  %v9202_v1 = vld [vmem:[#allocation54_spill] sm:$0xff]  ;;  %v6650_v50 = vld [vmem:[#allocation10 + $0x180] sm:$0xff]   ;;  %v9204_v62 = vld [vmem:[#allocation57_spill] sm:$0xff] }
 0x236   : > { %v2086_v18 = vsel %vm2050_vm12, %v2049_v22, %v9193_v26  ;;  %5978 = vmatprep.subr.bf16.mxu1 %v6637_v2  ;;  %v9199_v22 = vld [vmem:[#allocation49_spill] sm:$0xff]  ;;  %v6682_v4 = vld [vmem:[#allocation10 + $0xc0] sm:$0xff]   ;;  %v9207_v7 = vld [vmem:[#allocation59_spill] sm:$0xff] }
 0x237   : > { %v8434_v5 = vmul.f32 %v5318_v61, %v2086_v18  ;;  %v9205_v13 = vld [vmem:[#allocation61_spill] sm:$0xff]  ;;  %v9206_v32 = vld [vmem:[#allocation60_spill] sm:$0xff]  ;;  %v9208_v61 = vld [vmem:[#allocation63_spill] sm:$0xff] }
 0x238   : > { %5837 = vmatpush3.bf16.msra.mxu0 %v6644_v28  ;;  %v9209_v51 = vld [vmem:[#allocation67_spill] sm:$0xff]  ;;  %v9210_v26 = vld [vmem:[#allocation65_spill] sm:$0xff]  ;;  %v9211_v18 = vld [vmem:[#allocation64_spill] sm:$0xff] }
 0x239   : > { %v2284_v59 = vpack.c.bf16 %v8434_v5, %v8426_v63  ;;  %5805 = vmatmul.mubr.bf16.gmra.mrb[44].mxu0 %v9196_v12  ;;  %5979 = vmatpush3.bf16.msra.mxu1 %v6637_v2  ;;  %v9212_v2 = vld [vmem:[#allocation68_spill] sm:$0xff]  ;;  %v9213_v28 = vld [vmem:[#allocation46_spill] sm:$0xff]  ;;  %v6675_v14 = vld [vmem:[#allocation11 + $0x8] sm:$0xff]  }
 0x23a   : > { %5808 = vmatprep.mubr.bf16.mxu0 %v9197_v16  ;;  %5838 = vmatprep.subr.bf16.mxu0 %v6646_v56  ;;  %v6674_v31 = vld [vmem:[#allocation11] sm:$0xff]  }
 0x23b   : > { %5980 = vmatprep.subr.bf16.mxu1 %v6639_v17  ;;  %5949 = vmatmul.mubr.bf16.gmra.mrb[24].mxu1 %v9198_v30 }
 0x23c   : > { %5839 = vmatpush3.bf16.msra.mxu0 %v6646_v56  ;;  %5952 = vmatprep.mubr.bf16.mxu1 %v9199_v22  ;;  %v9214_v56 = vld [vmem:[#allocation45_spill] sm:$0xff] }
 0x23d   : > { %5981 = vmatpush3.bf16.msra.mxu1 %v6639_v17  ;;  %5840 = vmatprep.subr.bf16.mxu0 %v6647_v34  ;;  %v9215_v17 = vpack.c.bf16 %v9213_v28, %v9214_v56  ;;  %v6684_v28 = vld [vmem:[#allocation10 + $0xd0] sm:$0xff]   ;;  %v6653_v56 = vld [vmem:[#allocation10 + $0x198] sm:$0xff]  }
 0x23e   : > { %5982 = vmatprep.subr.bf16.mxu1 %v6642_v52 }
 0x240   : > { %5841 = vmatpush3.bf16.msra.mxu0 %v6647_v34  ;;  %v9217_v34 = vld [vmem:[#allocation66_spill] sm:$0xff] }
 0x241   : > { %5809 = vmatmul.mubr.bf16.gmra.mrb[48].mxu0 %v9200_v41  ;;  %5983 = vmatpush3.bf16.msra.mxu1 %v6642_v52  ;;  %v9216_v52 = vld [vmem:[#allocation56_spill] sm:$0xff] }
 0x242   : > { %5812 = vmatprep.mubr.bf16.mxu0 %v9201_v60  ;;  %5842 = vmatprep.subr.bf16.mxu0 %v6649_v42 }
 0x243   : > { %5984 = vmatprep.subr.bf16.mxu1 %v6645_v3  ;;  %5953 = vmatmul.mubr.bf16.gmra.mrb[28].mxu1 %v9202_v1 }
 0x244   : > { %5843 = vmatpush3.bf16.msra.mxu0 %v6649_v42  ;;  %5956 = vmatprep.mubr.bf16.mxu1 %v9203_v54  ;;  %v6683_v42 = vld [vmem:[#allocation10 + $0xc8] sm:$0xff]  }
 0x245   : > { %5985 = vmatpush3.bf16.msra.mxu1 %v6645_v3  ;;  %5876 = vmatprep.subr.bf16.mxu0 %v6682_v4  ;;  %v6651_v3 = vld [vmem:[#allocation10 + $0x188] sm:$0xff]  }
 0x246   : > { %5986 = vmatprep.subr.bf16.mxu1 %v6648_v43 }
 0x249   : > { %5813 = vmatmul.mubr.bf16.gmra.mrb[52].mxu0 %v9204_v62  ;;  %5987 = vmatpush3.bf16.msra.mxu1 %v6648_v43  ;;  %v6652_v43 = vld [vmem:[#allocation10 + $0x190] sm:$0xff]  }
 0x24a   : > { %5816 = vmatprep.mubr.bf16.mxu0 %v9205_v13  ;;  %6020 = vmatprep.subr.bf16.mxu1 %v6650_v50 }
 0x24b   : > { %5957 = vmatmul.mubr.bf16.gmra.mrb[0].mxu1 %v9206_v32 }
 0x24c   : > { %5960 = vmatprep.mubr.bf16.mxu1 %v9207_v7 }
 0x251   : > { %5817 = vmatmul.mubr.bf16.gmra.mrb[56].mxu0 %v9208_v61 }
 0x252   : > { %5820 = vmatprep.mubr.bf16.mxu0 %v9209_v51 }
 0x253   : > { %5961 = vmatmul.mubr.bf16.gmra.mrb[4].mxu1 %v9210_v26 }
 0x254   : > { %5964 = vmatprep.mubr.bf16.mxu1 %v9211_v18 }
 0x259   : > { %5821 = vmatmul.mubr.bf16.gmra.mrb[60].mxu0 %v9212_v2 }
 0x25a   : > { %5824 = vmatprep.mubr.bf16.mxu0 %v8148_v36 }
 0x25b   : > { %5965 = vmatmul.mubr.bf16.gmra.mrb[8].mxu1 %v8119_v19 }
 0x25c   : > { %5968 = vmatprep.mubr.bf16.mxu1 %v8111_v25 }
 0x261   : > { %5825 = vmatmul.mubr.bf16.gmra.mrb[64].mxu0 %v8164_v40 }
 0x262   : > { %5844 = vmatprep.mubr.bf16.mxu0 %v9215_v17  ;;  %v6686_v17 = vld [vmem:[#allocation10 + $0xe0] sm:$0xff]  }
 0x263   : > { %5969 = vmatmul.mubr.bf16.gmra.mrb[12].mxu1 %v8179_v24 }
 0x264   : > { %5988 = vmatprep.mubr.bf16.mxu1 %v9216_v52 }
 0x269   : > { %5845 = vmatmul.mubr.bf16.vlgmr.msra.gmra.mrb[36].mxu0 %v9216_v52  ;;  %v6687_v52 = vld [vmem:[#allocation10 + $0xe8] sm:$0xff]  }
 0x26a   : > { %5848 = vmatprep.mubr.bf16.mxu0 %v9217_v34  ;;  %5877 = vmatpush3.bf16.msra.mxu0 %v6682_v4  ;;  %v6685_v4 = vld [vmem:[#allocation10 + $0xd8] sm:$0xff]  }
 0x26b   : > { %5878 = vmatprep.subr.bf16.mxu0 %v6683_v42  ;;  %5989 = vmatmul.mubr.bf16.vlgmr.msra.gmra.mrb[16].mxu1 %v9217_v34 }
 0x26c   : > { %6021 = vmatpush3.bf16.msra.mxu1 %v6650_v50  ;;  %5992 = vmatprep.mubr.bf16.mxu1 %v8170_v11  ;;  %v6654_v50 = vld [vmem:[#allocation10 + $0x1a0] sm:$0xff]  }
 0x26d   : > { %6022 = vmatprep.subr.bf16.mxu1 %v6651_v3 }
 0x26e   : > { %5879 = vmatpush3.bf16.msra.mxu0 %v6683_v42  ;;  %v6655_v42 = vld [vmem:[#allocation10 + $0x1a8] sm:$0xff]  }
 0x26f   : > { %5880 = vmatprep.subr.bf16.mxu0 %v6684_v28 }
 0x270   : > { %6023 = vmatpush3.bf16.msra.mxu1 %v6651_v3  ;;  %v6656_v3 = vld [vmem:[#allocation10 + $0x1b0] sm:$0xff]  }
 0x271   : > { %5849 = vmatmul.mubr.bf16.gmra.mrb[40].mxu0 %v8170_v11  ;;  %6024 = vmatprep.subr.bf16.mxu1 %v6652_v43 }
 0x272   : > { %5852 = vmatprep.mubr.bf16.mxu0 %v8224_v27  ;;  %5881 = vmatpush3.bf16.msra.mxu0 %v6684_v28  ;;  %v6689_v28 = vld [vmem:[#allocation10 + $0xf8] sm:$0xff]  }
 0x273   : > { %5882 = vmatprep.subr.bf16.mxu0 %v6685_v4  ;;  %5993 = vmatmul.mubr.bf16.gmra.mrb[20].mxu1 %v8224_v27 }
 0x274   : > { %5996 = vmatprep.mubr.bf16.mxu1 %v8239_v35  ;;  %6025 = vmatpush3.bf16.msra.mxu1 %v6652_v43  ;;  %v6688_v43 = vld [vmem:[#allocation10 + $0xf0] sm:$0xff]  }
 0x275   : > { %6026 = vmatprep.subr.bf16.mxu1 %v6653_v56 }
 0x276   : > { %5883 = vmatpush3.bf16.msra.mxu0 %v6685_v4  ;;  %v6657_v4 = vld [vmem:[#allocation10 + $0x1b8] sm:$0xff]  }
 0x277   : > { %5884 = vmatprep.subr.bf16.mxu0 %v6686_v17 }
 0x278   : > { %6027 = vmatpush3.bf16.msra.mxu1 %v6653_v56  ;;  %v6658_v56 = vld [vmem:[#allocation10 + $0x1c0] sm:$0xff]  }
 0x279   : > { %5853 = vmatmul.mubr.bf16.gmra.mrb[44].mxu0 %v8239_v35  ;;  %6028 = vmatprep.subr.bf16.mxu1 %v6654_v50 }
 0x27a   : > { %5856 = vmatprep.mubr.bf16.mxu0 %v8267_v46  ;;  %5885 = vmatpush3.bf16.msra.mxu0 %v6686_v17  ;;  %v6660_v17 = vld [vmem:[#allocation10 + $0x1d0] sm:$0xff]  }
 0x27b   : > { %5886 = vmatprep.subr.bf16.mxu0 %v6687_v52  ;;  %5997 = vmatmul.mubr.bf16.gmra.mrb[24].mxu1 %v8267_v46 }
 0x27c   : > { %6000 = vmatprep.mubr.bf16.mxu1 %v8292_v45  ;;  %6029 = vmatpush3.bf16.msra.mxu1 %v6654_v50  ;;  %v6659_v50 = vld [vmem:[#allocation10 + $0x1c8] sm:$0xff]  }
 0x27d   : > { %6030 = vmatprep.subr.bf16.mxu1 %v6655_v42 }
 0x27e   : > { %5887 = vmatpush3.bf16.msra.mxu0 %v6687_v52 }
 0x27f   : > { %5888 = vmatprep.subr.bf16.mxu0 %v6688_v43 }
 0x280   : > { %6031 = vmatpush3.bf16.msra.mxu1 %v6655_v42 }
 0x281   : > { %5857 = vmatmul.mubr.bf16.gmra.mrb[48].mxu0 %v8292_v45  ;;  %6032 = vmatprep.subr.bf16.mxu1 %v6656_v3 }
 0x282   : > { %5860 = vmatprep.mubr.bf16.mxu0 %v8302_v58  ;;  %5889 = vmatpush3.bf16.msra.mxu0 %v6688_v43 }
 0x283   : > { %5890 = vmatprep.subr.bf16.mxu0 %v6689_v28  ;;  %6001 = vmatmul.mubr.bf16.gmra.mrb[28].mxu1 %v8302_v58 }
 0x284   : > { %6004 = vmatprep.mubr.bf16.mxu1 %v8320_v47  ;;  %6033 = vmatpush3.bf16.msra.mxu1 %v6656_v3  ;;  %v8612_v3 = vld [vmem:[%s9219_s14] ss:$0 sm:$0xff] }
 0x285   : > { %6034 = vmatprep.subr.bf16.mxu1 %v6657_v4 }
 0x286   : > { %5891 = vmatpush3.bf16.msra.mxu0 %v6689_v28 }
 0x287   : > { %6164 = vmatprep.subr.bf16.mxu0 %v6674_v31 }
 0x288   : > { %6035 = vmatpush3.bf16.msra.mxu1 %v6657_v4 }
 0x289   : > { %5861 = vmatmul.mubr.bf16.gmra.mrb[52].mxu0 %v8320_v47  ;;  %6068 = vmatprep.subr.bf16.mxu1 %v6658_v56 }
 0x28a   : > { %5864 = vmatprep.mubr.bf16.mxu0 %v8330_v33 }
 0x28b   : > { %6005 = vmatmul.mubr.bf16.gmra.mrb[0].mxu1 %v8330_v33 }
 0x28c   : > { %6008 = vmatprep.mubr.bf16.mxu1 %v8344_v21 }
 0x291   : > { %5865 = vmatmul.mubr.bf16.gmra.mrb[56].mxu0 %v8344_v21 }
 0x292   : > { %5868 = vmatprep.mubr.bf16.mxu0 %v8378_v0 }
 0x293   : > { %6009 = vmatmul.mubr.bf16.gmra.mrb[4].mxu1 %v8378_v0 }
 0x294   : > { %6012 = vmatprep.mubr.bf16.mxu1 %v8388_v23 }
 0x299   : > { %5869 = vmatmul.mubr.bf16.gmra.mrb[60].mxu0 %v8388_v23 }
 0x29a   : > { %5872 = vmatprep.mubr.bf16.mxu0 %v8396_v48 }
 0x29b   : > { %6013 = vmatmul.mubr.bf16.gmra.mrb[8].mxu1 %v8396_v48 }
 0x29c   : > { %6016 = vmatprep.mubr.bf16.mxu1 %v8405_v10 }
 0x2a1   : > { %5873 = vmatmul.mubr.bf16.gmra.mrb[64].mxu0 %v8405_v10 }
 0x2a2   : > { %5892 = vmatprep.mubr.bf16.mxu0 %v9164_v37  ;;  %v6661_v37 = vld [vmem:[#allocation10 + $0x1d8] sm:$0xff]  }
 0x2a3   : > { %6017 = vmatmul.mubr.bf16.gmra.mrb[12].mxu1 %v8420_v53 }
 0x2a4   : > { %6036 = vmatprep.mubr.bf16.mxu1 %v9170_v29 }
 0x2a9   : > { %5893 = vmatmul.mubr.bf16.vlgmr.msra.gmra.mrb[36].mxu0 %v9170_v29  ;;  %v6662_v29 = vld [vmem:[#allocation10 + $0x1e0] sm:$0xff]  }
 0x2aa   : > { %5896 = vmatprep.mubr.bf16.mxu0 %v9191_v8  ;;  %6165 = vmatpush3.bf16.msra.mxu0 %v6674_v31 }
 0x2ab   : > { %6037 = vmatmul.mubr.bf16.vlgmr.msra.gmra.mrb[16].mxu1 %v9191_v8  ;;  %v6663_v8 = vld [vmem:[#allocation10 + $0x1e8] sm:$0xff]   ;;  %6166 = vmatprep.subr.bf16.mxu0 %v6675_v14 }
 0x2ac   : > { %6069 = vmatpush3.bf16.msra.mxu1 %v6658_v56  ;;  %6040 = vmatprep.mubr.bf16.mxu1 %v9192_v55 }
 0x2ad   : > { %6070 = vmatprep.subr.bf16.mxu1 %v6659_v50 }
 0x2ae   : > { %6167 = vmatpush3.bf16.msra.mxu0 %v6675_v14 }
 0x2b0   : > { %6071 = vmatpush3.bf16.msra.mxu1 %v6659_v50 }
 0x2b1   : > { %5897 = vmatmul.mubr.bf16.gmra.mrb[40].mxu0 %v9192_v55  ;;  %6072 = vmatprep.subr.bf16.mxu1 %v6660_v17  ;;  %v6664_v55 = vld [vmem:[#allocation10 + $0x1f0] sm:$0xff]  }
 0x2b2   : > { %5900 = vmatprep.mubr.bf16.mxu0 %v9196_v12 }
 0x2b3   : > { %6041 = vmatmul.mubr.bf16.gmra.mrb[20].mxu1 %v9196_v12  ;;  %v6665_v12 = vld [vmem:[#allocation10 + $0x1f8] sm:$0xff]  }
 0x2b4   : > { %6044 = vmatprep.mubr.bf16.mxu1 %v9197_v16  ;;  %6073 = vmatpush3.bf16.msra.mxu1 %v6660_v17 }
 0x2b5   : > { %6074 = vmatprep.subr.bf16.mxu1 %v6661_v37 }
 0x2b8   : > { %6075 = vmatpush3.bf16.msra.mxu1 %v6661_v37 }
 0x2b9   : > { %5901 = vmatmul.mubr.bf16.gmra.mrb[44].mxu0 %v9197_v16  ;;  %6076 = vmatprep.subr.bf16.mxu1 %v6662_v29  ;;  %v6666_v16 = vld [vmem:[#allocation10 + $0x200] sm:$0xff]  }
 0x2ba   : > { %5904 = vmatprep.mubr.bf16.mxu0 %v9200_v41 }
 0x2bb   : > { %6045 = vmatmul.mubr.bf16.gmra.mrb[24].mxu1 %v9200_v41  ;;  %v6667_v41 = vld [vmem:[#allocation10 + $0x208] sm:$0xff]  }
 0x2bc   : > { %6048 = vmatprep.mubr.bf16.mxu1 %v9201_v60  ;;  %6077 = vmatpush3.bf16.msra.mxu1 %v6662_v29 }
 0x2bd   : > { %6078 = vmatprep.subr.bf16.mxu1 %v6663_v8 }
 0x2c0   : > { %6079 = vmatpush3.bf16.msra.mxu1 %v6663_v8 }
 0x2c1   : > { %5905 = vmatmul.mubr.bf16.gmra.mrb[48].mxu0 %v9201_v60  ;;  %6080 = vmatprep.subr.bf16.mxu1 %v6664_v55  ;;  %v6668_v60 = vld [vmem:[#allocation10 + $0x210] sm:$0xff]  }
 0x2c3   : > { %6049 = vmatmul.mubr.bf16.gmra.mrb[28].mxu1 %v9204_v62 }
 0x2c4   : > { %6052 = vmatprep.mubr.bf16.mxu1 %v9205_v13  ;;  %6081 = vmatpush3.bf16.msra.mxu1 %v6664_v55 }
 0x2c5   : > { %6082 = vmatprep.subr.bf16.mxu1 %v6665_v12 }
 0x2c8   : > { %6083 = vmatpush3.bf16.msra.mxu1 %v6665_v12 }
 0x2c9   : > { %6116 = vmatprep.subr.bf16.mxu1 %v6666_v16 }
 0x2cb   : > { %6053 = vmatmul.mubr.bf16.gmra.mrb[0].mxu1 %v9208_v61 }
 0x2cc   : > { %6056 = vmatprep.mubr.bf16.mxu1 %v9209_v51 }
 0x2d3   : > { %6057 = vmatmul.mubr.bf16.gmra.mrb[4].mxu1 %v9212_v2 }
 0x2d4   : > { %6060 = vmatprep.mubr.bf16.mxu1 %v8148_v36  ;;  %v6669_v36 = vld [vmem:[#allocation10 + $0x218] sm:$0xff]  }
 0x2db   : > { %6061 = vmatmul.mubr.bf16.gmra.mrb[8].mxu1 %v8164_v40  ;;  %v6670_v40 = vld [vmem:[#allocation10 + $0x220] sm:$0xff]  }
 0x2dc   : > { %6064 = vmatprep.mubr.bf16.mxu1 %v8208_v49  ;;  %v6671_v49 = vld [vmem:[#allocation10 + $0x228] sm:$0xff]  }
 0x2e3   : > { %6065 = vmatmul.mubr.bf16.gmra.mrb[12].mxu1 %v2248_v38  ;;  %v6676_v38 = vld [vmem:[#allocation11 + $0x10] sm:$0xff]  }
 0x2e4   : > { %6084 = vmatprep.mubr.bf16.mxu1 %v9185_v9  ;;  %v6672_v9 = vld [vmem:[#allocation10 + $0x230] sm:$0xff]   ;;  %6168 = vmatprep.subr.bf16.mxu0 %v6676_v38 }
 0x2e5   : > { %6169 = vmatpush3.bf16.msra.mxu0 %v6676_v38 }
 0x2eb   : > { %6085 = vmatmul.mubr.bf16.vlgmr.msra.gmra.mrb[16].mxu1 %v9187_v39  ;;  %v6673_v39 = vld [vmem:[#allocation10 + $0x238] sm:$0xff]  }
 0x2ec   : > { %6117 = vmatpush3.bf16.msra.mxu1 %v6666_v16  ;;  %6088 = vmatprep.mubr.bf16.mxu1 %v9194_v20  ;;  %v6677_v20 = vld [vmem:[#allocation11 + $0x18] sm:$0xff]  }
 0x2ed   : > { %6118 = vmatprep.subr.bf16.mxu1 %v6667_v41  ;;  %6170 = vmatprep.subr.bf16.mxu0 %v6677_v20 }
 0x2ee   : > { %6171 = vmatpush3.bf16.msra.mxu0 %v6677_v20 }
 0x2f0   : > { %6119 = vmatpush3.bf16.msra.mxu1 %v6667_v41 }
 0x2f1   : > { %6120 = vmatprep.subr.bf16.mxu1 %v6668_v60 }
 0x2f3   : > { %6089 = vmatmul.mubr.bf16.gmra.mrb[20].mxu1 %v9195_v44  ;;  %v6678_v44 = vld [vmem:[#allocation11 + $0x20] sm:$0xff]  }
 0x2f4   : > { %6092 = vmatprep.mubr.bf16.mxu1 %v9198_v30  ;;  %6121 = vmatpush3.bf16.msra.mxu1 %v6668_v60 }
 0x2f5   : > { %6122 = vmatprep.subr.bf16.mxu1 %v6669_v36  ;;  %6172 = vmatprep.subr.bf16.mxu0 %v6678_v44 }
 0x2f6   : > { %6173 = vmatpush3.bf16.msra.mxu0 %v6678_v44 }
 0x2f8   : > { %6123 = vmatpush3.bf16.msra.mxu1 %v6669_v36 }
 0x2f9   : > { %6124 = vmatprep.subr.bf16.mxu1 %v6670_v40 }
 0x2fb   : > { %6093 = vmatmul.mubr.bf16.gmra.mrb[24].mxu1 %v9199_v22 }
 0x2fc   : > { %6096 = vmatprep.mubr.bf16.mxu1 %v9202_v1  ;;  %6125 = vmatpush3.bf16.msra.mxu1 %v6670_v40  ;;  %v6679_v1 = vld [vmem:[#allocation11 + $0x28] sm:$0xff]  }
 0x2fd   : > { %6126 = vmatprep.subr.bf16.mxu1 %v6671_v49  ;;  %6174 = vmatprep.subr.bf16.mxu0 %v6679_v1 }
 0x2fe   : > { %6175 = vmatpush3.bf16.msra.mxu0 %v6679_v1 }
 0x300   : > { %6127 = vmatpush3.bf16.msra.mxu1 %v6671_v49 }
 0x301   : > { %6128 = vmatprep.subr.bf16.mxu1 %v6672_v9 }
 0x303   : > { %6097 = vmatmul.mubr.bf16.gmra.mrb[28].mxu1 %v9203_v54  ;;  %v6680_v54 = vld [vmem:[#allocation11 + $0x30] sm:$0xff]  }
 0x304   : > { %6100 = vmatprep.mubr.bf16.mxu1 %v9206_v32  ;;  %6129 = vmatpush3.bf16.msra.mxu1 %v6672_v9 }
 0x305   : > { %6130 = vmatprep.subr.bf16.mxu1 %v6673_v39  ;;  %6176 = vmatprep.subr.bf16.mxu0 %v6680_v54 }
 0x306   : > { %6177 = vmatpush3.bf16.msra.mxu0 %v6680_v54 }
 0x308   : > { %6131 = vmatpush3.bf16.msra.mxu1 %v6673_v39 }
 0x30b   : > { %6101 = vmatmul.mubr.bf16.gmra.mrb[0].mxu1 %v9207_v7  ;;  %v6681_v7 = vld [vmem:[#allocation11 + $0x38] sm:$0xff]  }
 0x30c   : > { %6104 = vmatprep.mubr.bf16.mxu1 %v9210_v26  ;;  %6178 = vmatprep.subr.bf16.mxu0 %v6681_v7 }
 0x30d   : > { %6179 = vmatpush3.bf16.msra.mxu0 %v6681_v7 }
 0x313   : > { %6105 = vmatmul.mubr.bf16.gmra.mrb[4].mxu1 %v9211_v18 }
 0x314   : > { %6108 = vmatprep.mubr.bf16.mxu1 %v8119_v19 }
 0x31b   : > { %6109 = vmatmul.mubr.bf16.gmra.mrb[8].mxu1 %v8111_v25 }
 0x31c   : > { %6112 = vmatprep.mubr.bf16.mxu1 %v8179_v24 }
 0x323   : > { %6113 = vmatmul.mubr.bf16.gmra.mrb[12].mxu1 %v2266_v6 }
 0x324   : > { %6132 = vmatprep.mubr.bf16.mxu1 %v9217_v34  ;;  %v8607_v34 = vld [vmem:[%s9218_s7] ss:$0 sm:$0xff] }
 0x32b   : > { %6133 = vmatmul.mubr.bf16.vlgmr.msra.gmra.mrb[16].mxu1 %v8170_v11 }
 0x32c   : > { %6136 = vmatprep.mubr.bf16.mxu1 %v8224_v27 }
 0x333   : > { %6137 = vmatmul.mubr.bf16.gmra.mrb[20].mxu1 %v8239_v35 }
 0x334   : > { %6140 = vmatprep.mubr.bf16.mxu1 %v8267_v46 }
 0x33b   : > { %6141 = vmatmul.mubr.bf16.gmra.mrb[24].mxu1 %v8292_v45 }
 0x33c   : > { %6144 = vmatprep.mubr.bf16.mxu1 %v8302_v58 }
 0x343   : > { %6145 = vmatmul.mubr.bf16.gmra.mrb[28].mxu1 %v8320_v47 }
 0x344   : > { %6148 = vmatprep.mubr.bf16.mxu1 %v8330_v33 }
 0x34b   : > { %6149 = vmatmul.mubr.bf16.gmra.mrb[0].mxu1 %v8344_v21 }
 0x34c   : > { %6152 = vmatprep.mubr.bf16.mxu1 %v8378_v0 }
 0x353   : > { %6153 = vmatmul.mubr.bf16.gmra.mrb[4].mxu1 %v8388_v23 }
 0x354   : > { %6156 = vmatprep.mubr.bf16.mxu1 %v8396_v48 }
 0x35b   : > { %6157 = vmatmul.mubr.bf16.gmra.mrb[8].mxu1 %v8405_v10 }
 0x35c   : > { %v8553_v25 = vpop.f32.mrb[52].mxu0  ;;  %6160 = vmatprep.mubr.bf16.mxu1 %v8420_v53 }
 0x35d   : > { %v8555_v19 = vpop.f32.mrb[53].mxu0 }
 0x35e   : > { %v8558_v57 = vpop.f32.mrb[54].mxu0 }
 0x35f   : > { %v8561_v11 = vpop.f32.mrb[55].mxu0 }
 0x363   : > { %6161 = vmatmul.mubr.bf16.gmra.mrb[12].mxu1 %v2284_v59 }
 0x364   : > { %v8563_v24 = vpop.f32.mrb[56].mxu0 }
 0x365   : > { %v8565_v15 = vpop.f32.mrb[57].mxu0 }
 0x366   : > { %v8570_v27 = vpop.f32.mrb[58].mxu0 }
 0x367   : > { %v8572_v35 = vpop.f32.mrb[59].mxu0 }
 0x36c   : > { %v8574_v46 = vpop.f32.mrb[60].mxu0 }
 0x36d   : > { %v8576_v45 = vpop.f32.mrb[61].mxu0 }
 0x36e   : > { %v8578_v58 = vpop.f32.mrb[62].mxu0 }
 0x36f   : > { %v8580_v47 = vpop.f32.mrb[63].mxu0 }
 0x374   : > { %v8582_v33 = vpop.f32.mrb[64].mxu0 }
 0x375   : > { %v8584_v21 = vpop.f32.mrb[65].mxu0 }
 0x376   : > { %v8586_v0 = vpop.f32.mrb[66].mxu0 }
 0x377   : > { %v8588_v23 = vpop.f32.mrb[67].mxu0 }
 0x37c   : > { %v5894_v48 = vpop.f32.mrb[36].mxu0 }
 0x37d   : > { %v3093_v10 = vpop.f32.mrb[37].mxu0 }
 0x37e   : > { %v5895_v6 = vpop.f32.mrb[38].mxu0 }
 0x37f   : > { %v3096_v53 = vpop.f32.mrb[39].mxu0 }
 0x384   : > { %v5898_v63 = vpop.f32.mrb[40].mxu0 }
 0x385   : > { %v3109_v5 = vpop.f32.mrb[41].mxu0 }
 0x386   : > { %v5899_v59 = vpop.f32.mrb[42].mxu0 }
 0x387   : > { %v3112_v30 = vpop.f32.mrb[43].mxu0 }
 0x38c   : > { %v5902_v22 = vpop.f32.mrb[44].mxu0 }
 0x38d   : > { %v8590_v62 = vpop.f32.mrb[45].mxu0 }
 0x38e   : > { %v8592_v13 = vpop.f32.mrb[46].mxu0 }
 0x38f   : > { %v8594_v32 = vpop.f32.mrb[47].mxu0 }
 0x394   : > { %v8596_v61 = vpop.f32.mrb[48].mxu0 }
 0x395   : > { %v8598_v51 = vpop.f32.mrb[49].mxu0 }
 0x396   : > { %v8600_v26 = vpop.f32.mrb[50].mxu0 }
 0x397   : > { %v8602_v18 = vpop.f32.mrb[51].mxu0 }
 0x3fe   : > { %v6134_v2 = vpop.f32.mrb[16].mxu1 }
 0x3ff   : > { %v6228_v52 = vadd.f32 %v6134_v2, %v5894_v48  ;;  %v4383_v42 = vpop.f32.mrb[17].mxu1 }
 0x400   : > { %v6229_v43 = vadd.f32 %v4383_v42, %v3093_v10  ;;  %v6135_v28 = vpop.f32.mrb[18].mxu1 }
 0x401   : > { %v4551_v4 = vmul.f32 %v6228_v52, %v8607_v34  ;;  %v6230_v56 = vadd.f32 %v6135_v28, %v5895_v6  ;;  %v4386_v50 = vpop.f32.mrb[19].mxu1 }
 0x402   : > { %v4549_v17 = vmul.f32 %v6229_v43, %v8607_v34  ;;  %v6231_v37 = vadd.f32 %v4386_v50, %v3096_v53 }
 0x403   : > { %v4590_v29 = vadd.f32 %v8612_v3, %v4551_v4  ;;  %v4552_v8 = vmul.f32 %v6230_v56, %v8607_v34 }
 0x404   : > { %v4588_v55 = vadd.f32 %v8612_v3, %v4549_v17  ;;  %v4550_v12 = vmul.f32 %v6231_v37, %v8607_v34 }
 0x405   : > { %v4591_v16 = vadd.f32 %v8612_v3, %v4552_v8  ;;  %v4622_v36 = vmax.f32 %v4590_v29, 0.0 }
 0x406   : > { %v4589_v41 = vadd.f32 %v8612_v3, %v4550_v12  ;;  %v6138_v60 = vpop.f32.mrb[20].mxu1  ;;  %v4620_v39 = vmax.f32 %v4588_v55, 0.0 }
 0x407   : > { %v4623_v40 = vmax.f32 %v4591_v16, 0.0  ;;  %v6232_v49 = vadd.f32 %v6138_v60, %v5898_v63  ;;  %v4399_v9 = vpop.f32.mrb[21].mxu1 }
 0x408   : > { %v4621_v31 = vmax.f32 %v4589_v41, 0.0  ;;  %v6233_v14 = vadd.f32 %v4399_v9, %v3109_v5  ;;  %v6139_v38 = vpop.f32.mrb[22].mxu1 }
 0x409   : > { %v4653_v20 = vpack.c.bf16 %v4623_v40, %v4622_v36  ;;  %v4555_v44 = vmul.f32 %v6232_v49, %v8607_v34  ;;  %v6234_v48 = vadd.f32 %v6139_v38, %v5899_v59  ;;  %v4402_v10 = vpop.f32.mrb[23].mxu1 }
 0x40a   : > { %v4553_v6 = vmul.f32 %v6233_v14, %v8607_v34  ;;  %v6235_v53 = vadd.f32 %v4402_v10, %v3112_v30  ;;  %v4652_v1 = vpack.c.bf16 %v4621_v31, %v4620_v39 }
 0x40b   : > { %v4594_v54 = vadd.f32 %v8612_v3, %v4555_v44  ;;  %v4556_v7 = vmul.f32 %v6234_v48, %v8607_v34 }
 0x40c   : > { %v4592_v63 = vadd.f32 %v8612_v3, %v4553_v6  ;;  %v4554_v2 = vmul.f32 %v6235_v53, %v8607_v34  ;;  %6180 = vmatprep.mubr.bf16.mxu0 %v4652_v1 }
 0x40d   : > { %v4595_v5 = vadd.f32 %v8612_v3, %v4556_v7  ;;  %6181 = vmatmul.mubr.bf16.vlgmr.msra.gmra.mrb[68].mxu0 %v4653_v20  ;;  %v4626_v42 = vmax.f32 %v4594_v54, 0.0 }
 0x40e   : > { %v4593_v52 = vadd.f32 %v8612_v3, %v4554_v2  ;;  %v6142_v59 = vpop.f32.mrb[24].mxu1  ;;  %v4624_v4 = vmax.f32 %v4592_v63, 0.0 }
 0x40f   : > { %v4627_v43 = vmax.f32 %v4595_v5, 0.0  ;;  %v6236_v28 = vadd.f32 %v6142_v59, %v5902_v22  ;;  %v4415_v30 = vpop.f32.mrb[25].mxu1 }
 0x410   : > { %v4625_v56 = vmax.f32 %v4593_v52, 0.0  ;;  %v6237_v50 = vadd.f32 %v4415_v30, %v8590_v62  ;;  %v6143_v17 = vpop.f32.mrb[26].mxu1 }
 0x411   : > { %v4559_v37 = vmul.f32 %v6236_v28, %v8607_v34  ;;  %v6238_v29 = vadd.f32 %v6143_v17, %v8592_v13  ;;  %v4418_v8 = vpop.f32.mrb[27].mxu1  ;;  %v4655_v55 = vpack.c.bf16 %v4627_v43, %v4626_v42 }
 0x412   : > { %v4557_v12 = vmul.f32 %v6237_v50, %v8607_v34  ;;  %v6239_v16 = vadd.f32 %v4418_v8, %v8594_v32  ;;  %v4654_v41 = vpack.c.bf16 %v4625_v56, %v4624_v4 }
 0x413   : > { %v4598_v60 = vadd.f32 %v8612_v3, %v4559_v37  ;;  %v4560_v22 = vmul.f32 %v6238_v29, %v8607_v34 }
 0x414   : > { %v4596_v36 = vadd.f32 %v8612_v3, %v4557_v12  ;;  %v4558_v62 = vmul.f32 %v6239_v16, %v8607_v34  ;;  %6184 = vmatprep.mubr.bf16.mxu0 %v4654_v41 }
 0x415   : > { %v4599_v40 = vadd.f32 %v8612_v3, %v4560_v22  ;;  %6185 = vmatmul.mubr.bf16.gmra.mrb[72].mxu0 %v4655_v55  ;;  %v4630_v9 = vmax.f32 %v4598_v60, 0.0 }
 0x416   : > { %v4597_v13 = vadd.f32 %v8612_v3, %v4558_v62  ;;  %v6146_v49 = vpop.f32.mrb[28].mxu1  ;;  %v4628_v14 = vmax.f32 %v4596_v36, 0.0 }
 0x417   : > { %v4631_v39 = vmax.f32 %v4599_v40, 0.0  ;;  %v6240_v32 = vadd.f32 %v6146_v49, %v8596_v61  ;;  %v4431_v31 = vpop.f32.mrb[29].mxu1 }
 0x418   : > { %v4629_v38 = vmax.f32 %v4597_v13, 0.0  ;;  %v6241_v20 = vadd.f32 %v4431_v31, %v8598_v51  ;;  %v6147_v44 = vpop.f32.mrb[30].mxu1 }
 0x419   : > { %v4563_v48 = vmul.f32 %v6240_v32, %v8607_v34  ;;  %v6242_v10 = vadd.f32 %v6147_v44, %v8600_v26  ;;  %v4434_v6 = vpop.f32.mrb[31].mxu1  ;;  %v4657_v53 = vpack.c.bf16 %v4631_v39, %v4630_v9 }
 0x41a   : > { %v4561_v1 = vmul.f32 %v6241_v20, %v8607_v34  ;;  %v6243_v54 = vadd.f32 %v4434_v6, %v8602_v18  ;;  %v4656_v7 = vpack.c.bf16 %v4629_v38, %v4628_v14 }
 0x41b   : > { %v4602_v63 = vadd.f32 %v8612_v3, %v4563_v48  ;;  %v4564_v61 = vmul.f32 %v6242_v10, %v8607_v34 }
 0x41c   : > { %v4600_v2 = vadd.f32 %v8612_v3, %v4561_v1  ;;  %v4562_v51 = vmul.f32 %v6243_v54, %v8607_v34  ;;  %6188 = vmatprep.mubr.bf16.mxu0 %v4656_v7 }
 0x41d   : > { %v4603_v5 = vadd.f32 %v8612_v3, %v4564_v61  ;;  %6189 = vmatmul.mubr.bf16.gmra.mrb[76].mxu0 %v4657_v53  ;;  %v4634_v59 = vmax.f32 %v4602_v63, 0.0 }
 0x41e   : > { %v4601_v26 = vadd.f32 %v8612_v3, %v4562_v51  ;;  %v6150_v52 = vpop.f32.mrb[0].mxu1  ;;  %v4632_v28 = vmax.f32 %v4600_v2, 0.0 }
 0x41f   : > { %v4635_v42 = vmax.f32 %v4603_v5, 0.0  ;;  %v6244_v18 = vadd.f32 %v6150_v52, %v8553_v25  ;;  %v4447_v43 = vpop.f32.mrb[1].mxu1 }
 0x420   : > { %v4633_v30 = vmax.f32 %v4601_v26, 0.0  ;;  %v6245_v4 = vadd.f32 %v4447_v43, %v8555_v19  ;;  %v6151_v56 = vpop.f32.mrb[2].mxu1 }
 0x421   : > { %v4567_v50 = vmul.f32 %v6244_v18, %v8607_v34  ;;  %v6246_v17 = vadd.f32 %v6151_v56, %v8558_v57  ;;  %v4450_v37 = vpop.f32.mrb[3].mxu1  ;;  %v4659_v29 = vpack.c.bf16 %v4635_v42, %v4634_v59 }
 0x422   : > { %v4565_v8 = vmul.f32 %v6245_v4, %v8607_v34  ;;  %v6247_v55 = vadd.f32 %v4450_v37, %v8561_v11  ;;  %v4658_v12 = vpack.c.bf16 %v4633_v30, %v4632_v28 }
 0x423   : > { %v4606_v16 = vadd.f32 %v8612_v3, %v4567_v50  ;;  %v4568_v25 = vmul.f32 %v6246_v17, %v8607_v34 }
 0x424   : > { %v4604_v41 = vadd.f32 %v8612_v3, %v4565_v8  ;;  %v4566_v19 = vmul.f32 %v6247_v55, %v8607_v34  ;;  %6192 = vmatprep.mubr.bf16.mxu0 %v4658_v12 }
 0x425   : > { %v4607_v60 = vadd.f32 %v8612_v3, %v4568_v25  ;;  %6193 = vmatmul.mubr.bf16.gmra.mrb[80].mxu0 %v4659_v29  ;;  %v4638_v36 = vmax.f32 %v4606_v16, 0.0 }
 0x426   : > { %v4605_v57 = vadd.f32 %v8612_v3, %v4566_v19  ;;  %v6154_v22 = vpop.f32.mrb[4].mxu1  ;;  %v4636_v13 = vmax.f32 %v4604_v41, 0.0 }
 0x427   : > { %v4639_v62 = vmax.f32 %v4607_v60, 0.0  ;;  %v6248_v11 = vadd.f32 %v6154_v22, %v8563_v24  ;;  %v4463_v40 = vpop.f32.mrb[5].mxu1 }
 0x428   : > { %v4637_v49 = vmax.f32 %v4605_v57, 0.0  ;;  %v6249_v9 = vadd.f32 %v4463_v40, %v8565_v15  ;;  %v6155_v39 = vpop.f32.mrb[6].mxu1 }
 0x429   : > { %v4571_v32 = vmul.f32 %v6248_v11, %v8607_v34  ;;  %v6250_v31 = vadd.f32 %v6155_v39, %v8570_v27  ;;  %v4466_v14 = vpop.f32.mrb[7].mxu1  ;;  %v4661_v38 = vpack.c.bf16 %v4639_v62, %v4638_v36 }
 0x42a   : > { %v4569_v20 = vmul.f32 %v6249_v9, %v8607_v34  ;;  %v6251_v44 = vadd.f32 %v4466_v14, %v8572_v35  ;;  %v4660_v48 = vpack.c.bf16 %v4637_v49, %v4636_v13 }
 0x42b   : > { %v4610_v10 = vadd.f32 %v8612_v3, %v4571_v32  ;;  %v4572_v24 = vmul.f32 %v6250_v31, %v8607_v34 }
 0x42c   : > { %v4608_v6 = vadd.f32 %v8612_v3, %v4569_v20  ;;  %v4570_v15 = vmul.f32 %v6251_v44, %v8607_v34  ;;  %6196 = vmatprep.mubr.bf16.mxu0 %v4660_v48 }
 0x42d   : > { %v4611_v53 = vadd.f32 %v8612_v3, %v4572_v24  ;;  %6197 = vmatmul.mubr.bf16.gmra.mrb[84].mxu0 %v4661_v38  ;;  %v4642_v54 = vmax.f32 %v4610_v10, 0.0 }
 0x42e   : > { %v4609_v27 = vadd.f32 %v8612_v3, %v4570_v15  ;;  %v6158_v1 = vpop.f32.mrb[8].mxu1  ;;  %v4640_v61 = vmax.f32 %v4608_v6, 0.0 }
 0x42f   : > { %v4643_v7 = vmax.f32 %v4611_v53, 0.0  ;;  %v6252_v35 = vadd.f32 %v6158_v1, %v8574_v46  ;;  %v4479_v63 = vpop.f32.mrb[9].mxu1  ;;  %v6690_v53 = vld [vmem:[%s7386_s8 + $0x10] sm:$0xff] }
 0x430   : > { %v4641_v2 = vmax.f32 %v4609_v27, 0.0  ;;  %v6253_v51 = vadd.f32 %v4479_v63, %v8576_v45  ;;  %v6159_v5 = vpop.f32.mrb[10].mxu1 }
 0x431   : > { %v4575_v26 = vmul.f32 %v6252_v35, %v8607_v34  ;;  %v6254_v52 = vadd.f32 %v6159_v5, %v8578_v58  ;;  %v4482_v59 = vpop.f32.mrb[11].mxu1  ;;  %v4663_v42 = vpack.c.bf16 %v4643_v7, %v4642_v54  ;;  %v6691_v54 = vld [vmem:[%s7386_s8] sm:$0xff]  ;;  %v6693_v5 = vld [vmem:[%s7386_s8 + $0x8] sm:$0xff] }
 0x432   : > { %v4573_v18 = vmul.f32 %v6253_v51, %v8607_v34  ;;  %v6255_v43 = vadd.f32 %v4482_v59, %v8580_v47  ;;  %v4662_v28 = vpack.c.bf16 %v4641_v2, %v4640_v61  ;;  %v6692_v61 = vld [vmem:[%s7386_s8 + $0x18] sm:$0xff] }
 0x433   : > { %v4614_v30 = vadd.f32 %v8612_v3, %v4575_v26  ;;  %v4576_v46 = vmul.f32 %v6254_v52, %v8607_v34 }
 0x434   : > { %v4612_v4 = vadd.f32 %v8612_v3, %v4573_v18  ;;  %v4574_v45 = vmul.f32 %v6255_v43, %v8607_v34  ;;  %6200 = vmatprep.mubr.bf16.mxu0 %v4662_v28 }
 0x435   : > { %v4615_v56 = vadd.f32 %v8612_v3, %v4576_v46  ;;  %6201 = vmatmul.mubr.bf16.gmra.mrb[88].mxu0 %v4663_v42  ;;  %v4646_v17 = vmax.f32 %v4614_v30, 0.0 }
 0x436   : > { %v4613_v58 = vadd.f32 %v8612_v3, %v4574_v45  ;;  %v6162_v50 = vpop.f32.mrb[12].mxu1  ;;  %v4644_v8 = vmax.f32 %v4612_v4, 0.0 }
 0x437   : > { %v4647_v37 = vmax.f32 %v4615_v56, 0.0  ;;  %v6256_v47 = vadd.f32 %v6162_v50, %v8582_v33  ;;  %v4495_v29 = vpop.f32.mrb[13].mxu1  ;;  %v6694_v50 = vld [vmem:[%s7386_s8 + $0x30] sm:$0xff] }
 0x438   : > { %v4645_v55 = vmax.f32 %v4613_v58, 0.0  ;;  %v6257_v12 = vadd.f32 %v4495_v29, %v8584_v21  ;;  %v6163_v16 = vpop.f32.mrb[14].mxu1 }
 0x439   : > { %v4579_v25 = vmul.f32 %v6256_v47, %v8607_v34  ;;  %v6258_v41 = vadd.f32 %v6163_v16, %v8586_v0  ;;  %v4498_v19 = vpop.f32.mrb[15].mxu1  ;;  %v4665_v60 = vpack.c.bf16 %v4647_v37, %v4646_v17  ;;  %v6695_v47 = vld [vmem:[%s7386_s8 + $0x20] sm:$0xff] }
 0x43a   : > { %v4577_v57 = vmul.f32 %v6257_v12, %v8607_v34  ;;  %v6259_v22 = vadd.f32 %v4498_v19, %v8588_v23  ;;  %v4664_v36 = vpack.c.bf16 %v4645_v55, %v4644_v8  ;;  %v6696_v12 = vld [vmem:[%s7386_s8 + $0x38] sm:$0xff] }
 0x43b   : > { %v4618_v62 = vadd.f32 %v8612_v3, %v4579_v25  ;;  %v4580_v33 = vmul.f32 %v6258_v41, %v8607_v34  ;;  %v6697_v41 = vld [vmem:[%s7386_s8 + $0x28] sm:$0xff] }
 0x43c   : > { %v4616_v11 = vadd.f32 %v8612_v3, %v4577_v57  ;;  %v4578_v21 = vmul.f32 %v6259_v22, %v8607_v34  ;;  %6204 = vmatprep.mubr.bf16.mxu0 %v4664_v36  ;;  %v8704_v34 = vld [vmem:[%s9220_s28] ss:$0 sm:$0xff] }
 0x43d   : > { %v4619_v40 = vadd.f32 %v8612_v3, %v4580_v33  ;;  %6205 = vmatmul.mubr.bf16.gmra.mrb[92].mxu0 %v4665_v60  ;;  %v4650_v13 = vmax.f32 %v4618_v62, 0.0 }
 0x43e   : > { %v4617_v0 = vadd.f32 %v8612_v3, %v4578_v21  ;;  %v4648_v9 = vmax.f32 %v4616_v11, 0.0  ;;  %v8709_v3 = vld [vmem:[%s9221_s29] ss:$0 sm:$0xff] }
 0x43f   : > { %v4651_v49 = vmax.f32 %v4619_v40, 0.0 }
 0x440   : > { %v4649_v39 = vmax.f32 %v4617_v0, 0.0 }
 0x441   : > { %v4667_v23 = vpack.c.bf16 %v4651_v49, %v4650_v13 }
 0x442   : > { %v4666_v32 = vpack.c.bf16 %v4649_v39, %v4648_v9  ;;  %v6698_v9 = vld [vmem:[%s7386_s8 + $0x50] sm:$0xff] }
 0x444   : > { %6208 = vmatprep.mubr.bf16.mxu0 %v4666_v32  ;;  %v6699_v32 = vld [vmem:[%s7386_s8 + $0x40] sm:$0xff] }
 0x445   : > { %6209 = vmatmul.mubr.bf16.gmra.mrb[96].mxu0 %v4667_v23 }
 0x4e0   : > { %v6182_v31 = vpop.f32.mrb[68].mxu0 }
 0x4e1   : > { %v4902_v14 = vmul.f32 %v6182_v31, %v8704_v34  ;;  %v4766_v38 = vpop.f32.mrb[69].mxu0 }
 0x4e2   : > { %v4900_v20 = vmul.f32 %v8704_v34, %v4766_v38  ;;  %v6183_v44 = vpop.f32.mrb[70].mxu0 }
 0x4e3   : > { %v4941_v48 = vadd.f32 %v8709_v3, %v4902_v14  ;;  %v4903_v10 = vmul.f32 %v6183_v44, %v8704_v34  ;;  %v4769_v24 = vpop.f32.mrb[71].mxu0 }
 0x4e4   : > { %v4939_v6 = vadd.f32 %v8709_v3, %v4900_v20  ;;  %v4901_v15 = vmul.f32 %v8704_v34, %v4769_v24  ;;  %v6700_v20 = vld [vmem:[%s7386_s8 + $0x58] sm:$0xff] }
 0x4e5   : > { %v4973_v27 = vadd.f32 %v6690_v53, %v4941_v48  ;;  %v4942_v1 = vadd.f32 %v8709_v3, %v4903_v10  ;;  %v6701_v10 = vld [vmem:[%s7386_s8 + $0x48] sm:$0xff] }
 0x4e6   : > { %v4971_v7 = vadd.f32 %v6691_v54, %v4939_v6  ;;  %v4940_v35 = vadd.f32 %v8709_v3, %v4901_v15 }
 0x4e7   : > { %v5005_v63 = vmax.f32 %v4973_v27, 0.0  ;;  %v4974_v2 = vadd.f32 %v6692_v61, %v4942_v1 }
 0x4e8   : > { %v5003_v51 = vmax.f32 %v4971_v7, 0.0  ;;  %v4972_v26 = vadd.f32 %v6693_v5, %v4940_v35  ;;  %v6186_v52 = vpop.f32.mrb[72].mxu0  ;;  %v6702_v5 = vld [vmem:[%s7386_s8 + $0x70] sm:$0xff] }
 0x4e9   : > { %5037 = vst [vmem:[%s8725_s3 + $0x10] sm:$0xff] %v5005_v63  ;;  %v5006_v59 = vmax.f32 %v4974_v2, 0.0  ;;  %v4906_v42 = vmul.f32 %v6186_v52, %v8704_v34  ;;  %v4782_v18 = vpop.f32.mrb[73].mxu0 }
 0x4ea   : > { %5035 = vst [vmem:[%s8725_s3] sm:$0xff] %v5003_v51  ;;  %v5004_v43 = vmax.f32 %v4972_v26, 0.0  ;;  %v4904_v28 = vmul.f32 %v8704_v34, %v4782_v18  ;;  %v6187_v30 = vpop.f32.mrb[74].mxu0 }
 0x4eb   : > { %5038 = vst [vmem:[%s8725_s3 + $0x18] sm:$0xff] %v5006_v59  ;;  %v4945_v46 = vadd.f32 %v8709_v3, %v4906_v42  ;;  %v4907_v4 = vmul.f32 %v6187_v30, %v8704_v34  ;;  %v4785_v45 = vpop.f32.mrb[75].mxu0  ;;  %v6703_v59 = vld [vmem:[%s7386_s8 + $0x60] sm:$0xff] }
 0x4ec   : > { %5036 = vst [vmem:[%s8725_s3 + $0x8] sm:$0xff] %v5004_v43  ;;  %v4943_v56 = vadd.f32 %v8709_v3, %v4904_v28  ;;  %v4905_v58 = vmul.f32 %v8704_v34, %v4785_v45  ;;  %v6704_v28 = vld [vmem:[%s7386_s8 + $0x78] sm:$0xff] }
 0x4ed   : > { %v4977_v17 = vadd.f32 %v6694_v50, %v4945_v46  ;;  %v4946_v37 = vadd.f32 %v8709_v3, %v4907_v4  ;;  %v6705_v4 = vld [vmem:[%s7386_s8 + $0x68] sm:$0xff] }
 0x4ee   : > { %v4975_v29 = vadd.f32 %v6695_v47, %v4943_v56  ;;  %v4944_v8 = vadd.f32 %v8709_v3, %v4905_v58 }
 0x4ef   : > { %v5009_v55 = vmax.f32 %v4977_v17, 0.0  ;;  %v4978_v16 = vadd.f32 %v6696_v12, %v4946_v37 }
 0x4f0   : > { %v5007_v25 = vmax.f32 %v4975_v29, 0.0  ;;  %v4976_v19 = vadd.f32 %v6697_v41, %v4944_v8  ;;  %v6190_v60 = vpop.f32.mrb[76].mxu0  ;;  %v6706_v41 = vld [vmem:[%s7386_s8 + $0x90] sm:$0xff] }
 0x4f1   : > { %5041 = vst [vmem:[%s8725_s3 + $0x30] sm:$0xff] %v5009_v55  ;;  %v5010_v57 = vmax.f32 %v4978_v16, 0.0  ;;  %v4910_v22 = vmul.f32 %v6190_v60, %v8704_v34  ;;  %v4798_v36 = vpop.f32.mrb[77].mxu0 }
 0x4f2   : > { %5039 = vst [vmem:[%s8725_s3 + $0x20] sm:$0xff] %v5007_v25  ;;  %v5008_v62 = vmax.f32 %v4976_v19, 0.0  ;;  %v4908_v33 = vmul.f32 %v8704_v34, %v4798_v36  ;;  %v6191_v11 = vpop.f32.mrb[78].mxu0 }
 0x4f3   : > { %5042 = vst [vmem:[%s8725_s3 + $0x38] sm:$0xff] %v5010_v57  ;;  %v4949_v21 = vadd.f32 %v8709_v3, %v4910_v22  ;;  %v4911_v40 = vmul.f32 %v6191_v11, %v8704_v34  ;;  %v4801_v0 = vpop.f32.mrb[79].mxu0  ;;  %v6707_v57 = vld [vmem:[%s7386_s8 + $0x80] sm:$0xff] }
 0x4f4   : > { %5040 = vst [vmem:[%s8725_s3 + $0x28] sm:$0xff] %v5008_v62  ;;  %v4947_v13 = vadd.f32 %v8709_v3, %v4908_v33  ;;  %v4909_v49 = vmul.f32 %v8704_v34, %v4801_v0  ;;  %v6708_v33 = vld [vmem:[%s7386_s8 + $0x98] sm:$0xff] }
 0x4f5   : > { %v4981_v39 = vadd.f32 %v6698_v9, %v4949_v21  ;;  %v4950_v23 = vadd.f32 %v8709_v3, %v4911_v40  ;;  %v6709_v40 = vld [vmem:[%s7386_s8 + $0x88] sm:$0xff] }
 0x4f6   : > { %v4979_v31 = vadd.f32 %v6699_v32, %v4947_v13  ;;  %v4948_v14 = vadd.f32 %v8709_v3, %v4909_v49 }
 0x4f7   : > { %v5013_v38 = vmax.f32 %v4981_v39, 0.0  ;;  %v4982_v44 = vadd.f32 %v6700_v20, %v4950_v23 }
 0x4f8   : > { %v5011_v48 = vmax.f32 %v4979_v31, 0.0  ;;  %v4980_v24 = vadd.f32 %v6701_v10, %v4948_v14  ;;  %v6194_v6 = vpop.f32.mrb[80].mxu0  ;;  %v6710_v10 = vld [vmem:[%s7386_s8 + $0xb0] sm:$0xff] }
 0x4f9   : > { %5045 = vst [vmem:[%s8725_s3 + $0x50] sm:$0xff] %v5013_v38  ;;  %v5014_v15 = vmax.f32 %v4982_v44, 0.0  ;;  %v4914_v53 = vmul.f32 %v6194_v6, %v8704_v34  ;;  %v4814_v27 = vpop.f32.mrb[81].mxu0 }
 0x4fa   : > { %5043 = vst [vmem:[%s8725_s3 + $0x40] sm:$0xff] %v5011_v48  ;;  %v5012_v1 = vmax.f32 %v4980_v24, 0.0  ;;  %v4912_v54 = vmul.f32 %v8704_v34, %v4814_v27  ;;  %v6195_v7 = vpop.f32.mrb[82].mxu0 }
 0x4fb   : > { %5046 = vst [vmem:[%s8725_s3 + $0x58] sm:$0xff] %v5014_v15  ;;  %v4953_v35 = vadd.f32 %v8709_v3, %v4914_v53  ;;  %v4915_v63 = vmul.f32 %v6195_v7, %v8704_v34  ;;  %v4817_v61 = vpop.f32.mrb[83].mxu0  ;;  %v6711_v15 = vld [vmem:[%s7386_s8 + $0xa0] sm:$0xff] }
 0x4fc   : > { %5044 = vst [vmem:[%s8725_s3 + $0x48] sm:$0xff] %v5012_v1  ;;  %v4951_v2 = vadd.f32 %v8709_v3, %v4912_v54  ;;  %v4913_v51 = vmul.f32 %v8704_v34, %v4817_v61  ;;  %v6712_v54 = vld [vmem:[%s7386_s8 + $0xb8] sm:$0xff] }
 0x4fd   : > { %v4985_v26 = vadd.f32 %v6702_v5, %v4953_v35  ;;  %v4954_v52 = vadd.f32 %v8709_v3, %v4915_v63  ;;  %v6713_v63 = vld [vmem:[%s7386_s8 + $0xa8] sm:$0xff] }
 0x4fe   : > { %v4983_v42 = vadd.f32 %v6703_v59, %v4951_v2  ;;  %v4952_v18 = vadd.f32 %v8709_v3, %v4913_v51 }
 0x4ff   : > { %v5017_v43 = vmax.f32 %v4985_v26, 0.0  ;;  %v4986_v30 = vadd.f32 %v6704_v28, %v4954_v52 }
 0x500   : > { %v5015_v46 = vmax.f32 %v4983_v42, 0.0  ;;  %v4984_v45 = vadd.f32 %v6705_v4, %v4952_v18  ;;  %v6198_v56 = vpop.f32.mrb[84].mxu0  ;;  %v6714_v4 = vld [vmem:[%s7386_s8 + $0xd0] sm:$0xff] }
 0x501   : > { %5049 = vst [vmem:[%s8725_s3 + $0x70] sm:$0xff] %v5017_v43  ;;  %v5018_v58 = vmax.f32 %v4986_v30, 0.0  ;;  %v4918_v50 = vmul.f32 %v6198_v56, %v8704_v34  ;;  %v4830_v17 = vpop.f32.mrb[85].mxu0 }
 0x502   : > { %5047 = vst [vmem:[%s8725_s3 + $0x60] sm:$0xff] %v5015_v46  ;;  %v5016_v37 = vmax.f32 %v4984_v45, 0.0  ;;  %v4916_v47 = vmul.f32 %v8704_v34, %v4830_v17  ;;  %v6199_v29 = vpop.f32.mrb[86].mxu0 }
 0x503   : > { %5050 = vst [vmem:[%s8725_s3 + $0x78] sm:$0xff] %v5018_v58  ;;  %v4957_v8 = vadd.f32 %v8709_v3, %v4918_v50  ;;  %v4919_v55 = vmul.f32 %v6199_v29, %v8704_v34  ;;  %v4833_v12 = vpop.f32.mrb[87].mxu0  ;;  %v6715_v58 = vld [vmem:[%s7386_s8 + $0xc0] sm:$0xff] }
 0x504   : > { %5048 = vst [vmem:[%s8725_s3 + $0x68] sm:$0xff] %v5016_v37  ;;  %v4955_v16 = vadd.f32 %v8709_v3, %v4916_v47  ;;  %v4917_v25 = vmul.f32 %v8704_v34, %v4833_v12  ;;  %v6716_v47 = vld [vmem:[%s7386_s8 + $0xd8] sm:$0xff] }
 0x505   : > { %v4989_v19 = vadd.f32 %v6706_v41, %v4957_v8  ;;  %v4958_v60 = vadd.f32 %v8709_v3, %v4919_v55  ;;  %v6717_v55 = vld [vmem:[%s7386_s8 + $0xc8] sm:$0xff] }
 0x506   : > { %v4987_v22 = vadd.f32 %v6707_v57, %v4955_v16  ;;  %v4956_v36 = vadd.f32 %v8709_v3, %v4917_v25 }
 0x507   : > { %v5021_v62 = vmax.f32 %v4989_v19, 0.0  ;;  %v4990_v11 = vadd.f32 %v6708_v33, %v4958_v60 }
 0x508   : > { %v5019_v21 = vmax.f32 %v4987_v22, 0.0  ;;  %v4988_v0 = vadd.f32 %v6709_v40, %v4956_v36  ;;  %v6202_v13 = vpop.f32.mrb[88].mxu0  ;;  %v6718_v40 = vld [vmem:[%s7386_s8 + $0xf0] sm:$0xff] }
 0x509   : > { %5053 = vst [vmem:[%s8725_s3 + $0x90] sm:$0xff] %v5021_v62  ;;  %v5022_v49 = vmax.f32 %v4990_v11, 0.0  ;;  %v4922_v9 = vmul.f32 %v6202_v13, %v8704_v34  ;;  %v4846_v39 = vpop.f32.mrb[89].mxu0 }
 0x50a   : > { %5051 = vst [vmem:[%s8725_s3 + $0x80] sm:$0xff] %v5019_v21  ;;  %v5020_v23 = vmax.f32 %v4988_v0, 0.0  ;;  %v4920_v32 = vmul.f32 %v8704_v34, %v4846_v39  ;;  %v6203_v31 = vpop.f32.mrb[90].mxu0 }
 0x50b   : > { %5054 = vst [vmem:[%s8725_s3 + $0x98] sm:$0xff] %v5022_v49  ;;  %v4961_v14 = vadd.f32 %v8709_v3, %v4922_v9  ;;  %v4923_v38 = vmul.f32 %v6203_v31, %v8704_v34  ;;  %v4849_v20 = vpop.f32.mrb[91].mxu0  ;;  %v6719_v49 = vld [vmem:[%s7386_s8 + $0xe0] sm:$0xff] }
 0x50c   : > { %5052 = vst [vmem:[%s8725_s3 + $0x88] sm:$0xff] %v5020_v23  ;;  %v4959_v44 = vadd.f32 %v8709_v3, %v4920_v32  ;;  %v4921_v48 = vmul.f32 %v8704_v34, %v4849_v20  ;;  %v6720_v32 = vld [vmem:[%s7386_s8 + $0xf8] sm:$0xff] }
 0x50d   : > { %v4993_v24 = vadd.f32 %v6710_v10, %v4961_v14  ;;  %v4962_v6 = vadd.f32 %v8709_v3, %v4923_v38 }
 0x50e   : > { %v4991_v53 = vadd.f32 %v6711_v15, %v4959_v44  ;;  %v4960_v27 = vadd.f32 %v8709_v3, %v4921_v48 }
 0x50f   : > { %v5025_v1 = vmax.f32 %v4993_v24, 0.0  ;;  %v4994_v7 = vadd.f32 %v6712_v54, %v4962_v6 }
 0x510   : > { %v5023_v35 = vmax.f32 %v4991_v53, 0.0  ;;  %v4992_v61 = vadd.f32 %v6713_v63, %v4960_v27  ;;  %v6206_v2 = vpop.f32.mrb[92].mxu0 }
 0x511   : > { %5057 = vst [vmem:[%s8725_s3 + $0xb0] sm:$0xff] %v5025_v1  ;;  %v5026_v51 = vmax.f32 %v4994_v7, 0.0  ;;  %v4926_v5 = vmul.f32 %v6206_v2, %v8704_v34  ;;  %v4862_v26 = vpop.f32.mrb[93].mxu0 }
 0x512   : > { %5055 = vst [vmem:[%s8725_s3 + $0xa0] sm:$0xff] %v5023_v35  ;;  %v5024_v52 = vmax.f32 %v4992_v61, 0.0  ;;  %v4924_v59 = vmul.f32 %v8704_v34, %v4862_v26  ;;  %v6207_v42 = vpop.f32.mrb[94].mxu0 }
 0x513   : > { %5058 = vst [vmem:[%s8725_s3 + $0xb8] sm:$0xff] %v5026_v51  ;;  %v4965_v18 = vadd.f32 %v8709_v3, %v4926_v5  ;;  %v4927_v43 = vmul.f32 %v6207_v42, %v8704_v34  ;;  %v4865_v28 = vpop.f32.mrb[95].mxu0 }
 0x514   : > { %5056 = vst [vmem:[%s8725_s3 + $0xa8] sm:$0xff] %v5024_v52  ;;  %v4963_v30 = vadd.f32 %v8709_v3, %v4924_v59  ;;  %v4925_v46 = vmul.f32 %v8704_v34, %v4865_v28 }
 0x515   : > { %v4997_v45 = vadd.f32 %v6714_v4, %v4965_v18  ;;  %v4966_v56 = vadd.f32 %v8709_v3, %v4927_v43 }
 0x516   : > { %v4995_v50 = vadd.f32 %v6715_v58, %v4963_v30  ;;  %v4964_v17 = vadd.f32 %v8709_v3, %v4925_v46 }
 0x517   : > { %v5029_v37 = vmax.f32 %v4997_v45, 0.0  ;;  %v4998_v29 = vadd.f32 %v6716_v47, %v4966_v56 }
 0x518   : > { %v5027_v8 = vmax.f32 %v4995_v50, 0.0  ;;  %v4996_v12 = vadd.f32 %v6717_v55, %v4964_v17  ;;  %v6210_v16 = vpop.f32.mrb[96].mxu0 }
 0x519   : > { %5061 = vst [vmem:[%s8725_s3 + $0xd0] sm:$0xff] %v5029_v37  ;;  %v5030_v25 = vmax.f32 %v4998_v29, 0.0  ;;  %v4930_v41 = vmul.f32 %v6210_v16, %v8704_v34  ;;  %v4878_v19 = vpop.f32.mrb[97].mxu0 }
 0x51a   : > { %5059 = vst [vmem:[%s8725_s3 + $0xc0] sm:$0xff] %v5027_v8  ;;  %v5028_v60 = vmax.f32 %v4996_v12, 0.0  ;;  %v4928_v57 = vmul.f32 %v8704_v34, %v4878_v19  ;;  %v6211_v22 = vpop.f32.mrb[98].mxu0 }
 0x51b   : > { %5062 = vst [vmem:[%s8725_s3 + $0xd8] sm:$0xff] %v5030_v25  ;;  %v4969_v36 = vadd.f32 %v8709_v3, %v4930_v41  ;;  %v4931_v62 = vmul.f32 %v6211_v22, %v8704_v34  ;;  %v4881_v33 = vpop.f32.mrb[99].mxu0 }
 0x51c   : > { %5060 = vst [vmem:[%s8725_s3 + $0xc8] sm:$0xff] %v5028_v60  ;;  %v4967_v11 = vadd.f32 %v8709_v3, %v4928_v57  ;;  %v4929_v21 = vmul.f32 %v8704_v34, %v4881_v33  ;;  %v6721_v34 = vld [vmem:[%s7386_s8 + $0xe8] sm:$0xff]  ;;  %s7003_s8 = smov [#allocation13]  }
 0x51d   : > { %v5001_v0 = vadd.f32 %v6718_v40, %v4969_v36  ;;  %v4970_v13 = vadd.f32 %v8709_v3, %v4931_v62  ;;  %s6900_s20 = sshll.u32 %s7003_s8, 4  ;;  %s6901_s20 = int_to_ptr.vmem [resolvable:$false] %s6900_s20 }
 0x51e   : > { %v4999_v9 = vadd.f32 %v6719_v49, %v4967_v11  ;;  %v4968_v39 = vadd.f32 %v8709_v3, %v4929_v21  ;;  %s6902_s7 = scalar_lea.vmem %s6901_s20, 8192  ;;  %p6903_p13 = scmp.lt.s32.totalorder %s8847_s15, %s6901_s20 }
 0x51f   : > { %v5033_v23 = vmax.f32 %v5001_v0, 0.0  ;;  %v5002_v31 = vadd.f32 %v6720_v32, %v4970_v13  ;;  %p6904_p5 = scmp.lt.s32.totalorder %s6902_s7, %s6896_s25 }
 0x520   : > { %v5031_v14 = vmax.f32 %v4999_v9, 0.0  ;;  %v5000_v38 = vadd.f32 %v6721_v34, %v4968_v39 }
 0x521   : > { %5065 = vst [vmem:[%s8725_s3 + $0xf0] sm:$0xff] %v5033_v23  ;;  %v5034_v20 = vmax.f32 %v5002_v31, 0.0  ;;  %p6905_p3 = por %p6904_p5, %p6903_p13 }
 0x522   : > { %5063 = vst [vmem:[%s8725_s3 + $0xe0] sm:$0xff] %v5031_v14  ;;  %v5032_v3 = vmax.f32 %v5000_v38, 0.0 }
 0x523   : > { %5066 = vst [vmem:[%s8725_s3 + $0xf8] sm:$0xff] %v5034_v20  ;;  %p6906_p6 = pnand %p6905_p3, %p6899_p0 }
 0x524   : > { %5064 = vst [vmem:[%s8725_s3 + $0xe8] sm:$0xff] %v5032_v3 }
 0x525   : > { %6909 = shalt.err (!%p6906_p6)
}
 0x526   : > { %s6910_s26 = scalar_lea.hbm %s8845_s1, 4096  ;;  %s6914_s12 = scalar_lea.hbm %s9224_s30, 8192 }
 0x527   : > { %p6911_p7 = scmp.ne.s32.totalorder %s8845_s1, %s6910_s26  ;;  %p6915_p4 = scmp.lt.u32.totalorder %s8845_s1, %s9224_s30 }
 0x528   : > { %p6916_p12 = scmp.lt.u32.totalorder %s6914_s12, %s6910_s26  ;;  %p6918_p11 = scmp.lt.u32.totalorder %s6910_s26, %s8845_s1 }
 0x529   : > { %p6912_p9 = pnand %p6911_p7, %p9225_p10 }
 0x52a   : > { %p6917_p2 = por %p6916_p12, %p6915_p4 }
 0x52b   : > { %p6913_p8 = pneg %p6912_p9 }
 0x52c   : > { %p6919_p1 = por %p6918_p11, %p6917_p2 }
 0x52e   : > { %p6920_p0 = pnand %p6919_p1, %p6913_p8 }
 0x530   : > { %6923 = shalt.err (!%p6920_p0)
}
 0x531   : > { %s7004_s17 = smov 128   ;;  %s7005_s24 = smov 8  }
 0x532   : > { %6502 = dma.vmem_to_hbm [thread:$0]  (%p9225_p10), %s8847_s15, 4096, %s8845_s1, %s5068_s11, %s7004_s17, %s7004_s17, %s7005_s24  }
 0x533 PF: > { %s9226_s29 = sld [smem:[#allocation19_spill]]  ;;  %s9227_s3 = sld [smem:[#allocation25_spill]] }
 0x534   : > { %s9228_s16 = sld [smem:[#allocation23_spill]] }
 0x539   : > { %s5099_s10 = sand.u32 1, %s9226_s29   ;;  %p9229_p13 = scmp.ne.s32.totalorder %s9227_s3, 0 }
 0x53a   : > { %p9230_p5 = scmp.ge.s32.totalorder %s9228_s16, 2  ;;  %s5100_s18 = scalar_lea.sflag [#allocation4], %s5099_s10 }
 0x53c   : > { %p6525_p3 = pnand %p9230_p5, %p9229_p13 }
 0x53e   : > { %6965 = dma.done.wait (!%p6525_p3), %s5100_s18, 4096  }
 0x53f   : > { %6967 = vsyncadd (!%p6525_p3), %s5100_s18, 4294963200  ;;  %s33_s26 = sadd.s32 1, %s9228_s16   ;;  %s9231_s27 = sld [smem:[#allocation20_spill]] }
 0x540   : > { %p30_p6 = scmp.ge.s32.totalorder %s33_s26, 4   ;;  %s9232_s23 = sld [smem:[#allocation27_spill]] }
 0x541   : > { %s9233_s24 = sld [smem:[#allocation22_spill]]  ;;  %s9234_s25 = sld [smem:[#allocation26_spill]] }
 0x542   : > { %s9235_s21 = smov %s6974_s22  ;;  %32 = sbr.rel (!%p30_p6) target bundleno = 18 (0x12), region = 157 }
 0x545   : > { %s9236_s22 = smov %s9231_s27 }
 0x549   :  { %5105 = vsyncpa [#allocation3], 1 }
 0x54a   :  { %5107 = vsyncpa [#allocation3 + $0x1], 1 }
 0x54b   :  { %5108 = vsyncpa [#allocation6], 1 }
 0x54c   :  { %5110 = vsyncpa [#allocation6 + $0x1], 1 }
 0x54d   :  { %5111 = vsyncpa [#allocation9], 1 }
 0x54e   :  { %5112 = vsyncpa [#allocation12], 1 }
 0x54f   :  { %5113 = vsyncpa [#allocation4], 1 }
 0x550   :  { %5115 = vsyncpa [#allocation4 + $0x1], 1 }

</bundles_post_ra>
